<compile_context>
chip_gen: v7x
topology: tpu7x:2x2x1
jax: 0.10.0
libtpu: 0.0.40
codegen_flags: <defaults>
</compile_context>

<pallas_src>
import math

import jax
import jax.numpy as jnp
from jax.experimental import pallas as pl
from jax.experimental.pallas import tpu as pltpu

# ----------------------- model configuration (small) -----------------------
IMG_SIZE = 32          # input image is 3 x 32 x 32
PATCH = 4              # patch size for the tiny ViT image encoder
EMBED_DIM = 32         # transformer / prompt embedding dim
EMB_H = EMB_W = IMG_SIZE // PATCH   # 8 x 8 image embedding
N_PIX = EMB_H * EMB_W               # 64 image tokens
NUM_HEADS = 2
NUM_MASK_TOKENS = 4    # 3 multimask tokens + 1
N_TOKENS = 1 + NUM_MASK_TOKENS + 2  # iou + mask tokens + 2 box corners = 7
UP_C1 = EMBED_DIM // 4              # channels after first upsample (8)
UP_C2 = EMBED_DIM // 8              # channels after second upsample (4)
HD_ENC = EMBED_DIM // NUM_HEADS            # head dim, encoder / self-attn (16)
HD_DEC = (EMBED_DIM // 2) // NUM_HEADS     # head dim, decoder cross-attn (8)
PACK_LANES = 128       # lane width of the packed weight buffer


# --------------------- packed weight buffer layout (static) ---------------------

def _pack_entries():
    C = EMBED_DIM
    D = C // 2
    e = []
    # tiny ViT image encoder (patch embed + 1 block + neck)
    e += [("patch_w", 3 * PATCH * PATCH, C), ("patch_b", 1, C),
          ("pos_embed", N_PIX, C), ("e_ln1", 2, C)]
    e += [("e_attn_wqkv", C, 3 * C), ("e_attn_bqkv", 1, 3 * C),
          ("e_attn_wo", C, C), ("e_attn_bo", 1, C)]
    e += [("e_ln2", 2, C), ("e_fc1_w", C, 2 * C), ("e_fc1_b", 1, 2 * C),
          ("e_fc2_w", 2 * C, C), ("e_fc2_b", 1, C)]
    e += [("neck_ln", 2, C), ("neck_w", C, C), ("neck_b", 1, C)]
    # prompt encoder (dense "no mask" embedding)
    e += [("no_mask_embed", 1, C)]
    # mask decoder: two-way transformer
    e += [("sa_wqkv", C, 3 * C), ("sa_bqkv", 1, 3 * C),
          ("sa_wo", C, C), ("sa_bo", 1, C), ("d_n1", 2, C)]
    for pre in ("t2i", "i2t", "fa"):
        e += [(pre + "_wq", C, D), (pre + "_wk", C, D), (pre + "_wv", C, D),
              (pre + "_bq", 1, D), (pre + "_bk", 1, D), (pre + "_bv", 1, D),
              (pre + "_wo", D, C), (pre + "_bo", 1, C)]
    e += [("d_n2", 2, C), ("d_mlp_w1", C, 2 * C), ("d_mlp_b1", 1, 2 * C),
          ("d_mlp_w2", 2 * C, C), ("d_mlp_b2", 1, C),
          ("d_n3", 2, C), ("d_n4", 2, C), ("d_nf", 2, C)]
    # upscaling head (both ConvTranspose2d fused over kernel positions/channels)
    e += [("up1_w", C, 4 * UP_C1), ("up1_b", 1, 4 * UP_C1),
          ("up_ln", 2, 4 * UP_C1), ("m8", 4 * UP_C1, 4 * UP_C1),
          ("up2_w", 4 * UP_C1, 16 * UP_C2), ("up2_b", 1, 16 * UP_C2),
          ("e4", UP_C2, 16 * UP_C2), ("p16", 16, 16 * UP_C2)]
    # hypernetwork MLP for mask token 0
    e += [("hyp_w1", C, C), ("hyp_b1", 1, C), ("hyp_w2", C, C),
          ("hyp_b2", 1, C), ("hyp_w3", C, UP_C2), ("hyp_b3", 1, UP_C2)]
    # IoU prediction head
    e += [("iou_w1", C, 2 * C), ("iou_b1", 1, 2 * C),
          ("iou_w2", 2 * C, 2 * C), ("iou_b2", 1, 2 * C),
          ("iou_w3", 2 * C, NUM_MASK_TOKENS), ("iou_b3", 1, NUM_MASK_TOKENS)]
    return e


def _build_layout():
    layout = {}
    off = 0
    for name, r, c in _pack_entries():
        layout[name] = (off, r, c)
        off += -(-r // 8) * 8          # keep every block 8-row aligned
    return layout, off


_LAYOUT, _PACK_ROWS = _build_layout()


def pack_weights(wdict):
    """Pack all weights into one (ROWS, 128) f32 buffer (host side, one-time)."""
    buf = jnp.zeros((_PACK_ROWS, PACK_LANES), jnp.float32)
    for name, (off, r, c) in _LAYOUT.items():
        a = jnp.asarray(wdict[name], jnp.float32)
        assert a.shape == (r, c), (name, a.shape, (r, c))
        buf = buf.at[off:off + r, 0:c].set(a)
    return buf


# --------------------------- in-kernel primitives ---------------------------

def _w(w_ref, name):
    off, r, c = _LAYOUT[name]
    return w_ref[off:off + r, 0:c]


def _gelu(x):
    # tanh-approx GELU (EUP-friendly); differs from exact-erf GELU by <1e-3.
    c = 0.7978845608028654  # sqrt(2/pi)
    return 0.5 * x * (1.0 + jnp.tanh(c * (x + 0.044715 * x * x * x)))


def _dot(a, b):
    return jnp.dot(a, b, preferred_element_type=jnp.float32)


# ----------------------------- the fused kernel -----------------------------

def _fused_medsam_kernel(patches_ref, pos_ref, tok_ref, w_ref,
                         masks_ref, iou_ref):
    W = lambda name: _w(w_ref, name)

    def ln(x, name, eps=1e-5):
        p = W(name)                                   # (2, C) = [gamma; beta]
        m = jnp.mean(x, axis=-1, keepdims=True)
        v = jnp.mean(jnp.square(x - m), axis=-1, keepdims=True)
        return (x - m) * jax.lax.rsqrt(v + eps) * p[0:1] + p[1:2]

    def attend(q, k, v, hd, pre):
        # q/k/v: (T, nh*hd) head-fused projections; per-head QK^T / PV only.
        scale = 1.0 / math.sqrt(hd)
        outs = []
        for h in range(NUM_HEADS):
            sl = slice(h * hd, (h + 1) * hd)
            s = jax.lax.dot_general(q[:, sl], k[:, sl],
                                    (((1,), (1,)), ((), ())),
                                    preferred_element_type=jnp.float32) * scale
            s = s - jnp.max(s, axis=-1, keepdims=True)
            e = jnp.exp(s)
            p = e * pl.reciprocal(jnp.sum(e, axis=-1, keepdims=True),
                                  approx=True)
            outs.append(_dot(p, v[:, sl]))
        o = jnp.concatenate(outs, axis=-1)            # (T, nh*hd)
        return _dot(o, W(pre + "_wo")) + W(pre + "_bo")

    def mha_self(x, pre, hd):                         # q == k == v
        d = NUM_HEADS * hd
        qkv = _dot(x, W(pre + "_wqkv")) + W(pre + "_bqkv")
        return attend(qkv[:, 0:d], qkv[:, d:2 * d], qkv[:, 2 * d:3 * d], hd, pre)

    def mha_cross(qx, kx, vx, pre, hd):
        q = _dot(qx, W(pre + "_wq")) + W(pre + "_bq")
        k = _dot(kx, W(pre + "_wk")) + W(pre + "_bk")
        v = _dot(vx, W(pre + "_wv")) + W(pre + "_bv")
        return attend(q, k, v, hd, pre)

    # ---------------- tiny ViT image encoder ----------------
    x = _dot(patches_ref[0], W("patch_w")) + W("patch_b") + W("pos_embed")
    h = ln(x, "e_ln1")
    x = x + mha_self(h, "e_attn", HD_ENC)
    h = ln(x, "e_ln2")
    h = _gelu(_dot(h, W("e_fc1_w")) + W("e_fc1_b"))
    x = x + _dot(h, W("e_fc2_w")) + W("e_fc2_b")
    x = ln(x, "neck_ln")
    img = _dot(x, W("neck_w")) + W("neck_b")                       # (N, C)

    # ---------------- mask decoder: two-way transformer ----------------
    tok = tok_ref[0]                       # (7, C)  prompt / output tokens
    pos = pos_ref[...]                     # (N, C)  dense positional encoding
    keys = img + W("no_mask_embed")        # dense ("no mask") prompt embedding

    # TwoWayAttentionBlock (depth=1, skip_first_layer_pe=True)
    queries = ln(mha_self(tok, "sa", HD_ENC), "d_n1")
    q = queries + tok
    k = keys + pos
    queries = ln(queries + mha_cross(q, k, keys, "t2i", HD_DEC), "d_n2")
    m = jnp.maximum(_dot(queries, W("d_mlp_w1")) + W("d_mlp_b1"), 0.0)
    m = _dot(m, W("d_mlp_w2")) + W("d_mlp_b2")
    queries = ln(queries + m, "d_n3")
    q = queries + tok
    k = keys + pos
    keys = ln(keys + mha_cross(k, q, queries, "i2t", HD_DEC), "d_n4")
    # final token-to-image attention
    q = queries + tok
    k = keys + pos
    queries = ln(queries + mha_cross(q, k, keys, "fa", HD_DEC), "d_nf")

    # ---------------- output heads ----------------
    # hypernetwork MLP for mask token 0 (multimask_output=False)
    mask_tok = queries[1:2, :]
    t = jnp.maximum(_dot(mask_tok, W("hyp_w1")) + W("hyp_b1"), 0.0)
    t = jnp.maximum(_dot(t, W("hyp_w2")) + W("hyp_b2"), 0.0)
    hyp = _dot(t, W("hyp_w3")) + W("hyp_b3")                       # (1, UP_C2)

    # upscaling head: both ConvTranspose2d(k=2,s=2) as single matmuls with
    # kernel positions / channels stacked on lanes; grouped LayerNorm2d via a
    # block-averaging matmul (no in-kernel reshapes/transposes).
    y1 = _dot(keys, W("up1_w")) + W("up1_b")                       # (64, 32)
    m8 = W("m8")                                                   # block avg
    mu = _dot(y1, m8)
    var = _dot(y1 * y1, m8) - mu * mu
    g = W("up_ln")
    a = _gelu((y1 - mu) * jax.lax.rsqrt(var + 1e-6) * g[0:1] + g[1:2])
    z = _gelu(_dot(a, W("up2_w")) + W("up2_b"))                    # (64, 64)

    # combine over output channels with the hypernetwork weights:
    # masks[g1*4+g2, hw] = sum_c2 hyp[c2] * z[hw, c2*16 + g1*4 + g2]
    hyp_lane = _dot(hyp, W("e4"))                                  # (1, 64)
    comb = W("p16") * hyp_lane                                     # (16, 64)
    masks_ref[0] = jax.lax.dot_general(
        comb, z, (((1,), (1,)), ((), ())),
        preferred_element_type=jnp.float32)                        # (16, 64)

    # IoU prediction head
    iou_feat = queries[0:1, :]
    v = jnp.maximum(_dot(iou_feat, W("iou_w1")) + W("iou_b1"), 0.0)
    v = jnp.maximum(_dot(v, W("iou_w2")) + W("iou_b2"), 0.0)
    iou_ref[0] = _dot(v, W("iou_w3")) + W("iou_b3")


def _fused_pallas_forward(wpack, patches, pos_tok, tokens):
    B = patches.shape[0]
    in_specs = [
        pl.BlockSpec((1, N_PIX, 3 * PATCH * PATCH), lambda b: (b, 0, 0)),
        pl.BlockSpec((N_PIX, EMBED_DIM), lambda b: (0, 0)),
        pl.BlockSpec((1, N_TOKENS, EMBED_DIM), lambda b: (b, 0, 0)),
        pl.BlockSpec((_PACK_ROWS, PACK_LANES), lambda b: (0, 0)),
    ]
    out_shape = (jax.ShapeDtypeStruct((B, 16, N_PIX), jnp.float32),
                 jax.ShapeDtypeStruct((B, 1, NUM_MASK_TOKENS), jnp.float32))
    out_specs = (pl.BlockSpec((1, 16, N_PIX), lambda b: (b, 0, 0)),
                 pl.BlockSpec((1, 1, NUM_MASK_TOKENS), lambda b: (b, 0, 0)))

    weight_bytes = 4 * _PACK_ROWS * PACK_LANES
    io_bytes = 4 * (int(patches.size) + int(pos_tok.size) + int(tokens.size)
                    + B * 16 * N_PIX + B * NUM_MASK_TOKENS)
    cost = pl.CostEstimate(flops=3_400_000 * B,
                           transcendentals=25_000 * B,
                           bytes_accessed=weight_bytes + io_bytes)

    return pl.pallas_call(
        _fused_medsam_kernel,
        out_shape=out_shape,
        grid=(B,),
        in_specs=in_specs,
        out_specs=out_specs,
        compiler_params=pltpu.CompilerParams(
            dimension_semantics=("parallel",)),
        cost_estimate=cost,
    )(patches, pos_tok, tokens, wpack)


# ----------------------------- parameter setup ------------------------------

def _rnd(key, shape, std=0.02):
    return jax.random.normal(key, shape, jnp.float32) * std


def _ln2(c):
    return jnp.stack([jnp.ones((c,), jnp.float32), jnp.zeros((c,), jnp.float32)])


def init_params(key):
    keys = iter(jax.random.split(key, 64))
    nk = lambda: next(keys)
    C = EMBED_DIM
    D = C // 2
    zeros = lambda *s: jnp.zeros(s, jnp.float32)

    w = {}
    # ---- image encoder ----
    w["patch_w"] = _rnd(nk(), (3 * PATCH * PATCH, C))
    w["patch_b"] = zeros(1, C)
    w["pos_embed"] = _rnd(nk(), (N_PIX, C))
    w["e_ln1"] = _ln2(C)
    w["e_attn_wqkv"] = _rnd(nk(), (C, 3 * C))
    w["e_attn_bqkv"] = zeros(1, 3 * C)
    w["e_attn_wo"] = _rnd(nk(), (C, C))
    w["e_attn_bo"] = zeros(1, C)
    w["e_ln2"] = _ln2(C)
    w["e_fc1_w"] = _rnd(nk(), (C, 2 * C)); w["e_fc1_b"] = zeros(1, 2 * C)
    w["e_fc2_w"] = _rnd(nk(), (2 * C, C)); w["e_fc2_b"] = zeros(1, C)
    w["neck_ln"] = _ln2(C)
    w["neck_w"] = _rnd(nk(), (C, C)); w["neck_b"] = zeros(1, C)
    # ---- prompt encoder dense ("no mask") embedding ----
    w["no_mask_embed"] = _rnd(nk(), (1, C))
    # ---- mask decoder: two-way transformer ----
    w["sa_wqkv"] = _rnd(nk(), (C, 3 * C)); w["sa_bqkv"] = zeros(1, 3 * C)
    w["sa_wo"] = _rnd(nk(), (C, C)); w["sa_bo"] = zeros(1, C)
    w["d_n1"] = _ln2(C)
    for pre in ("t2i", "i2t", "fa"):        # cross attentions, downsample x2
        w[pre + "_wq"] = _rnd(nk(), (C, D))
        w[pre + "_wk"] = _rnd(nk(), (C, D))
        w[pre + "_wv"] = _rnd(nk(), (C, D))
        w[pre + "_bq"] = zeros(1, D)
        w[pre + "_bk"] = zeros(1, D)
        w[pre + "_bv"] = zeros(1, D)
        w[pre + "_wo"] = _rnd(nk(), (D, C))
        w[pre + "_bo"] = zeros(1, C)
    w["d_n2"] = _ln2(C)
    w["d_mlp_w1"] = _rnd(nk(), (C, 2 * C)); w["d_mlp_b1"] = zeros(1, 2 * C)
    w["d_mlp_w2"] = _rnd(nk(), (2 * C, C)); w["d_mlp_b2"] = zeros(1, C)
    w["d_n3"] = _ln2(C)
    w["d_n4"] = _ln2(C)
    w["d_nf"] = _ln2(C)
    # ---- upscaling head (ConvTranspose2d(k=2,s=2) x2, fused layouts) ----
    up1 = _rnd(nk(), (4, C, UP_C1))                       # [g1, Cin, C1]
    w["up1_w"] = jnp.concatenate([up1[g] for g in range(4)], axis=1)  # (C, 32)
    w["up1_b"] = zeros(1, 4 * UP_C1)
    gamma = jnp.ones((UP_C1,), jnp.float32)
    beta = jnp.zeros((UP_C1,), jnp.float32)
    w["up_ln"] = jnp.stack([jnp.tile(gamma, 4), jnp.tile(beta, 4)])   # (2, 32)
    m8 = jnp.zeros((4 * UP_C1, 4 * UP_C1), jnp.float32)   # grouped-mean matrix
    for g in range(4):
        m8 = m8.at[g * UP_C1:(g + 1) * UP_C1,
                   g * UP_C1:(g + 1) * UP_C1].set(1.0 / UP_C1)
    w["m8"] = m8
    up2 = _rnd(nk(), (UP_C2, UP_C1, 4))                   # [c2, c1, g2]
    big = jnp.zeros((4 * UP_C1, 16 * UP_C2), jnp.float32)  # block-structured
    for g1 in range(4):
        for c2 in range(UP_C2):
            col = c2 * 16 + g1 * 4
            big = big.at[g1 * UP_C1:(g1 + 1) * UP_C1, col:col + 4].set(up2[c2])
    w["up2_w"] = big
    w["up2_b"] = zeros(1, 16 * UP_C2)
    e4 = jnp.zeros((UP_C2, 16 * UP_C2), jnp.float32)      # hyp -> lanes expand
    for c2 in range(UP_C2):
        e4 = e4.at[c2, c2 * 16:(c2 + 1) * 16].set(1.0)
    w["e4"] = e4
    p16 = jnp.zeros((16, 16 * UP_C2), jnp.float32)        # channel-group select
    for c2 in range(UP_C2):
        p16 = p16.at[:, c2 * 16:(c2 + 1) * 16].set(jnp.eye(16, dtype=jnp.float32))
    w["p16"] = p16
    # ---- hypernetwork MLP for mask token 0 (C -> C -> UP_C2) ----
    w["hyp_w1"] = _rnd(nk(), (C, C)); w["hyp_b1"] = zeros(1, C)
    w["hyp_w2"] = _rnd(nk(), (C, C)); w["hyp_b2"] = zeros(1, C)
    w["hyp_w3"] = _rnd(nk(), (C, UP_C2)); w["hyp_b3"] = zeros(1, UP_C2)
    # ---- IoU prediction head: C -> 2C -> 2C -> NUM_MASK_TOKENS ----
    w["iou_w1"] = _rnd(nk(), (C, 2 * C)); w["iou_b1"] = zeros(1, 2 * C)
    w["iou_w2"] = _rnd(nk(), (2 * C, 2 * C)); w["iou_b2"] = zeros(1, 2 * C)
    w["iou_w3"] = _rnd(nk(), (2 * C, NUM_MASK_TOKENS))
    w["iou_b3"] = zeros(1, NUM_MASK_TOKENS)

    glue = {
        "pe_gauss": jax.random.normal(nk(), (2, EMBED_DIM // 2), jnp.float32),
        "point_embed": _rnd(nk(), (4, EMBED_DIM)),
        "iou_token": _rnd(nk(), (1, EMBED_DIM)),
        "mask_tokens": _rnd(nk(), (NUM_MASK_TOKENS, EMBED_DIM)),
    }
    return {"wpack": pack_weights(w), "glue": glue}


# ------------------------------- host-side glue ------------------------------

def _pe_encoding(coords01, gauss):
    c = 2.0 * coords01 - 1.0
    proj = 2.0 * jnp.pi * jnp.einsum("...i,ij->...j", c, gauss)
    return jnp.concatenate([jnp.sin(proj), jnp.cos(proj)], axis=-1)


def medsam_lite_forward(params, image, boxes):
    B = image.shape[0]
    wpack, glue = params["wpack"], params["glue"]

    # --- patchify NCHW image -> (B, N, 3*P*P) tokens (layout plumbing) ---
    x = image.reshape(B, 3, EMB_H, PATCH, EMB_W, PATCH)
    patches = x.transpose(0, 2, 4, 1, 3, 5).reshape(B, N_PIX, 3 * PATCH * PATCH)

    # --- prompt encoder: sparse box-corner embeddings (tiny sin/cos glue) ---
    coords = (boxes.reshape(B, 2, 2) + 0.5) / IMG_SIZE
    sparse = _pe_encoding(coords, glue["pe_gauss"])          # (B, 2, C)
    sparse = sparse.at[:, 0, :].add(glue["point_embed"][2])  # top-left corner
    sparse = sparse.at[:, 1, :].add(glue["point_embed"][3])  # bottom-right

    # --- dense positional encoding of the image grid (shared over batch) ---
    ys = (jnp.arange(EMB_H, dtype=jnp.float32) + 0.5) / EMB_H
    xs = (jnp.arange(EMB_W, dtype=jnp.float32) + 0.5) / EMB_W
    yy, xx = jnp.meshgrid(ys, xs, indexing="ij")
    pos_tok = _pe_encoding(jnp.stack([xx, yy], axis=-1),
                           glue["pe_gauss"]).reshape(N_PIX, EMBED_DIM)

    # --- decoder prompt tokens: [iou_token, mask_tokens, sparse] -> (B,7,C) ---
    out_tok = jnp.concatenate([glue["iou_token"], glue["mask_tokens"]], axis=0)
    tokens = jnp.concatenate(
        [jnp.broadcast_to(out_tok[None], (B,) + out_tok.shape), sparse], axis=1)

    # --- single fused Pallas kernel for encoder + decoder + heads ---
    masks_pre, iou_raw = _fused_pallas_forward(wpack, patches, pos_tok, tokens)

    # --- pixel shuffle of the (B, k1pos*k2pos, hw) kernel output ---
    m = masks_pre.reshape(B, 2, 2, 2, 2, EMB_H, EMB_W)  # (B,kh1,kw1,kh2,kw2,h,w)
    m = m.transpose(0, 5, 1, 3, 6, 2, 4).reshape(B, 4 * EMB_H, 4 * EMB_W)
    low_res_masks = m[:, None]                          # (B, 1, 4H, 4W)
    iou_pred = iou_raw[:, 0, 0:1]                       # (B, 1) multimask=False
    return low_res_masks, iou_pred

# TODO(synk): postprocess_masks (F.interpolate bilinear crop+resize) is a
# no_grad utility outside the forward pass and is not implemented here.


if __name__ == "__main__":
    key = jax.random.PRNGKey(0)
    pkey, ikey = jax.random.split(key)
    params = init_params(pkey)

    B = 2
    image = jax.random.normal(ikey, (B, 3, IMG_SIZE, IMG_SIZE), jnp.float32)
    boxes = jnp.array([[[4.0, 4.0, 20.0, 24.0]],
                       [[2.0, 6.0, 28.0, 30.0]]], jnp.float32)   # (B, 1, 4)

    fwd = jax.jit(medsam_lite_forward)
    low_res_masks, iou_pred = fwd(params, image, boxes)
    jax.block_until_ready((low_res_masks, iou_pred))

    assert low_res_masks.shape == (B, 1, 4 * EMB_H, 4 * EMB_W)
    assert iou_pred.shape == (B, 1)
    assert bool(jnp.all(jnp.isfinite(low_res_masks)))
    assert bool(jnp.all(jnp.isfinite(iou_pred)))
    print("KERNEL_OK")
</pallas_src>

<mosaic_0001>
module attributes {stable_mosaic.version = 11 : i64} {
  func.func @_fused_medsam_kernel(%arg0: i32, %arg1: memref<1x64x48xf32, #tpu.memory_space<vmem>>, %arg2: memref<64x32xf32, #tpu.memory_space<vmem>>, %arg3: memref<1x7x32xf32, #tpu.memory_space<vmem>>, %arg4: memref<1496x128xf32, #tpu.memory_space<vmem>>, %arg5: memref<1x16x64xf32, #tpu.memory_space<vmem>>, %arg6: memref<1x1x4xf32, #tpu.memory_space<vmem>>) attributes {dimension_semantics = [#tpu.dimension_semantics<parallel>], iteration_bounds = array<i64: 2>, scalar_prefetch = 0 : i64, scratch_operands = 0 : i64, tpu.core_type = #tpu.core_type<tc>, window_params = [{transform_indices = @transform_0, window_bounds = array<i64: 1, 64, 48>}, {pipeline_mode = #tpu.pipeline_mode<synchronous>, transform_indices = @transform_1, window_bounds = array<i64: 64, 32>}, {transform_indices = @transform_2, window_bounds = array<i64: 1, 7, 32>}, {pipeline_mode = #tpu.pipeline_mode<synchronous>, transform_indices = @transform_3, window_bounds = array<i64: 1496, 128>}, {transform_indices = @transform_4, window_bounds = array<i64: 1, 16, 64>}, {transform_indices = @transform_5, window_bounds = array<i64: 1, 1, 4>}]} {
    %c0 = arith.constant 0 : index
    %c0_0 = arith.constant 0 : index
    %c0_1 = arith.constant 0 : index
    %0 = vector.load %arg1[%c0, %c0_0, %c0_1] : memref<1x64x48xf32, #tpu.memory_space<vmem>>, vector<1x64x48xf32>
    %1 = vector.shape_cast %0 : vector<1x64x48xf32> to vector<64x48xf32>
    %c0_2 = arith.constant 0 : index
    %c0_3 = arith.constant 0 : index
    %2 = vector.load %arg4[%c0_2, %c0_3] : memref<1496x128xf32, #tpu.memory_space<vmem>>, vector<48x32xf32>
    %cst = arith.constant dense<0.000000e+00> : vector<64x32xf32>
    %3 = tpu.matmul %1, %2, %cst {dimension_numbers = #tpu.dot_dimension_numbers<[1], [0], [0], [1], [0, 0, 1, 1], [], []>} : vector<64x48xf32>, vector<48x32xf32>, vector<64x32xf32> -> vector<64x32xf32>
    %c48 = arith.constant 48 : index
    %c0_4 = arith.constant 0 : index
    %4 = vector.load %arg4[%c48, %c0_4] : memref<1496x128xf32, #tpu.memory_space<vmem>>, vector<1x32xf32>
    %5 = vector.broadcast %4 : vector<1x32xf32> to vector<64x32xf32>
    %6 = arith.addf %3, %5 : vector<64x32xf32>
    %c56 = arith.constant 56 : index
    %c0_5 = arith.constant 0 : index
    %7 = vector.load %arg4[%c56, %c0_5] : memref<1496x128xf32, #tpu.memory_space<vmem>>, vector<64x32xf32>
    %8 = arith.addf %6, %7 : vector<64x32xf32>
    %c120 = arith.constant 120 : index
    %c0_6 = arith.constant 0 : index
    %9 = vector.load %arg4[%c120, %c0_6] : memref<1496x128xf32, #tpu.memory_space<vmem>>, vector<2x32xf32>
    %cst_7 = arith.constant dense<0.000000e+00> : vector<64xf32>
    %10 = vector.multi_reduction <add>, %8, %cst_7 [1] : vector<64x32xf32> to vector<64xf32>
    %11 = vector.shape_cast %10 : vector<64xf32> to vector<64x1xf32>
    %cst_8 = arith.constant 3.200000e+01 : f32
    %12 = vector.broadcast %cst_8 : f32 to vector<64x1xf32>
    %13 = arith.divf %11, %12 : vector<64x1xf32>
    %14 = vector.broadcast %13 : vector<64x1xf32> to vector<64x32xf32>
    %15 = arith.subf %8, %14 : vector<64x32xf32>
    %16 = arith.mulf %15, %15 : vector<64x32xf32>
    %cst_9 = arith.constant dense<0.000000e+00> : vector<64xf32>
    %17 = vector.multi_reduction <add>, %16, %cst_9 [1] : vector<64x32xf32> to vector<64xf32>
    %18 = vector.shape_cast %17 : vector<64xf32> to vector<64x1xf32>
    %cst_10 = arith.constant 3.200000e+01 : f32
    %19 = vector.broadcast %cst_10 : f32 to vector<64x1xf32>
    %20 = arith.divf %18, %19 : vector<64x1xf32>
    %21 = vector.broadcast %13 : vector<64x1xf32> to vector<64x32xf32>
    %22 = arith.subf %8, %21 : vector<64x32xf32>
    %cst_11 = arith.constant 9.99999974E-6 : f32
    %23 = vector.broadcast %cst_11 : f32 to vector<64x1xf32>
    %24 = arith.addf %20, %23 : vector<64x1xf32>
    %25 = math.rsqrt %24 : vector<64x1xf32>
    %26 = vector.broadcast %25 : vector<64x1xf32> to vector<64x32xf32>
    %27 = arith.mulf %22, %26 : vector<64x32xf32>
    %28 = vector.extract_strided_slice %9 {offsets = [0, 0], sizes = [1, 32], strides = [1, 1]} : vector<2x32xf32> to vector<1x32xf32>
    %29 = vector.broadcast %28 : vector<1x32xf32> to vector<64x32xf32>
    %30 = arith.mulf %27, %29 : vector<64x32xf32>
    %31 = vector.extract_strided_slice %9 {offsets = [1, 0], sizes = [1, 32], strides = [1, 1]} : vector<2x32xf32> to vector<1x32xf32>
    %32 = vector.broadcast %31 : vector<1x32xf32> to vector<64x32xf32>
    %33 = arith.addf %30, %32 : vector<64x32xf32>
    %c128 = arith.constant 128 : index
    %c0_12 = arith.constant 0 : index
    %34 = vector.load %arg4[%c128, %c0_12] : memref<1496x128xf32, #tpu.memory_space<vmem>>, vector<32x96xf32>
    %cst_13 = arith.constant dense<0.000000e+00> : vector<64x96xf32>
    %35 = tpu.matmul %33, %34, %cst_13 {dimension_numbers = #tpu.dot_dimension_numbers<[1], [0], [0], [1], [0, 0, 1, 1], [], []>} : vector<64x32xf32>, vector<32x96xf32>, vector<64x96xf32> -> vector<64x96xf32>
    %c160 = arith.constant 160 : index
    %c0_14 = arith.constant 0 : index
    %36 = vector.load %arg4[%c160, %c0_14] : memref<1496x128xf32, #tpu.memory_space<vmem>>, vector<1x96xf32>
    %37 = vector.broadcast %36 : vector<1x96xf32> to vector<64x96xf32>
    %38 = arith.addf %35, %37 : vector<64x96xf32>
    %39 = vector.extract_strided_slice %38 {offsets = [0, 0], sizes = [64, 32], strides = [1, 1]} : vector<64x96xf32> to vector<64x32xf32>
    %40 = vector.extract_strided_slice %38 {offsets = [0, 32], sizes = [64, 32], strides = [1, 1]} : vector<64x96xf32> to vector<64x32xf32>
    %41 = vector.extract_strided_slice %38 {offsets = [0, 64], sizes = [64, 32], strides = [1, 1]} : vector<64x96xf32> to vector<64x32xf32>
    %42 = vector.extract_strided_slice %39 {offsets = [0, 0], sizes = [64, 16], strides = [1, 1]} : vector<64x32xf32> to vector<64x16xf32>
    %43 = vector.extract_strided_slice %40 {offsets = [0, 0], sizes = [64, 16], strides = [1, 1]} : vector<64x32xf32> to vector<64x16xf32>
    %cst_15 = arith.constant dense<0.000000e+00> : vector<64x64xf32>
    %44 = tpu.matmul %42, %43, %cst_15 {dimension_numbers = #tpu.dot_dimension_numbers<[1], [1], [0], [0], [0, 0, 1, 0], [], []>} : vector<64x16xf32>, vector<64x16xf32>, vector<64x64xf32> -> vector<64x64xf32>
    %cst_16 = arith.constant 2.500000e-01 : f32
    %45 = vector.broadcast %cst_16 : f32 to vector<64x64xf32>
    %46 = arith.mulf %44, %45 : vector<64x64xf32>
    %cst_17 = arith.constant dense<0xFF800000> : vector<64xf32>
    %47 = vector.multi_reduction <maximumf>, %46, %cst_17 [1] : vector<64x64xf32> to vector<64xf32>
    %48 = vector.shape_cast %47 : vector<64xf32> to vector<64x1xf32>
    %49 = vector.broadcast %48 : vector<64x1xf32> to vector<64x64xf32>
    %50 = arith.subf %46, %49 : vector<64x64xf32>
    %51 = math.exp %50 : vector<64x64xf32>
    %cst_18 = arith.constant dense<0.000000e+00> : vector<64xf32>
    %52 = vector.multi_reduction <add>, %51, %cst_18 [1] : vector<64x64xf32> to vector<64xf32>
    %53 = vector.shape_cast %52 : vector<64xf32> to vector<64x1xf32>
    %54 = tpu.reciprocal %53 {approx = true} : vector<64x1xf32> -> vector<64x1xf32>
    %55 = vector.broadcast %54 : vector<64x1xf32> to vector<64x64xf32>
    %56 = arith.mulf %51, %55 : vector<64x64xf32>
    %57 = vector.extract_strided_slice %41 {offsets = [0, 0], sizes = [64, 16], strides = [1, 1]} : vector<64x32xf32> to vector<64x16xf32>
    %cst_19 = arith.constant dense<0.000000e+00> : vector<64x16xf32>
    %58 = tpu.matmul %56, %57, %cst_19 {dimension_numbers = #tpu.dot_dimension_numbers<[1], [0], [0], [1], [0, 0, 1, 1], [], []>} : vector<64x64xf32>, vector<64x16xf32>, vector<64x16xf32> -> vector<64x16xf32>
    %59 = vector.extract_strided_slice %39 {offsets = [0, 16], sizes = [64, 16], strides = [1, 1]} : vector<64x32xf32> to vector<64x16xf32>
    %60 = vector.extract_strided_slice %40 {offsets = [0, 16], sizes = [64, 16], strides = [1, 1]} : vector<64x32xf32> to vector<64x16xf32>
    %cst_20 = arith.constant dense<0.000000e+00> : vector<64x64xf32>
    %61 = tpu.matmul %59, %60, %cst_20 {dimension_numbers = #tpu.dot_dimension_numbers<[1], [1], [0], [0], [0, 0, 1, 0], [], []>} : vector<64x16xf32>, vector<64x16xf32>, vector<64x64xf32> -> vector<64x64xf32>
    %cst_21 = arith.constant 2.500000e-01 : f32
    %62 = vector.broadcast %cst_21 : f32 to vector<64x64xf32>
    %63 = arith.mulf %61, %62 : vector<64x64xf32>
    %cst_22 = arith.constant dense<0xFF800000> : vector<64xf32>
    %64 = vector.multi_reduction <maximumf>, %63, %cst_22 [1] : vector<64x64xf32> to vector<64xf32>
    %65 = vector.shape_cast %64 : vector<64xf32> to vector<64x1xf32>
    %66 = vector.broadcast %65 : vector<64x1xf32> to vector<64x64xf32>
    %67 = arith.subf %63, %66 : vector<64x64xf32>
    %68 = math.exp %67 : vector<64x64xf32>
    %cst_23 = arith.constant dense<0.000000e+00> : vector<64xf32>
    %69 = vector.multi_reduction <add>, %68, %cst_23 [1] : vector<64x64xf32> to vector<64xf32>
    %70 = vector.shape_cast %69 : vector<64xf32> to vector<64x1xf32>
    %71 = tpu.reciprocal %70 {approx = true} : vector<64x1xf32> -> vector<64x1xf32>
    %72 = vector.broadcast %71 : vector<64x1xf32> to vector<64x64xf32>
    %73 = arith.mulf %68, %72 : vector<64x64xf32>
    %74 = vector.extract_strided_slice %41 {offsets = [0, 16], sizes = [64, 16], strides = [1, 1]} : vector<64x32xf32> to vector<64x16xf32>
    %cst_24 = arith.constant dense<0.000000e+00> : vector<64x16xf32>
    %75 = tpu.matmul %73, %74, %cst_24 {dimension_numbers = #tpu.dot_dimension_numbers<[1], [0], [0], [1], [0, 0, 1, 1], [], []>} : vector<64x64xf32>, vector<64x16xf32>, vector<64x16xf32> -> vector<64x16xf32>
    %76 = tpu.concatenate %58, %75 in 1 : vector<64x16xf32>, vector<64x16xf32> -> vector<64x32xf32>
    %c168 = arith.constant 168 : index
    %c0_25 = arith.constant 0 : index
    %77 = vector.load %arg4[%c168, %c0_25] : memref<1496x128xf32, #tpu.memory_space<vmem>>, vector<32x32xf32>
    %cst_26 = arith.constant dense<0.000000e+00> : vector<64x32xf32>
    %78 = tpu.matmul %76, %77, %cst_26 {dimension_numbers = #tpu.dot_dimension_numbers<[1], [0], [0], [1], [0, 0, 1, 1], [], []>} : vector<64x32xf32>, vector<32x32xf32>, vector<64x32xf32> -> vector<64x32xf32>
    %c200 = arith.constant 200 : index
    %c0_27 = arith.constant 0 : index
    %79 = vector.load %arg4[%c200, %c0_27] : memref<1496x128xf32, #tpu.memory_space<vmem>>, vector<1x32xf32>
    %80 = vector.broadcast %79 : vector<1x32xf32> to vector<64x32xf32>
    %81 = arith.addf %78, %80 : vector<64x32xf32>
    %82 = arith.addf %8, %81 : vector<64x32xf32>
    %c208 = arith.constant 208 : index
    %c0_28 = arith.constant 0 : index
    %83 = vector.load %arg4[%c208, %c0_28] : memref<1496x128xf32, #tpu.memory_space<vmem>>, vector<2x32xf32>
    %cst_29 = arith.constant dense<0.000000e+00> : vector<64xf32>
    %84 = vector.multi_reduction <add>, %82, %cst_29 [1] : vector<64x32xf32> to vector<64xf32>
    %85 = vector.shape_cast %84 : vector<64xf32> to vector<64x1xf32>
    %cst_30 = arith.constant 3.200000e+01 : f32
    %86 = vector.broadcast %cst_30 : f32 to vector<64x1xf32>
    %87 = arith.divf %85, %86 : vector<64x1xf32>
    %88 = vector.broadcast %87 : vector<64x1xf32> to vector<64x32xf32>
    %89 = arith.subf %82, %88 : vector<64x32xf32>
    %90 = arith.mulf %89, %89 : vector<64x32xf32>
    %cst_31 = arith.constant dense<0.000000e+00> : vector<64xf32>
    %91 = vector.multi_reduction <add>, %90, %cst_31 [1] : vector<64x32xf32> to vector<64xf32>
    %92 = vector.shape_cast %91 : vector<64xf32> to vector<64x1xf32>
    %cst_32 = arith.constant 3.200000e+01 : f32
    %93 = vector.broadcast %cst_32 : f32 to vector<64x1xf32>
    %94 = arith.divf %92, %93 : vector<64x1xf32>
    %95 = vector.broadcast %87 : vector<64x1xf32> to vector<64x32xf32>
    %96 = arith.subf %82, %95 : vector<64x32xf32>
    %cst_33 = arith.constant 9.99999974E-6 : f32
    %97 = vector.broadcast %cst_33 : f32 to vector<64x1xf32>
    %98 = arith.addf %94, %97 : vector<64x1xf32>
    %99 = math.rsqrt %98 : vector<64x1xf32>
    %100 = vector.broadcast %99 : vector<64x1xf32> to vector<64x32xf32>
    %101 = arith.mulf %96, %100 : vector<64x32xf32>
    %102 = vector.extract_strided_slice %83 {offsets = [0, 0], sizes = [1, 32], strides = [1, 1]} : vector<2x32xf32> to vector<1x32xf32>
    %103 = vector.broadcast %102 : vector<1x32xf32> to vector<64x32xf32>
    %104 = arith.mulf %101, %103 : vector<64x32xf32>
    %105 = vector.extract_strided_slice %83 {offsets = [1, 0], sizes = [1, 32], strides = [1, 1]} : vector<2x32xf32> to vector<1x32xf32>
    %106 = vector.broadcast %105 : vector<1x32xf32> to vector<64x32xf32>
    %107 = arith.addf %104, %106 : vector<64x32xf32>
    %c216 = arith.constant 216 : index
    %c0_34 = arith.constant 0 : index
    %108 = vector.load %arg4[%c216, %c0_34] : memref<1496x128xf32, #tpu.memory_space<vmem>>, vector<32x64xf32>
    %cst_35 = arith.constant dense<0.000000e+00> : vector<64x64xf32>
    %109 = tpu.matmul %107, %108, %cst_35 {dimension_numbers = #tpu.dot_dimension_numbers<[1], [0], [0], [1], [0, 0, 1, 1], [], []>} : vector<64x32xf32>, vector<32x64xf32>, vector<64x64xf32> -> vector<64x64xf32>
    %c248 = arith.constant 248 : index
    %c0_36 = arith.constant 0 : index
    %110 = vector.load %arg4[%c248, %c0_36] : memref<1496x128xf32, #tpu.memory_space<vmem>>, vector<1x64xf32>
    %111 = vector.broadcast %110 : vector<1x64xf32> to vector<64x64xf32>
    %112 = arith.addf %109, %111 : vector<64x64xf32>
    %cst_37 = arith.constant 5.000000e-01 : f32
    %113 = vector.broadcast %cst_37 : f32 to vector<64x64xf32>
    %114 = arith.mulf %113, %112 : vector<64x64xf32>
    %cst_38 = arith.constant 4.471500e-02 : f32
    %115 = vector.broadcast %cst_38 : f32 to vector<64x64xf32>
    %116 = arith.mulf %115, %112 : vector<64x64xf32>
    %117 = arith.mulf %116, %112 : vector<64x64xf32>
    %118 = arith.mulf %117, %112 : vector<64x64xf32>
    %119 = arith.addf %112, %118 : vector<64x64xf32>
    %cst_39 = arith.constant 0.797884583 : f32
    %120 = vector.broadcast %cst_39 : f32 to vector<64x64xf32>
    %121 = arith.mulf %120, %119 : vector<64x64xf32>
    %122 = math.tanh %121 : vector<64x64xf32>
    %cst_40 = arith.constant 1.000000e+00 : f32
    %123 = vector.broadcast %cst_40 : f32 to vector<64x64xf32>
    %124 = arith.addf %123, %122 : vector<64x64xf32>
    %125 = arith.mulf %114, %124 : vector<64x64xf32>
    %c256 = arith.constant 256 : index
    %c0_41 = arith.constant 0 : index
    %126 = vector.load %arg4[%c256, %c0_41] : memref<1496x128xf32, #tpu.memory_space<vmem>>, vector<64x32xf32>
    %cst_42 = arith.constant dense<0.000000e+00> : vector<64x32xf32>
    %127 = tpu.matmul %125, %126, %cst_42 {dimension_numbers = #tpu.dot_dimension_numbers<[1], [0], [0], [1], [0, 0, 1, 1], [], []>} : vector<64x64xf32>, vector<64x32xf32>, vector<64x32xf32> -> vector<64x32xf32>
    %128 = arith.addf %82, %127 : vector<64x32xf32>
    %c320 = arith.constant 320 : index
    %c0_43 = arith.constant 0 : index
    %129 = vector.load %arg4[%c320, %c0_43] : memref<1496x128xf32, #tpu.memory_space<vmem>>, vector<1x32xf32>
    %130 = vector.broadcast %129 : vector<1x32xf32> to vector<64x32xf32>
    %131 = arith.addf %128, %130 : vector<64x32xf32>
    %c328 = arith.constant 328 : index
    %c0_44 = arith.constant 0 : index
    %132 = vector.load %arg4[%c328, %c0_44] : memref<1496x128xf32, #tpu.memory_space<vmem>>, vector<2x32xf32>
    %cst_45 = arith.constant dense<0.000000e+00> : vector<64xf32>
    %133 = vector.multi_reduction <add>, %131, %cst_45 [1] : vector<64x32xf32> to vector<64xf32>
    %134 = vector.shape_cast %133 : vector<64xf32> to vector<64x1xf32>
    %cst_46 = arith.constant 3.200000e+01 : f32
    %135 = vector.broadcast %cst_46 : f32 to vector<64x1xf32>
    %136 = arith.divf %134, %135 : vector<64x1xf32>
    %137 = vector.broadcast %136 : vector<64x1xf32> to vector<64x32xf32>
    %138 = arith.subf %131, %137 : vector<64x32xf32>
    %139 = arith.mulf %138, %138 : vector<64x32xf32>
    %cst_47 = arith.constant dense<0.000000e+00> : vector<64xf32>
    %140 = vector.multi_reduction <add>, %139, %cst_47 [1] : vector<64x32xf32> to vector<64xf32>
    %141 = vector.shape_cast %140 : vector<64xf32> to vector<64x1xf32>
    %cst_48 = arith.constant 3.200000e+01 : f32
    %142 = vector.broadcast %cst_48 : f32 to vector<64x1xf32>
    %143 = arith.divf %141, %142 : vector<64x1xf32>
    %144 = vector.broadcast %136 : vector<64x1xf32> to vector<64x32xf32>
    %145 = arith.subf %131, %144 : vector<64x32xf32>
    %cst_49 = arith.constant 9.99999974E-6 : f32
    %146 = vector.broadcast %cst_49 : f32 to vector<64x1xf32>
    %147 = arith.addf %143, %146 : vector<64x1xf32>
    %148 = math.rsqrt %147 : vector<64x1xf32>
    %149 = vector.broadcast %148 : vector<64x1xf32> to vector<64x32xf32>
    %150 = arith.mulf %145, %149 : vector<64x32xf32>
    %151 = vector.extract_strided_slice %132 {offsets = [0, 0], sizes = [1, 32], strides = [1, 1]} : vector<2x32xf32> to vector<1x32xf32>
    %152 = vector.broadcast %151 : vector<1x32xf32> to vector<64x32xf32>
    %153 = arith.mulf %150, %152 : vector<64x32xf32>
    %154 = vector.extract_strided_slice %132 {offsets = [1, 0], sizes = [1, 32], strides = [1, 1]} : vector<2x32xf32> to vector<1x32xf32>
    %155 = vector.broadcast %154 : vector<1x32xf32> to vector<64x32xf32>
    %156 = arith.addf %153, %155 : vector<64x32xf32>
    %c336 = arith.constant 336 : index
    %c0_50 = arith.constant 0 : index
    %157 = vector.load %arg4[%c336, %c0_50] : memref<1496x128xf32, #tpu.memory_space<vmem>>, vector<32x32xf32>
    %cst_51 = arith.constant dense<0.000000e+00> : vector<64x32xf32>
    %158 = tpu.matmul %156, %157, %cst_51 {dimension_numbers = #tpu.dot_dimension_numbers<[1], [0], [0], [1], [0, 0, 1, 1], [], []>} : vector<64x32xf32>, vector<32x32xf32>, vector<64x32xf32> -> vector<64x32xf32>
    %c368 = arith.constant 368 : index
    %c0_52 = arith.constant 0 : index
    %159 = vector.load %arg4[%c368, %c0_52] : memref<1496x128xf32, #tpu.memory_space<vmem>>, vector<1x32xf32>
    %160 = vector.broadcast %159 : vector<1x32xf32> to vector<64x32xf32>
    %161 = arith.addf %158, %160 : vector<64x32xf32>
    %c0_53 = arith.constant 0 : index
    %c0_54 = arith.constant 0 : index
    %c0_55 = arith.constant 0 : index
    %162 = vector.load %arg3[%c0_53, %c0_54, %c0_55] : memref<1x7x32xf32, #tpu.memory_space<vmem>>, vector<1x7x32xf32>
    %163 = vector.shape_cast %162 : vector<1x7x32xf32> to vector<7x32xf32>
    %c0_56 = arith.constant 0 : index
    %c0_57 = arith.constant 0 : index
    %164 = vector.load %arg2[%c0_56, %c0_57] : memref<64x32xf32, #tpu.memory_space<vmem>>, vector<64x32xf32>
    %c376 = arith.constant 376 : index
    %c0_58 = arith.constant 0 : index
    %165 = vector.load %arg4[%c376, %c0_58] : memref<1496x128xf32, #tpu.memory_space<vmem>>, vector<1x32xf32>
    %166 = vector.broadcast %165 : vector<1x32xf32> to vector<64x32xf32>
    %167 = arith.addf %161, %166 : vector<64x32xf32>
    %c384 = arith.constant 384 : index
    %c0_59 = arith.constant 0 : index
    %168 = vector.load %arg4[%c384, %c0_59] : memref<1496x128xf32, #tpu.memory_space<vmem>>, vector<32x96xf32>
    %cst_60 = arith.constant dense<0.000000e+00> : vector<7x96xf32>
    %169 = tpu.matmul %163, %168, %cst_60 {dimension_numbers = #tpu.dot_dimension_numbers<[1], [0], [0], [1], [0, 0, 1, 1], [], []>} : vector<7x32xf32>, vector<32x96xf32>, vector<7x96xf32> -> vector<7x96xf32>
    %c416 = arith.constant 416 : index
    %c0_61 = arith.constant 0 : index
    %170 = vector.load %arg4[%c416, %c0_61] : memref<1496x128xf32, #tpu.memory_space<vmem>>, vector<1x96xf32>
    %171 = vector.broadcast %170 : vector<1x96xf32> to vector<7x96xf32>
    %172 = arith.addf %169, %171 : vector<7x96xf32>
    %173 = vector.extract_strided_slice %172 {offsets = [0, 0], sizes = [7, 32], strides = [1, 1]} : vector<7x96xf32> to vector<7x32xf32>
    %174 = vector.extract_strided_slice %172 {offsets = [0, 32], sizes = [7, 32], strides = [1, 1]} : vector<7x96xf32> to vector<7x32xf32>
    %175 = vector.extract_strided_slice %172 {offsets = [0, 64], sizes = [7, 32], strides = [1, 1]} : vector<7x96xf32> to vector<7x32xf32>
    %176 = vector.extract_strided_slice %173 {offsets = [0, 0], sizes = [7, 16], strides = [1, 1]} : vector<7x32xf32> to vector<7x16xf32>
    %177 = vector.extract_strided_slice %174 {offsets = [0, 0], sizes = [7, 16], strides = [1, 1]} : vector<7x32xf32> to vector<7x16xf32>
    %cst_62 = arith.constant dense<0.000000e+00> : vector<7x7xf32>
    %178 = tpu.matmul %176, %177, %cst_62 {dimension_numbers = #tpu.dot_dimension_numbers<[1], [1], [0], [0], [0, 0, 1, 0], [], []>} : vector<7x16xf32>, vector<7x16xf32>, vector<7x7xf32> -> vector<7x7xf32>
    %cst_63 = arith.constant 2.500000e-01 : f32
    %179 = vector.broadcast %cst_63 : f32 to vector<7x7xf32>
    %180 = arith.mulf %178, %179 : vector<7x7xf32>
    %cst_64 = arith.constant dense<0xFF800000> : vector<7xf32>
    %181 = vector.multi_reduction <maximumf>, %180, %cst_64 [1] : vector<7x7xf32> to vector<7xf32>
    %182 = vector.shape_cast %181 : vector<7xf32> to vector<7x1xf32>
    %183 = vector.broadcast %182 : vector<7x1xf32> to vector<7x7xf32>
    %184 = arith.subf %180, %183 : vector<7x7xf32>
    %185 = math.exp %184 : vector<7x7xf32>
    %cst_65 = arith.constant dense<0.000000e+00> : vector<7xf32>
    %186 = vector.multi_reduction <add>, %185, %cst_65 [1] : vector<7x7xf32> to vector<7xf32>
    %187 = vector.shape_cast %186 : vector<7xf32> to vector<7x1xf32>
    %188 = tpu.reciprocal %187 {approx = true} : vector<7x1xf32> -> vector<7x1xf32>
    %189 = vector.broadcast %188 : vector<7x1xf32> to vector<7x7xf32>
    %190 = arith.mulf %185, %189 : vector<7x7xf32>
    %191 = vector.extract_strided_slice %175 {offsets = [0, 0], sizes = [7, 16], strides = [1, 1]} : vector<7x32xf32> to vector<7x16xf32>
    %cst_66 = arith.constant dense<0.000000e+00> : vector<7x16xf32>
    %192 = tpu.matmul %190, %191, %cst_66 {dimension_numbers = #tpu.dot_dimension_numbers<[1], [0], [0], [1], [0, 0, 1, 1], [], []>} : vector<7x7xf32>, vector<7x16xf32>, vector<7x16xf32> -> vector<7x16xf32>
    %193 = vector.extract_strided_slice %173 {offsets = [0, 16], sizes = [7, 16], strides = [1, 1]} : vector<7x32xf32> to vector<7x16xf32>
    %194 = vector.extract_strided_slice %174 {offsets = [0, 16], sizes = [7, 16], strides = [1, 1]} : vector<7x32xf32> to vector<7x16xf32>
    %cst_67 = arith.constant dense<0.000000e+00> : vector<7x7xf32>
    %195 = tpu.matmul %193, %194, %cst_67 {dimension_numbers = #tpu.dot_dimension_numbers<[1], [1], [0], [0], [0, 0, 1, 0], [], []>} : vector<7x16xf32>, vector<7x16xf32>, vector<7x7xf32> -> vector<7x7xf32>
    %cst_68 = arith.constant 2.500000e-01 : f32
    %196 = vector.broadcast %cst_68 : f32 to vector<7x7xf32>
    %197 = arith.mulf %195, %196 : vector<7x7xf32>
    %cst_69 = arith.constant dense<0xFF800000> : vector<7xf32>
    %198 = vector.multi_reduction <maximumf>, %197, %cst_69 [1] : vector<7x7xf32> to vector<7xf32>
    %199 = vector.shape_cast %198 : vector<7xf32> to vector<7x1xf32>
    %200 = vector.broadcast %199 : vector<7x1xf32> to vector<7x7xf32>
    %201 = arith.subf %197, %200 : vector<7x7xf32>
    %202 = math.exp %201 : vector<7x7xf32>
    %cst_70 = arith.constant dense<0.000000e+00> : vector<7xf32>
    %203 = vector.multi_reduction <add>, %202, %cst_70 [1] : vector<7x7xf32> to vector<7xf32>
    %204 = vector.shape_cast %203 : vector<7xf32> to vector<7x1xf32>
    %205 = tpu.reciprocal %204 {approx = true} : vector<7x1xf32> -> vector<7x1xf32>
    %206 = vector.broadcast %205 : vector<7x1xf32> to vector<7x7xf32>
    %207 = arith.mulf %202, %206 : vector<7x7xf32>
    %208 = vector.extract_strided_slice %175 {offsets = [0, 16], sizes = [7, 16], strides = [1, 1]} : vector<7x32xf32> to vector<7x16xf32>
    %cst_71 = arith.constant dense<0.000000e+00> : vector<7x16xf32>
    %209 = tpu.matmul %207, %208, %cst_71 {dimension_numbers = #tpu.dot_dimension_numbers<[1], [0], [0], [1], [0, 0, 1, 1], [], []>} : vector<7x7xf32>, vector<7x16xf32>, vector<7x16xf32> -> vector<7x16xf32>
    %210 = tpu.concatenate %192, %209 in 1 : vector<7x16xf32>, vector<7x16xf32> -> vector<7x32xf32>
    %c424 = arith.constant 424 : index
    %c0_72 = arith.constant 0 : index
    %211 = vector.load %arg4[%c424, %c0_72] : memref<1496x128xf32, #tpu.memory_space<vmem>>, vector<32x32xf32>
    %cst_73 = arith.constant dense<0.000000e+00> : vector<7x32xf32>
    %212 = tpu.matmul %210, %211, %cst_73 {dimension_numbers = #tpu.dot_dimension_numbers<[1], [0], [0], [1], [0, 0, 1, 1], [], []>} : vector<7x32xf32>, vector<32x32xf32>, vector<7x32xf32> -> vector<7x32xf32>
    %c456 = arith.constant 456 : index
    %c0_74 = arith.constant 0 : index
    %213 = vector.load %arg4[%c456, %c0_74] : memref<1496x128xf32, #tpu.memory_space<vmem>>, vector<1x32xf32>
    %214 = vector.broadcast %213 : vector<1x32xf32> to vector<7x32xf32>
    %215 = arith.addf %212, %214 : vector<7x32xf32>
    %c464 = arith.constant 464 : index
    %c0_75 = arith.constant 0 : index
    %216 = vector.load %arg4[%c464, %c0_75] : memref<1496x128xf32, #tpu.memory_space<vmem>>, vector<2x32xf32>
    %cst_76 = arith.constant dense<0.000000e+00> : vector<7xf32>
    %217 = vector.multi_reduction <add>, %215, %cst_76 [1] : vector<7x32xf32> to vector<7xf32>
    %218 = vector.shape_cast %217 : vector<7xf32> to vector<7x1xf32>
    %cst_77 = arith.constant 3.200000e+01 : f32
    %219 = vector.broadcast %cst_77 : f32 to vector<7x1xf32>
    %220 = arith.divf %218, %219 : vector<7x1xf32>
    %221 = vector.broadcast %220 : vector<7x1xf32> to vector<7x32xf32>
    %222 = arith.subf %215, %221 : vector<7x32xf32>
    %223 = arith.mulf %222, %222 : vector<7x32xf32>
    %cst_78 = arith.constant dense<0.000000e+00> : vector<7xf32>
    %224 = vector.multi_reduction <add>, %223, %cst_78 [1] : vector<7x32xf32> to vector<7xf32>
    %225 = vector.shape_cast %224 : vector<7xf32> to vector<7x1xf32>
    %cst_79 = arith.constant 3.200000e+01 : f32
    %226 = vector.broadcast %cst_79 : f32 to vector<7x1xf32>
    %227 = arith.divf %225, %226 : vector<7x1xf32>
    %228 = vector.broadcast %220 : vector<7x1xf32> to vector<7x32xf32>
    %229 = arith.subf %215, %228 : vector<7x32xf32>
    %cst_80 = arith.constant 9.99999974E-6 : f32
    %230 = vector.broadcast %cst_80 : f32 to vector<7x1xf32>
    %231 = arith.addf %227, %230 : vector<7x1xf32>
    %232 = math.rsqrt %231 : vector<7x1xf32>
    %233 = vector.broadcast %232 : vector<7x1xf32> to vector<7x32xf32>
    %234 = arith.mulf %229, %233 : vector<7x32xf32>
    %235 = vector.extract_strided_slice %216 {offsets = [0, 0], sizes = [1, 32], strides = [1, 1]} : vector<2x32xf32> to vector<1x32xf32>
    %236 = vector.broadcast %235 : vector<1x32xf32> to vector<7x32xf32>
    %237 = arith.mulf %234, %236 : vector<7x32xf32>
    %238 = vector.extract_strided_slice %216 {offsets = [1, 0], sizes = [1, 32], strides = [1, 1]} : vector<2x32xf32> to vector<1x32xf32>
    %239 = vector.broadcast %238 : vector<1x32xf32> to vector<7x32xf32>
    %240 = arith.addf %237, %239 : vector<7x32xf32>
    %241 = arith.addf %240, %163 : vector<7x32xf32>
    %242 = arith.addf %167, %164 : vector<64x32xf32>
    %c472 = arith.constant 472 : index
    %c0_81 = arith.constant 0 : index
    %243 = vector.load %arg4[%c472, %c0_81] : memref<1496x128xf32, #tpu.memory_space<vmem>>, vector<32x16xf32>
    %cst_82 = arith.constant dense<0.000000e+00> : vector<7x16xf32>
    %244 = tpu.matmul %241, %243, %cst_82 {dimension_numbers = #tpu.dot_dimension_numbers<[1], [0], [0], [1], [0, 0, 1, 1], [], []>} : vector<7x32xf32>, vector<32x16xf32>, vector<7x16xf32> -> vector<7x16xf32>
    %c568 = arith.constant 568 : index
    %c0_83 = arith.constant 0 : index
    %245 = vector.load %arg4[%c568, %c0_83] : memref<1496x128xf32, #tpu.memory_space<vmem>>, vector<1x16xf32>
    %246 = vector.broadcast %245 : vector<1x16xf32> to vector<7x16xf32>
    %247 = arith.addf %244, %246 : vector<7x16xf32>
    %c504 = arith.constant 504 : index
    %c0_84 = arith.constant 0 : index
    %248 = vector.load %arg4[%c504, %c0_84] : memref<1496x128xf32, #tpu.memory_space<vmem>>, vector<32x16xf32>
    %cst_85 = arith.constant dense<0.000000e+00> : vector<64x16xf32>
    %249 = tpu.matmul %242, %248, %cst_85 {dimension_numbers = #tpu.dot_dimension_numbers<[1], [0], [0], [1], [0, 0, 1, 1], [], []>} : vector<64x32xf32>, vector<32x16xf32>, vector<64x16xf32> -> vector<64x16xf32>
    %c576 = arith.constant 576 : index
    %c0_86 = arith.constant 0 : index
    %250 = vector.load %arg4[%c576, %c0_86] : memref<1496x128xf32, #tpu.memory_space<vmem>>, vector<1x16xf32>
    %251 = vector.broadcast %250 : vector<1x16xf32> to vector<64x16xf32>
    %252 = arith.addf %249, %251 : vector<64x16xf32>
    %c536 = arith.constant 536 : index
    %c0_87 = arith.constant 0 : index
    %253 = vector.load %arg4[%c536, %c0_87] : memref<1496x128xf32, #tpu.memory_space<vmem>>, vector<32x16xf32>
    %cst_88 = arith.constant dense<0.000000e+00> : vector<64x16xf32>
    %254 = tpu.matmul %167, %253, %cst_88 {dimension_numbers = #tpu.dot_dimension_numbers<[1], [0], [0], [1], [0, 0, 1, 1], [], []>} : vector<64x32xf32>, vector<32x16xf32>, vector<64x16xf32> -> vector<64x16xf32>
    %c584 = arith.constant 584 : index
    %c0_89 = arith.constant 0 : index
    %255 = vector.load %arg4[%c584, %c0_89] : memref<1496x128xf32, #tpu.memory_space<vmem>>, vector<1x16xf32>
    %256 = vector.broadcast %255 : vector<1x16xf32> to vector<64x16xf32>
    %257 = arith.addf %254, %256 : vector<64x16xf32>
    %258 = vector.extract_strided_slice %247 {offsets = [0, 0], sizes = [7, 8], strides = [1, 1]} : vector<7x16xf32> to vector<7x8xf32>
    %259 = vector.extract_strided_slice %252 {offsets = [0, 0], sizes = [64, 8], strides = [1, 1]} : vector<64x16xf32> to vector<64x8xf32>
    %cst_90 = arith.constant dense<0.000000e+00> : vector<7x64xf32>
    %260 = tpu.matmul %258, %259, %cst_90 {dimension_numbers = #tpu.dot_dimension_numbers<[1], [1], [0], [0], [0, 0, 1, 0], [], []>} : vector<7x8xf32>, vector<64x8xf32>, vector<7x64xf32> -> vector<7x64xf32>
    %cst_91 = arith.constant 0.353553385 : f32
    %261 = vector.broadcast %cst_91 : f32 to vector<7x64xf32>
    %262 = arith.mulf %260, %261 : vector<7x64xf32>
    %cst_92 = arith.constant dense<0xFF800000> : vector<7xf32>
    %263 = vector.multi_reduction <maximumf>, %262, %cst_92 [1] : vector<7x64xf32> to vector<7xf32>
    %264 = vector.shape_cast %263 : vector<7xf32> to vector<7x1xf32>
    %265 = vector.broadcast %264 : vector<7x1xf32> to vector<7x64xf32>
    %266 = arith.subf %262, %265 : vector<7x64xf32>
    %267 = math.exp %266 : vector<7x64xf32>
    %cst_93 = arith.constant dense<0.000000e+00> : vector<7xf32>
    %268 = vector.multi_reduction <add>, %267, %cst_93 [1] : vector<7x64xf32> to vector<7xf32>
    %269 = vector.shape_cast %268 : vector<7xf32> to vector<7x1xf32>
    %270 = tpu.reciprocal %269 {approx = true} : vector<7x1xf32> -> vector<7x1xf32>
    %271 = vector.broadcast %270 : vector<7x1xf32> to vector<7x64xf32>
    %272 = arith.mulf %267, %271 : vector<7x64xf32>
    %273 = vector.extract_strided_slice %257 {offsets = [0, 0], sizes = [64, 8], strides = [1, 1]} : vector<64x16xf32> to vector<64x8xf32>
    %cst_94 = arith.constant dense<0.000000e+00> : vector<7x8xf32>
    %274 = tpu.matmul %272, %273, %cst_94 {dimension_numbers = #tpu.dot_dimension_numbers<[1], [0], [0], [1], [0, 0, 1, 1], [], []>} : vector<7x64xf32>, vector<64x8xf32>, vector<7x8xf32> -> vector<7x8xf32>
    %275 = vector.extract_strided_slice %247 {offsets = [0, 8], sizes = [7, 8], strides = [1, 1]} : vector<7x16xf32> to vector<7x8xf32>
    %276 = vector.extract_strided_slice %252 {offsets = [0, 8], sizes = [64, 8], strides = [1, 1]} : vector<64x16xf32> to vector<64x8xf32>
    %cst_95 = arith.constant dense<0.000000e+00> : vector<7x64xf32>
    %277 = tpu.matmul %275, %276, %cst_95 {dimension_numbers = #tpu.dot_dimension_numbers<[1], [1], [0], [0], [0, 0, 1, 0], [], []>} : vector<7x8xf32>, vector<64x8xf32>, vector<7x64xf32> -> vector<7x64xf32>
    %cst_96 = arith.constant 0.353553385 : f32
    %278 = vector.broadcast %cst_96 : f32 to vector<7x64xf32>
    %279 = arith.mulf %277, %278 : vector<7x64xf32>
    %cst_97 = arith.constant dense<0xFF800000> : vector<7xf32>
    %280 = vector.multi_reduction <maximumf>, %279, %cst_97 [1] : vector<7x64xf32> to vector<7xf32>
    %281 = vector.shape_cast %280 : vector<7xf32> to vector<7x1xf32>
    %282 = vector.broadcast %281 : vector<7x1xf32> to vector<7x64xf32>
    %283 = arith.subf %279, %282 : vector<7x64xf32>
    %284 = math.exp %283 : vector<7x64xf32>
    %cst_98 = arith.constant dense<0.000000e+00> : vector<7xf32>
    %285 = vector.multi_reduction <add>, %284, %cst_98 [1] : vector<7x64xf32> to vector<7xf32>
    %286 = vector.shape_cast %285 : vector<7xf32> to vector<7x1xf32>
    %287 = tpu.reciprocal %286 {approx = true} : vector<7x1xf32> -> vector<7x1xf32>
    %288 = vector.broadcast %287 : vector<7x1xf32> to vector<7x64xf32>
    %289 = arith.mulf %284, %288 : vector<7x64xf32>
    %290 = vector.extract_strided_slice %257 {offsets = [0, 8], sizes = [64, 8], strides = [1, 1]} : vector<64x16xf32> to vector<64x8xf32>
    %cst_99 = arith.constant dense<0.000000e+00> : vector<7x8xf32>
    %291 = tpu.matmul %289, %290, %cst_99 {dimension_numbers = #tpu.dot_dimension_numbers<[1], [0], [0], [1], [0, 0, 1, 1], [], []>} : vector<7x64xf32>, vector<64x8xf32>, vector<7x8xf32> -> vector<7x8xf32>
    %292 = tpu.concatenate %274, %291 in 1 : vector<7x8xf32>, vector<7x8xf32> -> vector<7x16xf32>
    %c592 = arith.constant 592 : index
    %c0_100 = arith.constant 0 : index
    %293 = vector.load %arg4[%c592, %c0_100] : memref<1496x128xf32, #tpu.memory_space<vmem>>, vector<16x32xf32>
    %cst_101 = arith.constant dense<0.000000e+00> : vector<7x32xf32>
    %294 = tpu.matmul %292, %293, %cst_101 {dimension_numbers = #tpu.dot_dimension_numbers<[1], [0], [0], [1], [0, 0, 1, 1], [], []>} : vector<7x16xf32>, vector<16x32xf32>, vector<7x32xf32> -> vector<7x32xf32>
    %c608 = arith.constant 608 : index
    %c0_102 = arith.constant 0 : index
    %295 = vector.load %arg4[%c608, %c0_102] : memref<1496x128xf32, #tpu.memory_space<vmem>>, vector<1x32xf32>
    %296 = vector.broadcast %295 : vector<1x32xf32> to vector<7x32xf32>
    %297 = arith.addf %294, %296 : vector<7x32xf32>
    %298 = arith.addf %240, %297 : vector<7x32xf32>
    %c904 = arith.constant 904 : index
    %c0_103 = arith.constant 0 : index
    %299 = vector.load %arg4[%c904, %c0_103] : memref<1496x128xf32, #tpu.memory_space<vmem>>, vector<2x32xf32>
    %cst_104 = arith.constant dense<0.000000e+00> : vector<7xf32>
    %300 = vector.multi_reduction <add>, %298, %cst_104 [1] : vector<7x32xf32> to vector<7xf32>
    %301 = vector.shape_cast %300 : vector<7xf32> to vector<7x1xf32>
    %cst_105 = arith.constant 3.200000e+01 : f32
    %302 = vector.broadcast %cst_105 : f32 to vector<7x1xf32>
    %303 = arith.divf %301, %302 : vector<7x1xf32>
    %304 = vector.broadcast %303 : vector<7x1xf32> to vector<7x32xf32>
    %305 = arith.subf %298, %304 : vector<7x32xf32>
    %306 = arith.mulf %305, %305 : vector<7x32xf32>
    %cst_106 = arith.constant dense<0.000000e+00> : vector<7xf32>
    %307 = vector.multi_reduction <add>, %306, %cst_106 [1] : vector<7x32xf32> to vector<7xf32>
    %308 = vector.shape_cast %307 : vector<7xf32> to vector<7x1xf32>
    %cst_107 = arith.constant 3.200000e+01 : f32
    %309 = vector.broadcast %cst_107 : f32 to vector<7x1xf32>
    %310 = arith.divf %308, %309 : vector<7x1xf32>
    %311 = vector.broadcast %303 : vector<7x1xf32> to vector<7x32xf32>
    %312 = arith.subf %298, %311 : vector<7x32xf32>
    %cst_108 = arith.constant 9.99999974E-6 : f32
    %313 = vector.broadcast %cst_108 : f32 to vector<7x1xf32>
    %314 = arith.addf %310, %313 : vector<7x1xf32>
    %315 = math.rsqrt %314 : vector<7x1xf32>
    %316 = vector.broadcast %315 : vector<7x1xf32> to vector<7x32xf32>
    %317 = arith.mulf %312, %316 : vector<7x32xf32>
    %318 = vector.extract_strided_slice %299 {offsets = [0, 0], sizes = [1, 32], strides = [1, 1]} : vector<2x32xf32> to vector<1x32xf32>
    %319 = vector.broadcast %318 : vector<1x32xf32> to vector<7x32xf32>
    %320 = arith.mulf %317, %319 : vector<7x32xf32>
    %321 = vector.extract_strided_slice %299 {offsets = [1, 0], sizes = [1, 32], strides = [1, 1]} : vector<2x32xf32> to vector<1x32xf32>
    %322 = vector.broadcast %321 : vector<1x32xf32> to vector<7x32xf32>
    %323 = arith.addf %320, %322 : vector<7x32xf32>
    %c912 = arith.constant 912 : index
    %c0_109 = arith.constant 0 : index
    %324 = vector.load %arg4[%c912, %c0_109] : memref<1496x128xf32, #tpu.memory_space<vmem>>, vector<32x64xf32>
    %cst_110 = arith.constant dense<0.000000e+00> : vector<7x64xf32>
    %325 = tpu.matmul %323, %324, %cst_110 {dimension_numbers = #tpu.dot_dimension_numbers<[1], [0], [0], [1], [0, 0, 1, 1], [], []>} : vector<7x32xf32>, vector<32x64xf32>, vector<7x64xf32> -> vector<7x64xf32>
    %c944 = arith.constant 944 : index
    %c0_111 = arith.constant 0 : index
    %326 = vector.load %arg4[%c944, %c0_111] : memref<1496x128xf32, #tpu.memory_space<vmem>>, vector<1x64xf32>
    %327 = vector.broadcast %326 : vector<1x64xf32> to vector<7x64xf32>
    %328 = arith.addf %325, %327 : vector<7x64xf32>
    %cst_112 = arith.constant 0.000000e+00 : f32
    %329 = vector.broadcast %cst_112 : f32 to vector<7x64xf32>
    %330 = arith.maximumf %328, %329 : vector<7x64xf32>
    %c952 = arith.constant 952 : index
    %c0_113 = arith.constant 0 : index
    %331 = vector.load %arg4[%c952, %c0_113] : memref<1496x128xf32, #tpu.memory_space<vmem>>, vector<64x32xf32>
    %cst_114 = arith.constant dense<0.000000e+00> : vector<7x32xf32>
    %332 = tpu.matmul %330, %331, %cst_114 {dimension_numbers = #tpu.dot_dimension_numbers<[1], [0], [0], [1], [0, 0, 1, 1], [], []>} : vector<7x64xf32>, vector<64x32xf32>, vector<7x32xf32> -> vector<7x32xf32>
    %c1016 = arith.constant 1016 : index
    %c0_115 = arith.constant 0 : index
    %333 = vector.load %arg4[%c1016, %c0_115] : memref<1496x128xf32, #tpu.memory_space<vmem>>, vector<1x32xf32>
    %334 = vector.broadcast %333 : vector<1x32xf32> to vector<7x32xf32>
    %335 = arith.addf %332, %334 : vector<7x32xf32>
    %336 = arith.addf %323, %335 : vector<7x32xf32>
    %c1024 = arith.constant 1024 : index
    %c0_116 = arith.constant 0 : index
    %337 = vector.load %arg4[%c1024, %c0_116] : memref<1496x128xf32, #tpu.memory_space<vmem>>, vector<2x32xf32>
    %cst_117 = arith.constant dense<0.000000e+00> : vector<7xf32>
    %338 = vector.multi_reduction <add>, %336, %cst_117 [1] : vector<7x32xf32> to vector<7xf32>
    %339 = vector.shape_cast %338 : vector<7xf32> to vector<7x1xf32>
    %cst_118 = arith.constant 3.200000e+01 : f32
    %340 = vector.broadcast %cst_118 : f32 to vector<7x1xf32>
    %341 = arith.divf %339, %340 : vector<7x1xf32>
    %342 = vector.broadcast %341 : vector<7x1xf32> to vector<7x32xf32>
    %343 = arith.subf %336, %342 : vector<7x32xf32>
    %344 = arith.mulf %343, %343 : vector<7x32xf32>
    %cst_119 = arith.constant dense<0.000000e+00> : vector<7xf32>
    %345 = vector.multi_reduction <add>, %344, %cst_119 [1] : vector<7x32xf32> to vector<7xf32>
    %346 = vector.shape_cast %345 : vector<7xf32> to vector<7x1xf32>
    %cst_120 = arith.constant 3.200000e+01 : f32
    %347 = vector.broadcast %cst_120 : f32 to vector<7x1xf32>
    %348 = arith.divf %346, %347 : vector<7x1xf32>
    %349 = vector.broadcast %341 : vector<7x1xf32> to vector<7x32xf32>
    %350 = arith.subf %336, %349 : vector<7x32xf32>
    %cst_121 = arith.constant 9.99999974E-6 : f32
    %351 = vector.broadcast %cst_121 : f32 to vector<7x1xf32>
    %352 = arith.addf %348, %351 : vector<7x1xf32>
    %353 = math.rsqrt %352 : vector<7x1xf32>
    %354 = vector.broadcast %353 : vector<7x1xf32> to vector<7x32xf32>
    %355 = arith.mulf %350, %354 : vector<7x32xf32>
    %356 = vector.extract_strided_slice %337 {offsets = [0, 0], sizes = [1, 32], strides = [1, 1]} : vector<2x32xf32> to vector<1x32xf32>
    %357 = vector.broadcast %356 : vector<1x32xf32> to vector<7x32xf32>
    %358 = arith.mulf %355, %357 : vector<7x32xf32>
    %359 = vector.extract_strided_slice %337 {offsets = [1, 0], sizes = [1, 32], strides = [1, 1]} : vector<2x32xf32> to vector<1x32xf32>
    %360 = vector.broadcast %359 : vector<1x32xf32> to vector<7x32xf32>
    %361 = arith.addf %358, %360 : vector<7x32xf32>
    %362 = arith.addf %361, %163 : vector<7x32xf32>
    %363 = arith.addf %167, %164 : vector<64x32xf32>
    %c616 = arith.constant 616 : index
    %c0_122 = arith.constant 0 : index
    %364 = vector.load %arg4[%c616, %c0_122] : memref<1496x128xf32, #tpu.memory_space<vmem>>, vector<32x16xf32>
    %cst_123 = arith.constant dense<0.000000e+00> : vector<64x16xf32>
    %365 = tpu.matmul %363, %364, %cst_123 {dimension_numbers = #tpu.dot_dimension_numbers<[1], [0], [0], [1], [0, 0, 1, 1], [], []>} : vector<64x32xf32>, vector<32x16xf32>, vector<64x16xf32> -> vector<64x16xf32>
    %c712 = arith.constant 712 : index
    %c0_124 = arith.constant 0 : index
    %366 = vector.load %arg4[%c712, %c0_124] : memref<1496x128xf32, #tpu.memory_space<vmem>>, vector<1x16xf32>
    %367 = vector.broadcast %366 : vector<1x16xf32> to vector<64x16xf32>
    %368 = arith.addf %365, %367 : vector<64x16xf32>
    %c648 = arith.constant 648 : index
    %c0_125 = arith.constant 0 : index
    %369 = vector.load %arg4[%c648, %c0_125] : memref<1496x128xf32, #tpu.memory_space<vmem>>, vector<32x16xf32>
    %cst_126 = arith.constant dense<0.000000e+00> : vector<7x16xf32>
    %370 = tpu.matmul %362, %369, %cst_126 {dimension_numbers = #tpu.dot_dimension_numbers<[1], [0], [0], [1], [0, 0, 1, 1], [], []>} : vector<7x32xf32>, vector<32x16xf32>, vector<7x16xf32> -> vector<7x16xf32>
    %c720 = arith.constant 720 : index
    %c0_127 = arith.constant 0 : index
    %371 = vector.load %arg4[%c720, %c0_127] : memref<1496x128xf32, #tpu.memory_space<vmem>>, vector<1x16xf32>
    %372 = vector.broadcast %371 : vector<1x16xf32> to vector<7x16xf32>
    %373 = arith.addf %370, %372 : vector<7x16xf32>
    %c680 = arith.constant 680 : index
    %c0_128 = arith.constant 0 : index
    %374 = vector.load %arg4[%c680, %c0_128] : memref<1496x128xf32, #tpu.memory_space<vmem>>, vector<32x16xf32>
    %cst_129 = arith.constant dense<0.000000e+00> : vector<7x16xf32>
    %375 = tpu.matmul %361, %374, %cst_129 {dimension_numbers = #tpu.dot_dimension_numbers<[1], [0], [0], [1], [0, 0, 1, 1], [], []>} : vector<7x32xf32>, vector<32x16xf32>, vector<7x16xf32> -> vector<7x16xf32>
    %c728 = arith.constant 728 : index
    %c0_130 = arith.constant 0 : index
    %376 = vector.load %arg4[%c728, %c0_130] : memref<1496x128xf32, #tpu.memory_space<vmem>>, vector<1x16xf32>
    %377 = vector.broadcast %376 : vector<1x16xf32> to vector<7x16xf32>
    %378 = arith.addf %375, %377 : vector<7x16xf32>
    %379 = vector.extract_strided_slice %368 {offsets = [0, 0], sizes = [64, 8], strides = [1, 1]} : vector<64x16xf32> to vector<64x8xf32>
    %380 = vector.extract_strided_slice %373 {offsets = [0, 0], sizes = [7, 8], strides = [1, 1]} : vector<7x16xf32> to vector<7x8xf32>
    %cst_131 = arith.constant dense<0.000000e+00> : vector<64x7xf32>
    %381 = tpu.matmul %379, %380, %cst_131 {dimension_numbers = #tpu.dot_dimension_numbers<[1], [1], [0], [0], [0, 0, 1, 0], [], []>} : vector<64x8xf32>, vector<7x8xf32>, vector<64x7xf32> -> vector<64x7xf32>
    %cst_132 = arith.constant 0.353553385 : f32
    %382 = vector.broadcast %cst_132 : f32 to vector<64x7xf32>
    %383 = arith.mulf %381, %382 : vector<64x7xf32>
    %cst_133 = arith.constant dense<0xFF800000> : vector<64xf32>
    %384 = vector.multi_reduction <maximumf>, %383, %cst_133 [1] : vector<64x7xf32> to vector<64xf32>
    %385 = vector.shape_cast %384 : vector<64xf32> to vector<64x1xf32>
    %386 = vector.broadcast %385 : vector<64x1xf32> to vector<64x7xf32>
    %387 = arith.subf %383, %386 : vector<64x7xf32>
    %388 = math.exp %387 : vector<64x7xf32>
    %cst_134 = arith.constant dense<0.000000e+00> : vector<64xf32>
    %389 = vector.multi_reduction <add>, %388, %cst_134 [1] : vector<64x7xf32> to vector<64xf32>
    %390 = vector.shape_cast %389 : vector<64xf32> to vector<64x1xf32>
    %391 = tpu.reciprocal %390 {approx = true} : vector<64x1xf32> -> vector<64x1xf32>
    %392 = vector.broadcast %391 : vector<64x1xf32> to vector<64x7xf32>
    %393 = arith.mulf %388, %392 : vector<64x7xf32>
    %394 = vector.extract_strided_slice %378 {offsets = [0, 0], sizes = [7, 8], strides = [1, 1]} : vector<7x16xf32> to vector<7x8xf32>
    %cst_135 = arith.constant dense<0.000000e+00> : vector<64x8xf32>
    %395 = tpu.matmul %393, %394, %cst_135 {dimension_numbers = #tpu.dot_dimension_numbers<[1], [0], [0], [1], [0, 0, 1, 1], [], []>} : vector<64x7xf32>, vector<7x8xf32>, vector<64x8xf32> -> vector<64x8xf32>
    %396 = vector.extract_strided_slice %368 {offsets = [0, 8], sizes = [64, 8], strides = [1, 1]} : vector<64x16xf32> to vector<64x8xf32>
    %397 = vector.extract_strided_slice %373 {offsets = [0, 8], sizes = [7, 8], strides = [1, 1]} : vector<7x16xf32> to vector<7x8xf32>
    %cst_136 = arith.constant dense<0.000000e+00> : vector<64x7xf32>
    %398 = tpu.matmul %396, %397, %cst_136 {dimension_numbers = #tpu.dot_dimension_numbers<[1], [1], [0], [0], [0, 0, 1, 0], [], []>} : vector<64x8xf32>, vector<7x8xf32>, vector<64x7xf32> -> vector<64x7xf32>
    %cst_137 = arith.constant 0.353553385 : f32
    %399 = vector.broadcast %cst_137 : f32 to vector<64x7xf32>
    %400 = arith.mulf %398, %399 : vector<64x7xf32>
    %cst_138 = arith.constant dense<0xFF800000> : vector<64xf32>
    %401 = vector.multi_reduction <maximumf>, %400, %cst_138 [1] : vector<64x7xf32> to vector<64xf32>
    %402 = vector.shape_cast %401 : vector<64xf32> to vector<64x1xf32>
    %403 = vector.broadcast %402 : vector<64x1xf32> to vector<64x7xf32>
    %404 = arith.subf %400, %403 : vector<64x7xf32>
    %405 = math.exp %404 : vector<64x7xf32>
    %cst_139 = arith.constant dense<0.000000e+00> : vector<64xf32>
    %406 = vector.multi_reduction <add>, %405, %cst_139 [1] : vector<64x7xf32> to vector<64xf32>
    %407 = vector.shape_cast %406 : vector<64xf32> to vector<64x1xf32>
    %408 = tpu.reciprocal %407 {approx = true} : vector<64x1xf32> -> vector<64x1xf32>
    %409 = vector.broadcast %408 : vector<64x1xf32> to vector<64x7xf32>
    %410 = arith.mulf %405, %409 : vector<64x7xf32>
    %411 = vector.extract_strided_slice %378 {offsets = [0, 8], sizes = [7, 8], strides = [1, 1]} : vector<7x16xf32> to vector<7x8xf32>
    %cst_140 = arith.constant dense<0.000000e+00> : vector<64x8xf32>
    %412 = tpu.matmul %410, %411, %cst_140 {dimension_numbers = #tpu.dot_dimension_numbers<[1], [0], [0], [1], [0, 0, 1, 1], [], []>} : vector<64x7xf32>, vector<7x8xf32>, vector<64x8xf32> -> vector<64x8xf32>
    %413 = tpu.concatenate %395, %412 in 1 : vector<64x8xf32>, vector<64x8xf32> -> vector<64x16xf32>
    %c736 = arith.constant 736 : index
    %c0_141 = arith.constant 0 : index
    %414 = vector.load %arg4[%c736, %c0_141] : memref<1496x128xf32, #tpu.memory_space<vmem>>, vector<16x32xf32>
    %cst_142 = arith.constant dense<0.000000e+00> : vector<64x32xf32>
    %415 = tpu.matmul %413, %414, %cst_142 {dimension_numbers = #tpu.dot_dimension_numbers<[1], [0], [0], [1], [0, 0, 1, 1], [], []>} : vector<64x16xf32>, vector<16x32xf32>, vector<64x32xf32> -> vector<64x32xf32>
    %c752 = arith.constant 752 : index
    %c0_143 = arith.constant 0 : index
    %416 = vector.load %arg4[%c752, %c0_143] : memref<1496x128xf32, #tpu.memory_space<vmem>>, vector<1x32xf32>
    %417 = vector.broadcast %416 : vector<1x32xf32> to vector<64x32xf32>
    %418 = arith.addf %415, %417 : vector<64x32xf32>
    %419 = arith.addf %167, %418 : vector<64x32xf32>
    %c1032 = arith.constant 1032 : index
    %c0_144 = arith.constant 0 : index
    %420 = vector.load %arg4[%c1032, %c0_144] : memref<1496x128xf32, #tpu.memory_space<vmem>>, vector<2x32xf32>
    %cst_145 = arith.constant dense<0.000000e+00> : vector<64xf32>
    %421 = vector.multi_reduction <add>, %419, %cst_145 [1] : vector<64x32xf32> to vector<64xf32>
    %422 = vector.shape_cast %421 : vector<64xf32> to vector<64x1xf32>
    %cst_146 = arith.constant 3.200000e+01 : f32
    %423 = vector.broadcast %cst_146 : f32 to vector<64x1xf32>
    %424 = arith.divf %422, %423 : vector<64x1xf32>
    %425 = vector.broadcast %424 : vector<64x1xf32> to vector<64x32xf32>
    %426 = arith.subf %419, %425 : vector<64x32xf32>
    %427 = arith.mulf %426, %426 : vector<64x32xf32>
    %cst_147 = arith.constant dense<0.000000e+00> : vector<64xf32>
    %428 = vector.multi_reduction <add>, %427, %cst_147 [1] : vector<64x32xf32> to vector<64xf32>
    %429 = vector.shape_cast %428 : vector<64xf32> to vector<64x1xf32>
    %cst_148 = arith.constant 3.200000e+01 : f32
    %430 = vector.broadcast %cst_148 : f32 to vector<64x1xf32>
    %431 = arith.divf %429, %430 : vector<64x1xf32>
    %432 = vector.broadcast %424 : vector<64x1xf32> to vector<64x32xf32>
    %433 = arith.subf %419, %432 : vector<64x32xf32>
    %cst_149 = arith.constant 9.99999974E-6 : f32
    %434 = vector.broadcast %cst_149 : f32 to vector<64x1xf32>
    %435 = arith.addf %431, %434 : vector<64x1xf32>
    %436 = math.rsqrt %435 : vector<64x1xf32>
    %437 = vector.broadcast %436 : vector<64x1xf32> to vector<64x32xf32>
    %438 = arith.mulf %433, %437 : vector<64x32xf32>
    %439 = vector.extract_strided_slice %420 {offsets = [0, 0], sizes = [1, 32], strides = [1, 1]} : vector<2x32xf32> to vector<1x32xf32>
    %440 = vector.broadcast %439 : vector<1x32xf32> to vector<64x32xf32>
    %441 = arith.mulf %438, %440 : vector<64x32xf32>
    %442 = vector.extract_strided_slice %420 {offsets = [1, 0], sizes = [1, 32], strides = [1, 1]} : vector<2x32xf32> to vector<1x32xf32>
    %443 = vector.broadcast %442 : vector<1x32xf32> to vector<64x32xf32>
    %444 = arith.addf %441, %443 : vector<64x32xf32>
    %445 = arith.addf %361, %163 : vector<7x32xf32>
    %446 = arith.addf %444, %164 : vector<64x32xf32>
    %c760 = arith.constant 760 : index
    %c0_150 = arith.constant 0 : index
    %447 = vector.load %arg4[%c760, %c0_150] : memref<1496x128xf32, #tpu.memory_space<vmem>>, vector<32x16xf32>
    %cst_151 = arith.constant dense<0.000000e+00> : vector<7x16xf32>
    %448 = tpu.matmul %445, %447, %cst_151 {dimension_numbers = #tpu.dot_dimension_numbers<[1], [0], [0], [1], [0, 0, 1, 1], [], []>} : vector<7x32xf32>, vector<32x16xf32>, vector<7x16xf32> -> vector<7x16xf32>
    %c856 = arith.constant 856 : index
    %c0_152 = arith.constant 0 : index
    %449 = vector.load %arg4[%c856, %c0_152] : memref<1496x128xf32, #tpu.memory_space<vmem>>, vector<1x16xf32>
    %450 = vector.broadcast %449 : vector<1x16xf32> to vector<7x16xf32>
    %451 = arith.addf %448, %450 : vector<7x16xf32>
    %c792 = arith.constant 792 : index
    %c0_153 = arith.constant 0 : index
    %452 = vector.load %arg4[%c792, %c0_153] : memref<1496x128xf32, #tpu.memory_space<vmem>>, vector<32x16xf32>
    %cst_154 = arith.constant dense<0.000000e+00> : vector<64x16xf32>
    %453 = tpu.matmul %446, %452, %cst_154 {dimension_numbers = #tpu.dot_dimension_numbers<[1], [0], [0], [1], [0, 0, 1, 1], [], []>} : vector<64x32xf32>, vector<32x16xf32>, vector<64x16xf32> -> vector<64x16xf32>
    %c864 = arith.constant 864 : index
    %c0_155 = arith.constant 0 : index
    %454 = vector.load %arg4[%c864, %c0_155] : memref<1496x128xf32, #tpu.memory_space<vmem>>, vector<1x16xf32>
    %455 = vector.broadcast %454 : vector<1x16xf32> to vector<64x16xf32>
    %456 = arith.addf %453, %455 : vector<64x16xf32>
    %c824 = arith.constant 824 : index
    %c0_156 = arith.constant 0 : index
    %457 = vector.load %arg4[%c824, %c0_156] : memref<1496x128xf32, #tpu.memory_space<vmem>>, vector<32x16xf32>
    %cst_157 = arith.constant dense<0.000000e+00> : vector<64x16xf32>
    %458 = tpu.matmul %444, %457, %cst_157 {dimension_numbers = #tpu.dot_dimension_numbers<[1], [0], [0], [1], [0, 0, 1, 1], [], []>} : vector<64x32xf32>, vector<32x16xf32>, vector<64x16xf32> -> vector<64x16xf32>
    %c872 = arith.constant 872 : index
    %c0_158 = arith.constant 0 : index
    %459 = vector.load %arg4[%c872, %c0_158] : memref<1496x128xf32, #tpu.memory_space<vmem>>, vector<1x16xf32>
    %460 = vector.broadcast %459 : vector<1x16xf32> to vector<64x16xf32>
    %461 = arith.addf %458, %460 : vector<64x16xf32>
    %462 = vector.extract_strided_slice %451 {offsets = [0, 0], sizes = [7, 8], strides = [1, 1]} : vector<7x16xf32> to vector<7x8xf32>
    %463 = vector.extract_strided_slice %456 {offsets = [0, 0], sizes = [64, 8], strides = [1, 1]} : vector<64x16xf32> to vector<64x8xf32>
    %cst_159 = arith.constant dense<0.000000e+00> : vector<7x64xf32>
    %464 = tpu.matmul %462, %463, %cst_159 {dimension_numbers = #tpu.dot_dimension_numbers<[1], [1], [0], [0], [0, 0, 1, 0], [], []>} : vector<7x8xf32>, vector<64x8xf32>, vector<7x64xf32> -> vector<7x64xf32>
    %cst_160 = arith.constant 0.353553385 : f32
    %465 = vector.broadcast %cst_160 : f32 to vector<7x64xf32>
    %466 = arith.mulf %464, %465 : vector<7x64xf32>
    %cst_161 = arith.constant dense<0xFF800000> : vector<7xf32>
    %467 = vector.multi_reduction <maximumf>, %466, %cst_161 [1] : vector<7x64xf32> to vector<7xf32>
    %468 = vector.shape_cast %467 : vector<7xf32> to vector<7x1xf32>
    %469 = vector.broadcast %468 : vector<7x1xf32> to vector<7x64xf32>
    %470 = arith.subf %466, %469 : vector<7x64xf32>
    %471 = math.exp %470 : vector<7x64xf32>
    %cst_162 = arith.constant dense<0.000000e+00> : vector<7xf32>
    %472 = vector.multi_reduction <add>, %471, %cst_162 [1] : vector<7x64xf32> to vector<7xf32>
    %473 = vector.shape_cast %472 : vector<7xf32> to vector<7x1xf32>
    %474 = tpu.reciprocal %473 {approx = true} : vector<7x1xf32> -> vector<7x1xf32>
    %475 = vector.broadcast %474 : vector<7x1xf32> to vector<7x64xf32>
    %476 = arith.mulf %471, %475 : vector<7x64xf32>
    %477 = vector.extract_strided_slice %461 {offsets = [0, 0], sizes = [64, 8], strides = [1, 1]} : vector<64x16xf32> to vector<64x8xf32>
    %cst_163 = arith.constant dense<0.000000e+00> : vector<7x8xf32>
    %478 = tpu.matmul %476, %477, %cst_163 {dimension_numbers = #tpu.dot_dimension_numbers<[1], [0], [0], [1], [0, 0, 1, 1], [], []>} : vector<7x64xf32>, vector<64x8xf32>, vector<7x8xf32> -> vector<7x8xf32>
    %479 = vector.extract_strided_slice %451 {offsets = [0, 8], sizes = [7, 8], strides = [1, 1]} : vector<7x16xf32> to vector<7x8xf32>
    %480 = vector.extract_strided_slice %456 {offsets = [0, 8], sizes = [64, 8], strides = [1, 1]} : vector<64x16xf32> to vector<64x8xf32>
    %cst_164 = arith.constant dense<0.000000e+00> : vector<7x64xf32>
    %481 = tpu.matmul %479, %480, %cst_164 {dimension_numbers = #tpu.dot_dimension_numbers<[1], [1], [0], [0], [0, 0, 1, 0], [], []>} : vector<7x8xf32>, vector<64x8xf32>, vector<7x64xf32> -> vector<7x64xf32>
    %cst_165 = arith.constant 0.353553385 : f32
    %482 = vector.broadcast %cst_165 : f32 to vector<7x64xf32>
    %483 = arith.mulf %481, %482 : vector<7x64xf32>
    %cst_166 = arith.constant dense<0xFF800000> : vector<7xf32>
    %484 = vector.multi_reduction <maximumf>, %483, %cst_166 [1] : vector<7x64xf32> to vector<7xf32>
    %485 = vector.shape_cast %484 : vector<7xf32> to vector<7x1xf32>
    %486 = vector.broadcast %485 : vector<7x1xf32> to vector<7x64xf32>
    %487 = arith.subf %483, %486 : vector<7x64xf32>
    %488 = math.exp %487 : vector<7x64xf32>
    %cst_167 = arith.constant dense<0.000000e+00> : vector<7xf32>
    %489 = vector.multi_reduction <add>, %488, %cst_167 [1] : vector<7x64xf32> to vector<7xf32>
    %490 = vector.shape_cast %489 : vector<7xf32> to vector<7x1xf32>
    %491 = tpu.reciprocal %490 {approx = true} : vector<7x1xf32> -> vector<7x1xf32>
    %492 = vector.broadcast %491 : vector<7x1xf32> to vector<7x64xf32>
    %493 = arith.mulf %488, %492 : vector<7x64xf32>
    %494 = vector.extract_strided_slice %461 {offsets = [0, 8], sizes = [64, 8], strides = [1, 1]} : vector<64x16xf32> to vector<64x8xf32>
    %cst_168 = arith.constant dense<0.000000e+00> : vector<7x8xf32>
    %495 = tpu.matmul %493, %494, %cst_168 {dimension_numbers = #tpu.dot_dimension_numbers<[1], [0], [0], [1], [0, 0, 1, 1], [], []>} : vector<7x64xf32>, vector<64x8xf32>, vector<7x8xf32> -> vector<7x8xf32>
    %496 = tpu.concatenate %478, %495 in 1 : vector<7x8xf32>, vector<7x8xf32> -> vector<7x16xf32>
    %c880 = arith.constant 880 : index
    %c0_169 = arith.constant 0 : index
    %497 = vector.load %arg4[%c880, %c0_169] : memref<1496x128xf32, #tpu.memory_space<vmem>>, vector<16x32xf32>
    %cst_170 = arith.constant dense<0.000000e+00> : vector<7x32xf32>
    %498 = tpu.matmul %496, %497, %cst_170 {dimension_numbers = #tpu.dot_dimension_numbers<[1], [0], [0], [1], [0, 0, 1, 1], [], []>} : vector<7x16xf32>, vector<16x32xf32>, vector<7x32xf32> -> vector<7x32xf32>
    %c896 = arith.constant 896 : index
    %c0_171 = arith.constant 0 : index
    %499 = vector.load %arg4[%c896, %c0_171] : memref<1496x128xf32, #tpu.memory_space<vmem>>, vector<1x32xf32>
    %500 = vector.broadcast %499 : vector<1x32xf32> to vector<7x32xf32>
    %501 = arith.addf %498, %500 : vector<7x32xf32>
    %502 = arith.addf %361, %501 : vector<7x32xf32>
    %c1040 = arith.constant 1040 : index
    %c0_172 = arith.constant 0 : index
    %503 = vector.load %arg4[%c1040, %c0_172] : memref<1496x128xf32, #tpu.memory_space<vmem>>, vector<2x32xf32>
    %cst_173 = arith.constant dense<0.000000e+00> : vector<7xf32>
    %504 = vector.multi_reduction <add>, %502, %cst_173 [1] : vector<7x32xf32> to vector<7xf32>
    %505 = vector.shape_cast %504 : vector<7xf32> to vector<7x1xf32>
    %cst_174 = arith.constant 3.200000e+01 : f32
    %506 = vector.broadcast %cst_174 : f32 to vector<7x1xf32>
    %507 = arith.divf %505, %506 : vector<7x1xf32>
    %508 = vector.broadcast %507 : vector<7x1xf32> to vector<7x32xf32>
    %509 = arith.subf %502, %508 : vector<7x32xf32>
    %510 = arith.mulf %509, %509 : vector<7x32xf32>
    %cst_175 = arith.constant dense<0.000000e+00> : vector<7xf32>
    %511 = vector.multi_reduction <add>, %510, %cst_175 [1] : vector<7x32xf32> to vector<7xf32>
    %512 = vector.shape_cast %511 : vector<7xf32> to vector<7x1xf32>
    %cst_176 = arith.constant 3.200000e+01 : f32
    %513 = vector.broadcast %cst_176 : f32 to vector<7x1xf32>
    %514 = arith.divf %512, %513 : vector<7x1xf32>
    %515 = vector.broadcast %507 : vector<7x1xf32> to vector<7x32xf32>
    %516 = arith.subf %502, %515 : vector<7x32xf32>
    %cst_177 = arith.constant 9.99999974E-6 : f32
    %517 = vector.broadcast %cst_177 : f32 to vector<7x1xf32>
    %518 = arith.addf %514, %517 : vector<7x1xf32>
    %519 = math.rsqrt %518 : vector<7x1xf32>
    %520 = vector.broadcast %519 : vector<7x1xf32> to vector<7x32xf32>
    %521 = arith.mulf %516, %520 : vector<7x32xf32>
    %522 = vector.extract_strided_slice %503 {offsets = [0, 0], sizes = [1, 32], strides = [1, 1]} : vector<2x32xf32> to vector<1x32xf32>
    %523 = vector.broadcast %522 : vector<1x32xf32> to vector<7x32xf32>
    %524 = arith.mulf %521, %523 : vector<7x32xf32>
    %525 = vector.extract_strided_slice %503 {offsets = [1, 0], sizes = [1, 32], strides = [1, 1]} : vector<2x32xf32> to vector<1x32xf32>
    %526 = vector.broadcast %525 : vector<1x32xf32> to vector<7x32xf32>
    %527 = arith.addf %524, %526 : vector<7x32xf32>
    %528 = vector.extract_strided_slice %527 {offsets = [1, 0], sizes = [1, 32], strides = [1, 1]} : vector<7x32xf32> to vector<1x32xf32>
    %c1192 = arith.constant 1192 : index
    %c0_178 = arith.constant 0 : index
    %529 = vector.load %arg4[%c1192, %c0_178] : memref<1496x128xf32, #tpu.memory_space<vmem>>, vector<32x32xf32>
    %cst_179 = arith.constant dense<0.000000e+00> : vector<1x32xf32>
    %530 = tpu.matmul %528, %529, %cst_179 {dimension_numbers = #tpu.dot_dimension_numbers<[1], [0], [0], [1], [0, 0, 1, 1], [], []>} : vector<1x32xf32>, vector<32x32xf32>, vector<1x32xf32> -> vector<1x32xf32>
    %c1224 = arith.constant 1224 : index
    %c0_180 = arith.constant 0 : index
    %531 = vector.load %arg4[%c1224, %c0_180] : memref<1496x128xf32, #tpu.memory_space<vmem>>, vector<1x32xf32>
    %532 = arith.addf %530, %531 : vector<1x32xf32>
    %cst_181 = arith.constant 0.000000e+00 : f32
    %533 = vector.broadcast %cst_181 : f32 to vector<1x32xf32>
    %534 = arith.maximumf %532, %533 : vector<1x32xf32>
    %c1232 = arith.constant 1232 : index
    %c0_182 = arith.constant 0 : index
    %535 = vector.load %arg4[%c1232, %c0_182] : memref<1496x128xf32, #tpu.memory_space<vmem>>, vector<32x32xf32>
    %cst_183 = arith.constant dense<0.000000e+00> : vector<1x32xf32>
    %536 = tpu.matmul %534, %535, %cst_183 {dimension_numbers = #tpu.dot_dimension_numbers<[1], [0], [0], [1], [0, 0, 1, 1], [], []>} : vector<1x32xf32>, vector<32x32xf32>, vector<1x32xf32> -> vector<1x32xf32>
    %c1264 = arith.constant 1264 : index
    %c0_184 = arith.constant 0 : index
    %537 = vector.load %arg4[%c1264, %c0_184] : memref<1496x128xf32, #tpu.memory_space<vmem>>, vector<1x32xf32>
    %538 = arith.addf %536, %537 : vector<1x32xf32>
    %cst_185 = arith.constant 0.000000e+00 : f32
    %539 = vector.broadcast %cst_185 : f32 to vector<1x32xf32>
    %540 = arith.maximumf %538, %539 : vector<1x32xf32>
    %c1272 = arith.constant 1272 : index
    %c0_186 = arith.constant 0 : index
    %541 = vector.load %arg4[%c1272, %c0_186] : memref<1496x128xf32, #tpu.memory_space<vmem>>, vector<32x4xf32>
    %cst_187 = arith.constant dense<0.000000e+00> : vector<1x4xf32>
    %542 = tpu.matmul %540, %541, %cst_187 {dimension_numbers = #tpu.dot_dimension_numbers<[1], [0], [0], [1], [0, 0, 1, 1], [], []>} : vector<1x32xf32>, vector<32x4xf32>, vector<1x4xf32> -> vector<1x4xf32>
    %c1304 = arith.constant 1304 : index
    %c0_188 = arith.constant 0 : index
    %543 = vector.load %arg4[%c1304, %c0_188] : memref<1496x128xf32, #tpu.memory_space<vmem>>, vector<1x4xf32>
    %544 = arith.addf %542, %543 : vector<1x4xf32>
    %c1048 = arith.constant 1048 : index
    %c0_189 = arith.constant 0 : index
    %545 = vector.load %arg4[%c1048, %c0_189] : memref<1496x128xf32, #tpu.memory_space<vmem>>, vector<32x32xf32>
    %cst_190 = arith.constant dense<0.000000e+00> : vector<64x32xf32>
    %546 = tpu.matmul %444, %545, %cst_190 {dimension_numbers = #tpu.dot_dimension_numbers<[1], [0], [0], [1], [0, 0, 1, 1], [], []>} : vector<64x32xf32>, vector<32x32xf32>, vector<64x32xf32> -> vector<64x32xf32>
    %c1080 = arith.constant 1080 : index
    %c0_191 = arith.constant 0 : index
    %547 = vector.load %arg4[%c1080, %c0_191] : memref<1496x128xf32, #tpu.memory_space<vmem>>, vector<1x32xf32>
    %548 = vector.broadcast %547 : vector<1x32xf32> to vector<64x32xf32>
    %549 = arith.addf %546, %548 : vector<64x32xf32>
    %c1096 = arith.constant 1096 : index
    %c0_192 = arith.constant 0 : index
    %550 = vector.load %arg4[%c1096, %c0_192] : memref<1496x128xf32, #tpu.memory_space<vmem>>, vector<32x32xf32>
    %cst_193 = arith.constant dense<0.000000e+00> : vector<64x32xf32>
    %551 = tpu.matmul %549, %550, %cst_193 {dimension_numbers = #tpu.dot_dimension_numbers<[1], [0], [0], [1], [0, 0, 1, 1], [], []>} : vector<64x32xf32>, vector<32x32xf32>, vector<64x32xf32> -> vector<64x32xf32>
    %552 = arith.mulf %549, %549 : vector<64x32xf32>
    %cst_194 = arith.constant dense<0.000000e+00> : vector<64x32xf32>
    %553 = tpu.matmul %552, %550, %cst_194 {dimension_numbers = #tpu.dot_dimension_numbers<[1], [0], [0], [1], [0, 0, 1, 1], [], []>} : vector<64x32xf32>, vector<32x32xf32>, vector<64x32xf32> -> vector<64x32xf32>
    %554 = arith.mulf %551, %551 : vector<64x32xf32>
    %555 = arith.subf %553, %554 : vector<64x32xf32>
    %c1088 = arith.constant 1088 : index
    %c0_195 = arith.constant 0 : index
    %556 = vector.load %arg4[%c1088, %c0_195] : memref<1496x128xf32, #tpu.memory_space<vmem>>, vector<2x32xf32>
    %557 = arith.subf %549, %551 : vector<64x32xf32>
    %cst_196 = arith.constant 9.99999997E-7 : f32
    %558 = vector.broadcast %cst_196 : f32 to vector<64x32xf32>
    %559 = arith.addf %555, %558 : vector<64x32xf32>
    %560 = math.rsqrt %559 : vector<64x32xf32>
    %561 = arith.mulf %557, %560 : vector<64x32xf32>
    %562 = vector.extract_strided_slice %556 {offsets = [0, 0], sizes = [1, 32], strides = [1, 1]} : vector<2x32xf32> to vector<1x32xf32>
    %563 = vector.broadcast %562 : vector<1x32xf32> to vector<64x32xf32>
    %564 = arith.mulf %561, %563 : vector<64x32xf32>
    %565 = vector.extract_strided_slice %556 {offsets = [1, 0], sizes = [1, 32], strides = [1, 1]} : vector<2x32xf32> to vector<1x32xf32>
    %566 = vector.broadcast %565 : vector<1x32xf32> to vector<64x32xf32>
    %567 = arith.addf %564, %566 : vector<64x32xf32>
    %cst_197 = arith.constant 5.000000e-01 : f32
    %568 = vector.broadcast %cst_197 : f32 to vector<64x32xf32>
    %569 = arith.mulf %568, %567 : vector<64x32xf32>
    %cst_198 = arith.constant 4.471500e-02 : f32
    %570 = vector.broadcast %cst_198 : f32 to vector<64x32xf32>
    %571 = arith.mulf %570, %567 : vector<64x32xf32>
    %572 = arith.mulf %571, %567 : vector<64x32xf32>
    %573 = arith.mulf %572, %567 : vector<64x32xf32>
    %574 = arith.addf %567, %573 : vector<64x32xf32>
    %cst_199 = arith.constant 0.797884583 : f32
    %575 = vector.broadcast %cst_199 : f32 to vector<64x32xf32>
    %576 = arith.mulf %575, %574 : vector<64x32xf32>
    %577 = math.tanh %576 : vector<64x32xf32>
    %cst_200 = arith.constant 1.000000e+00 : f32
    %578 = vector.broadcast %cst_200 : f32 to vector<64x32xf32>
    %579 = arith.addf %578, %577 : vector<64x32xf32>
    %580 = arith.mulf %569, %579 : vector<64x32xf32>
    %c1128 = arith.constant 1128 : index
    %c0_201 = arith.constant 0 : index
    %581 = vector.load %arg4[%c1128, %c0_201] : memref<1496x128xf32, #tpu.memory_space<vmem>>, vector<32x64xf32>
    %cst_202 = arith.constant dense<0.000000e+00> : vector<64x64xf32>
    %582 = tpu.matmul %580, %581, %cst_202 {dimension_numbers = #tpu.dot_dimension_numbers<[1], [0], [0], [1], [0, 0, 1, 1], [], []>} : vector<64x32xf32>, vector<32x64xf32>, vector<64x64xf32> -> vector<64x64xf32>
    %c1160 = arith.constant 1160 : index
    %c0_203 = arith.constant 0 : index
    %583 = vector.load %arg4[%c1160, %c0_203] : memref<1496x128xf32, #tpu.memory_space<vmem>>, vector<1x64xf32>
    %584 = vector.broadcast %583 : vector<1x64xf32> to vector<64x64xf32>
    %585 = arith.addf %582, %584 : vector<64x64xf32>
    %cst_204 = arith.constant 5.000000e-01 : f32
    %586 = vector.broadcast %cst_204 : f32 to vector<64x64xf32>
    %587 = arith.mulf %586, %585 : vector<64x64xf32>
    %cst_205 = arith.constant 4.471500e-02 : f32
    %588 = vector.broadcast %cst_205 : f32 to vector<64x64xf32>
    %589 = arith.mulf %588, %585 : vector<64x64xf32>
    %590 = arith.mulf %589, %585 : vector<64x64xf32>
    %591 = arith.mulf %590, %585 : vector<64x64xf32>
    %592 = arith.addf %585, %591 : vector<64x64xf32>
    %cst_206 = arith.constant 0.797884583 : f32
    %593 = vector.broadcast %cst_206 : f32 to vector<64x64xf32>
    %594 = arith.mulf %593, %592 : vector<64x64xf32>
    %595 = math.tanh %594 : vector<64x64xf32>
    %cst_207 = arith.constant 1.000000e+00 : f32
    %596 = vector.broadcast %cst_207 : f32 to vector<64x64xf32>
    %597 = arith.addf %596, %595 : vector<64x64xf32>
    %598 = arith.mulf %587, %597 : vector<64x64xf32>
    %c1168 = arith.constant 1168 : index
    %c0_208 = arith.constant 0 : index
    %599 = vector.load %arg4[%c1168, %c0_208] : memref<1496x128xf32, #tpu.memory_space<vmem>>, vector<4x64xf32>
    %cst_209 = arith.constant dense<0.000000e+00> : vector<1x64xf32>
    %600 = tpu.matmul %544, %599, %cst_209 {dimension_numbers = #tpu.dot_dimension_numbers<[1], [0], [0], [1], [0, 0, 1, 1], [], []>} : vector<1x4xf32>, vector<4x64xf32>, vector<1x64xf32> -> vector<1x64xf32>
    %c1176 = arith.constant 1176 : index
    %c0_210 = arith.constant 0 : index
    %601 = vector.load %arg4[%c1176, %c0_210] : memref<1496x128xf32, #tpu.memory_space<vmem>>, vector<16x64xf32>
    %602 = vector.broadcast %600 : vector<1x64xf32> to vector<16x64xf32>
    %603 = arith.mulf %601, %602 : vector<16x64xf32>
    %cst_211 = arith.constant dense<0.000000e+00> : vector<16x64xf32>
    %604 = tpu.matmul %603, %598, %cst_211 {dimension_numbers = #tpu.dot_dimension_numbers<[1], [1], [0], [0], [0, 0, 1, 0], [], []>} : vector<16x64xf32>, vector<64x64xf32>, vector<16x64xf32> -> vector<16x64xf32>
    %c0_212 = arith.constant 0 : index
    %c0_213 = arith.constant 0 : index
    %c0_214 = arith.constant 0 : index
    %605 = vector.load %arg5[%c0_212, %c0_213, %c0_214] : memref<1x16x64xf32, #tpu.memory_space<vmem>>, vector<1x16x64xf32>
    %606 = vector.shape_cast %605 : vector<1x16x64xf32> to vector<16x64xf32>
    %607 = vector.shape_cast %604 : vector<16x64xf32> to vector<1x16x64xf32>
    tpu.vector_store %arg5[%c0_212, %c0_213, %c0_214], %607 {strides = array<i32>} : memref<1x16x64xf32, #tpu.memory_space<vmem>>, vector<1x16x64xf32>,
    %608 = vector.extract_strided_slice %527 {offsets = [0, 0], sizes = [1, 32], strides = [1, 1]} : vector<7x32xf32> to vector<1x32xf32>
    %c1312 = arith.constant 1312 : index
    %c0_215 = arith.constant 0 : index
    %609 = vector.load %arg4[%c1312, %c0_215] : memref<1496x128xf32, #tpu.memory_space<vmem>>, vector<32x64xf32>
    %cst_216 = arith.constant dense<0.000000e+00> : vector<1x64xf32>
    %610 = tpu.matmul %608, %609, %cst_216 {dimension_numbers = #tpu.dot_dimension_numbers<[1], [0], [0], [1], [0, 0, 1, 1], [], []>} : vector<1x32xf32>, vector<32x64xf32>, vector<1x64xf32> -> vector<1x64xf32>
    %c1344 = arith.constant 1344 : index
    %c0_217 = arith.constant 0 : index
    %611 = vector.load %arg4[%c1344, %c0_217] : memref<1496x128xf32, #tpu.memory_space<vmem>>, vector<1x64xf32>
    %612 = arith.addf %610, %611 : vector<1x64xf32>
    %cst_218 = arith.constant 0.000000e+00 : f32
    %613 = vector.broadcast %cst_218 : f32 to vector<1x64xf32>
    %614 = arith.maximumf %612, %613 : vector<1x64xf32>
    %c1352 = arith.constant 1352 : index
    %c0_219 = arith.constant 0 : index
    %615 = vector.load %arg4[%c1352, %c0_219] : memref<1496x128xf32, #tpu.memory_space<vmem>>, vector<64x64xf32>
    %cst_220 = arith.constant dense<0.000000e+00> : vector<1x64xf32>
    %616 = tpu.matmul %614, %615, %cst_220 {dimension_numbers = #tpu.dot_dimension_numbers<[1], [0], [0], [1], [0, 0, 1, 1], [], []>} : vector<1x64xf32>, vector<64x64xf32>, vector<1x64xf32> -> vector<1x64xf32>
    %c1416 = arith.constant 1416 : index
    %c0_221 = arith.constant 0 : index
    %617 = vector.load %arg4[%c1416, %c0_221] : memref<1496x128xf32, #tpu.memory_space<vmem>>, vector<1x64xf32>
    %618 = arith.addf %616, %617 : vector<1x64xf32>
    %cst_222 = arith.constant 0.000000e+00 : f32
    %619 = vector.broadcast %cst_222 : f32 to vector<1x64xf32>
    %620 = arith.maximumf %618, %619 : vector<1x64xf32>
    %c1424 = arith.constant 1424 : index
    %c0_223 = arith.constant 0 : index
    %621 = vector.load %arg4[%c1424, %c0_223] : memref<1496x128xf32, #tpu.memory_space<vmem>>, vector<64x4xf32>
    %cst_224 = arith.constant dense<0.000000e+00> : vector<1x4xf32>
    %622 = tpu.matmul %620, %621, %cst_224 {dimension_numbers = #tpu.dot_dimension_numbers<[1], [0], [0], [1], [0, 0, 1, 1], [], []>} : vector<1x64xf32>, vector<64x4xf32>, vector<1x4xf32> -> vector<1x4xf32>
    %c1488 = arith.constant 1488 : index
    %c0_225 = arith.constant 0 : index
    %623 = vector.load %arg4[%c1488, %c0_225] : memref<1496x128xf32, #tpu.memory_space<vmem>>, vector<1x4xf32>
    %624 = arith.addf %622, %623 : vector<1x4xf32>
    %c0_226 = arith.constant 0 : index
    %c0_227 = arith.constant 0 : index
    %c0_228 = arith.constant 0 : index
    %625 = vector.load %arg6[%c0_226, %c0_227, %c0_228] : memref<1x1x4xf32, #tpu.memory_space<vmem>>, vector<1x1x4xf32>
    %626 = vector.shape_cast %625 : vector<1x1x4xf32> to vector<1x4xf32>
    %627 = vector.shape_cast %624 : vector<1x4xf32> to vector<1x1x4xf32>
    tpu.vector_store %arg6[%c0_226, %c0_227, %c0_228], %627 {strides = array<i32>} : memref<1x1x4xf32, #tpu.memory_space<vmem>>, vector<1x1x4xf32>,
    return
  }
  func.func @transform_0(%arg0: i32) -> (i32, i32, i32) {
    %c0_i32 = arith.constant 0 : i32
    %c0_i32_0 = arith.constant 0 : i32
    %c0_i32_1 = arith.constant 0 : i32
    return %arg0, %c0_i32, %c0_i32_0 : i32, i32, i32
  }
  func.func @transform_1(%arg0: i32) -> (i32, i32) {
    %c0_i32 = arith.constant 0 : i32
    %c0_i32_0 = arith.constant 0 : i32
    %c0_i32_1 = arith.constant 0 : i32
    return %c0_i32, %c0_i32_0 : i32, i32
  }
  func.func @transform_2(%arg0: i32) -> (i32, i32, i32) {
    %c0_i32 = arith.constant 0 : i32
    %c0_i32_0 = arith.constant 0 : i32
    %c0_i32_1 = arith.constant 0 : i32
    return %arg0, %c0_i32, %c0_i32_0 : i32, i32, i32
  }
  func.func @transform_3(%arg0: i32) -> (i32, i32) {
    %c0_i32 = arith.constant 0 : i32
    %c0_i32_0 = arith.constant 0 : i32
    %c0_i32_1 = arith.constant 0 : i32
    return %c0_i32, %c0_i32_0 : i32, i32
  }
  func.func @transform_4(%arg0: i32) -> (i32, i32, i32) {
    %c0_i32 = arith.constant 0 : i32
    %c0_i32_0 = arith.constant 0 : i32
    %c0_i32_1 = arith.constant 0 : i32
    return %arg0, %c0_i32, %c0_i32_0 : i32, i32, i32
  }
  func.func @transform_5(%arg0: i32) -> (i32, i32, i32) {
    %c0_i32 = arith.constant 0 : i32
    %c0_i32_0 = arith.constant 0 : i32
    %c0_i32_1 = arith.constant 0 : i32
    return %arg0, %c0_i32, %c0_i32_0 : i32, i32, i32
  }
}

</mosaic_0001>

<bundles_post_ra>
// kernel: medsam_lite_forward.1
= control target key start
LH: loop header
LB: loop body
LE: loop exit
PB: predicated region body
PF: predicated region fallthrough
CT: control target
= control target key end

     0   :  { %s10478_s18 = smov 0   ;;  %s12906_s0 = inlined_call_operand.vmem [shape: f32[2,64,48], index: 0, kind: input, shape index: {}]   ;;  %s12907_s1 = inlined_call_operand.vmem [shape: f32[64,32], index: 1, kind: input, shape index: {}]   ;;  %s12908_s2 = inlined_call_operand.vmem [shape: f32[2,7,32], index: 2, kind: input, shape index: {}]   ;;  %s12909_s3 = inlined_call_operand.vmem [shape: f32[1496,128], index: 3, kind: input, shape index: {}]   ;;  %s12910_s4 = inlined_call_operand.vmem [shape: f32[2,16,64], index: 4, kind: output, shape index: {0}]   ;;  %s12911_s5 = inlined_call_operand.vmem [shape: f32[2,1,4], index: 5, kind: output, shape index: {1}]  }
   0x1 LB: > { %s7802_s19 = sadd.s32 4294967295, %s10435_s18   ;;  %p7806_p0 = scmp.ge.s32.totalorder %s10435_s18, 1  ;;  %s10435_s18 = sphi %s10478_s18, %s16_s18  }
   0x2   : > { %p199_p1 = scmp.lt.s32.totalorder %s10435_s18, 3 }
   0x4   : > { %p200_p2 = pnand %p7806_p0, %p199_p1 }
   0x5   : > { %v259_v0 = vld [vmem:[%s12909_s3] sm:$0xff] (!%p200_p2)  ;;  %v260_v1 = vld [vmem:[%s12909_s3 + $0x8] sm:$0xff] (!%p200_p2)  ;;  %v261_v2 = vld [vmem:[%s12909_s3 + $0x10] sm:$0xff] (!%p200_p2)  ;;  %p234_p3 = scmp.lt.s32.totalorder (!%p200_p2), %s7802_s19, 1  ;;  %vm270_vm0 = vcmask (!%p200_p2), 392192   ;;  %vm417_vm1 = vcmask (!%p200_p2), 261120  }
   0x6   : > { %203 = sbr.rel (%p200_p2) target bundleno = 13574 (0x3506), region = 36  ;;  %v9489_v3 = vpack.c.bf16 (!%p200_p2), %v260_v1, %v259_v0  ;;  %v262_v4 = vld [vmem:[%s12909_s3 + $0x18] sm:$0xff] (!%p200_p2)  ;;  %v263_v6 = vld [vmem:[%s12909_s3 + $0x20] sm:$0xff] (!%p200_p2)  ;;  %v264_v7 = vld [vmem:[%s12909_s3 + $0x28] sm:$0xff] (!%p200_p2)  ;;  %vm709_vm2 = vcmask (!%p200_p2), 130048   ;;  %s10437_s20 = smov (!%p200_p2), 96  }
   0x7   : > { %v9493_v5 = vpack.c.bf16 (!%p200_p2), %v262_v4, %v261_v2  ;;  %v9497_v8 = vpack.c.bf16 (!%p200_p2), %v264_v7, %v263_v6  ;;  %v7812_v17 = vld [vmem:[%s12909_s3 + $0x30] ss:$0 sm:$0xff] (!%p200_p2)  ;;  %v400_v20 = vld [vmem:[%s12909_s3 + $0x38] sm:$0xff] (!%p200_p2)  ;;  %v401_v23 = vld [vmem:[%s12909_s3 + $0x40] sm:$0xff] (!%p200_p2)  ;;  %vm855_vm4 = vcmask (!%p200_p2), 523264   ;;  %s10438_s21 = smov (!%p200_p2), 64  }
   0x8   : > { %9490 = vmatprep.subr.bf16.mxu0 (!%p200_p2), %v9489_v3  ;;  %v403_v27 = vld [vmem:[%s12909_s3 + $0x50] sm:$0xff] (!%p200_p2)  ;;  %v402_v29 = vld [vmem:[%s12909_s3 + $0x48] sm:$0xff] (!%p200_p2)  ;;  %v405_v37 = vld [vmem:[%s12909_s3 + $0x60] sm:$0xff] (!%p200_p2)  ;;  %s10439_s22 = smov (!%p200_p2), 80   ;;  %s10440_s23 = smov (!%p200_p2), 112   ;;  %vm10445_vm5 = vmmov (!%p200_p2), 0  }
   0x9   : > { %9492 = vmatpush3.bf16.msra.mxu0 (!%p200_p2), %v9489_v3  ;;  %v404_v39 = vld [vmem:[%s12909_s3 + $0x58] sm:$0xff] (!%p200_p2)  ;;  %v407_v48 = vld [vmem:[%s12909_s3 + $0x70] sm:$0xff] (!%p200_p2)  ;;  %v406_v50 = vld [vmem:[%s12909_s3 + $0x68] sm:$0xff] (!%p200_p2)  ;;  %s10441_s24 = smov (!%p200_p2), 48   ;;  %s10442_s8 = smov (!%p200_p2), 16   ;;  %vm2647_vm6 = vcmask (!%p200_p2), 55296  }
   0xa   : > { %9494 = vmatprep.subr.bf16.mxu0 (!%p200_p2), %v9493_v5  ;;  %vm10709_vm3 = vmpackc.low (!%p200_p2), %vm709_vm2, %vm709_vm2  ;;  %vm2665_vm7 = vcmask (!%p200_p2), 1046528   ;;  %vm2661_vm8 = vcmask (!%p200_p2), 56320   ;;  %vm2993_vm9 = vcmask (!%p200_p2), 260096   ;;  %vm3384_vm10 = vcmask (!%p200_p2), 64512  }
   0xb   : > { %vm11498_vm11 = vmpackc.low (!%p200_p2), %vm3384_vm10, %vm3384_vm10  ;;  %vm3483_vm12 = vcmask (!%p200_p2), 522240   ;;  %vm7276_vm13 = vcmask (!%p200_p2), 1043456   ;;  %vm7272_vm14 = vcmask (!%p200_p2), 31744  }
   0xc   : > { %vm12827_vm15 = vmpackc.low (!%p200_p2), %vm855_vm4, %vm855_vm4 }
   0xd   : > { %s12919_s19 = smov (!%p234_p3, %s7802_s19), 1  ;;  %9496 = vmatpush3.bf16.msra.mxu0 %v9493_v5 }
   0xe   : > { %s8127_s7 = sshll.u32 %s12919_s19, 6  ;;  %9498 = vmatprep.subr.bf16.mxu0 %v9497_v8 }
   0xf   : > { %s238_s10 = scalar_lea.vmem %s12906_s0, %s8127_s7  ;;  %s7809_s7 = sshll.u32 %s12919_s19, 3 }
  0x10   : > { %v251_v9 = vld [vmem:[%s238_s10] sm:$0xff]  ;;  %v252_v10 = vld [vmem:[%s238_s10 + $0x8] sm:$0xff]  ;;  %v253_v11 = vld [vmem:[%s238_s10 + $0x10] sm:$0xff]  ;;  %s11280_s11 = scalar_lea.vmem %s12908_s2, %s7809_s7 }
  0x11   : > { %8617 = vmatprep.mubr.msk.f32.mxu0 %vm270_vm0, %v251_v9  ;;  %9500 = vmatpush3.bf16.msra.mxu0 %v9497_v8  ;;  %v254_v12 = vld [vmem:[%s238_s10 + $0x18] sm:$0xff]  ;;  %v255_v13 = vld [vmem:[%s238_s10 + $0x20] sm:$0xff]  ;;  %v256_v14 = vld [vmem:[%s238_s10 + $0x28] sm:$0xff] }
  0x12   : > { %v257_v15 = vld [vmem:[%s238_s10 + $0x30] sm:$0xff]  ;;  %v258_v16 = vld [vmem:[%s238_s10 + $0x38] sm:$0xff]  ;;  %s10446_s10 = smov 120  }
  0x14   : > { %8618 = vmatmul.mubr.msk.f32.vlgmr.msra.gmra.mrb[0].mxu0 %vm270_vm0, %v252_v10 }
  0x15   : > { %8620 = vmatprep.mubr.msk.f32.mxu0 %vm270_vm0, %v253_v11 }
  0x18   : > { %8621 = vmatmul.mubr.msk.f32.gmra.mrb[2].mxu0 %vm270_vm0, %v254_v12 }
  0x19   : > { %8623 = vmatprep.mubr.msk.f32.mxu0 %vm270_vm0, %v255_v13 }
  0x1c   : > { %8624 = vmatmul.mubr.msk.f32.gmra.mrb[4].mxu0 %vm270_vm0, %v256_v14 }
  0x1d   : > { %8626 = vmatprep.mubr.msk.f32.mxu0 %vm270_vm0, %v257_v15 }
  0x20   : > { %8627 = vmatmul.mubr.msk.f32.gmra.mrb[6].mxu0 %vm270_vm0, %v258_v16  ;;  %vm7708_vm0 = vcmask 24576  }
  0xe7   : > { %v8619_v18 = vpop.f32.mrb[0].mxu0 }
  0xe8   : > { %v361_v19 = vpop.f32.mrb[1].mxu0  ;;  %v367_v21 = vadd.f32 %v8619_v18, %v7812_v17 }
  0xe9   : > { %v362_v22 = vadd.f32 %v7812_v17, %v361_v19 }
  0xea   : > { %v10535_v30 = vadd.f32 %v401_v23, %v367_v21 }
  0xeb   : > { %v10527_v24 = vadd.f32 %v400_v20, %v362_v22  ;;  %v8622_v25 = vpop.f32.mrb[2].mxu0 }
  0xec   : > { %v377_v26 = vadd.f32 %v8622_v25, %v7812_v17  ;;  %v371_v28 = vpop.f32.mrb[3].mxu0  ;;  %v421_v42 = vsel %vm417_vm1, %v10535_v30, 0.0 }
  0xed   : > { %v372_v31 = vadd.f32 %v7812_v17, %v371_v28  ;;  %v418_v32 = vsel %vm417_vm1, %v10527_v24, 0.0 }
  0xee   : > { %419 = vadd.xlane.f32.xlu0 %v418_v32  ;;  %v10539_v33 = vadd.f32 %v403_v27, %v377_v26 }
  0xef   : > { %v10541_v34 = vadd.f32 %v402_v29, %v372_v31  ;;  %v8625_v35 = vpop.f32.mrb[4].mxu0 }
  0xf0   : > { %v387_v36 = vadd.f32 %v8625_v35, %v7812_v17  ;;  %v381_v38 = vpop.f32.mrb[5].mxu0  ;;  %v427_v46 = vsel %vm417_vm1, %v10539_v33, 0.0 }
  0xf1   : > { %v382_v40 = vadd.f32 %v7812_v17, %v381_v38  ;;  %v424_v41 = vsel %vm417_vm1, %v10541_v34, 0.0  ;;  %v547_v38 = vld [vmem:[%s12909_s3 + $0x80] sm:$0xff] }
  0xf2   : > { %425 = vadd.xlane.f32.xlu1 %v424_v41  ;;  %422 = vadd.xlane.f32.xlu0 %v421_v42  ;;  %v10553_v43 = vadd.f32 %v405_v37, %v387_v36  ;;  %v549_v41 = vld [vmem:[%s12909_s3 + $0x90] sm:$0xff]  ;;  %v550_v42 = vld [vmem:[%s12909_s3 + $0x98] sm:$0xff] }
  0xf3   : > { %v10555_v44 = vadd.f32 %v404_v39, %v382_v40  ;;  %v8628_v45 = vpop.f32.mrb[6].mxu0  ;;  %v548_v39 = vld [vmem:[%s12909_s3 + $0x88] sm:$0xff] }
  0xf4   : > { %v397_v47 = vadd.f32 %v8628_v45, %v7812_v17  ;;  %v391_v49 = vpop.f32.mrb[7].mxu0  ;;  %v433_v55 = vsel %vm417_vm1, %v10553_v43, 0.0  ;;  %v9501_v40 = vpack.c.bf16 %v548_v39, %v547_v38  ;;  %v9505_v45 = vpack.c.bf16 %v550_v42, %v549_v41 }
  0xf5   : > { %v392_v51 = vadd.f32 %v7812_v17, %v391_v49  ;;  %v430_v52 = vsel %vm417_vm1, %v10555_v44, 0.0 }
  0xf6   : > { %428 = vadd.xlane.f32.xlu1 %v427_v46  ;;  %431 = vadd.xlane.f32.xlu0 %v430_v52  ;;  %v10567_v53 = vadd.f32 %v407_v48, %v397_v47  ;;  %v523_v48 = vlaneseq }
  0xf7   : > { %v10569_v54 = vadd.f32 %v406_v50, %v392_v51  ;;  %9502 = vmatprep.subr.bf16.mxu1 %v9501_v40 }
  0xf8   : > { %v439_v57 = vsel %vm417_vm1, %v10567_v53, 0.0  ;;  %9504 = vmatpush3.bf16.msra.mxu1 %v9501_v40 }
  0xf9   : > { %v436_v56 = vsel %vm417_vm1, %v10569_v54, 0.0  ;;  %9506 = vmatprep.subr.bf16.mxu1 %v9505_v45 }
  0xfa   : > { %434 = vadd.xlane.f32.xlu1 %v433_v55  ;;  %437 = vadd.xlane.f32.xlu0 %v436_v56  ;;  %v524_v56 = vshrl.u32 %v523_v48, 7 }
  0xfc   : > { %9508 = vmatpush3.bf16.msra.mxu1 %v9505_v45 }
  0xfe   : > { %440 = vadd.xlane.f32.xlu1 %v439_v57 }
 0x17b   : > { %v420_v58 = vpop.xlane.xlu0 %419 }
 0x17c   : > { %v443_v59 = vmul.f32 0.03125, %v420_v58 }
 0x17e   : > { %v10578_v60 = vsub.f32 %v10527_v24, %v443_v59 }
 0x17f   : > { %v426_v61 = vpop.xlane.xlu1 %425  ;;  %v423_v62 = vpop.xlane.xlu0 %422 }
 0x180   : > { %v445_v63 = vmul.f32 0.03125, %v426_v61  ;;  %v444_v0 = vmul.f32 0.03125, %v423_v62  ;;  %v459_v1 = vmul.f32 %v10578_v60, %v10578_v60 }
 0x182   : > { %v10583_v2 = vsub.f32 %v10541_v34, %v445_v63  ;;  %v10586_v3 = vsub.f32 %v10535_v30, %v444_v0  ;;  %v467_v4 = vsel %vm417_vm1, %v459_v1, 0.0  ;;  %v10637_v0 = vsub.s32 0, %v524_v56 }
 0x183   : > { %v429_v5 = vpop.xlane.xlu1 %428  ;;  %468 = vadd.xlane.f32.xlu0 %v467_v4  ;;  %v432_v6 = vpop.xlane.xlu0 %431 }
 0x184   : > { %v446_v7 = vmul.f32 0.03125, %v429_v5  ;;  %v447_v8 = vmul.f32 0.03125, %v432_v6  ;;  %v461_v9 = vmul.f32 %v10583_v2, %v10583_v2  ;;  %v460_v10 = vmul.f32 %v10586_v3, %v10586_v3  ;;  %v416_v5 = vld [vmem:[%s12909_s3 + $0x78] sm:$0x3] }
 0x186   : > { %v10594_v11 = vsub.f32 %v10539_v33, %v446_v7  ;;  %v10597_v12 = vsub.f32 %v10555_v44, %v447_v8  ;;  %v473_v13 = vsel %vm417_vm1, %v461_v9, 0.0  ;;  %v470_v14 = vsel %vm417_vm1, %v460_v10, 0.0 }
 0x187   : > { %v435_v15 = vpop.xlane.xlu1 %434  ;;  %474 = vadd.xlane.f32.xlu0 %v473_v13  ;;  %471 = vadd.xlane.f32.xlu1 %v470_v14  ;;  %v438_v16 = vpop.xlane.xlu0 %437  ;;  %v10642_v8 = vsub.s32 1, %v524_v56  ;;  %v526_v13 = vrot.slane %v416_v5, %v10637_v0 }
 0x188   : > { %v448_v17 = vmul.f32 0.03125, %v435_v15  ;;  %v449_v18 = vmul.f32 0.03125, %v438_v16  ;;  %v462_v19 = vmul.f32 %v10594_v11, %v10594_v11  ;;  %v463_v20 = vmul.f32 %v10597_v12, %v10597_v12 }
 0x18a   : > { %v10606_v21 = vsub.f32 %v10553_v43, %v448_v17  ;;  %v10609_v22 = vsub.f32 %v10569_v54, %v449_v18  ;;  %v476_v23 = vsel %vm417_vm1, %v462_v19, 0.0  ;;  %v479_v25 = vsel %vm417_vm1, %v463_v20, 0.0 }
 0x18b   : > { %v441_v26 = vpop.xlane.xlu1 %440  ;;  %477 = vadd.xlane.f32.xlu1 %v476_v23  ;;  %480 = vadd.xlane.f32.xlu0 %v479_v25  ;;  %v538_v19 = vrot.slane %v416_v5, %v10642_v8 }
 0x18c   : > { %v450_v27 = vmul.f32 0.03125, %v441_v26  ;;  %v464_v28 = vmul.f32 %v10606_v21, %v10606_v21  ;;  %v465_v29 = vmul.f32 %v10609_v22, %v10609_v22 }
 0x18e   : > { %v10618_v31 = vsub.f32 %v10567_v53, %v450_v27  ;;  %v482_v32 = vsel %vm417_vm1, %v464_v28, 0.0  ;;  %v485_v35 = vsel %vm417_vm1, %v465_v29, 0.0 }
 0x18f   : > { %483 = vadd.xlane.f32.xlu1 %v482_v32  ;;  %486 = vadd.xlane.f32.xlu0 %v485_v35 }
 0x190   : > { %v466_v36 = vmul.f32 %v10618_v31, %v10618_v31 }
 0x192   : > { %v488_v37 = vsel %vm417_vm1, %v466_v36, 0.0 }
 0x193   : > { %489 = vadd.xlane.f32.xlu1 %v488_v37 }
 0x210   : > { %v469_v46 = vpop.xlane.xlu0 %468 }
 0x211   : > { %v491_v47 = vmul.f32 0.03125, %v469_v46 }
 0x213   : > { %v499_v49 = vadd.f32 1e-05, %v491_v47 }
 0x214   : > { %v472_v50 = vpop.xlane.xlu1 %471  ;;  %v475_v51 = vpop.xlane.xlu0 %474 }
 0x215   : > { %10132 = vrsqrt.f32 %v499_v49  ;;  %v492_v52 = vmul.f32 0.03125, %v472_v50  ;;  %v493_v55 = vmul.f32 0.03125, %v475_v51 }
 0x217   : > { %v500_v57 = vadd.f32 1e-05, %v492_v52  ;;  %v501_v58 = vadd.f32 1e-05, %v493_v55 }
 0x218   : > { %v478_v59 = vpop.xlane.xlu1 %477  ;;  %v481_v61 = vpop.xlane.xlu0 %480 }
 0x219   : > { %10134 = vrsqrt.f32 %v500_v57  ;;  %v494_v62 = vmul.f32 0.03125, %v478_v59  ;;  %v495_v63 = vmul.f32 0.03125, %v481_v61 }
 0x21a   : > { %10136 = vrsqrt.f32 %v501_v58 }
 0x21b   : > { %v502_v1 = vadd.f32 1e-05, %v494_v62  ;;  %v503_v4 = vadd.f32 1e-05, %v495_v63 }
 0x21c   : > { %v484_v6 = vpop.xlane.xlu1 %483  ;;  %v487_v7 = vpop.xlane.xlu0 %486 }
 0x21d   : > { %10138 = vrsqrt.f32 %v502_v1  ;;  %v496_v9 = vmul.f32 0.03125, %v484_v6  ;;  %v497_v10 = vmul.f32 0.03125, %v487_v7 }
 0x21e   : > { %10140 = vrsqrt.f32 %v503_v4 }
 0x21f   : > { %v10133_v14 = vpop.eup %10132  ;;  %v504_v15 = vadd.f32 1e-05, %v496_v9  ;;  %v505_v16 = vadd.f32 1e-05, %v497_v10 }
 0x220   : > { %v490_v17 = vpop.xlane.xlu1 %489  ;;  %v515_v18 = vmul.f32 %v10133_v14, %v10578_v60 }
 0x221   : > { %10142 = vrsqrt.f32 %v504_v15  ;;  %v498_v20 = vmul.f32 0.03125, %v490_v17 }
 0x222   : > { %10144 = vrsqrt.f32 %v505_v16  ;;  %v527_v23 = vmul.f32 %v526_v13, %v515_v18 }
 0x223   : > { %v10135_v25 = vpop.eup %10134  ;;  %v506_v26 = vadd.f32 1e-05, %v498_v20 }
 0x224   : > { %v10137_v27 = vpop.eup %10136  ;;  %v539_v28 = vadd.f32 %v538_v19, %v527_v23  ;;  %v516_v29 = vmul.f32 %v10135_v25, %v10586_v3 }
 0x225   : > { %10146 = vrsqrt.f32 %v506_v26  ;;  %v517_v32 = vmul.f32 %v10137_v27, %v10583_v2 }
 0x226   : > { %8637 = vmatprep.mubr.msk.f32.mxu1 %vm417_vm1, %v539_v28  ;;  %v528_v35 = vmul.f32 %v526_v13, %v516_v29 }
 0x227   : > { %v10139_v36 = vpop.eup %10138  ;;  %v529_v60 = vmul.f32 %v526_v13, %v517_v32 }
 0x228   : > { %v10141_v37 = vpop.eup %10140  ;;  %v540_v38 = vadd.f32 %v538_v19, %v528_v35  ;;  %v518_v39 = vmul.f32 %v10139_v36, %v10594_v11 }
 0x229   : > { %v541_v40 = vadd.f32 %v538_v19, %v529_v60  ;;  %v519_v41 = vmul.f32 %v10141_v37, %v10597_v12 }
 0x22a   : > { %8638 = vmatmul.mubr.msk.f32.vlgmr.msra.gmra.mrb[0].mxu1 %vm417_vm1, %v540_v38  ;;  %v530_v42 = vmul.f32 %v526_v13, %v518_v39 }
 0x22b   : > { %v10143_v45 = vpop.eup %10142  ;;  %8640 = vmatprep.mubr.msk.f32.mxu1 %vm417_vm1, %v541_v40  ;;  %v531_v3 = vmul.f32 %v526_v13, %v519_v41 }
 0x22c   : > { %v10145_v2 = vpop.eup %10144  ;;  %v542_v46 = vadd.f32 %v538_v19, %v530_v42  ;;  %v520_v47 = vmul.f32 %v10143_v45, %v10606_v21 }
 0x22d   : > { %v543_v48 = vadd.f32 %v538_v19, %v531_v3  ;;  %v521_v49 = vmul.f32 %v10145_v2, %v10609_v22  ;;  %v7821_v22 = vld [vmem:[%s12909_s3 + $0xa0] ss:$0 sm:$0xff] }
 0x22e   : > { %8641 = vmatmul.mubr.msk.f32.gmra.mrb[2].mxu1 %vm417_vm1, %v542_v46  ;;  %v532_v11 = vmul.f32 %v526_v13, %v520_v47 }
 0x22f   : > { %v10147_v50 = vpop.eup %10146  ;;  %8643 = vmatprep.mubr.msk.f32.mxu1 %vm417_vm1, %v543_v48  ;;  %v533_v12 = vmul.f32 %v526_v13, %v521_v49 }
 0x230   : > { %v544_v51 = vadd.f32 %v538_v19, %v532_v11  ;;  %v522_v52 = vmul.f32 %v10147_v50, %v10618_v31 }
 0x231   : > { %v545_v55 = vadd.f32 %v538_v19, %v533_v12 }
 0x232   : > { %8644 = vmatmul.mubr.msk.f32.gmra.mrb[4].mxu1 %vm417_vm1, %v544_v51  ;;  %v534_v56 = vmul.f32 %v526_v13, %v522_v52 }
 0x233   : > { %8646 = vmatprep.mubr.msk.f32.mxu1 %vm417_vm1, %v545_v55 }
 0x234   : > { %v546_v21 = vadd.f32 %v538_v19, %v534_v56 }
 0x236   : > { %8647 = vmatmul.mubr.msk.f32.gmra.mrb[6].mxu1 %vm417_vm1, %v546_v21 }
 0x2fd   : > { %v8639_v57 = vpop.f32.mrb[0].mxu1 }
 0x2fe   : > { %v10665_v58 = vadd.f32 %v8639_v57, %v7821_v22  ;;  %v646_v59 = vpop.f32.mrb[1].mxu1 }
 0x2ff   : > { %v10667_v61 = vadd.f32 %v7821_v22, %v646_v59 }
 0x301   : > { %v8642_v31 = vpop.f32.mrb[2].mxu1  ;;  %8665 = vmatprep.mubr.msk.f32.mxu1 %vm709_vm2, %v10667_v61  ;;  %v10673_v62 = vpack.i.bf16 %v10665_v58, %v10667_v61 }
 0x302   : > { %v10675_v63 = vadd.f32 %v8642_v31, %v7821_v22  ;;  %v656_v1 = vpop.f32.mrb[3].mxu1 }
 0x303   : > { %v10677_v4 = vadd.f32 %v7821_v22, %v656_v1  ;;  %9973 = vrot.lane.b32.xlu0 %v10673_v62, %s10437_s20 }
 0x305   : > { %v8645_v5 = vpop.f32.mrb[4].mxu1  ;;  %v10683_v6 = vpack.i.bf16 %v10675_v63, %v10677_v4 }
 0x306   : > { %v10685_v7 = vadd.f32 %v8645_v5, %v7821_v22  ;;  %v666_v9 = vpop.f32.mrb[5].mxu1 }
 0x307   : > { %v10687_v10 = vadd.f32 %v7821_v22, %v666_v9  ;;  %9978 = vrot.lane.b32.xlu1 %v10683_v6, %s10437_s20 }
 0x309   : > { %v8648_v13 = vpop.f32.mrb[6].mxu1  ;;  %v10693_v14 = vpack.i.bf16 %v10685_v7, %v10687_v10 }
 0x30a   : > { %v10695_v15 = vadd.f32 %v8648_v13, %v7821_v22  ;;  %v676_v16 = vpop.f32.mrb[7].mxu1 }
 0x30b   : > { %v10697_v17 = vadd.f32 %v7821_v22, %v676_v16  ;;  %9983 = vrot.lane.b32.xlu1 %v10693_v14, %s10437_s20 }
 0x30d   : > { %v10703_v18 = vpack.i.bf16 %v10695_v15, %v10697_v17 }
 0x30f   : > { %9988 = vrot.lane.b32.xlu1 %v10703_v18, %s10437_s20 }
 0x375   : > { %v9974_v19 = vpop.permute.xlu0 %9973 }
 0x376   : > { %v9976_v20 = vunpack.i.h.bf16 %v9974_v19  ;;  %v9975_v23 = vunpack.i.l.bf16 %v9974_v19 }
 0x378   : > { %v9509_v26 = vpack.c.bf16 %v9976_v20, %v9975_v23 }
 0x379   : > { %v9979_v27 = vpop.permute.xlu1 %9978 }
 0x37a   : > { %v9981_v28 = vunpack.i.h.bf16 %v9979_v27  ;;  %v9980_v29 = vunpack.i.l.bf16 %v9979_v27  ;;  %9511 = vmatprep.subr.msk.bf16.mxu1 %vm10709_vm3, %v9509_v26 }
 0x37b   : > { %9514 = vmatpush3.bf16.xpose.msk.msra.mxu1 %vm10709_vm3, %v9509_v26 }
 0x37c   : > { %v9515_v32 = vpack.c.bf16 %v9981_v28, %v9980_v29 }
 0x37d   : > { %v9984_v35 = vpop.permute.xlu1 %9983 }
 0x37e   : > { %v9986_v36 = vunpack.i.h.bf16 %v9984_v35  ;;  %v9985_v60 = vunpack.i.l.bf16 %v9984_v35  ;;  %9517 = vmatprep.subr.msk.bf16.mxu1 %vm10709_vm3, %v9515_v32 }
 0x380   : > { %v9521_v37 = vpack.c.bf16 %v9986_v36, %v9985_v60 }
 0x381   : > { %v9989_v38 = vpop.permute.xlu1 %9988 }
 0x382   : > { %v9991_v39 = vunpack.i.h.bf16 %v9989_v38  ;;  %v9990_v40 = vunpack.i.l.bf16 %v9989_v38 }
 0x383   : > { %9520 = vmatpush3.bf16.xpose.msk.msra.mxu1 %vm10709_vm3, %v9515_v32 }
 0x384   : > { %9523 = vmatprep.subr.msk.bf16.mxu1 %vm10709_vm3, %v9521_v37  ;;  %v9527_v41 = vpack.c.bf16 %v9991_v39, %v9990_v40 }
 0x38b   : > { %9526 = vmatpush3.bf16.xpose.msk.msra.mxu1 %vm10709_vm3, %v9521_v37 }
 0x38c   : > { %9529 = vmatprep.subr.msk.bf16.mxu1 %vm10709_vm3, %v9527_v41 }
 0x393   : > { %9532 = vmatpush3.bf16.xpose.msk.msra.mxu1 %vm10709_vm3, %v9527_v41 }
 0x39a   : > { %8666 = vmatmul.mubr.msk.f32.vlgmr.msra.gmra.mrb[8].mxu1 %vm709_vm2, %v10665_v58 }
 0x39b   : > { %8668 = vmatprep.mubr.msk.f32.mxu1 %vm709_vm2, %v10677_v4 }
 0x39e   : > { %8669 = vmatmul.mubr.msk.f32.gmra.mrb[10].mxu1 %vm709_vm2, %v10675_v63 }
 0x39f   : > { %8671 = vmatprep.mubr.msk.f32.mxu1 %vm709_vm2, %v10687_v10 }
 0x3a2   : > { %8672 = vmatmul.mubr.msk.f32.gmra.mrb[12].mxu1 %vm709_vm2, %v10685_v7 }
 0x3a3   : > { %8674 = vmatprep.mubr.msk.f32.mxu1 %vm709_vm2, %v10697_v17 }
 0x3a6   : > { %8675 = vmatmul.mubr.msk.f32.gmra.mrb[14].mxu1 %vm709_vm2, %v10695_v15 }
 0x46d   : > { %v8667_v42 = vpop.f32.mrb[8].mxu1 }
 0x46e   : > { %v848_v45 = vmul.f32 0.25, %v8667_v42  ;;  %v808_v3 = vpop.f32.mrb[9].mxu1 }
 0x46f   : > { %v847_v2 = vmul.f32 0.25, %v808_v3 }
 0x470   : > { %v859_v46 = vsel %vm855_vm4, %v848_v45, -inf }
 0x471   : > { %860 = vmax.xlane.f32.xlu1 %v859_v46  ;;  %v8670_v47 = vpop.f32.mrb[10].mxu1  ;;  %v856_v48 = vsel %vm855_vm4, %v847_v2, -inf }
 0x472   : > { %v850_v49 = vmul.f32 0.25, %v8670_v47  ;;  %857 = vmax.xlane.f32.xlu0 %v856_v48  ;;  %v818_v11 = vpop.f32.mrb[11].mxu1 }
 0x473   : > { %v849_v12 = vmul.f32 0.25, %v818_v11 }
 0x474   : > { %v865_v50 = vsel %vm855_vm4, %v850_v49, -inf }
 0x475   : > { %v8673_v51 = vpop.f32.mrb[12].mxu1  ;;  %v862_v57 = vsel %vm855_vm4, %v849_v12, -inf }
 0x476   : > { %v852_v52 = vmul.f32 0.25, %v8673_v51  ;;  %866 = vmax.xlane.f32.xlu0 %v865_v50  ;;  %v828_v55 = vpop.f32.mrb[13].mxu1 }
 0x477   : > { %v851_v21 = vmul.f32 0.25, %v828_v55 }
 0x478   : > { %v871_v56 = vsel %vm855_vm4, %v852_v52, -inf }
 0x479   : > { %872 = vmax.xlane.f32.xlu1 %v871_v56  ;;  %v8676_v22 = vpop.f32.mrb[14].mxu1  ;;  %v868_v9 = vsel %vm855_vm4, %v851_v21, -inf }
 0x47a   : > { %v10748_v59 = vmul.f32 0.25, %v8676_v22  ;;  %863 = vmax.xlane.f32.xlu0 %v862_v57  ;;  %v838_v31 = vpop.f32.mrb[15].mxu1 }
 0x47b   : > { %v10752_v5 = vmul.f32 0.25, %v838_v31 }
 0x47c   : > { %v877_v1 = vsel %vm855_vm4, %v10748_v59, -inf }
 0x47d   : > { %878 = vmax.xlane.f32.xlu1 %v877_v1  ;;  %v874_v13 = vsel %vm855_vm4, %v10752_v5, -inf }
 0x47e   : > { %869 = vmax.xlane.f32.xlu0 %v868_v9 }
 0x482   : > { %875 = vmax.xlane.f32.xlu0 %v874_v13 }
 0x48e   : > { %9998 = vrot.lane.b32.xlu1 %v10683_v6, %s10438_s21 }
 0x492   : > { %10003 = vrot.lane.b32.xlu1 %v10693_v14, %s10438_s21 }
 0x496   : > { %10008 = vrot.lane.b32.xlu1 %v10703_v18, %s10438_s21 }
 0x498   : > { %9993 = vrot.lane.b32.xlu0 %v10673_v62, %s10438_s21 }
 0x49a   : > { %10018 = vrot.lane.b32.xlu1 %v10683_v6, %s10439_s22 }
 0x49c   : > { %10013 = vrot.lane.b32.xlu0 %v10673_v62, %s10439_s22 }
 0x4fe   : > { %v861_v16 = vpop.xlane.xlu1 %860 }
 0x4ff   : > { %v881_v19 = vsub.f32 %v848_v45, %v861_v16  ;;  %v858_v20 = vpop.xlane.xlu0 %857 }
 0x500   : > { %v880_v23 = vsub.f32 %v847_v2, %v858_v20 }
 0x501   : > { %v890_v26 = vmul.f32 1.442695, %v881_v19 }
 0x502   : > { %v888_v27 = vmul.f32 1.442695, %v880_v23 }
 0x503   : > { %10148 = vpow2.f32 %v890_v26  ;;  %v867_v28 = vpop.xlane.xlu0 %866 }
 0x504   : > { %10150 = vpow2.f32 %v888_v27  ;;  %v883_v29 = vsub.f32 %v850_v49, %v867_v28 }
 0x506   : > { %v894_v32 = vmul.f32 1.442695, %v883_v29  ;;  %v873_v35 = vpop.xlane.xlu1 %872 }
 0x507   : > { %v885_v36 = vsub.f32 %v852_v52, %v873_v35  ;;  %v864_v60 = vpop.xlane.xlu0 %863 }
 0x508   : > { %10152 = vpow2.f32 %v894_v32  ;;  %v882_v37 = vsub.f32 %v849_v12, %v864_v60 }
 0x509   : > { %v898_v38 = vmul.f32 1.442695, %v885_v36 }
 0x50a   : > { %v892_v39 = vmul.f32 1.442695, %v882_v37  ;;  %v879_v40 = vpop.xlane.xlu1 %878 }
 0x50b   : > { %v870_v41 = vpop.xlane.xlu0 %869 }
 0x50c   : > { %10154 = vpow2.f32 %v892_v39  ;;  %v884_v42 = vsub.f32 %v851_v21, %v870_v41 }
 0x50d   : > { %v10769_v45 = vpop.eup %10148  ;;  %10156 = vpow2.f32 %v898_v38  ;;  %v887_v38 = vsub.f32 %v10748_v59, %v879_v40 }
 0x50e   : > { %v10771_v3 = vpop.eup %10150  ;;  %v896_v2 = vmul.f32 1.442695, %v884_v42  ;;  %v9999_v46 = vpop.permute.xlu1 %9998  ;;  %v907_v47 = vsel %vm855_vm4, %v10769_v45, 0.0 }
 0x50f   : > { %908 = vadd.xlane.f32.xlu1 %v907_v47  ;;  %v876_v48 = vpop.xlane.xlu0 %875  ;;  %v904_v49 = vsel %vm855_vm4, %v10771_v3, 0.0  ;;  %v10001_v52 = vunpack.i.h.bf16 %v9999_v46  ;;  %v10000_v55 = vunpack.i.l.bf16 %v9999_v46  ;;  %v902_v39 = vmul.f32 1.442695, %v887_v38 }
 0x510   : > { %905 = vadd.xlane.f32.xlu0 %v904_v49  ;;  %10158 = vpow2.f32 %v896_v2  ;;  %v886_v41 = vsub.f32 %v10752_v5, %v876_v48 }
 0x511   : > { %v9537_v16 = vpack.c.bf16 %v10001_v52, %v10000_v55  ;;  %10160 = vpow2.f32 %v902_v39 }
 0x512   : > { %v10777_v11 = vpop.eup %10152  ;;  %v10004_v50 = vpop.permute.xlu1 %10003  ;;  %v900_v42 = vmul.f32 1.442695, %v886_v41 }
 0x513   : > { %v9994_v12 = vpop.permute.xlu0 %9993  ;;  %v913_v51 = vsel %vm855_vm4, %v10777_v11, 0.0  ;;  %v10006_v9 = vunpack.i.h.bf16 %v10004_v50  ;;  %v10005_v13 = vunpack.i.l.bf16 %v10004_v50 }
 0x514   : > { %v9996_v56 = vunpack.i.h.bf16 %v9994_v12  ;;  %v9995_v21 = vunpack.i.l.bf16 %v9994_v12  ;;  %914 = vadd.xlane.f32.xlu1 %v913_v51  ;;  %10162 = vpow2.f32 %v900_v42 }
 0x515   : > { %v9541_v28 = vpack.c.bf16 %v10006_v9, %v10005_v13 }
 0x516   : > { %v10781_v22 = vpop.eup %10154  ;;  %v9533_v57 = vpack.c.bf16 %v9996_v56, %v9995_v21  ;;  %v10009_v19 = vpop.permute.xlu1 %10008 }
 0x517   : > { %v910_v31 = vsel %vm855_vm4, %v10781_v22, 0.0  ;;  %v10785_v1 = vpop.eup %10156  ;;  %v10011_v26 = vunpack.i.h.bf16 %v10009_v19  ;;  %v10010_v27 = vunpack.i.l.bf16 %v10009_v19  ;;  %v10014_v29 = vpop.permute.xlu0 %10013 }
 0x518   : > { %911 = vadd.xlane.f32.xlu0 %v910_v31  ;;  %9534 = vmatprep.subr.bf16.mxu0 %v9533_v57  ;;  %v919_v20 = vsel %vm855_vm4, %v10785_v1, 0.0  ;;  %v10016_v35 = vunpack.i.h.bf16 %v10014_v29  ;;  %v10015_v36 = vunpack.i.l.bf16 %v10014_v29 }
 0x519   : > { %9536 = vmatpush3.bf16.msra.mxu0 %v9533_v57  ;;  %v9545_v60 = vpack.c.bf16 %v10011_v26, %v10010_v27 }
 0x51a   : > { %9538 = vmatprep.subr.bf16.mxu0 %v9537_v16  ;;  %v10789_v23 = vpop.eup %10158  ;;  %v9549_v37 = vpack.c.bf16 %v10016_v35, %v10015_v36 }
 0x51b   : > { %v916_v32 = vsel %vm855_vm4, %v10789_v23, 0.0 }
 0x51c   : > { %920 = vadd.xlane.f32.xlu0 %v919_v20 }
 0x51d   : > { %9540 = vmatpush3.bf16.msra.mxu0 %v9537_v16 }
 0x51e   : > { %9542 = vmatprep.subr.bf16.mxu0 %v9541_v28 }
 0x520   : > { %917 = vadd.xlane.f32.xlu0 %v916_v32 }
 0x521   : > { %9544 = vmatpush3.bf16.msra.mxu0 %v9541_v28 }
 0x522   : > { %9546 = vmatprep.subr.bf16.mxu0 %v9545_v60 }
 0x525   : > { %10028 = vrot.lane.b32.xlu1 %v10703_v18, %s10439_s22  ;;  %9548 = vmatpush3.bf16.msra.mxu0 %v9545_v60 }
 0x526   : > { %9551 = vmatprep.subr.msk.bf16.mxu0 %vm10709_vm3, %v9549_v37 }
 0x529   : > { %1099 = vrot.lane.b32.xlu1 %v10665_v58, %s10440_s23  ;;  %v10811_v58 = vpop.eup %10160 }
 0x52a   : > { %v10815_v59 = vpop.eup %10162 }
 0x536   : > { %10023 = vrot.lane.b32.xlu0 %v10693_v14, %s10439_s22 }
 0x53a   : > { %1097 = vrot.lane.b32.xlu0 %v10667_v61, %s10440_s23  ;;  %v925_v61 = vsel %vm855_vm4, %v10811_v58, 0.0 }
 0x53e   : > { %1101 = vrot.lane.b32.xlu0 %v10677_v4, %s10440_s23  ;;  %v922_v4 = vsel %vm855_vm4, %v10815_v59, 0.0 }
 0x542   : > { %1105 = vrot.lane.b32.xlu0 %v10687_v10, %s10440_s23  ;;  %v10019_v10 = vpop.permute.xlu1 %10018 }
 0x543   : > { %v10021_v48 = vunpack.i.h.bf16 %v10019_v10  ;;  %v10020_v49 = vunpack.i.l.bf16 %v10019_v10 }
 0x546   : > { %1109 = vrot.lane.b32.xlu0 %v10697_v17, %s10440_s23 }
 0x54d   : > { %926 = vadd.xlane.f32.xlu1 %v925_v61 }
 0x551   : > { %923 = vadd.xlane.f32.xlu1 %v922_v4 }
 0x562   : > { %1103 = vrot.lane.b32.xlu1 %v10675_v63, %s10440_s23 }
 0x566   : > { %1107 = vrot.lane.b32.xlu1 %v10685_v7, %s10440_s23 }
 0x56a   : > { %1111 = vrot.lane.b32.xlu1 %v10695_v15, %s10440_s23  ;;  %v9555_v15 = vpack.c.bf16 %v10021_v48, %v10020_v49 }
 0x59c   : > { %v909_v17 = vpop.xlane.xlu1 %908 }
 0x59d   : > { %10164 = vrcp.f32 %v909_v17  ;;  %v906_v5 = vpop.xlane.xlu0 %905 }
 0x59e   : > { %10166 = vrcp.f32 %v906_v5 }
 0x5a1   : > { %v915_v40 = vpop.xlane.xlu1 %914 }
 0x5a2   : > { %10168 = vrcp.f32 %v915_v40 }
 0x5a5   : > { %v912_v2 = vpop.xlane.xlu0 %911  ;;  %v10029_v31 = vpop.permute.xlu1 %10028 }
 0x5a6   : > { %10170 = vrcp.f32 %v912_v2  ;;  %v10031_v16 = vunpack.i.h.bf16 %v10029_v31 }
 0x5a7   : > { %v10165_v46 = vpop.eup %10164 }
 0x5a8   : > { %v10167_v47 = vpop.eup %10166  ;;  %v937_v7 = vmul.f32 %v10165_v46, %v10769_v45 }
 0x5a9   : > { %v921_v63 = vpop.xlane.xlu0 %920  ;;  %v936_v50 = vmul.f32 %v10167_v47, %v10771_v3  ;;  %v1100_v26 = vpop.permute.xlu1 %1099 }
 0x5aa   : > { %10172 = vrcp.f32 %v921_v63 }
 0x5ab   : > { %8693 = vmatprep.mubr.msk.f32.mxu0 %vm855_vm4, %v936_v50 }
 0x5ac   : > { %8694 = vmatmul.mubr.msk.f32.vlgmr.msra.gmra.mrb[8].mxu0 %vm855_vm4, %v937_v7  ;;  %v10169_v51 = vpop.eup %10168 }
 0x5ad   : > { %9554 = vmatpush3.bf16.xpose.msk.msra.mxu0 %vm10709_vm3, %v9549_v37  ;;  %v918_v12 = vpop.xlane.xlu0 %917  ;;  %v939_v21 = vmul.f32 %v10169_v51, %v10777_v11 }
 0x5ae   : > { %10174 = vrcp.f32 %v918_v12  ;;  %9557 = vmatprep.subr.msk.bf16.mxu0 %vm10709_vm3, %v9555_v15 }
 0x5b0   : > { %v10171_v52 = vpop.eup %10170 }
 0x5b1   : > { %v10024_v55 = vpop.permute.xlu0 %10023  ;;  %v938_v3 = vmul.f32 %v10171_v52, %v10781_v22  ;;  %v10030_v22 = vunpack.i.l.bf16 %v10029_v31 }
 0x5b2   : > { %v10026_v45 = vunpack.i.h.bf16 %v10024_v55  ;;  %v10025_v56 = vunpack.i.l.bf16 %v10024_v55 }
 0x5b3   : > { %8696 = vmatprep.mubr.msk.f32.mxu0 %vm855_vm4, %v938_v3  ;;  %v9567_v20 = vpack.c.bf16 %v10031_v16, %v10030_v22 }
 0x5b4   : > { %v9561_v57 = vpack.c.bf16 %v10026_v45, %v10025_v56  ;;  %8697 = vmatmul.mubr.msk.f32.gmra.mrb[10].mxu0 %vm855_vm4, %v939_v21  ;;  %v10173_v9 = vpop.eup %10172 }
 0x5b5   : > { %9560 = vmatpush3.bf16.xpose.msk.msra.mxu0 %vm10709_vm3, %v9555_v15  ;;  %v941_v11 = vmul.f32 %v10173_v9, %v10785_v1  ;;  %v1098_v1 = vpop.permute.xlu0 %1097 }
 0x5b6   : > { %9563 = vmatprep.subr.msk.bf16.mxu0 %vm10709_vm3, %v9561_v57 }
 0x5b8   : > { %v10175_v13 = vpop.eup %10174 }
 0x5b9   : > { %v940_v19 = vmul.f32 %v10175_v13, %v10789_v23  ;;  %v1102_v36 = vpop.permute.xlu0 %1101 }
 0x5bb   : > { %8699 = vmatprep.mubr.msk.f32.mxu0 %vm855_vm4, %v940_v19 }
 0x5bc   : > { %8700 = vmatmul.mubr.msk.f32.gmra.mrb[12].mxu0 %vm855_vm4, %v941_v11 }
 0x5bd   : > { %9566 = vmatpush3.bf16.xpose.msk.msra.mxu0 %vm10709_vm3, %v9561_v57  ;;  %v1106_v60 = vpop.permute.xlu0 %1105 }
 0x5be   : > { %9569 = vmatprep.subr.msk.bf16.mxu0 %vm10709_vm3, %v9567_v20 }
 0x5c1   : > { %v1110_v38 = vpop.permute.xlu0 %1109 }
 0x5c5   : > { %9572 = vmatpush3.bf16.xpose.msk.msra.mxu0 %vm10709_vm3, %v9567_v20 }
 0x5da   : > { %v927_v27 = vpop.xlane.xlu1 %926 }
 0x5db   : > { %10176 = vrcp.f32 %v927_v27 }
 0x5de   : > { %v924_v23 = vpop.xlane.xlu1 %923 }
 0x5df   : > { %10178 = vrcp.f32 %v924_v23 }
 0x5e2   : > { %v1104_v25 = vpop.permute.xlu1 %1103 }
 0x5e5   : > { %v10177_v28 = vpop.eup %10176 }
 0x5e6   : > { %v943_v35 = vmul.f32 %v10177_v28, %v10811_v58  ;;  %v1108_v37 = vpop.permute.xlu1 %1107 }
 0x5e9   : > { %v10179_v29 = vpop.eup %10178 }
 0x5ea   : > { %v942_v32 = vmul.f32 %v10179_v29, %v10815_v59  ;;  %v1112_v39 = vpop.permute.xlu1 %1111 }
 0x5ec   : > { %8702 = vmatprep.mubr.msk.f32.mxu0 %vm855_vm4, %v942_v32 }
 0x5ed   : > { %8703 = vmatmul.mubr.msk.f32.gmra.mrb[14].mxu0 %vm855_vm4, %v943_v35 }
 0x5ee   : > { %8721 = vmatprep.mubr.msk.f32.mxu0 %vm709_vm2, %v1098_v1 }
 0x5f1   : > { %8722 = vmatmul.mubr.msk.f32.vlgmr.msra.gmra.mrb[16].mxu0 %vm709_vm2, %v1100_v26 }
 0x5f2   : > { %8724 = vmatprep.mubr.msk.f32.mxu0 %vm709_vm2, %v1102_v36 }
 0x5f5   : > { %8725 = vmatmul.mubr.msk.f32.gmra.mrb[18].mxu0 %vm709_vm2, %v1104_v25 }
 0x5f6   : > { %8727 = vmatprep.mubr.msk.f32.mxu0 %vm709_vm2, %v1106_v60 }
 0x5f9   : > { %8728 = vmatmul.mubr.msk.f32.gmra.mrb[20].mxu0 %vm709_vm2, %v1108_v37 }
 0x5fa   : > { %8730 = vmatprep.mubr.msk.f32.mxu0 %vm709_vm2, %v1110_v38 }
 0x5fd   : > { %8731 = vmatmul.mubr.msk.f32.gmra.mrb[22].mxu0 %vm709_vm2, %v1112_v39 }
 0x67f   : > { %v10863_v41 = vpop.f32.mrb[8].mxu0 }
 0x680   : > { %v10865_v42 = vpop.f32.mrb[9].mxu0 }
 0x687   : > { %v10867_v58 = vpop.f32.mrb[10].mxu0 }
 0x688   : > { %v10869_v61 = vpop.f32.mrb[11].mxu0 }
 0x68f   : > { %v10871_v59 = vpop.f32.mrb[12].mxu0 }
 0x690   : > { %v10873_v4 = vpop.f32.mrb[13].mxu0 }
 0x6c0   : > { %v10875_v10 = vpop.f32.mrb[14].mxu0 }
 0x6c1   : > { %v10877_v17 = vpop.f32.mrb[15].mxu0 }
 0x6c4   : > { %v8723_v5 = vpop.f32.mrb[16].mxu0 }
 0x6c5   : > { %v1267_v40 = vmul.f32 0.25, %v8723_v5  ;;  %v1227_v2 = vpop.f32.mrb[17].mxu0 }
 0x6c6   : > { %v1266_v46 = vmul.f32 0.25, %v1227_v2 }
 0x6c7   : > { %v1277_v47 = vsel %vm855_vm4, %v1267_v40, -inf }
 0x6c8   : > { %1278 = vmax.xlane.f32.xlu1 %v1277_v47  ;;  %v8726_v48 = vpop.f32.mrb[18].mxu0  ;;  %v1274_v49 = vsel %vm855_vm4, %v1266_v46, -inf }
 0x6c9   : > { %v1269_v63 = vmul.f32 0.25, %v8726_v48  ;;  %1275 = vmax.xlane.f32.xlu0 %v1274_v49  ;;  %v1237_v50 = vpop.f32.mrb[19].mxu0 }
 0x6ca   : > { %v1268_v15 = vmul.f32 0.25, %v1237_v50 }
 0x6cb   : > { %v1283_v7 = vsel %vm855_vm4, %v1269_v63, -inf }
 0x6cc   : > { %v8729_v12 = vpop.f32.mrb[20].mxu0  ;;  %v1280_v56 = vsel %vm855_vm4, %v1268_v15, -inf }
 0x6cd   : > { %v1271_v51 = vmul.f32 0.25, %v8729_v12  ;;  %1284 = vmax.xlane.f32.xlu0 %v1283_v7  ;;  %v1247_v52 = vpop.f32.mrb[21].mxu0 }
 0x6ce   : > { %v1270_v3 = vmul.f32 0.25, %v1247_v52 }
 0x6cf   : > { %v1289_v55 = vsel %vm855_vm4, %v1271_v51, -inf }
 0x6d0   : > { %1290 = vmax.xlane.f32.xlu1 %v1289_v55  ;;  %v8732_v45 = vpop.f32.mrb[22].mxu0  ;;  %v1286_v13 = vsel %vm855_vm4, %v1270_v3, -inf }
 0x6d1   : > { %v1273_v21 = vmul.f32 0.25, %v8732_v45  ;;  %1281 = vmax.xlane.f32.xlu0 %v1280_v56  ;;  %v1257_v57 = vpop.f32.mrb[23].mxu0 }
 0x6d2   : > { %v1272_v9 = vmul.f32 0.25, %v1257_v57 }
 0x6d3   : > { %v1295_v31 = vsel %vm855_vm4, %v1273_v21, -inf }
 0x6d4   : > { %1296 = vmax.xlane.f32.xlu1 %v1295_v31  ;;  %v1292_v16 = vsel %vm855_vm4, %v1272_v9, -inf }
 0x6d5   : > { %1287 = vmax.xlane.f32.xlu0 %v1286_v13 }
 0x6d9   : > { %1293 = vmax.xlane.f32.xlu0 %v1292_v16 }
 0x6e5   : > { %10038 = vrot.lane.b32.xlu1 %v10683_v6, %s10441_s24 }
 0x6ef   : > { %10033 = vrot.lane.b32.xlu0 %v10673_v62, %s10441_s24 }
 0x755   : > { %v1279_v22 = vpop.xlane.xlu1 %1278 }
 0x756   : > { %v1299_v19 = vsub.f32 %v1267_v40, %v1279_v22  ;;  %v1276_v11 = vpop.xlane.xlu0 %1275 }
 0x757   : > { %v1298_v20 = vsub.f32 %v1266_v46, %v1276_v11 }
 0x758   : > { %v1308_v26 = vmul.f32 1.442695, %v1299_v19 }
 0x759   : > { %v1306_v27 = vmul.f32 1.442695, %v1298_v20 }
 0x75a   : > { %10180 = vpow2.f32 %v1308_v26  ;;  %v1285_v23 = vpop.xlane.xlu0 %1284 }
 0x75b   : > { %10182 = vpow2.f32 %v1306_v27  ;;  %v1301_v1 = vsub.f32 %v1269_v63, %v1285_v23 }
 0x75d   : > { %v1312_v28 = vmul.f32 1.442695, %v1301_v1  ;;  %v1291_v29 = vpop.xlane.xlu1 %1290 }
 0x75e   : > { %v1303_v32 = vsub.f32 %v1271_v51, %v1291_v29  ;;  %v1282_v35 = vpop.xlane.xlu0 %1281 }
 0x75f   : > { %10184 = vpow2.f32 %v1312_v28  ;;  %v1300_v36 = vsub.f32 %v1268_v15, %v1282_v35 }
 0x760   : > { %v1316_v6 = vmul.f32 1.442695, %v1303_v32 }
 0x761   : > { %v1310_v25 = vmul.f32 1.442695, %v1300_v36  ;;  %v1297_v60 = vpop.xlane.xlu1 %1296 }
 0x762   : > { %10186 = vpow2.f32 %v1316_v6  ;;  %v1305_v62 = vsub.f32 %v1273_v21, %v1297_v60  ;;  %v1288_v37 = vpop.xlane.xlu0 %1287 }
 0x763   : > { %10188 = vpow2.f32 %v1310_v25  ;;  %v1302_v38 = vsub.f32 %v1270_v3, %v1288_v37 }
 0x764   : > { %v10891_v39 = vpop.eup %10180  ;;  %v1320_v5 = vmul.f32 1.442695, %v1305_v62 }
 0x765   : > { %v10183_v40 = vpop.eup %10182  ;;  %v1314_v2 = vmul.f32 1.442695, %v1302_v38  ;;  %v1325_v46 = vsel %vm855_vm4, %v10891_v39, 0.0  ;;  %v10039_v50 = vpop.permute.xlu1 %10038 }
 0x766   : > { %10190 = vpow2.f32 %v1320_v5  ;;  %1326 = vadd.xlane.f32.xlu1 %v1325_v46  ;;  %v1294_v47 = vpop.xlane.xlu0 %1293  ;;  %v1322_v48 = vsel %vm855_vm4, %v10183_v40, 0.0  ;;  %v10041_v3 = vunpack.i.h.bf16 %v10039_v50  ;;  %v10040_v45 = vunpack.i.l.bf16 %v10039_v50 }
 0x767   : > { %10192 = vpow2.f32 %v1314_v2  ;;  %v1304_v49 = vsub.f32 %v1272_v9, %v1294_v47  ;;  %1323 = vadd.xlane.f32.xlu0 %v1322_v48 }
 0x768   : > { %v9577_v13 = vpack.c.bf16 %v10041_v3, %v10040_v45  ;;  %v1556_v45 = vld [vmem:[%s12909_s3 + $0xb0] sm:$0xff] }
 0x769   : > { %v10896_v63 = vpop.eup %10184  ;;  %v1318_v7 = vmul.f32 1.442695, %v1304_v49 }
 0x76a   : > { %v10034_v15 = vpop.permute.xlu0 %10033  ;;  %v1331_v12 = vsel %vm855_vm4, %v10896_v63, 0.0 }
 0x76b   : > { %10194 = vpow2.f32 %v1318_v7  ;;  %v10036_v51 = vunpack.i.h.bf16 %v10034_v15  ;;  %v10035_v52 = vunpack.i.l.bf16 %v10034_v15  ;;  %1332 = vadd.xlane.f32.xlu1 %v1331_v12 }
 0x76c   : > { %v10900_v55 = vpop.eup %10186 }
 0x76d   : > { %v10189_v56 = vpop.eup %10188  ;;  %v1337_v21 = vsel %vm855_vm4, %v10900_v55, 0.0  ;;  %v9573_v57 = vpack.c.bf16 %v10036_v51, %v10035_v52 }
 0x76e   : > { %v1328_v31 = vsel %vm855_vm4, %v10189_v56, 0.0 }
 0x76f   : > { %1338 = vadd.xlane.f32.xlu1 %v1337_v21  ;;  %1329 = vadd.xlane.f32.xlu0 %v1328_v31  ;;  %v1558_v21 = vld [vmem:[%s12909_s3 + $0xc0] sm:$0xff] }
 0x770   : > { %v10905_v9 = vpop.eup %10190  ;;  %9574 = vmatprep.subr.bf16.mxu1 %v9573_v57 }
 0x771   : > { %v10193_v16 = vpop.eup %10192  ;;  %9576 = vmatpush3.bf16.msra.mxu1 %v9573_v57  ;;  %v1343_v22 = vsel %vm855_vm4, %v10905_v9, 0.0 }
 0x772   : > { %9578 = vmatprep.subr.bf16.mxu1 %v9577_v13  ;;  %v1334_v19 = vsel %vm855_vm4, %v10193_v16, 0.0 }
 0x773   : > { %1344 = vadd.xlane.f32.xlu1 %v1343_v22  ;;  %1335 = vadd.xlane.f32.xlu0 %v1334_v19 }
 0x775   : > { %v10195_v11 = vpop.eup %10194  ;;  %9580 = vmatpush3.bf16.msra.mxu1 %v9577_v13 }
 0x776   : > { %v1340_v20 = vsel %vm855_vm4, %v10195_v11, 0.0 }
 0x777   : > { %1341 = vadd.xlane.f32.xlu1 %v1340_v20 }
 0x788   : > { %10048 = vrot.lane.b32.xlu1 %v10703_v18, %s10441_s24 }
 0x789   : > { %10043 = vrot.lane.b32.xlu0 %v10693_v14, %s10441_s24 }
 0x7f3   : > { %v1327_v26 = vpop.xlane.xlu1 %1326 }
 0x7f4   : > { %v1324_v27 = vpop.xlane.xlu0 %1323 }
 0x7f5   : > { %10196 = vrcp.f32 %v1324_v27 }
 0x7f6   : > { %10198 = vrcp.f32 %v1327_v26 }
 0x7f8   : > { %v1333_v23 = vpop.xlane.xlu1 %1332 }
 0x7fc   : > { %v1339_v1 = vpop.xlane.xlu1 %1338  ;;  %v1330_v28 = vpop.xlane.xlu0 %1329 }
 0x7fd   : > { %10200 = vrcp.f32 %v1330_v28 }
 0x7fe   : > { %10202 = vrcp.f32 %v1333_v23 }
 0x7ff   : > { %v10197_v29 = vpop.eup %10196 }
 0x800   : > { %v1345_v32 = vpop.xlane.xlu1 %1344  ;;  %v1336_v35 = vpop.xlane.xlu0 %1335  ;;  %v1354_v36 = vmul.f32 %v10197_v29, %v10183_v40 }
 0x801   : > { %10204 = vrcp.f32 %v1336_v35  ;;  %v10199_v40 = vpop.eup %10198 }
 0x802   : > { %8749 = vmatprep.mubr.msk.f32.mxu1 %vm855_vm4, %v1354_v36  ;;  %10206 = vrcp.f32 %v1339_v1  ;;  %v1355_v46 = vmul.f32 %v10199_v40, %v10891_v39 }
 0x804   : > { %v1342_v6 = vpop.xlane.xlu1 %1341  ;;  %v10044_v25 = vpop.permute.xlu0 %10043 }
 0x805   : > { %v10046_v18 = vunpack.i.h.bf16 %v10044_v25  ;;  %v10045_v60 = vunpack.i.l.bf16 %v10044_v25  ;;  %10208 = vrcp.f32 %v1342_v6 }
 0x806   : > { %10210 = vrcp.f32 %v1345_v32 }
 0x807   : > { %v9581_v14 = vpack.c.bf16 %v10046_v18, %v10045_v60  ;;  %v10201_v2 = vpop.eup %10200 }
 0x808   : > { %v10049_v62 = vpop.permute.xlu1 %10048  ;;  %v10203_v47 = vpop.eup %10202  ;;  %v1356_v48 = vmul.f32 %v10201_v2, %v10189_v56 }
 0x809   : > { %v10051_v37 = vunpack.i.h.bf16 %v10049_v62  ;;  %v10050_v38 = vunpack.i.l.bf16 %v10049_v62  ;;  %9582 = vmatprep.subr.bf16.mxu1 %v9581_v14  ;;  %v1357_v50 = vmul.f32 %v10203_v47, %v10896_v63  ;;  %v1555_v63 = vld [vmem:[%s12909_s3 + $0xa8] sm:$0xff] }
 0x80a   : > { %9584 = vmatpush3.bf16.msra.mxu1 %v9581_v14  ;;  %v9589_v56 = vpack.c.bf16 %v1556_v45, %v1555_v63 }
 0x80b   : > { %v9585_v5 = vpack.c.bf16 %v10051_v37, %v10050_v38  ;;  %v10205_v49 = vpop.eup %10204 }
 0x80c   : > { %v10207_v7 = vpop.eup %10206  ;;  %v1358_v15 = vmul.f32 %v10205_v49, %v10193_v16 }
 0x80d   : > { %9586 = vmatprep.subr.bf16.mxu1 %v9585_v5  ;;  %v1359_v51 = vmul.f32 %v10207_v7, %v10900_v55  ;;  %v1557_v55 = vld [vmem:[%s12909_s3 + $0xb8] sm:$0xff] }
 0x80e   : > { %9588 = vmatpush3.bf16.msra.mxu1 %v9585_v5  ;;  %v9593_v57 = vpack.c.bf16 %v1558_v21, %v1557_v55 }
 0x80f   : > { %v10209_v12 = vpop.eup %10208  ;;  %9590 = vmatprep.subr.bf16.mxu1 %v9589_v56 }
 0x810   : > { %v10211_v52 = vpop.eup %10210  ;;  %v1360_v39 = vmul.f32 %v10209_v12, %v10195_v11 }
 0x811   : > { %8750 = vmatmul.mubr.msk.f32.vlgmr.msra.gmra.mrb[16].mxu1 %vm855_vm4, %v1355_v46  ;;  %v1361_v3 = vmul.f32 %v10211_v52, %v10905_v9 }
 0x812   : > { %8752 = vmatprep.mubr.msk.f32.mxu1 %vm855_vm4, %v1356_v48  ;;  %9592 = vmatpush3.bf16.msra.mxu1 %v9589_v56 }
 0x813   : > { %9594 = vmatprep.subr.bf16.mxu1 %v9593_v57 }
 0x815   : > { %8753 = vmatmul.mubr.msk.f32.gmra.mrb[18].mxu1 %vm855_vm4, %v1357_v50 }
 0x816   : > { %8755 = vmatprep.mubr.msk.f32.mxu1 %vm855_vm4, %v1358_v15  ;;  %9596 = vmatpush3.bf16.msra.mxu1 %v9593_v57 }
 0x819   : > { %8756 = vmatmul.mubr.msk.f32.gmra.mrb[20].mxu1 %vm855_vm4, %v1359_v51 }
 0x81a   : > { %8758 = vmatprep.mubr.msk.f32.mxu1 %vm855_vm4, %v1360_v39 }
 0x81d   : > { %8759 = vmatmul.mubr.msk.f32.gmra.mrb[22].mxu1 %vm855_vm4, %v1361_v3 }
 0x8e4   : > { %v8751_v31 = vpop.f32.mrb[16].mxu1 }
 0x8e5   : > { %1525 = vrot.lane.b32.xlu1 %v8751_v31, %s10442_s8  ;;  %v1476_v9 = vpop.f32.mrb[17].mxu1 }
 0x8e6   : > { %1523 = vrot.lane.b32.xlu0 %v1476_v9, %s10442_s8 }
 0x8e8   : > { %v8754_v13 = vpop.f32.mrb[18].mxu1 }
 0x8e9   : > { %1529 = vrot.lane.b32.xlu1 %v8754_v13, %s10442_s8  ;;  %v1486_v16 = vpop.f32.mrb[19].mxu1 }
 0x8ea   : > { %1527 = vrot.lane.b32.xlu0 %v1486_v16, %s10442_s8 }
 0x8ec   : > { %v8757_v22 = vpop.f32.mrb[20].mxu1 }
 0x8ed   : > { %1533 = vrot.lane.b32.xlu1 %v8757_v22, %s10442_s8  ;;  %v1496_v19 = vpop.f32.mrb[21].mxu1 }
 0x8ee   : > { %1531 = vrot.lane.b32.xlu0 %v1496_v19, %s10442_s8 }
 0x8f0   : > { %v8760_v11 = vpop.f32.mrb[22].mxu1 }
 0x8f1   : > { %1537 = vrot.lane.b32.xlu1 %v8760_v11, %s10442_s8  ;;  %v1506_v20 = vpop.f32.mrb[23].mxu1 }
 0x8f2   : > { %1535 = vrot.lane.b32.xlu0 %v1506_v20, %s10442_s8 }
 0x957   : > { %v1526_v26 = vpop.permute.xlu1 %1525 }
 0x958   : > { %v1524_v27 = vpop.permute.xlu0 %1523  ;;  %v1548_v1 = vsel %vm709_vm2, %v10863_v41, %v1526_v26 }
 0x959   : > { %v1547_v23 = vsel %vm709_vm2, %v10865_v42, %v1524_v27 }
 0x95a   : > { %8769 = vmatprep.mubr.msk.f32.mxu1 %vm417_vm1, %v1547_v23 }
 0x95b   : > { %8770 = vmatmul.mubr.msk.f32.vlgmr.msra.gmra.mrb[24].mxu1 %vm417_vm1, %v1548_v1  ;;  %v1530_v28 = vpop.permute.xlu1 %1529 }
 0x95c   : > { %v1528_v29 = vpop.permute.xlu0 %1527  ;;  %v1550_v35 = vsel %vm709_vm2, %v10867_v58, %v1530_v28 }
 0x95d   : > { %v1549_v32 = vsel %vm709_vm2, %v10869_v61, %v1528_v29 }
 0x95e   : > { %8772 = vmatprep.mubr.msk.f32.mxu1 %vm417_vm1, %v1549_v32 }
 0x95f   : > { %8773 = vmatmul.mubr.msk.f32.gmra.mrb[26].mxu1 %vm417_vm1, %v1550_v35  ;;  %v1534_v42 = vpop.permute.xlu1 %1533 }
 0x960   : > { %v1532_v36 = vpop.permute.xlu0 %1531  ;;  %v1552_v6 = vsel %vm709_vm2, %v10871_v59, %v1534_v42  ;;  %v7878_v59 = vld [vmem:[%s12909_s3 + $0xc8] ss:$0 sm:$0xff] }
 0x961   : > { %v1551_v41 = vsel %vm709_vm2, %v10873_v4, %v1532_v36 }
 0x962   : > { %8775 = vmatprep.mubr.msk.f32.mxu1 %vm417_vm1, %v1551_v41 }
 0x963   : > { %8776 = vmatmul.mubr.msk.f32.gmra.mrb[28].mxu1 %vm417_vm1, %v1552_v6  ;;  %v1538_v61 = vpop.permute.xlu1 %1537 }
 0x964   : > { %v1536_v25 = vpop.permute.xlu0 %1535  ;;  %v1554_v18 = vsel %vm709_vm2, %v10875_v10, %v1538_v61 }
 0x965   : > { %v1553_v58 = vsel %vm709_vm2, %v10877_v17, %v1536_v25 }
 0x966   : > { %8778 = vmatprep.mubr.msk.f32.mxu1 %vm417_vm1, %v1553_v58 }
 0x967   : > { %8779 = vmatmul.mubr.msk.f32.gmra.mrb[30].mxu1 %vm417_vm1, %v1554_v18 }
 0xa2e   : > { %v8771_v4 = vpop.f32.mrb[24].mxu1 }
 0xa2f   : > { %v1660_v60 = vadd.f32 %v8771_v4, %v7878_v59  ;;  %v1654_v14 = vpop.f32.mrb[25].mxu1 }
 0xa30   : > { %v1655_v62 = vadd.f32 %v7878_v59, %v1654_v14 }
 0xa31   : > { %v10975_v37 = vadd.f32 %v1660_v60, %v10535_v30 }
 0xa32   : > { %v10978_v17 = vadd.f32 %v1655_v62, %v10527_v24  ;;  %v8774_v38 = vpop.f32.mrb[26].mxu1 }
 0xa33   : > { %v1670_v10 = vadd.f32 %v8774_v38, %v7878_v59  ;;  %v1664_v5 = vpop.f32.mrb[27].mxu1  ;;  %v1705_v40 = vsel %vm417_vm1, %v10975_v37, 0.0 }
 0xa34   : > { %v1665_v2 = vadd.f32 %v7878_v59, %v1664_v5  ;;  %1706 = vadd.xlane.f32.xlu1 %v1705_v40  ;;  %v1702_v46 = vsel %vm417_vm1, %v10978_v17, 0.0 }
 0xa35   : > { %v10985_v47 = vadd.f32 %v1670_v10, %v10539_v33  ;;  %1703 = vadd.xlane.f32.xlu0 %v1702_v46 }
 0xa36   : > { %v8777_v30 = vpop.f32.mrb[28].mxu1  ;;  %v10990_v50 = vadd.f32 %v1665_v2, %v10541_v34 }
 0xa37   : > { %v1680_v48 = vadd.f32 %v8777_v30, %v7878_v59  ;;  %v1674_v49 = vpop.f32.mrb[29].mxu1  ;;  %v1711_v24 = vsel %vm417_vm1, %v10985_v47, 0.0  ;;  %v1830_v30 = vld [vmem:[%s12909_s3 + $0xd8] sm:$0xff] }
 0xa38   : > { %v1675_v7 = vadd.f32 %v7878_v59, %v1674_v49  ;;  %v1708_v34 = vsel %vm417_vm1, %v10990_v50, 0.0 }
 0xa39   : > { %v10993_v15 = vadd.f32 %v1680_v48, %v10553_v43  ;;  %1712 = vadd.xlane.f32.xlu0 %v1711_v24  ;;  %v1831_v48 = vld [vmem:[%s12909_s3 + $0xe0] sm:$0xff]  ;;  %v1832_v24 = vld [vmem:[%s12909_s3 + $0xe8] sm:$0xff] }
 0xa3a   : > { %v8780_v12 = vpop.f32.mrb[30].mxu1  ;;  %v10998_v39 = vadd.f32 %v1675_v7, %v10555_v44  ;;  %v9597_v49 = vpack.c.bf16 %v1831_v48, %v1830_v30  ;;  %v1833_v7 = vld [vmem:[%s12909_s3 + $0xf0] sm:$0xff] }
 0xa3b   : > { %v1690_v51 = vadd.f32 %v8780_v12, %v7878_v59  ;;  %v1684_v52 = vpop.f32.mrb[31].mxu1  ;;  %v1717_v33 = vsel %vm417_vm1, %v10993_v15, 0.0  ;;  %v9601_v12 = vpack.c.bf16 %v1833_v7, %v1832_v24 }
 0xa3c   : > { %v1685_v3 = vadd.f32 %v7878_v59, %v1684_v52  ;;  %1718 = vadd.xlane.f32.xlu1 %v1717_v33  ;;  %v1714_v44 = vsel %vm417_vm1, %v10998_v39, 0.0  ;;  %9598 = vmatprep.subr.bf16.mxu0 %v9597_v49 }
 0xa3d   : > { %v11003_v63 = vadd.f32 %v1690_v51, %v10567_v53  ;;  %1709 = vadd.xlane.f32.xlu0 %v1708_v34  ;;  %9600 = vmatpush3.bf16.msra.mxu0 %v9597_v49 }
 0xa3e   : > { %v11008_v45 = vadd.f32 %v1685_v3, %v10569_v54  ;;  %9602 = vmatprep.subr.bf16.mxu0 %v9601_v12 }
 0xa3f   : > { %v1723_v43 = vsel %vm417_vm1, %v11003_v63, 0.0 }
 0xa40   : > { %1724 = vadd.xlane.f32.xlu1 %v1723_v43  ;;  %v1720_v55 = vsel %vm417_vm1, %v11008_v45, 0.0 }
 0xa41   : > { %1715 = vadd.xlane.f32.xlu0 %v1714_v44  ;;  %9604 = vmatpush3.bf16.msra.mxu0 %v9601_v12 }
 0xa45   : > { %1721 = vadd.xlane.f32.xlu0 %v1720_v55 }
 0xac1   : > { %v1707_v56 = vpop.xlane.xlu1 %1706 }
 0xac2   : > { %v1727_v21 = vmul.f32 0.03125, %v1707_v56  ;;  %v1704_v53 = vpop.xlane.xlu0 %1703 }
 0xac3   : > { %v1726_v57 = vmul.f32 0.03125, %v1704_v53 }
 0xac4   : > { %v11015_v31 = vsub.f32 %v10975_v37, %v1727_v21 }
 0xac5   : > { %v11018_v9 = vsub.f32 %v10978_v17, %v1726_v57 }
 0xac6   : > { %v1713_v54 = vpop.xlane.xlu0 %1712  ;;  %v1743_v13 = vmul.f32 %v11015_v31, %v11015_v31 }
 0xac7   : > { %v1729_v16 = vmul.f32 0.03125, %v1713_v54  ;;  %v1742_v22 = vmul.f32 %v11018_v9, %v11018_v9 }
 0xac8   : > { %v1753_v19 = vsel %vm417_vm1, %v1743_v13, 0.0  ;;  %v1701_v13 = vld [vmem:[%s12909_s3 + $0xd0] sm:$0x3] }
 0xac9   : > { %v11026_v11 = vsub.f32 %v10985_v47, %v1729_v16  ;;  %v1719_v20 = vpop.xlane.xlu1 %1718  ;;  %1754 = vadd.xlane.f32.xlu1 %v1753_v19  ;;  %v1750_v26 = vsel %vm417_vm1, %v1742_v22, 0.0 }
 0xaca   : > { %v1731_v27 = vmul.f32 0.03125, %v1719_v20  ;;  %1751 = vadd.xlane.f32.xlu0 %v1750_v26  ;;  %v1710_v23 = vpop.xlane.xlu0 %1709  ;;  %v1809_v26 = vrot.slane %v1701_v13, %v10637_v0 }
 0xacb   : > { %v1728_v1 = vmul.f32 0.03125, %v1710_v23  ;;  %v1745_v28 = vmul.f32 %v11026_v11, %v11026_v11 }
 0xacc   : > { %v11032_v29 = vsub.f32 %v10993_v15, %v1731_v27 }
 0xacd   : > { %v11035_v32 = vsub.f32 %v10990_v50, %v1728_v1  ;;  %v1725_v35 = vpop.xlane.xlu1 %1724  ;;  %v1759_v42 = vsel %vm417_vm1, %v1745_v28, 0.0 }
 0xace   : > { %v1733_v36 = vmul.f32 0.03125, %v1725_v35  ;;  %1760 = vadd.xlane.f32.xlu1 %v1759_v42  ;;  %v1716_v41 = vpop.xlane.xlu0 %1715  ;;  %v1747_v6 = vmul.f32 %v11032_v29, %v11032_v29 }
 0xacf   : > { %v1730_v61 = vmul.f32 0.03125, %v1716_v41  ;;  %v1744_v25 = vmul.f32 %v11035_v32, %v11035_v32 }
 0xad0   : > { %v11043_v58 = vsub.f32 %v11003_v63, %v1733_v36  ;;  %v1765_v18 = vsel %vm417_vm1, %v1747_v6, 0.0 }
 0xad1   : > { %v11047_v59 = vsub.f32 %v10998_v39, %v1730_v61  ;;  %v1756_v4 = vsel %vm417_vm1, %v1744_v25, 0.0  ;;  %v1821_v61 = vrot.slane %v1701_v13, %v10642_v8 }
 0xad2   : > { %1766 = vadd.xlane.f32.xlu1 %v1765_v18  ;;  %1757 = vadd.xlane.f32.xlu0 %v1756_v4  ;;  %v1722_v60 = vpop.xlane.xlu0 %1721  ;;  %v1749_v14 = vmul.f32 %v11043_v58, %v11043_v58 }
 0xad3   : > { %v1732_v62 = vmul.f32 0.03125, %v1722_v60  ;;  %v1746_v38 = vmul.f32 %v11047_v59, %v11047_v59 }
 0xad4   : > { %v1771_v10 = vsel %vm417_vm1, %v1749_v14, 0.0 }
 0xad5   : > { %v11056_v5 = vsub.f32 %v11008_v45, %v1732_v62  ;;  %v1762_v40 = vsel %vm417_vm1, %v1746_v38, 0.0 }
 0xad6   : > { %1772 = vadd.xlane.f32.xlu1 %v1771_v10  ;;  %1763 = vadd.xlane.f32.xlu0 %v1762_v40 }
 0xad7   : > { %v1748_v2 = vmul.f32 %v11056_v5, %v11056_v5 }
 0xad9   : > { %v1768_v46 = vsel %vm417_vm1, %v1748_v2, 0.0 }
 0xada   : > { %1769 = vadd.xlane.f32.xlu0 %v1768_v46 }
 0xb56   : > { %v1755_v51 = vpop.xlane.xlu1 %1754 }
 0xb57   : > { %v1775_v52 = vmul.f32 0.03125, %v1755_v51  ;;  %v1752_v33 = vpop.xlane.xlu0 %1751 }
 0xb58   : > { %v1774_v3 = vmul.f32 0.03125, %v1752_v33 }
 0xb59   : > { %v1783_v34 = vadd.f32 1e-05, %v1775_v52 }
 0xb5a   : > { %v1782_v43 = vadd.f32 1e-05, %v1774_v3 }
 0xb5b   : > { %10212 = vrsqrt.f32 %v1783_v34  ;;  %v1761_v44 = vpop.xlane.xlu1 %1760 }
 0xb5c   : > { %10214 = vrsqrt.f32 %v1782_v43  ;;  %v1777_v55 = vmul.f32 0.03125, %v1761_v44  ;;  %v2040_v44 = vld [vmem:[%s12909_s3 + $0x100] sm:$0xff] }
 0xb5e   : > { %v1785_v56 = vadd.f32 1e-05, %v1777_v55 }
 0xb5f   : > { %v1767_v21 = vpop.xlane.xlu1 %1766  ;;  %v1758_v53 = vpop.xlane.xlu0 %1757 }
 0xb60   : > { %10216 = vrsqrt.f32 %v1785_v56  ;;  %v1779_v57 = vmul.f32 0.03125, %v1767_v21  ;;  %v1776_v54 = vmul.f32 0.03125, %v1758_v53  ;;  %v2042_v56 = vld [vmem:[%s12909_s3 + $0x110] sm:$0xff]  ;;  %v2043_v21 = vld [vmem:[%s12909_s3 + $0x118] sm:$0xff] }
 0xb61   : > { %v9609_v53 = vpack.c.bf16 %v2043_v21, %v2042_v56 }
 0xb62   : > { %v1787_v16 = vadd.f32 1e-05, %v1779_v57  ;;  %v1784_v22 = vadd.f32 1e-05, %v1776_v54  ;;  %v2044_v57 = vld [vmem:[%s12909_s3 + $0x120] sm:$0xff]  ;;  %v2045_v54 = vld [vmem:[%s12909_s3 + $0x128] sm:$0xff] }
 0xb63   : > { %v1773_v19 = vpop.xlane.xlu1 %1772  ;;  %v1764_v20 = vpop.xlane.xlu0 %1763  ;;  %v9613_v13 = vpack.c.bf16 %v2045_v54, %v2044_v57 }
 0xb64   : > { %10218 = vrsqrt.f32 %v1787_v16  ;;  %v1781_v27 = vmul.f32 0.03125, %v1773_v19  ;;  %v1778_v23 = vmul.f32 0.03125, %v1764_v20  ;;  %v2046_v16 = vld [vmem:[%s12909_s3 + $0x130] sm:$0xff]  ;;  %v7887_v20 = vld [vmem:[%s12909_s3 + $0xf8] ss:$0 sm:$0xff] }
 0xb65   : > { %v10213_v1 = vpop.eup %10212  ;;  %10220 = vrsqrt.f32 %v1784_v22  ;;  %v2047_v22 = vld [vmem:[%s12909_s3 + $0x138] sm:$0xff] }
 0xb66   : > { %v10215_v28 = vpop.eup %10214  ;;  %v1799_v35 = vmul.f32 %v10213_v1, %v11015_v31  ;;  %v1789_v42 = vadd.f32 1e-05, %v1781_v27  ;;  %v1786_v36 = vadd.f32 1e-05, %v1778_v23  ;;  %v9617_v19 = vpack.c.bf16 %v2047_v22, %v2046_v16 }
 0xb67   : > { %v1770_v41 = vpop.xlane.xlu0 %1769  ;;  %v1798_v6 = vmul.f32 %v10215_v28, %v11018_v9 }
 0xb68   : > { %v1811_v25 = vmul.f32 %v1809_v26, %v1799_v35  ;;  %10222 = vrsqrt.f32 %v1789_v42  ;;  %v1780_v18 = vmul.f32 0.03125, %v1770_v41 }
 0xb69   : > { %10224 = vrsqrt.f32 %v1786_v36  ;;  %v1810_v4 = vmul.f32 %v1809_v26, %v1798_v6 }
 0xb6a   : > { %v10217_v60 = vpop.eup %10216  ;;  %v1788_v14 = vadd.f32 1e-05, %v1780_v18  ;;  %v1823_v38 = vadd.f32 %v1821_v61, %v1811_v25 }
 0xb6b   : > { %v1822_v62 = vadd.f32 %v1821_v61, %v1810_v4  ;;  %v1801_v31 = vmul.f32 %v10217_v60, %v11026_v11 }
 0xb6c   : > { %10226 = vrsqrt.f32 %v1788_v14 }
 0xb6d   : > { %8789 = vmatprep.mubr.msk.f32.mxu0 %vm417_vm1, %v1822_v62  ;;  %v1813_v2 = vmul.f32 %v1809_v26, %v1801_v31 }
 0xb6e   : > { %v10219_v10 = vpop.eup %10218  ;;  %8790 = vmatmul.mubr.msk.f32.vlgmr.msra.gmra.mrb[24].mxu0 %vm417_vm1, %v1823_v38 }
 0xb6f   : > { %v10221_v9 = vpop.eup %10220  ;;  %v1803_v46 = vmul.f32 %v10219_v10, %v11032_v29  ;;  %v1825_v12 = vadd.f32 %v1821_v61, %v1813_v2 }
 0xb70   : > { %v1800_v40 = vmul.f32 %v10221_v9, %v11035_v32 }
 0xb71   : > { %v1815_v51 = vmul.f32 %v1809_v26, %v1803_v46 }
 0xb72   : > { %v10223_v30 = vpop.eup %10222  ;;  %v1812_v48 = vmul.f32 %v1809_v26, %v1800_v40 }
 0xb73   : > { %v10225_v49 = vpop.eup %10224  ;;  %v1805_v52 = vmul.f32 %v10223_v30, %v11043_v58  ;;  %v1827_v29 = vadd.f32 %v1821_v61, %v1815_v51 }
 0xb74   : > { %v1824_v24 = vadd.f32 %v1821_v61, %v1812_v48  ;;  %v1802_v7 = vmul.f32 %v10225_v49, %v11047_v59 }
 0xb75   : > { %v1817_v43 = vmul.f32 %v1809_v26, %v1805_v52 }
 0xb76   : > { %v10227_v11 = vpop.eup %10226  ;;  %8792 = vmatprep.mubr.msk.f32.mxu0 %vm417_vm1, %v1824_v24  ;;  %v1814_v33 = vmul.f32 %v1809_v26, %v1802_v7 }
 0xb77   : > { %8793 = vmatmul.mubr.msk.f32.gmra.mrb[26].mxu0 %vm417_vm1, %v1825_v12  ;;  %v1804_v32 = vmul.f32 %v10227_v11, %v11056_v5  ;;  %v1829_v58 = vadd.f32 %v1821_v61, %v1817_v43  ;;  %v2041_v5 = vld [vmem:[%s12909_s3 + $0x108] sm:$0xff] }
 0xb78   : > { %v1826_v3 = vadd.f32 %v1821_v61, %v1814_v33  ;;  %v9605_v55 = vpack.c.bf16 %v2041_v5, %v2040_v44 }
 0xb79   : > { %v1816_v34 = vmul.f32 %v1809_v26, %v1804_v32 }
 0xb7a   : > { %8795 = vmatprep.mubr.msk.f32.mxu0 %vm417_vm1, %v1826_v3  ;;  %9606 = vmatprep.subr.bf16.mxu1 %v9605_v55 }
 0xb7b   : > { %8796 = vmatmul.mubr.msk.f32.gmra.mrb[28].mxu0 %vm417_vm1, %v1827_v29  ;;  %v1828_v59 = vadd.f32 %v1821_v61, %v1816_v34  ;;  %9608 = vmatpush3.bf16.msra.mxu1 %v9605_v55 }
 0xb7c   : > { %9610 = vmatprep.subr.bf16.mxu1 %v9609_v53 }
 0xb7d   : > { %8798 = vmatprep.mubr.msk.f32.mxu0 %vm417_vm1, %v1828_v59 }
 0xb7f   : > { %8799 = vmatmul.mubr.msk.f32.gmra.mrb[30].mxu0 %vm417_vm1, %v1829_v58  ;;  %9612 = vmatpush3.bf16.msra.mxu1 %v9609_v53 }
 0xb80   : > { %9614 = vmatprep.subr.bf16.mxu1 %v9613_v13 }
 0xb83   : > { %9616 = vmatpush3.bf16.msra.mxu1 %v9613_v13 }
 0xb84   : > { %9618 = vmatprep.subr.bf16.mxu1 %v9617_v19 }
 0xb87   : > { %9620 = vmatpush3.bf16.msra.mxu1 %v9617_v19 }
 0xc41   : > { %v8791_v26 = vpop.f32.mrb[24].mxu0 }
 0xc42   : > { %v1935_v27 = vadd.f32 %v8791_v26, %v7887_v20  ;;  %v1929_v23 = vpop.f32.mrb[25].mxu0 }
 0xc43   : > { %v1930_v1 = vadd.f32 %v7887_v20, %v1929_v23 }
 0xc44   : > { %v1977_v28 = vmul.f32 0.044715, %v1935_v27 }
 0xc45   : > { %v1976_v35 = vmul.f32 0.044715, %v1930_v1  ;;  %v1968_v26 = vmul.f32 0.5, %v1930_v1 }
 0xc46   : > { %v1985_v42 = vmul.f32 %v1977_v28, %v1935_v27 }
 0xc47   : > { %v1984_v36 = vmul.f32 %v1976_v35, %v1930_v1  ;;  %v1969_v35 = vmul.f32 0.5, %v1935_v27 }
 0xc48   : > { %v1993_v41 = vmul.f32 %v1985_v42, %v1935_v27 }
 0xc49   : > { %v1992_v6 = vmul.f32 %v1984_v36, %v1930_v1 }
 0xc4a   : > { %v2001_v61 = vadd.f32 %v1993_v41, %v1935_v27  ;;  %v8794_v25 = vpop.f32.mrb[26].mxu0 }
 0xc4b   : > { %v2000_v18 = vadd.f32 %v1992_v6, %v1930_v1  ;;  %v11122_v4 = vadd.f32 %v8794_v25, %v7887_v20  ;;  %v1939_v60 = vpop.f32.mrb[27].mxu0 }
 0xc4c   : > { %v2009_v14 = vmul.f32 0.7978846, %v2001_v61  ;;  %v1940_v62 = vadd.f32 %v7887_v20, %v1939_v60 }
 0xc4d   : > { %v1979_v38 = vmul.f32 0.044715, %v11122_v4  ;;  %v2008_v31 = vmul.f32 0.7978846, %v2000_v18 }
 0xc4e   : > { %10228 = vtanh.f32 %v2009_v14  ;;  %v1978_v10 = vmul.f32 0.044715, %v1940_v62  ;;  %v8797_v9 = vpop.f32.mrb[28].mxu0  ;;  %v1970_v14 = vmul.f32 0.5, %v1940_v62 }
 0xc4f   : > { %v1987_v40 = vmul.f32 %v1979_v38, %v11122_v4  ;;  %v11126_v2 = vadd.f32 %v8797_v9, %v7887_v20  ;;  %v1949_v46 = vpop.f32.mrb[29].mxu0  ;;  %10230 = vtanh.f32 %v2008_v31  ;;  %v1971_v38 = vmul.f32 0.5, %v11122_v4 }
 0xc50   : > { %v1986_v30 = vmul.f32 %v1978_v10, %v1940_v62  ;;  %v1950_v48 = vadd.f32 %v7887_v20, %v1949_v46 }
 0xc51   : > { %v1995_v49 = vmul.f32 %v1987_v40, %v11122_v4  ;;  %v1981_v24 = vmul.f32 0.044715, %v11126_v2 }
 0xc52   : > { %v1994_v7 = vmul.f32 %v1986_v30, %v1940_v62  ;;  %v1980_v12 = vmul.f32 0.044715, %v1950_v48  ;;  %v8800_v51 = vpop.f32.mrb[30].mxu0  ;;  %v1972_v30 = vmul.f32 0.5, %v1950_v48 }
 0xc53   : > { %v2003_v52 = vadd.f32 %v1995_v49, %v11122_v4  ;;  %v1989_v11 = vmul.f32 %v1981_v24, %v11126_v2  ;;  %v11132_v33 = vadd.f32 %v8800_v51, %v7887_v20  ;;  %v1959_v32 = vpop.f32.mrb[31].mxu0  ;;  %v1973_v24 = vmul.f32 0.5, %v11126_v2 }
 0xc54   : > { %v2002_v3 = vadd.f32 %v1994_v7, %v1940_v62  ;;  %v1988_v29 = vmul.f32 %v1980_v12, %v1950_v48  ;;  %v1960_v34 = vadd.f32 %v7887_v20, %v1959_v32 }
 0xc55   : > { %v1997_v43 = vmul.f32 %v1989_v11, %v11126_v2  ;;  %v1983_v59 = vmul.f32 0.044715, %v11132_v33  ;;  %v2011_v58 = vmul.f32 0.7978846, %v2003_v52  ;;  %v1975_v32 = vmul.f32 0.5, %v11132_v33 }
 0xc56   : > { %v1996_v44 = vmul.f32 %v1988_v29, %v1950_v48  ;;  %v1982_v5 = vmul.f32 0.044715, %v1960_v34  ;;  %v2010_v55 = vmul.f32 0.7978846, %v2002_v3  ;;  %v1974_v4 = vmul.f32 0.5, %v1960_v34 }
 0xc57   : > { %v2005_v56 = vadd.f32 %v1997_v43, %v11126_v2  ;;  %v1991_v21 = vmul.f32 %v1983_v59, %v11132_v33  ;;  %10232 = vtanh.f32 %v2011_v58  ;;  %v7904_v29 = vld [vmem:[%s12909_s3 + $0x140] ss:$0 sm:$0xff] }
 0xc58   : > { %v10229_v53 = vpop.eup %10228  ;;  %v2004_v57 = vadd.f32 %v1996_v44, %v1950_v48  ;;  %v1990_v54 = vmul.f32 %v1982_v5, %v1960_v34  ;;  %10234 = vtanh.f32 %v2010_v55 }
 0xc59   : > { %v10231_v13 = vpop.eup %10230  ;;  %v2025_v16 = vadd.f32 1.0, %v10229_v53  ;;  %v1999_v22 = vmul.f32 %v1991_v21, %v11132_v33  ;;  %v2013_v19 = vmul.f32 0.7978846, %v2005_v56 }
 0xc5a   : > { %v1998_v20 = vmul.f32 %v1990_v54, %v1960_v34  ;;  %v2024_v23 = vadd.f32 1.0, %v10231_v13  ;;  %v2012_v28 = vmul.f32 0.7978846, %v2004_v57 }
 0xc5b   : > { %v2007_v42 = vadd.f32 %v1999_v22, %v11132_v33  ;;  %10236 = vtanh.f32 %v2013_v19  ;;  %v2033_v6 = vmul.f32 %v2025_v16, %v1969_v35 }
 0xc5c   : > { %v2006_v36 = vadd.f32 %v1998_v20, %v1960_v34  ;;  %v2032_v41 = vmul.f32 %v2024_v23, %v1968_v26  ;;  %10238 = vtanh.f32 %v2012_v28 }
 0xc5d   : > { %v2015_v61 = vmul.f32 0.7978846, %v2007_v42 }
 0xc5e   : > { %8817 = vmatprep.mubr.msk.f32.mxu1 %vm855_vm4, %v2032_v41  ;;  %v2014_v25 = vmul.f32 0.7978846, %v2006_v36 }
 0xc5f   : > { %8818 = vmatmul.mubr.msk.f32.vlgmr.msra.gmra.mrb[32].mxu1 %vm855_vm4, %v2033_v6  ;;  %10240 = vtanh.f32 %v2015_v61 }
 0xc60   : > { %10242 = vtanh.f32 %v2014_v25 }
 0xc61   : > { %v10233_v18 = vpop.eup %10232 }
 0xc62   : > { %v10235_v1 = vpop.eup %10234  ;;  %v2027_v60 = vadd.f32 1.0, %v10233_v18 }
 0xc63   : > { %v2026_v27 = vadd.f32 1.0, %v10235_v1 }
 0xc64   : > { %v2035_v40 = vmul.f32 %v2027_v60, %v1971_v38 }
 0xc65   : > { %v10237_v31 = vpop.eup %10236  ;;  %v2034_v10 = vmul.f32 %v2026_v27, %v1970_v14 }
 0xc66   : > { %v10239_v9 = vpop.eup %10238  ;;  %v2029_v46 = vadd.f32 1.0, %v10237_v31 }
 0xc67   : > { %8820 = vmatprep.mubr.msk.f32.mxu1 %vm855_vm4, %v2034_v10  ;;  %v2028_v49 = vadd.f32 1.0, %v10239_v9 }
 0xc68   : > { %8821 = vmatmul.mubr.msk.f32.gmra.mrb[34].mxu1 %vm855_vm4, %v2035_v40  ;;  %v2037_v62 = vmul.f32 %v2029_v46, %v1973_v24 }
 0xc69   : > { %v10241_v7 = vpop.eup %10240  ;;  %v2036_v12 = vmul.f32 %v2028_v49, %v1972_v30 }
 0xc6a   : > { %v10243_v51 = vpop.eup %10242  ;;  %v2031_v52 = vadd.f32 1.0, %v10241_v7 }
 0xc6b   : > { %8823 = vmatprep.mubr.msk.f32.mxu1 %vm855_vm4, %v2036_v12  ;;  %v2030_v11 = vadd.f32 1.0, %v10243_v51  ;;  %v2327_v12 = vld [vmem:[%s12909_s3 + $0x150] sm:$0xff]  ;;  %v2328_v51 = vld [vmem:[%s12909_s3 + $0x158] sm:$0xff] }
 0xc6c   : > { %8824 = vmatmul.mubr.msk.f32.gmra.mrb[36].mxu1 %vm855_vm4, %v2037_v62  ;;  %v2039_v48 = vmul.f32 %v2031_v52, %v1975_v32  ;;  %v9621_v62 = vpack.c.bf16 %v2328_v51, %v2327_v12  ;;  %v2329_v52 = vld [vmem:[%s12909_s3 + $0x160] sm:$0xff]  ;;  %v10443_v32 = vmov 0.0|0.0   ;;  %v2490_v12 = vld [vmem:[%s12909_s3 + $0x198] sm:$0xff] }
 0xc6d   : > { %v2038_v3 = vmul.f32 %v2030_v11, %v1974_v4  ;;  %v2330_v4 = vld [vmem:[%s12909_s3 + $0x168] sm:$0xff] }
 0xc6e   : > { %9949 = vmatprep.subr.bf16.mxu1 %v9621_v62  ;;  %9622 = vmatprep.subr.bf16.mxu0 %v9621_v62  ;;  %v9625_v11 = vpack.c.bf16 %v2330_v4, %v2329_v52  ;;  %v11287_v52 = vld [vmem:[%s11280_s11] sm:$0x7f] }
 0xc6f   : > { %8826 = vmatprep.mubr.msk.f32.mxu1 %vm855_vm4, %v2038_v3  ;;  %9951 = vmatpush3.bf16.msra.mxu1 %v9621_v62  ;;  %v10444_v3 = vmov 0.0  }
 0xc70   : > { %8827 = vmatmul.mubr.msk.f32.gmra.mrb[38].mxu1 %vm855_vm4, %v2039_v48  ;;  %9624 = vmatpush3.bf16.msra.mxu0 %v9621_v62 }
 0xc71   : > { %9950 = vmatprep.subr.bf16.mxu1 %v9625_v11  ;;  %9626 = vmatprep.subr.bf16.mxu0 %v9625_v11 }
 0xc73   : > { %9952 = vmatpush3.bf16.msra.mxu1 %v9625_v11 }
 0xc74   : > { %9628 = vmatpush3.bf16.msra.mxu0 %v9625_v11  ;;  %9629 = vmatprep.subr.bf16.mxu1 %v10443_v32 }
 0xc75   : > { %8860 = vmatprep.subr.mxu0 %v10444_v3 }
 0xd32   : > { %v8819_v2 = vpop.f32.mrb[32].mxu1 }
 0xd33   : > { %v2178_v43 = vadd.f32 %v8819_v2, %v10975_v37  ;;  %v2138_v59 = vpop.f32.mrb[33].mxu1 }
 0xd34   : > { %v2177_v34 = vadd.f32 %v2138_v59, %v10978_v17 }
 0xd35   : > { %v11156_v58 = vadd.f32 %v7904_v29, %v2178_v43 }
 0xd36   : > { %v11158_v44 = vadd.f32 %v7904_v29, %v2177_v34 }
 0xd37   : > { %v2202_v30 = vsel %vm417_vm1, %v11156_v58, 0.0 }
 0xd38   : > { %v2199_v49 = vsel %vm417_vm1, %v11158_v44, 0.0 }
 0xd3b   : > { %v8822_v33 = vpop.f32.mrb[34].mxu1 }
 0xd3c   : > { %v2180_v5 = vadd.f32 %v8822_v33, %v10985_v47  ;;  %v2148_v55 = vpop.f32.mrb[35].mxu1 }
 0xd3d   : > { %v2179_v56 = vadd.f32 %v2148_v55, %v10990_v50 }
 0xd3e   : > { %v11162_v21 = vadd.f32 %v7904_v29, %v2180_v5 }
 0xd3f   : > { %v11164_v53 = vadd.f32 %v7904_v29, %v2179_v56  ;;  %v8825_v57 = vpop.f32.mrb[36].mxu1 }
 0xd40   : > { %v2182_v37 = vadd.f32 %v8825_v57, %v10993_v15  ;;  %v2158_v54 = vpop.f32.mrb[37].mxu1  ;;  %v2208_v24 = vsel %vm417_vm1, %v11162_v21, 0.0 }
 0xd41   : > { %v2181_v17 = vadd.f32 %v2158_v54, %v10998_v39  ;;  %v2205_v7 = vsel %vm417_vm1, %v11164_v53, 0.0 }
 0xd42   : > { %v2195_v13 = vadd.f32 %v7904_v29, %v2182_v37 }
 0xd43   : > { %v8828_v16 = vpop.f32.mrb[38].mxu1  ;;  %v2194_v22 = vadd.f32 %v7904_v29, %v2181_v17 }
 0xd44   : > { %v2184_v19 = vadd.f32 %v8828_v16, %v11003_v63  ;;  %v2168_v20 = vpop.f32.mrb[39].mxu1  ;;  %v2214_v47 = vsel %vm417_vm1, %v2195_v13, 0.0 }
 0xd45   : > { %v2183_v50 = vadd.f32 %v2168_v20, %v11008_v45  ;;  %2215 = vadd.xlane.f32.xlu1 %v2214_v47  ;;  %v2211_v26 = vsel %vm417_vm1, %v2194_v22, 0.0 }
 0xd46   : > { %v2197_v23 = vadd.f32 %v7904_v29, %v2184_v19  ;;  %2212 = vadd.xlane.f32.xlu0 %v2211_v26 }
 0xd47   : > { %v2196_v28 = vadd.f32 %v7904_v29, %v2183_v50 }
 0xd48   : > { %v2220_v15 = vsel %vm417_vm1, %v2197_v23, 0.0 }
 0xd49   : > { %2221 = vadd.xlane.f32.xlu1 %v2220_v15  ;;  %v2217_v39 = vsel %vm417_vm1, %v2196_v28, 0.0 }
 0xd4a   : > { %2218 = vadd.xlane.f32.xlu0 %v2217_v39 }
 0xdd2   : > { %v2216_v35 = vpop.xlane.xlu1 %2215 }
 0xdd3   : > { %v2228_v42 = vmul.f32 0.03125, %v2216_v35  ;;  %v2213_v63 = vpop.xlane.xlu0 %2212 }
 0xdd4   : > { %v2227_v36 = vmul.f32 0.03125, %v2213_v63 }
 0xdd5   : > { %v11174_v41 = vsub.f32 %v2195_v13, %v2228_v42 }
 0xdd6   : > { %v11176_v6 = vsub.f32 %v2194_v22, %v2227_v36  ;;  %v2222_v45 = vpop.xlane.xlu1 %2221  ;;  %v2198_v22 = vld [vmem:[%s12909_s3 + $0x148] sm:$0x3] }
 0xdd7   : > { %v2230_v61 = vmul.f32 0.03125, %v2222_v45  ;;  %v2219_v25 = vpop.xlane.xlu0 %2218  ;;  %v2244_v18 = vmul.f32 %v11174_v41, %v11174_v41 }
 0xdd8   : > { %v2229_v1 = vmul.f32 0.03125, %v2219_v25  ;;  %v2243_v60 = vmul.f32 %v11176_v6, %v11176_v6 }
 0xdd9   : > { %v11182_v14 = vsub.f32 %v2197_v23, %v2230_v61  ;;  %v2262_v27 = vsel %vm417_vm1, %v2244_v18, 0.0 }
 0xdda   : > { %v11185_v38 = vsub.f32 %v2196_v28, %v2229_v1  ;;  %2263 = vadd.xlane.f32.xlu1 %v2262_v27  ;;  %v2259_v31 = vsel %vm417_vm1, %v2243_v60, 0.0  ;;  %v11228_v28 = vrot.slane %v2198_v22, %v10637_v0  ;;  %v2488_v1 = vld [vmem:[%s12909_s3 + $0x188] sm:$0xff] }
 0xddb   : > { %2260 = vadd.xlane.f32.xlu0 %v2259_v31  ;;  %v2246_v10 = vmul.f32 %v11182_v14, %v11182_v14 }
 0xddc   : > { %v2245_v9 = vmul.f32 %v11185_v38, %v11185_v38 }
 0xddd   : > { %v2268_v40 = vsel %vm417_vm1, %v2246_v10, 0.0 }
 0xdde   : > { %2269 = vadd.xlane.f32.xlu1 %v2268_v40  ;;  %v2265_v46 = vsel %vm417_vm1, %v2245_v9, 0.0 }
 0xddf   : > { %2266 = vadd.xlane.f32.xlu0 %v2265_v46 }
 0xde2   : > { %2203 = vadd.xlane.f32.xlu1 %v2202_v30 }
 0xde3   : > { %2200 = vadd.xlane.f32.xlu0 %v2199_v49 }
 0xde6   : > { %2209 = vadd.xlane.f32.xlu1 %v2208_v24 }
 0xde7   : > { %2206 = vadd.xlane.f32.xlu0 %v2205_v7  ;;  %v2489_v7 = vld [vmem:[%s12909_s3 + $0x190] sm:$0xff] }
 0xde8   : > { %v9633_v51 = vpack.c.bf16 %v2490_v12, %v2489_v7 }
 0xe67   : > { %v2264_v48 = vpop.xlane.xlu1 %2263 }
 0xe68   : > { %v2276_v2 = vmul.f32 0.03125, %v2264_v48  ;;  %v2261_v29 = vpop.xlane.xlu0 %2260 }
 0xe69   : > { %v2275_v43 = vmul.f32 0.03125, %v2261_v29 }
 0xe6a   : > { %v2284_v59 = vadd.f32 1e-05, %v2276_v2 }
 0xe6b   : > { %v2283_v34 = vadd.f32 1e-05, %v2275_v43  ;;  %v2270_v33 = vpop.xlane.xlu1 %2269 }
 0xe6c   : > { %10244 = vrsqrt.f32 %v2284_v59  ;;  %v2278_v5 = vmul.f32 0.03125, %v2270_v33  ;;  %v2267_v55 = vpop.xlane.xlu0 %2266 }
 0xe6d   : > { %10246 = vrsqrt.f32 %v2283_v34  ;;  %v2277_v56 = vmul.f32 0.03125, %v2267_v55 }
 0xe6e   : > { %v2286_v57 = vadd.f32 1e-05, %v2278_v5 }
 0xe6f   : > { %v2285_v37 = vadd.f32 1e-05, %v2277_v56  ;;  %v2204_v54 = vpop.xlane.xlu1 %2203 }
 0xe70   : > { %10248 = vrsqrt.f32 %v2286_v57  ;;  %v2224_v17 = vmul.f32 0.03125, %v2204_v54  ;;  %v2201_v13 = vpop.xlane.xlu0 %2200 }
 0xe71   : > { %10250 = vrsqrt.f32 %v2285_v37  ;;  %v2223_v16 = vmul.f32 0.03125, %v2201_v13 }
 0xe72   : > { %v11220_v19 = vsub.f32 %v11156_v58, %v2224_v17 }
 0xe73   : > { %v11223_v20 = vsub.f32 %v11158_v44, %v2223_v16  ;;  %v2210_v47 = vpop.xlane.xlu1 %2209 }
 0xe74   : > { %v2226_v50 = vmul.f32 0.03125, %v2210_v47  ;;  %v2207_v26 = vpop.xlane.xlu0 %2206  ;;  %v2240_v23 = vmul.f32 %v11220_v19, %v11220_v19 }
 0xe75   : > { %v2225_v15 = vmul.f32 0.03125, %v2207_v26  ;;  %v2239_v39 = vmul.f32 %v11223_v20, %v11223_v20 }
 0xe76   : > { %v10245_v35 = vpop.eup %10244  ;;  %v11233_v58 = vsub.f32 %v11162_v21, %v2226_v50  ;;  %v2250_v44 = vsel %vm417_vm1, %v2240_v23, 0.0  ;;  %v11245_v21 = vrot.slane %v2198_v22, %v10642_v8 }
 0xe77   : > { %v10247_v42 = vpop.eup %10246  ;;  %v2300_v63 = vmul.f32 %v10245_v35, %v11174_v41  ;;  %v11238_v36 = vsub.f32 %v11164_v53, %v2225_v15  ;;  %2251 = vadd.xlane.f32.xlu1 %v2250_v44  ;;  %v2247_v45 = vsel %vm417_vm1, %v2239_v39, 0.0  ;;  %v2487_v53 = vld [vmem:[%s12909_s3 + $0x180] sm:$0xff] }
 0xe78   : > { %2248 = vadd.xlane.f32.xlu0 %v2247_v45  ;;  %v2242_v61 = vmul.f32 %v11233_v58, %v11233_v58  ;;  %v2299_v25 = vmul.f32 %v10247_v42, %v11176_v6  ;;  %v9630_v46 = vpack.c.bf16 %v2488_v1, %v2487_v53 }
 0xe79   : > { %v2312_v18 = vmul.f32 %v11228_v28, %v2300_v63  ;;  %v2241_v41 = vmul.f32 %v11238_v36, %v11238_v36  ;;  %v7915_v63 = vld [vmem:[%s12909_s3 + $0x1a0] ss:$0 sm:$0xff] }
 0xe7a   : > { %v10249_v60 = vpop.eup %10248  ;;  %v2256_v27 = vsel %vm417_vm1, %v2242_v61, 0.0  ;;  %v2311_v6 = vmul.f32 %v11228_v28, %v2299_v25 }
 0xe7b   : > { %v10251_v31 = vpop.eup %10250  ;;  %2257 = vadd.xlane.f32.xlu1 %v2256_v27  ;;  %v2253_v10 = vsel %vm417_vm1, %v2241_v41, 0.0  ;;  %v2302_v9 = vmul.f32 %v10249_v60, %v11182_v14  ;;  %v2324_v49 = vadd.f32 %v11245_v21, %v2312_v18 }
 0xe7c   : > { %2254 = vadd.xlane.f32.xlu0 %v2253_v10  ;;  %v2323_v40 = vadd.f32 %v11245_v21, %v2311_v6  ;;  %v2301_v30 = vmul.f32 %v10251_v31, %v11185_v38 }
 0xe7d   : > { %v2314_v24 = vmul.f32 %v11228_v28, %v2302_v9 }
 0xe7e   : > { %8843 = vmatprep.mubr.msk.f32.mxu1 %vm417_vm1, %v2323_v40  ;;  %v2313_v14 = vmul.f32 %v11228_v28, %v2301_v30 }
 0xe7f   : > { %8844 = vmatmul.mubr.msk.f32.vlgmr.msra.gmra.mrb[40].mxu1 %vm417_vm1, %v2324_v49  ;;  %v2326_v62 = vadd.f32 %v11245_v21, %v2314_v24 }
 0xe80   : > { %9631 = vmatpush3.bf16.msra.mxu1 %v9630_v46  ;;  %v2325_v38 = vadd.f32 %v11245_v21, %v2313_v14 }
 0xe81   : > { %9632 = vmatprep.subr.bf16.mxu1 %v10443_v32 }
 0xe82   : > { %8846 = vmatprep.mubr.msk.f32.mxu1 %vm417_vm1, %v2325_v38 }
 0xe83   : > { %8847 = vmatmul.mubr.msk.f32.gmra.mrb[42].mxu1 %vm417_vm1, %v2326_v62 }
 0xe84   : > { %9634 = vmatpush3.bf16.msra.mxu1 %v9633_v51  ;;  %8857 = vmatprep.mubr.msk.f32.mxu1 %vm10445_vm5, %v10444_v3 }
 0xe85   : > { %8865 = vmatprep.subr.mxu1 %v10444_v3 }
 0xe87   : > { %8858 = vmatmul.mubr.msk.f32.vlgmr.msra.gmra.mrb[44].mxu1 %vm417_vm1, %v11287_v52 }
 0xe88   : > { %8867 = vmatprep.mubr.msk.f32.mxu1 %vm10445_vm5, %v10444_v3 }
 0xf04   : > { %v2252_v4 = vpop.xlane.xlu1 %2251 }
 0xf05   : > { %v2272_v11 = vmul.f32 0.03125, %v2252_v4  ;;  %v2249_v48 = vpop.xlane.xlu0 %2248 }
 0xf06   : > { %v2271_v2 = vmul.f32 0.03125, %v2249_v48 }
 0xf07   : > { %v2280_v29 = vadd.f32 1e-05, %v2272_v11 }
 0xf08   : > { %v2279_v43 = vadd.f32 1e-05, %v2271_v2  ;;  %v2258_v59 = vpop.xlane.xlu1 %2257 }
 0xf09   : > { %10252 = vrsqrt.f32 %v2280_v29  ;;  %v2274_v34 = vmul.f32 0.03125, %v2258_v59  ;;  %v2255_v33 = vpop.xlane.xlu0 %2254 }
 0xf0a   : > { %10254 = vrsqrt.f32 %v2279_v43  ;;  %v2273_v5 = vmul.f32 0.03125, %v2255_v33 }
 0xf0b   : > { %v2282_v55 = vadd.f32 1e-05, %v2274_v34 }
 0xf0c   : > { %v2281_v56 = vadd.f32 1e-05, %v2273_v5 }
 0xf0d   : > { %10256 = vrsqrt.f32 %v2282_v55  ;;  %v2910_v55 = vld [vmem:[%s12909_s3 + $0x1a8] sm:$0xff] }
 0xf0e   : > { %10258 = vrsqrt.f32 %v2281_v56  ;;  %v2911_v56 = vld [vmem:[%s12909_s3 + $0x1b0] sm:$0xff] }
 0xf13   : > { %v10253_v57 = vpop.eup %10252 }
 0xf14   : > { %v10255_v37 = vpop.eup %10254  ;;  %v2296_v54 = vmul.f32 %v10253_v57, %v11220_v19  ;;  %v2912_v57 = vld [vmem:[%s12909_s3 + $0x1b8] sm:$0xff] }
 0xf15   : > { %v2295_v17 = vmul.f32 %v10255_v37, %v11223_v20  ;;  %v9636_v37 = vpack.c.bf16 %v2911_v56, %v2910_v55 }
 0xf16   : > { %v2308_v13 = vmul.f32 %v11228_v28, %v2296_v54  ;;  %v2913_v54 = vld [vmem:[%s12909_s3 + $0x1c0] sm:$0xff] }
 0xf17   : > { %v10257_v16 = vpop.eup %10256  ;;  %v2307_v22 = vmul.f32 %v11228_v28, %v2295_v17  ;;  %v9639_v17 = vpack.c.bf16 %v2913_v54, %v2912_v57 }
 0xf18   : > { %v10259_v47 = vpop.eup %10258  ;;  %v2298_v50 = vmul.f32 %v10257_v16, %v11233_v58  ;;  %v2320_v15 = vadd.f32 %v11245_v21, %v2308_v13  ;;  %v3108_v13 = vld [vmem:[%s12909_s3 + $0x1f8] sm:$0xff]  ;;  %v3109_v16 = vld [vmem:[%s12909_s3 + $0x200] sm:$0xff] }
 0xf19   : > { %v2319_v26 = vadd.f32 %v11245_v21, %v2307_v22  ;;  %v2297_v23 = vmul.f32 %v10259_v47, %v11238_v36  ;;  %v9647_v22 = vpack.c.bf16 %v3109_v16, %v3108_v13 }
 0xf1a   : > { %v2310_v39 = vmul.f32 %v11228_v28, %v2298_v50 }
 0xf1b   : > { %8837 = vmatprep.mubr.msk.f32.mxu0 %vm417_vm1, %v2319_v26  ;;  %v2309_v19 = vmul.f32 %v11228_v28, %v2297_v23 }
 0xf1c   : > { %8838 = vmatmul.mubr.msk.f32.vlgmr.msra.gmra.mrb[32].mxu0 %vm417_vm1, %v2320_v15  ;;  %v2322_v35 = vadd.f32 %v11245_v21, %v2310_v39  ;;  %v7905_v15 = vld [vmem:[%s12909_s3 + $0x170] ss:$0 sm:$0xff] }
 0xf1d   : > { %v2321_v20 = vadd.f32 %v11245_v21, %v2309_v19  ;;  %v7914_v19 = vld [vmem:[%s12909_s3 + $0x178] ss:$0 sm:$0xff] }
 0xf1f   : > { %8840 = vmatprep.mubr.msk.f32.mxu0 %vm417_vm1, %v2321_v20 }
 0xf20   : > { %8841 = vmatmul.mubr.msk.f32.gmra.mrb[34].mxu0 %vm417_vm1, %v2322_v35  ;;  %v3110_v35 = vld [vmem:[%s12909_s3 + $0x208] sm:$0xff] }
 0xf21   : > { %8862 = vmatprep.mubr.msk.f32.mxu0 %vm10445_vm5, %v10444_v3 }
 0xf52   : > { %v11312_v58 = vpop.f32.mrb[40].mxu1 }
 0xf53   : > { %v11314_v44 = vpop.f32.mrb[41].mxu1 }
 0xf56   : > { %v11316_v42 = vpop.f32.mrb[42].mxu1 }
 0xf57   : > { %v11318_v28 = vpop.f32.mrb[43].mxu1 }
 0xf5a   : > { %v2565_v36 = vpop.f32.mrb[44].mxu1 }
 0xf5b   : > { %v2566_v45 = vadd.f32 %v7915_v63, %v2565_v36  ;;  %v8859_v61 = vpop.f32.mrb[45].mxu1  ;;  %v3111_v63 = vld [vmem:[%s12909_s3 + $0x210] sm:$0xff]  ;;  %v2466_v36 = vld [vmem:[%s12907_s1] sm:$0xff] }
 0xf5d   : > { %2740 = vrot.lane.b32.xlu1 %v2566_v45, %s10439_s22  ;;  %2570 = vrot.lane.b32.xlu0 %v2566_v45, %s10437_s20 }
 0xf61   : > { %2738 = vrot.lane.b32.xlu1 %v2566_v45, %s10440_s23 }
 0xfcf   : > { %v2571_v25 = vpop.permute.xlu0 %2570  ;;  %v2741_v21 = vpop.permute.xlu1 %2740 }
 0xfd0   : > { %8861 = vmatpush3.xpose.msk.msra.mxu0 %vm709_vm2, %v2571_v25  ;;  %v9651_v25 = vpack.c.bf16 %v3111_v63, %v3110_v35 }
 0xfd1   : > { %8870 = vmatprep.subr.mxu0 %v10444_v3 }
 0xfd3   : > { %8863 = vmatmul.mubr.msk.f32.vlgmr.msra.gmra.mrb[36].mxu0 %vm709_vm2, %v2566_v45  ;;  %v2739_v18 = vpop.permute.xlu1 %2738 }
 0xfd4   : > { %8871 = vmatpush3.xpose.msk.msra.mxu0 %vm709_vm2, %v2741_v21  ;;  %8872 = vmatprep.mubr.msk.f32.mxu0 %vm10445_vm5, %v10444_v3 }
 0xfd5   : > { %9635 = vmatprep.subr.bf16.mxu0 %v10443_v32 }
 0xfd7   : > { %8873 = vmatmul.mubr.msk.f32.vlgmr.msra.gmra.mrb[38].mxu0 %vm709_vm2, %v2739_v18 }
 0xfd8   : > { %8888 = vmatprep.mubr.msk.f32.mxu0 %vm10445_vm5, %v10444_v3  ;;  %9637 = vmatpush3.bf16.msra.mxu0 %v9636_v37 }
 0xfd9   : > { %9638 = vmatprep.subr.bf16.mxu0 %v10443_v32 }
 0xfdc   : > { %9640 = vmatpush3.bf16.msra.mxu0 %v9639_v17 }
 0xfdd   : > { %9648 = vmatprep.subr.bf16.mxu0 %v9647_v22 }
 0xfef   : > { %v11336_v41 = vpop.f32.mrb[32].mxu0 }
 0xff0   : > { %v11338_v53 = vpop.f32.mrb[33].mxu0 }
 0xff1   : > { %v2427_v39 = vadd.f32 %v7905_v15, %v11338_v53 }
 0xff3   : > { %v11340_v1 = vpop.f32.mrb[34].mxu0  ;;  %v11387_v20 = vadd.f32 %v7914_v19, %v2427_v39 }
 0xff4   : > { %v11342_v60 = vpop.f32.mrb[35].mxu0 }
 0xff5   : > { %v11400_v21 = vadd.f32 %v11387_v20, %v2466_v36  ;;  %v2437_v18 = vadd.f32 %v7905_v15, %v11342_v60 }
 0xff7   : > { %v11414_v60 = vadd.f32 %v7914_v19, %v2437_v18 }
0x10a6   : > { %v2642_v27 = vpop.f32.mrb[36].mxu0 }
0x10a7   : > { %v2646_v6 = vmul.f32 0.25, %v2642_v27  ;;  %v8864_v31 = vpop.f32.mrb[37].mxu0 }
0x10a8   : > { %v2467_v31 = vld [vmem:[%s12907_s1 + $0x8] sm:$0xff] }
0x10a9   : > { %v2648_v10 = vsel %vm2647_vm6, %v2646_v6, -inf }
0x10aa   : > { %2649 = vmax.xlane.f32.xlu1 %v2648_v10  ;;  %v2812_v9 = vpop.f32.mrb[38].mxu0  ;;  %v2468_v10 = vld [vmem:[%s12907_s1 + $0x10] sm:$0xff] }
0x10ab   : > { %v2816_v40 = vmul.f32 0.25, %v2812_v9  ;;  %v8874_v46 = vpop.f32.mrb[39].mxu0  ;;  %v2452_v9 = vadd.f32 %v11312_v58, %v7905_v15  ;;  %v2470_v58 = vld [vmem:[%s12907_s1 + $0x20] sm:$0xff] }
0x10ac   : > { %v2457_v46 = vadd.f32 %v7905_v15, %v11318_v28  ;;  %v2462_v28 = vadd.f32 %v11316_v42, %v7905_v15 }
0x10ad   : > { %v2817_v30 = vsel %vm2647_vm6, %v2816_v40, -inf }
0x10ae   : > { %2818 = vmax.xlane.f32.xlu0 %v2817_v30  ;;  %v2469_v30 = vld [vmem:[%s12907_s1 + $0x18] sm:$0xff] }
0x10bb   : > { %2659 = vrot.lane.b32.xlu1 %v2566_v45, %s10438_s21  ;;  %s10447_s21 = smov 8  }
0x1137   : > { %v2650_v49 = vpop.xlane.xlu1 %2649 }
0x1138   : > { %v2651_v24 = vsub.f32 %v2646_v6, %v2650_v49  ;;  %v2442_v6 = vadd.f32 %v11340_v1, %v7905_v15  ;;  %v11433_v49 = vadd.f32 %v11414_v60, %v2468_v10 }
0x113a   : > { %v2652_v7 = vmul.f32 1.442695, %v2651_v24  ;;  %v11423_v1 = vadd.f32 %v7914_v19, %v2442_v6  ;;  %v11442_v24 = vadd.f32 %v7914_v19, %v2452_v9 }
0x113b   : > { %v2660_v12 = vpop.permute.xlu1 %2659  ;;  %v2819_v14 = vpop.xlane.xlu0 %2818 }
0x113c   : > { %10260 = vpow2.f32 %v2652_v7  ;;  %v2820_v38 = vsub.f32 %v2816_v40, %v2819_v14  ;;  %8866 = vmatpush3.msk.msra.mxu1 %vm2665_vm7, %v2660_v12  ;;  %v11446_v7 = vadd.f32 %v11423_v1, %v2469_v30  ;;  %v2471_v12 = vld [vmem:[%s12907_s1 + $0x28] sm:$0xff]  ;;  %v3027_v30 = vld [vmem:[%s12909_s3 + $0x1e0] sm:$0xff] }
0x113d   : > { %8875 = vmatprep.subr.mxu1 %v10444_v3  ;;  %v11464_v42 = vadd.f32 %v11442_v24, %v2471_v12  ;;  %v3029_v12 = vld [vmem:[%s12909_s3 + $0x1f0] sm:$0xff] }
0x113e   : > { %v2821_v51 = vmul.f32 1.442695, %v2820_v38  ;;  %v11454_v38 = vadd.f32 %v7914_v19, %v2457_v46  ;;  %v3026_v46 = vld [vmem:[%s12909_s3 + $0x1d8] sm:$0xff] }
0x1140   : > { %10262 = vpow2.f32 %v2821_v51  ;;  %v2472_v51 = vld [vmem:[%s12907_s1 + $0x30] sm:$0xff] }
0x1146   : > { %v10261_v62 = vpop.eup %10260 }
0x1147   : > { %v2654_v4 = vsel %vm2647_vm6, %v10261_v62, 0.0 }
0x1148   : > { %2655 = vadd.xlane.f32.xlu0 %v2654_v4  ;;  %v2473_v4 = vld [vmem:[%s12907_s1 + $0x38] sm:$0xff] }
0x114a   : > { %v10263_v11 = vpop.eup %10262 }
0x114b   : > { %v2823_v48 = vsel %vm2647_vm6, %v10263_v11, 0.0 }
0x114c   : > { %2824 = vadd.xlane.f32.xlu0 %v2823_v48 }
0x1162   : > { %2828 = vrot.lane.b32.xlu0 %v2566_v45, %s10441_s24  ;;  %v2432_v45 = vadd.f32 %v11336_v41, %v7905_v15  ;;  %v2447_v41 = vadd.f32 %v7905_v15, %v11314_v44 }
0x1164   : > { %v11407_v27 = vadd.f32 %v7914_v19, %v2432_v45  ;;  %v11426_v44 = vadd.f32 %v7914_v19, %v2447_v41 }
0x1166   : > { %v11421_v40 = vadd.f32 %v11407_v27, %v2467_v31  ;;  %v11452_v14 = vadd.f32 %v11426_v44, %v2470_v58  ;;  %v9642_v58 = vpack.c.bf16 %v3027_v30, %v3026_v46 }
0x11d5   : > { %v2656_v2 = vpop.xlane.xlu0 %2655 }
0x11d6   : > { %10264 = vrcp.f32 %v2656_v2  ;;  %v7925_v2 = vld [vmem:[%s12909_s3 + $0x1c8] ss:$0 sm:$0xff] }
0x11d9   : > { %v2825_v29 = vpop.xlane.xlu0 %2824 }
0x11da   : > { %10266 = vrcp.f32 %v2825_v29 }
0x11dd   : > { %v2829_v34 = vpop.permute.xlu0 %2828 }
0x11e0   : > { %v10265_v43 = vpop.eup %10264 }
0x11e1   : > { %v2658_v59 = vmul.f32 %v10265_v43, %v10261_v62  ;;  %v11466_v62 = vadd.f32 %v7914_v19, %v2462_v28  ;;  %v3028_v28 = vld [vmem:[%s12909_s3 + $0x1e8] sm:$0xff] }
0x11e3   : > { %8868 = vmatmul.mubr.msk.f32.vlgmr.msra.gmra.mrb[46].mxu1 %vm2661_vm8, %v2658_v59  ;;  %v11479_v48 = vadd.f32 %v11466_v62, %v2473_v4  ;;  %v9645_v4 = vpack.c.bf16 %v3029_v12, %v3028_v28 }
0x11e4   : > { %v10267_v33 = vpop.eup %10266  ;;  %8876 = vmatpush3.msk.msra.mxu1 %vm2665_vm7, %v2829_v34  ;;  %8877 = vmatprep.mubr.msk.f32.mxu1 %vm10445_vm5, %v10444_v3 }
0x11e5   : > { %v2827_v5 = vmul.f32 %v10267_v33, %v10263_v11  ;;  %9641 = vmatprep.subr.bf16.mxu1 %v10443_v32  ;;  %v11472_v11 = vadd.f32 %v11454_v38, %v2472_v51  ;;  %v7929_v33 = vld [vmem:[%s12909_s3 + $0x240] ss:$0 sm:$0xff]  ;;  %v3246_v51 = vld [vmem:[%s12909_s3 + $0x218] sm:$0xff] }
0x11e7   : > { %8878 = vmatmul.mubr.msk.f32.vlgmr.msra.gmra.mrb[48].mxu1 %vm2661_vm8, %v2827_v5 }
0x11e8   : > { %8899 = vmatprep.mubr.msk.f32.mxu1 %vm10445_vm5, %v10444_v3  ;;  %9643 = vmatpush3.bf16.msra.mxu1 %v9642_v58 }
0x11e9   : > { %9644 = vmatprep.subr.bf16.mxu1 %v10443_v32 }
0x11ec   : > { %9646 = vmatpush3.bf16.msra.mxu1 %v9645_v4 }
0x12b6   : > { %v2734_v47 = vpop.f32.mrb[46].mxu1 }
0x12b7   : > { %v8869_v50 = vpop.f32.mrb[47].mxu1 }
0x12ba   : > { %v2901_v26 = vpop.f32.mrb[48].mxu1 }
0x12bb   : > { %2906 = vrot.lane.b32.xlu1 %v2901_v26, %s10442_s8  ;;  %v8879_v23 = vpop.f32.mrb[49].mxu1  ;;  %s8128_s8 = sshll.u32 %s12919_s19, 4 }
0x132d   : > { %v2907_v61 = vpop.permute.xlu1 %2906 }
0x132e   : > { %v2909_v53 = vsel %vm709_vm2, %v2734_v47, %v2907_v61 }
0x132f   : > { %8889 = vmatmul.mubr.msk.f32.vlgmr.msra.gmra.mrb[40].mxu0 %vm417_vm1, %v2909_v53 }
0x1330   : > { %9650 = vmatpush3.bf16.msra.mxu0 %v9647_v22  ;;  %8910 = vmatprep.mubr.msk.f32.mxu0 %vm417_vm1, %v11400_v21 }
0x1331   : > { %9652 = vmatprep.subr.bf16.mxu0 %v9651_v25 }
0x1334   : > { %9654 = vmatpush3.bf16.msra.mxu0 %v9651_v25 }
0x1335   : > { %9663 = vmatprep.subr.bf16.mxu0 %v10443_v32 }
0x1337   : > { %8911 = vmatmul.mubr.msk.f32.vlgmr.msra.gmra.mrb[42].mxu0 %vm417_vm1, %v11421_v40 }
0x1338   : > { %8913 = vmatprep.mubr.msk.f32.mxu0 %vm417_vm1, %v11433_v49 }
0x133b   : > { %8914 = vmatmul.mubr.msk.f32.gmra.mrb[44].mxu0 %vm417_vm1, %v11446_v7 }
0x133c   : > { %8916 = vmatprep.mubr.msk.f32.mxu0 %vm417_vm1, %v11452_v14 }
0x133f   : > { %8917 = vmatmul.mubr.msk.f32.gmra.mrb[46].mxu0 %vm417_vm1, %v11464_v42 }
0x1340   : > { %8919 = vmatprep.mubr.msk.f32.mxu0 %vm417_vm1, %v11472_v11 }
0x1343   : > { %8920 = vmatmul.mubr.msk.f32.gmra.mrb[48].mxu0 %vm417_vm1, %v11479_v48 }
0x1344   : > { %8958 = vmatprep.mubr.msk.f32.mxu0 %vm10445_vm5, %v10444_v3 }
0x1402   : > { %v2988_v29 = vpop.f32.mrb[40].mxu0 }
0x1403   : > { %v2989_v43 = vadd.f32 %v7925_v2, %v2988_v29  ;;  %v8890_v59 = vpop.f32.mrb[41].mxu0  ;;  %v3247_v2 = vld [vmem:[%s12909_s3 + $0x220] sm:$0xff] }
0x1404   : > { %v9655_v29 = vpack.c.bf16 %v3247_v2, %v3246_v51 }
0x1405   : > { %v2994_v34 = vsel %vm2993_vm9, %v2989_v43, 0.0 }
0x1406   : > { %2995 = vadd.xlane.f32.xlu1 %v2994_v34  ;;  %9656 = vmatprep.subr.bf16.mxu1 %v9655_v29 }
0x140a   : > { %v8912_v5 = vpop.f32.mrb[42].mxu0 }
0x140b   : > { %v11492_v55 = vadd.f32 %v8912_v5, %v7929_v33  ;;  %v3207_v56 = vpop.f32.mrb[43].mxu0 }
0x140c   : > { %v11494_v57 = vadd.f32 %v7929_v33, %v3207_v56 }
0x140e   : > { %v10052_v54 = vpack.i.bf16 %v11492_v55, %v11494_v57  ;;  %v9664_v17 = vpack.c.bf16 %v11492_v55, %v11494_v57  ;;  %v8915_v13 = vpop.f32.mrb[44].mxu0 }
0x140f   : > { %v11506_v16 = vadd.f32 %v8915_v13, %v7929_v33  ;;  %v3217_v22 = vpop.f32.mrb[45].mxu0 }
0x1410   : > { %v11508_v47 = vadd.f32 %v7929_v33, %v3217_v22  ;;  %9666 = vmatpush3.bf16.xpose.msk.msra.mxu0 %vm11498_vm11, %v9664_v17 }
0x1411   : > { %9667 = vmatprep.subr.bf16.mxu0 %v10443_v32 }
0x1412   : > { %v10057_v50 = vpack.i.bf16 %v11506_v16, %v11508_v47  ;;  %v9668_v26 = vpack.c.bf16 %v11506_v16, %v11508_v47  ;;  %v8918_v23 = vpop.f32.mrb[46].mxu0 }
0x1413   : > { %v11517_v15 = vadd.f32 %v8918_v23, %v7929_v33  ;;  %v3227_v39 = vpop.f32.mrb[47].mxu0  ;;  %v3249_v23 = vld [vmem:[%s12909_s3 + $0x230] sm:$0xff] }
0x1414   : > { %v11519_v19 = vadd.f32 %v7929_v33, %v3227_v39 }
0x1416   : > { %v10062_v35 = vpack.i.bf16 %v11517_v15, %v11519_v19  ;;  %v9672_v63 = vpack.c.bf16 %v11517_v15, %v11519_v19  ;;  %v8921_v36 = vpop.f32.mrb[48].mxu0 }
0x1417   : > { %v11525_v45 = vadd.f32 %v8921_v36, %v7929_v33  ;;  %v3237_v61 = vpop.f32.mrb[49].mxu0 }
0x1418   : > { %v11527_v25 = vadd.f32 %v7929_v33, %v3237_v61  ;;  %9670 = vmatpush3.bf16.xpose.msk.msra.mxu0 %vm11498_vm11, %v9668_v26  ;;  %v2992_v33 = vld [vmem:[%s12909_s3 + $0x1d0] sm:$0x3]  ;;  %v3248_v26 = vld [vmem:[%s12909_s3 + $0x228] sm:$0xff] }
0x1419   : > { %9671 = vmatprep.subr.bf16.mxu0 %v10443_v32  ;;  %v3010_v5 = vrot.slane %v2992_v33, %v10637_v0  ;;  %v3015_v13 = vrot.slane %v2992_v33, %v10642_v8  ;;  %v9659_v36 = vpack.c.bf16 %v3249_v23, %v3248_v26 }
0x141a   : > { %v10067_v18 = vpack.i.bf16 %v11525_v45, %v11527_v25  ;;  %v9676_v53 = vpack.c.bf16 %v11525_v45, %v11527_v25 }
0x1420   : > { %9674 = vmatpush3.bf16.xpose.msk.msra.mxu0 %vm11498_vm11, %v9672_v63 }
0x1421   : > { %9675 = vmatprep.subr.bf16.mxu0 %v10443_v32 }
0x1428   : > { %9678 = vmatpush3.bf16.xpose.msk.msra.mxu0 %vm11498_vm11, %v9676_v53 }
0x1429   : > { %9707 = vmatprep.subr.bf16.mxu0 %v10443_v32 }
0x1493   : > { %v2996_v6 = vpop.xlane.xlu1 %2995 }
0x1494   : > { %v2997_v41 = vmul.f32 0.03125, %v2996_v6 }
0x1496   : > { %v2998_v31 = vsub.f32 %v2989_v43, %v2997_v41  ;;  %v7938_v41 = vld [vmem:[%s12909_s3 + $0x248] ss:$0 sm:$0xff] }
0x1498   : > { %v2999_v10 = vmul.f32 %v2998_v31, %v2998_v31 }
0x149a   : > { %v3000_v9 = vsel %vm2993_vm9, %v2999_v10, 0.0 }
0x149b   : > { %3001 = vadd.xlane.f32.xlu0 %v3000_v9 }
0x1528   : > { %v3002_v43 = vpop.xlane.xlu0 %3001 }
0x1529   : > { %v3003_v59 = vmul.f32 0.03125, %v3002_v43 }
0x152b   : > { %v3004_v34 = vadd.f32 1e-05, %v3003_v59 }
0x152d   : > { %10268 = vrsqrt.f32 %v3004_v34 }
0x1537   : > { %v10269_v56 = vpop.eup %10268 }
0x1538   : > { %v3006_v17 = vmul.f32 %v10269_v56, %v2998_v31 }
0x153a   : > { %v3011_v22 = vmul.f32 %v3010_v5, %v3006_v17 }
0x153c   : > { %v11573_v39 = vadd.f32 %v3015_v13, %v3011_v22 }
0x153e   : > { %v3017_v63 = vadd.f32 %v11573_v39, %v11287_v52  ;;  %v7927_v52 = vld [vmem:[%s12909_s3 + $0x238] ss:$0 sm:$0xff] }
0x1540   : > { %8900 = vmatmul.mubr.msk.f32.vlgmr.msra.gmra.mrb[50].mxu1 %vm417_vm1, %v3017_v63 }
0x1541   : > { %9658 = vmatpush3.bf16.msra.mxu1 %v9655_v29  ;;  %8930 = vmatprep.mubr.msk.f32.mxu1 %vm417_vm1, %v11387_v20 }
0x1542   : > { %9660 = vmatprep.subr.bf16.mxu1 %v9659_v36 }
0x1545   : > { %9662 = vmatpush3.bf16.msra.mxu1 %v9659_v36 }
0x1546   : > { %9679 = vmatprep.subr.bf16.mxu1 %v10443_v32 }
0x1548   : > { %8931 = vmatmul.mubr.msk.f32.vlgmr.msra.gmra.mrb[52].mxu1 %vm417_vm1, %v11407_v27 }
0x1549   : > { %8933 = vmatprep.mubr.msk.f32.mxu1 %vm417_vm1, %v11414_v60 }
0x154c   : > { %8934 = vmatmul.mubr.msk.f32.gmra.mrb[54].mxu1 %vm417_vm1, %v11423_v1 }
0x154d   : > { %8936 = vmatprep.mubr.msk.f32.mxu1 %vm417_vm1, %v11426_v44 }
0x1550   : > { %8937 = vmatmul.mubr.msk.f32.gmra.mrb[56].mxu1 %vm417_vm1, %v11442_v24 }
0x1551   : > { %8939 = vmatprep.mubr.msk.f32.mxu1 %vm417_vm1, %v11454_v38 }
0x1554   : > { %8940 = vmatmul.mubr.msk.f32.gmra.mrb[58].mxu1 %vm417_vm1, %v11466_v62 }
0x1555   : > { %8977 = vmatprep.mubr.msk.f32.mxu1 %vm10445_vm5, %v10444_v3 }
0x1613   : > { %v3104_v61 = vpop.f32.mrb[50].mxu1 }
0x1614   : > { %v3105_v53 = vadd.f32 %v7927_v52, %v3104_v61  ;;  %v8901_v6 = vpop.f32.mrb[51].mxu1 }
0x1616   : > { %8959 = vmatmul.mubr.msk.f32.vlgmr.msra.gmra.mrb[50].mxu0 %vm3384_vm10, %v3105_v53 }
0x1617   : > { %9015 = vmatprep.mubr.msk.f32.mxu0 %vm10445_vm5, %v10444_v3 }
0x161b   : > { %v8932_v31 = vpop.f32.mrb[52].mxu1 }
0x161c   : > { %v3351_v10 = vadd.f32 %v8932_v31, %v7938_v41  ;;  %v3345_v9 = vpop.f32.mrb[53].mxu1 }
0x161d   : > { %v3346_v46 = vadd.f32 %v7938_v41, %v3345_v9 }
0x161f   : > { %v10072_v30 = vpack.i.bf16 %v3351_v10, %v3346_v46  ;;  %v9680_v58 = vpack.c.bf16 %v3351_v10, %v3346_v46  ;;  %v8935_v28 = vpop.f32.mrb[54].mxu1 }
0x1620   : > { %v11606_v12 = vadd.f32 %v8935_v28, %v7938_v41  ;;  %v3355_v51 = vpop.f32.mrb[55].mxu1 }
0x1621   : > { %v11608_v4 = vadd.f32 %v7938_v41, %v3355_v51  ;;  %9681 = vmatpush3.bf16.msra.mxu1 %v9680_v58 }
0x1622   : > { %9682 = vmatprep.subr.bf16.mxu1 %v10443_v32 }
0x1623   : > { %v10077_v2 = vpack.i.bf16 %v11606_v12, %v11608_v4  ;;  %v9683_v29 = vpack.c.bf16 %v11606_v12, %v11608_v4  ;;  %v8938_v43 = vpop.f32.mrb[56].mxu1 }
0x1624   : > { %v11615_v59 = vadd.f32 %v8938_v43, %v7938_v41  ;;  %v3365_v34 = vpop.f32.mrb[57].mxu1 }
0x1625   : > { %v11617_v33 = vadd.f32 %v7938_v41, %v3365_v34  ;;  %9684 = vmatpush3.bf16.msra.mxu1 %v9683_v29 }
0x1626   : > { %9685 = vmatprep.subr.bf16.mxu1 %v10443_v32 }
0x1627   : > { %v10082_v5 = vpack.i.bf16 %v11615_v59, %v11617_v33  ;;  %v9686_v56 = vpack.c.bf16 %v11615_v59, %v11617_v33  ;;  %v8941_v17 = vpop.f32.mrb[58].mxu1 }
0x1628   : > { %v11624_v13 = vadd.f32 %v8941_v17, %v7938_v41  ;;  %v3375_v22 = vpop.f32.mrb[59].mxu1 }
0x1629   : > { %v11626_v26 = vadd.f32 %v7938_v41, %v3375_v22  ;;  %9687 = vmatpush3.bf16.msra.mxu1 %v9686_v56 }
0x162a   : > { %9688 = vmatprep.subr.bf16.mxu1 %v10443_v32 }
0x162b   : > { %v10087_v23 = vpack.i.bf16 %v11624_v13, %v11626_v26  ;;  %v9689_v63 = vpack.c.bf16 %v11624_v13, %v11626_v26  ;;  %v3796_v13 = vld [vmem:[%s12909_s3 + $0x250] sm:$0xff]  ;;  %v3797_v26 = vld [vmem:[%s12909_s3 + $0x258] sm:$0xff] }
0x162d   : > { %9690 = vmatpush3.bf16.msra.mxu1 %v9689_v63 }
0x162e   : > { %9691 = vmatprep.subr.bf16.mxu1 %v10443_v32 }
0x16e9   : > { %v3478_v36 = vpop.f32.mrb[50].mxu0 }
0x16ea   : > { %v3482_v52 = vmul.f32 0.35355338, %v3478_v36  ;;  %v8960_v61 = vpop.f32.mrb[51].mxu0 }
0x16ec   : > { %v3484_v6 = vsel %vm3483_vm12, %v3482_v52, -inf }
0x16ed   : > { %3485 = vmax.xlane.f32.xlu0 %v3484_v6 }
0x1703   : > { %10053 = vrot.lane.b32.xlu0 %v10052_v54, %s10446_s10 }
0x1707   : > { %3568 = vrot.lane.b32.xlu0 %v3105_v53, %s10446_s10 }
0x170b   : > { %10073 = vrot.lane.b32.xlu0 %v10072_v30, %s10446_s10 }
0x177a   : > { %v3486_v41 = vpop.xlane.xlu0 %3485 }
0x177b   : > { %v3487_v31 = vsub.f32 %v3482_v52, %v3486_v41 }
0x177d   : > { %v3488_v10 = vmul.f32 1.442695, %v3487_v31 }
0x177e   : > { %v10054_v9 = vpop.permute.xlu0 %10053 }
0x177f   : > { %10270 = vpow2.f32 %v3488_v10  ;;  %v10056_v57 = vunpack.i.h.bf16 %v10054_v9  ;;  %v10055_v54 = vunpack.i.l.bf16 %v10054_v9 }
0x1781   : > { %v9692_v56 = vpack.c.bf16 %v10056_v57, %v10055_v54 }
0x1782   : > { %v3569_v46 = vpop.permute.xlu0 %3568 }
0x1786   : > { %v10074_v58 = vpop.permute.xlu0 %10073 }
0x1787   : > { %v10076_v28 = vunpack.i.h.bf16 %v10074_v58  ;;  %v10075_v51 = vunpack.i.l.bf16 %v10074_v58 }
0x1789   : > { %v10271_v29 = vpop.eup %10270  ;;  %v9708_v43 = vpack.c.bf16 %v10076_v28, %v10075_v51 }
0x178a   : > { %v3490_v34 = vsel %vm3483_vm12, %v10271_v29, 0.0 }
0x178b   : > { %3491 = vadd.xlane.f32.xlu1 %v3490_v34  ;;  %9709 = vmatpush3.bf16.msra.mxu0 %v9708_v43 }
0x178c   : > { %9710 = vmatprep.subr.bf16.mxu0 %v10443_v32 }
0x179c   : > { %10058 = vrot.lane.b32.xlu1 %v10057_v50, %s10446_s10 }
0x17a0   : > { %10063 = vrot.lane.b32.xlu1 %v10062_v35, %s10446_s10 }
0x17a4   : > { %10068 = vrot.lane.b32.xlu1 %v10067_v18, %s10446_s10 }
0x1818   : > { %v3492_v55 = vpop.xlane.xlu1 %3491 }
0x1819   : > { %10272 = vrcp.f32 %v3492_v55 }
0x181c   : > { %v10059_v17 = vpop.permute.xlu1 %10058 }
0x181d   : > { %v10061_v16 = vunpack.i.h.bf16 %v10059_v17  ;;  %v10060_v47 = vunpack.i.l.bf16 %v10059_v17 }
0x181f   : > { %v9696_v50 = vpack.c.bf16 %v10061_v16, %v10060_v47 }
0x1820   : > { %v10064_v15 = vpop.permute.xlu1 %10063 }
0x1821   : > { %v10066_v19 = vunpack.i.h.bf16 %v10064_v15  ;;  %v10065_v35 = vunpack.i.l.bf16 %v10064_v15 }
0x1823   : > { %v10273_v53 = vpop.eup %10272  ;;  %v9700_v45 = vpack.c.bf16 %v10066_v19, %v10065_v35 }
0x1824   : > { %v3494_v30 = vmul.f32 %v10273_v53, %v10271_v29  ;;  %v10069_v25 = vpop.permute.xlu1 %10068 }
0x1825   : > { %v10071_v18 = vunpack.i.h.bf16 %v10069_v25  ;;  %v10070_v22 = vunpack.i.l.bf16 %v10069_v25 }
0x1826   : > { %8978 = vmatmul.mubr.msk.f32.vlgmr.msra.gmra.mrb[60].mxu1 %vm855_vm4, %v3494_v30 }
0x1827   : > { %9694 = vmatpush3.bf16.xpose.msk.msra.mxu1 %vm11498_vm11, %v9692_v56  ;;  %8996 = vmatprep.mubr.msk.f32.mxu1 %vm10445_vm5, %v10444_v3  ;;  %v9704_v63 = vpack.c.bf16 %v10071_v18, %v10070_v22 }
0x1828   : > { %9695 = vmatprep.subr.bf16.mxu1 %v10443_v32 }
0x182f   : > { %9698 = vmatpush3.bf16.xpose.msk.msra.mxu1 %vm11498_vm11, %v9696_v50  ;;  %v7967_v50 = vld [vmem:[%s12909_s3 + $0x260] ss:$0 sm:$0xff] }
0x1830   : > { %9699 = vmatprep.subr.bf16.mxu1 %v10443_v32 }
0x1837   : > { %9702 = vmatpush3.bf16.xpose.msk.msra.mxu1 %vm11498_vm11, %v9700_v45 }
0x1838   : > { %9703 = vmatprep.subr.bf16.mxu1 %v10443_v32 }
0x183f   : > { %9706 = vmatpush3.bf16.xpose.msk.msra.mxu1 %vm11498_vm11, %v9704_v63 }
0x1840   : > { %9722 = vmatprep.subr.bf16.mxu1 %v10443_v32 }
0x1846   : > { %8997 = vmatmul.mubr.msk.f32.vlgmr.msra.gmra.mrb[62].mxu1 %vm3384_vm10, %v3569_v46 }
0x1847   : > { %9033 = vmatprep.mubr.msk.f32.mxu1 %vm10445_vm5, %v10444_v3 }
0x18f9   : > { %v3564_v36 = vpop.f32.mrb[60].mxu1 }
0x18fa   : > { %v8979_v52 = vpop.f32.mrb[61].mxu1 }
0x1919   : > { %v3670_v61 = vpop.f32.mrb[62].mxu1 }
0x191a   : > { %v3674_v6 = vmul.f32 0.35355338, %v3670_v61  ;;  %v8998_v41 = vpop.f32.mrb[63].mxu1  ;;  %v3901_v61 = vld [vmem:[%s12909_s3 + $0x390] sm:$0xff] }
0x191c   : > { %v3675_v31 = vsel %vm3483_vm12, %v3674_v6, -inf }
0x191d   : > { %3676 = vmax.xlane.f32.xlu1 %v3675_v31  ;;  %v3904_v31 = vld [vmem:[%s12909_s3 + $0x3a8] sm:$0xff] }
0x192e   : > { %10078 = vrot.lane.b32.xlu1 %v10077_v2, %s10446_s10 }
0x1932   : > { %10083 = vrot.lane.b32.xlu1 %v10082_v5, %s10446_s10 }
0x19aa   : > { %v3677_v10 = vpop.xlane.xlu1 %3676 }
0x19ab   : > { %v3678_v9 = vsub.f32 %v3674_v6, %v3677_v10  ;;  %v3902_v6 = vld [vmem:[%s12909_s3 + $0x398] sm:$0xff] }
0x19ac   : > { %v9723_v41 = vpack.c.bf16 %v3902_v6, %v3901_v61 }
0x19ad   : > { %v3679_v46 = vmul.f32 1.442695, %v3678_v9  ;;  %v4096_v9 = vld [vmem:[%s12909_s3 + $0x268] sm:$0xff] }
0x19ae   : > { %v10079_v58 = vpop.permute.xlu1 %10078  ;;  %9724 = vmatpush3.bf16.msra.mxu1 %v9723_v41 }
0x19af   : > { %10274 = vpow2.f32 %v3679_v46  ;;  %v10081_v28 = vunpack.i.h.bf16 %v10079_v58  ;;  %v10080_v51 = vunpack.i.l.bf16 %v10079_v58  ;;  %9725 = vmatprep.subr.bf16.mxu1 %v10443_v32  ;;  %v4097_v46 = vld [vmem:[%s12909_s3 + $0x270] sm:$0xff] }
0x19b0   : > { %v9740_v58 = vpack.c.bf16 %v4097_v46, %v4096_v9 }
0x19b1   : > { %v9711_v29 = vpack.c.bf16 %v10081_v28, %v10080_v51  ;;  %v3984_v28 = vld [vmem:[%s12909_s3 + $0x3b8] sm:$0xff]  ;;  %v3985_v51 = vld [vmem:[%s12909_s3 + $0x3c0] sm:$0xff] }
0x19b2   : > { %v10084_v43 = vpop.permute.xlu1 %10083 }
0x19b3   : > { %v10086_v34 = vunpack.i.h.bf16 %v10084_v43  ;;  %v10085_v55 = vunpack.i.l.bf16 %v10084_v43  ;;  %9712 = vmatpush3.bf16.msra.mxu0 %v9711_v29  ;;  %v3986_v29 = vld [vmem:[%s12909_s3 + $0x3c8] sm:$0xff]  ;;  %v9729_v43 = vpack.c.bf16 %v3985_v51, %v3984_v28 }
0x19b4   : > { %9713 = vmatprep.subr.bf16.mxu0 %v10443_v32 }
0x19b5   : > { %v9714_v12 = vpack.c.bf16 %v10086_v34, %v10085_v55  ;;  %v3987_v34 = vld [vmem:[%s12909_s3 + $0x3d0] sm:$0xff] }
0x19b6   : > { %v9732_v55 = vpack.c.bf16 %v3987_v34, %v3986_v29 }
0x19b7   : > { %9715 = vmatpush3.bf16.msra.mxu0 %v9714_v12  ;;  %v3988_v12 = vld [vmem:[%s12909_s3 + $0x3d8] sm:$0xff] }
0x19b8   : > { %9716 = vmatprep.subr.bf16.mxu0 %v10443_v32 }
0x19b9   : > { %v10275_v4 = vpop.eup %10274 }
0x19ba   : > { %v3681_v2 = vsel %vm3483_vm12, %v10275_v4, 0.0 }
0x19bb   : > { %3682 = vadd.xlane.f32.xlu0 %v3681_v2 }
0x19d1   : > { %10088 = vrot.lane.b32.xlu0 %v10087_v23, %s10446_s10  ;;  %v9720_v23 = vpack.c.bf16 %v3797_v26, %v3796_v13  ;;  %v4098_v26 = vld [vmem:[%s12909_s3 + $0x278] sm:$0xff] }
0x1a48   : > { %v3683_v59 = vpop.xlane.xlu0 %3682 }
0x1a49   : > { %10276 = vrcp.f32 %v3683_v59 }
0x1a4c   : > { %v10089_v33 = vpop.permute.xlu0 %10088 }
0x1a4d   : > { %v10091_v5 = vunpack.i.h.bf16 %v10089_v33  ;;  %v10090_v57 = vunpack.i.l.bf16 %v10089_v33 }
0x1a4f   : > { %v9717_v54 = vpack.c.bf16 %v10091_v5, %v10090_v57  ;;  %v3877_v57 = vld [vmem:[%s12909_s3 + $0x388] sm:$0x3] }
0x1a50   : > { %v3899_v13 = vrot.slane %v3877_v57, %v10642_v8 }
0x1a51   : > { %9718 = vmatpush3.bf16.msra.mxu0 %v9717_v54  ;;  %v3894_v54 = vrot.slane %v3877_v57, %v10637_v0 }
0x1a52   : > { %9719 = vmatprep.subr.bf16.mxu0 %v10443_v32 }
0x1a53   : > { %v10277_v53 = vpop.eup %10276 }
0x1a54   : > { %v3685_v30 = vmul.f32 %v10277_v53, %v10275_v4  ;;  %v3989_v4 = vld [vmem:[%s12909_s3 + $0x3e0] sm:$0xff] }
0x1a55   : > { %v9735_v2 = vpack.c.bf16 %v3989_v4, %v3988_v12  ;;  %v4292_v4 = vld [vmem:[%s12909_s3 + $0x2a8] sm:$0xff] }
0x1a56   : > { %9016 = vmatmul.mubr.msk.f32.vlgmr.msra.gmra.mrb[52].mxu0 %vm855_vm4, %v3685_v30 }
0x1a57   : > { %9022 = vmatprep.mubr.msk.f32.mxu0 %vm10445_vm5, %v10444_v3  ;;  %9721 = vmatpush3.bf16.msra.mxu0 %v9720_v23  ;;  %v4099_v23 = vld [vmem:[%s12909_s3 + $0x280] sm:$0xff] }
0x1a58   : > { %9728 = vmatprep.subr.bf16.mxu0 %v10443_v32 }
0x1b29   : > { %v3787_v56 = vpop.f32.mrb[52].mxu0 }
0x1b2a   : > { %3792 = vrot.lane.b32.xlu1 %v3787_v56, %s10447_s21  ;;  %v9017_v17 = vpop.f32.mrb[53].mxu0 }
0x1b9c   : > { %v3793_v16 = vpop.permute.xlu1 %3792 }
0x1b9d   : > { %v3795_v47 = vsel %vm3384_vm10, %v3564_v36, %v3793_v16  ;;  %v9744_v16 = vpack.c.bf16 %v4099_v23, %v4098_v26  ;;  %v4213_v26 = vld [vmem:[%s12909_s3 + $0x2a0] sm:$0xff] }
0x1b9e   : > { %9023 = vmatmul.mubr.msk.f32.vlgmr.msra.gmra.mrb[54].mxu0 %vm709_vm2, %v3795_v47  ;;  %v7973_v47 = vld [vmem:[%s12909_s3 + $0x2c8] ss:$0 sm:$0xff] }
0x1b9f   : > { %9052 = vmatprep.mubr.msk.f32.mxu0 %vm10445_vm5, %v10444_v3  ;;  %9730 = vmatpush3.bf16.msra.mxu0 %v9729_v43 }
0x1ba0   : > { %9731 = vmatprep.subr.bf16.mxu0 %v10443_v32 }
0x1ba3   : > { %9733 = vmatpush3.bf16.msra.mxu0 %v9732_v55 }
0x1ba4   : > { %9734 = vmatprep.subr.bf16.mxu0 %v10443_v32 }
0x1ba7   : > { %9736 = vmatpush3.bf16.msra.mxu0 %v9735_v2  ;;  %v4293_v2 = vld [vmem:[%s12909_s3 + $0x2b0] sm:$0xff] }
0x1ba8   : > { %9737 = vmatprep.subr.bf16.mxu0 %v10443_v32 }
0x1c71   : > { %v3872_v15 = vpop.f32.mrb[54].mxu0 }
0x1c72   : > { %v3873_v19 = vadd.f32 %v7967_v50, %v3872_v15  ;;  %v9024_v35 = vpop.f32.mrb[55].mxu0 }
0x1c74   : > { %v3876_v45 = vadd.f32 %v3873_v19, %v11573_v39  ;;  %v3903_v39 = vld [vmem:[%s12909_s3 + $0x3a0] sm:$0xff] }
0x1c75   : > { %v9726_v10 = vpack.c.bf16 %v3904_v31, %v3903_v39 }
0x1c76   : > { %v3878_v25 = vsel %vm2993_vm9, %v3876_v45, 0.0 }
0x1c77   : > { %3879 = vadd.xlane.f32.xlu0 %v3878_v25  ;;  %9727 = vmatpush3.bf16.msra.mxu1 %v9726_v10  ;;  %v7971_v10 = vld [vmem:[%s12909_s3 + $0x3f8] ss:$0 sm:$0xff] }
0x1c78   : > { %9741 = vmatprep.subr.bf16.mxu1 %v9740_v58 }
0x1d04   : > { %v3880_v18 = vpop.xlane.xlu0 %3879 }
0x1d05   : > { %v3881_v22 = vmul.f32 0.03125, %v3880_v18 }
0x1d07   : > { %v3882_v63 = vsub.f32 %v3876_v45, %v3881_v22 }
0x1d09   : > { %v3883_v36 = vmul.f32 %v3882_v63, %v3882_v63 }
0x1d0b   : > { %v3884_v52 = vsel %vm2993_vm9, %v3883_v36, 0.0 }
0x1d0c   : > { %3885 = vadd.xlane.f32.xlu1 %v3884_v52 }
0x1d99   : > { %v3886_v59 = vpop.xlane.xlu1 %3885 }
0x1d9a   : > { %v3887_v33 = vmul.f32 0.03125, %v3886_v59  ;;  %v9755_v59 = vpack.c.bf16 %v4293_v2, %v4292_v4 }
0x1d9c   : > { %v3888_v5 = vadd.f32 1e-05, %v3887_v33  ;;  %v4210_v33 = vld [vmem:[%s12909_s3 + $0x288] sm:$0xff] }
0x1d9e   : > { %10278 = vrsqrt.f32 %v3888_v5  ;;  %v4211_v5 = vld [vmem:[%s12909_s3 + $0x290] sm:$0xff] }
0x1d9f   : > { %v9749_v57 = vpack.c.bf16 %v4211_v5, %v4210_v33 }
0x1da8   : > { %v10279_v53 = vpop.eup %10278 }
0x1da9   : > { %v3890_v30 = vmul.f32 %v10279_v53, %v3882_v63  ;;  %v4295_v53 = vld [vmem:[%s12909_s3 + $0x2c0] sm:$0xff] }
0x1dab   : > { %v3895_v56 = vmul.f32 %v3894_v54, %v3890_v30  ;;  %v4294_v54 = vld [vmem:[%s12909_s3 + $0x2b8] sm:$0xff] }
0x1dac   : > { %v9758_v30 = vpack.c.bf16 %v4295_v53, %v4294_v54 }
0x1dad   : > { %v3900_v17 = vadd.f32 %v3899_v13, %v3895_v56  ;;  %v4212_v13 = vld [vmem:[%s12909_s3 + $0x298] sm:$0xff] }
0x1dae   : > { %v9752_v23 = vpack.c.bf16 %v4213_v26, %v4212_v13 }
0x1daf   : > { %9034 = vmatmul.mubr.msk.f32.vlgmr.msra.gmra.mrb[64].mxu1 %vm417_vm1, %v3900_v17 }
0x1db0   : > { %9743 = vmatpush3.bf16.msra.mxu1 %v9740_v58  ;;  %9063 = vmatprep.mubr.msk.f32.mxu1 %vm417_vm1, %v11400_v21  ;;  %v3990_v21 = vld [vmem:[%s12909_s3 + $0x3e8] sm:$0xff] }
0x1db1   : > { %9745 = vmatprep.subr.bf16.mxu1 %v9744_v16 }
0x1db4   : > { %9747 = vmatpush3.bf16.msra.mxu1 %v9744_v16 }
0x1db5   : > { %9754 = vmatprep.subr.bf16.mxu1 %v10443_v32 }
0x1db7   : > { %9064 = vmatmul.mubr.msk.f32.vlgmr.msra.gmra.mrb[66].mxu1 %vm417_vm1, %v11421_v40  ;;  %v3991_v40 = vld [vmem:[%s12909_s3 + $0x3f0] sm:$0xff] }
0x1db8   : > { %9066 = vmatprep.mubr.msk.f32.mxu1 %vm417_vm1, %v11433_v49  ;;  %v9738_v49 = vpack.c.bf16 %v3991_v40, %v3990_v21  ;;  %9756 = vmatpush3.bf16.msra.mxu1 %v9755_v59  ;;  %v4071_v21 = vld [vmem:[%s12909_s3 + $0x400] sm:$0x3] }
0x1db9   : > { %9757 = vmatprep.subr.bf16.mxu1 %v10443_v32  ;;  %v4088_v40 = vrot.slane %v4071_v21, %v10637_v0 }
0x1dba   : > { %9739 = vmatpush3.bf16.msra.mxu0 %v9738_v49 }
0x1dbb   : > { %9067 = vmatmul.mubr.msk.f32.gmra.mrb[68].mxu1 %vm417_vm1, %v11446_v7  ;;  %9748 = vmatprep.subr.bf16.mxu0 %v10443_v32  ;;  %v7969_v7 = vld [vmem:[%s12909_s3 + $0x3b0] ss:$0 sm:$0xff] }
0x1dbc   : > { %9069 = vmatprep.mubr.msk.f32.mxu1 %vm417_vm1, %v11452_v14  ;;  %9759 = vmatpush3.bf16.msra.mxu1 %v9758_v30 }
0x1dbf   : > { %9070 = vmatmul.mubr.msk.f32.gmra.mrb[70].mxu1 %vm417_vm1, %v11464_v42 }
0x1dc0   : > { %9072 = vmatprep.mubr.msk.f32.mxu1 %vm417_vm1, %v11472_v11 }
0x1dc3   : > { %9073 = vmatmul.mubr.msk.f32.gmra.mrb[72].mxu1 %vm417_vm1, %v11479_v48 }
0x1dc4   : > { %9094 = vmatprep.mubr.msk.f32.mxu1 %vm10445_vm5, %v10444_v3 }
0x1e82   : > { %v3979_v14 = vpop.f32.mrb[64].mxu1 }
0x1e83   : > { %v3980_v42 = vadd.f32 %v7969_v7, %v3979_v14  ;;  %v9035_v11 = vpop.f32.mrb[65].mxu1  ;;  %v4093_v7 = vrot.slane %v4071_v21, %v10642_v8 }
0x1e85   : > { %v3983_v48 = vmax.f32 %v3980_v42, 0.0 }
0x1e87   : > { %9053 = vmatmul.mubr.msk.f32.vlgmr.msra.gmra.mrb[56].mxu0 %vm855_vm4, %v3983_v48  ;;  %v10420_v48 = vld [vmem:[%s11280_s11] sm:$0x7f]  ;;  %s250_s11 = scalar_lea.vmem %s12911_s5, %s12919_s19 }
0x1e88   : > { %9083 = vmatprep.mubr.msk.f32.mxu0 %vm10445_vm5, %v10444_v3  ;;  %9750 = vmatpush3.bf16.msra.mxu0 %v9749_v57 }
0x1e89   : > { %9751 = vmatprep.subr.bf16.mxu0 %v10443_v32 }
0x1e8a   : > { %v9065_v50 = vpop.f32.mrb[66].mxu1 }
0x1e8b   : > { %v4171_v15 = vpop.f32.mrb[67].mxu1  ;;  %v11804_v18 = vadd.f32 %v9065_v50, %v7973_v47  ;;  %v7984_v50 = vld [vmem:[%s12909_s3 + $0x2d8] ss:$0 sm:$0xff] }
0x1e8c   : > { %v11798_v19 = vadd.f32 %v7973_v47, %v4171_v15  ;;  %9753 = vmatpush3.bf16.msra.mxu0 %v9752_v23 }
0x1e8e   : > { %v9068_v35 = vpop.f32.mrb[68].mxu1  ;;  %4734 = vrot.lane.b32.xlu1 %v11798_v19, %s10446_s10 }
0x1e8f   : > { %v11802_v45 = vadd.f32 %v9068_v35, %v7973_v47  ;;  %v4181_v25 = vpop.f32.mrb[69].mxu1  ;;  %v7982_v35 = vld [vmem:[%s12909_s3 + $0x2d0] ss:$0 sm:$0xff] }
0x1e90   : > { %v11810_v52 = vadd.f32 %v7973_v47, %v4181_v25 }
0x1e92   : > { %v9071_v22 = vpop.f32.mrb[70].mxu1  ;;  %4736 = vrot.lane.b32.xlu1 %v11804_v18, %s10446_s10 }
0x1e93   : > { %v11808_v63 = vadd.f32 %v9071_v22, %v7973_v47  ;;  %v4191_v36 = vpop.f32.mrb[71].mxu1 }
0x1e94   : > { %v11816_v39 = vadd.f32 %v7973_v47, %v4191_v36 }
0x1e96   : > { %v9074_v61 = vpop.f32.mrb[72].mxu1  ;;  %4738 = vrot.lane.b32.xlu1 %v11810_v52, %s10446_s10 }
0x1e97   : > { %v11814_v6 = vadd.f32 %v9074_v61, %v7973_v47  ;;  %v4201_v41 = vpop.f32.mrb[73].mxu1 }
0x1e98   : > { %v11820_v31 = vadd.f32 %v7973_v47, %v4201_v41 }
0x1e9a   : > { %4742 = vrot.lane.b32.xlu1 %v11816_v39, %s10446_s10 }
0x1e9e   : > { %4746 = vrot.lane.b32.xlu1 %v11820_v31, %s10446_s10 }
0x1f5a   : > { %v4066_v9 = vpop.f32.mrb[56].mxu0 }
0x1f5b   : > { %v4067_v46 = vadd.f32 %v7971_v10, %v4066_v9  ;;  %v9054_v58 = vpop.f32.mrb[57].mxu0 }
0x1f5d   : > { %v4070_v28 = vadd.f32 %v4067_v46, %v3900_v17 }
0x1f5f   : > { %v4072_v51 = vsel %vm2993_vm9, %v4070_v28, 0.0 }
0x1f60   : > { %4073 = vadd.xlane.f32.xlu0 %v4072_v51 }
0x1fed   : > { %v4074_v29 = vpop.xlane.xlu0 %4073 }
0x1fee   : > { %v4075_v43 = vmul.f32 0.03125, %v4074_v29 }
0x1ff0   : > { %v4076_v34 = vsub.f32 %v4070_v28, %v4075_v43 }
0x1ff2   : > { %v4077_v55 = vmul.f32 %v4076_v34, %v4076_v34 }
0x1ff4   : > { %v4078_v12 = vsel %vm2993_vm9, %v4077_v55, 0.0 }
0x1ff5   : > { %4079 = vadd.xlane.f32.xlu0 %v4078_v12 }
0x2082   : > { %v4080_v56 = vpop.xlane.xlu0 %4079 }
0x2083   : > { %v4081_v17 = vmul.f32 0.03125, %v4080_v56 }
0x2085   : > { %v4082_v16 = vadd.f32 1e-05, %v4081_v17 }
0x2087   : > { %10280 = vrsqrt.f32 %v4082_v16 }
0x2091   : > { %v10281_v49 = vpop.eup %10280 }
0x2092   : > { %v4084_v14 = vmul.f32 %v10281_v49, %v4076_v34 }
0x2094   : > { %v4089_v42 = vmul.f32 %v4088_v40, %v4084_v14 }
0x2096   : > { %v11860_v11 = vadd.f32 %v4093_v7, %v4089_v42 }
0x2098   : > { %9095 = vmatmul.mubr.msk.f32.vlgmr.msra.gmra.mrb[74].mxu1 %vm417_vm1, %v11860_v11  ;;  %v11866_v47 = vadd.f32 %v10420_v48, %v11860_v11 }
0x209a   : > { %9084 = vmatmul.mubr.msk.f32.vlgmr.msra.gmra.mrb[58].mxu0 %vm417_vm1, %v11866_v47 }
0x209b   : > { %9099 = vmatprep.mubr.msk.f32.mxu0 %vm3384_vm10, %v11798_v19  ;;  %v4735_v19 = vpop.permute.xlu1 %4734 }
0x216b   : > { %v4370_v15 = vpop.f32.mrb[74].mxu1 }
0x216c   : > { %v11878_v25 = vadd.f32 %v7984_v50, %v4370_v15  ;;  %v9096_v22 = vpop.f32.mrb[75].mxu1 }
0x216d   : > { %v4288_v36 = vpop.f32.mrb[58].mxu0 }
0x216e   : > { %v4289_v61 = vadd.f32 %v7982_v35, %v4288_v36  ;;  %v9085_v41 = vpop.f32.mrb[59].mxu0  ;;  %9111 = vmatprep.subr.msk.mxu1 %vm2665_vm7, %v11878_v25 }
0x216f   : > { %9112 = vmatpush3.msk.msra.mxu1 %vm2665_vm7, %v11878_v25 }
0x2170   : > { %4750 = vrot.lane.b32.xlu0 %v4289_v61, %s10446_s10  ;;  %9097 = vmatprep.subr.msk.mxu0 %vm3384_vm10, %v4289_v61 }
0x2171   : > { %9098 = vmatpush3.xpose.msk.msra.mxu0 %vm3384_vm10, %v4289_v61 }
0x2174   : > { %4740 = vrot.lane.b32.xlu0 %v11802_v45, %s10446_s10  ;;  %9100 = vmatmul.mubr.msk.f32.vlgmr.msra.gmra.mrb[60].mxu0 %vm3384_vm10, %v11804_v18  ;;  %v4737_v18 = vpop.permute.xlu1 %4736 }
0x2175   : > { %9102 = vmatprep.mubr.msk.f32.mxu0 %vm3384_vm10, %v11810_v52 }
0x2178   : > { %4744 = vrot.lane.b32.xlu0 %v11808_v63, %s10446_s10  ;;  %9103 = vmatmul.mubr.msk.f32.gmra.mrb[62].mxu0 %vm3384_vm10, %v11802_v45  ;;  %v4739_v52 = vpop.permute.xlu1 %4738 }
0x2179   : > { %9105 = vmatprep.mubr.msk.f32.mxu0 %vm3384_vm10, %v11816_v39 }
0x217c   : > { %4748 = vrot.lane.b32.xlu0 %v11814_v6, %s10446_s10  ;;  %9106 = vmatmul.mubr.msk.f32.gmra.mrb[64].mxu0 %vm3384_vm10, %v11808_v63  ;;  %v4743_v63 = vpop.permute.xlu1 %4742 }
0x217d   : > { %9108 = vmatprep.mubr.msk.f32.mxu0 %vm3384_vm10, %v11820_v31 }
0x2180   : > { %9109 = vmatmul.mubr.msk.f32.gmra.mrb[66].mxu0 %vm3384_vm10, %v11814_v6  ;;  %v4747_v6 = vpop.permute.xlu1 %4746 }
0x2181   : > { %9127 = vmatprep.mubr.msk.f32.mxu0 %vm3384_vm10, %v4735_v19 }
0x21e2   : > { %v4751_v45 = vpop.permute.xlu0 %4750 }
0x21e3   : > { %9125 = vmatprep.subr.msk.mxu0 %vm3384_vm10, %v4751_v45 }
0x21e4   : > { %9126 = vmatpush3.xpose.msk.msra.mxu0 %vm3384_vm10, %v4751_v45 }
0x21e6   : > { %v4741_v39 = vpop.permute.xlu0 %4740 }
0x21e7   : > { %9128 = vmatmul.mubr.msk.f32.vlgmr.msra.gmra.mrb[68].mxu0 %vm3384_vm10, %v4737_v18 }
0x21e8   : > { %9130 = vmatprep.mubr.msk.f32.mxu0 %vm3384_vm10, %v4739_v52 }
0x21ea   : > { %v4745_v31 = vpop.permute.xlu0 %4744 }
0x21eb   : > { %9131 = vmatmul.mubr.msk.f32.gmra.mrb[70].mxu0 %vm3384_vm10, %v4741_v39 }
0x21ec   : > { %9133 = vmatprep.mubr.msk.f32.mxu0 %vm3384_vm10, %v4743_v63 }
0x21ee   : > { %v4749_v10 = vpop.permute.xlu0 %4748 }
0x21ef   : > { %9134 = vmatmul.mubr.msk.f32.gmra.mrb[72].mxu0 %vm3384_vm10, %v4745_v31 }
0x21f0   : > { %9136 = vmatprep.mubr.msk.f32.mxu0 %vm3384_vm10, %v4747_v6 }
0x21f3   : > { %9137 = vmatmul.mubr.msk.f32.gmra.mrb[74].mxu0 %vm3384_vm10, %v4749_v10 }
0x2247   : > { %v9101_v9 = vpop.f32.mrb[60].mxu0 }
0x2248   : > { %v11917_v46 = vmul.f32 0.35355338, %v9101_v9  ;;  %v4467_v58 = vpop.f32.mrb[61].mxu0 }
0x2249   : > { %v11919_v28 = vmul.f32 0.35355338, %v4467_v58 }
0x224a   : > { %v4517_v51 = vsel %vm2661_vm8, %v11917_v46, -inf }
0x224b   : > { %4518 = vmax.xlane.f32.xlu0 %v4517_v51  ;;  %v9104_v29 = vpop.f32.mrb[62].mxu0  ;;  %v4514_v43 = vsel %vm2661_vm8, %v11919_v28, -inf }
0x224c   : > { %4515 = vmax.xlane.f32.xlu1 %v4514_v43  ;;  %v4477_v34 = vpop.f32.mrb[63].mxu0  ;;  %v11927_v12 = vmul.f32 0.35355338, %v9104_v29 }
0x224d   : > { %v11925_v55 = vmul.f32 0.35355338, %v4477_v34 }
0x224e   : > { %v4523_v54 = vsel %vm2661_vm8, %v11927_v12, -inf }
0x224f   : > { %v9107_v4 = vpop.f32.mrb[64].mxu0  ;;  %v4520_v2 = vsel %vm2661_vm8, %v11925_v55, -inf }
0x2250   : > { %4521 = vmax.xlane.f32.xlu0 %v4520_v2  ;;  %v4487_v59 = vpop.f32.mrb[65].mxu0  ;;  %v11933_v5 = vmul.f32 0.35355338, %v9107_v4 }
0x2251   : > { %v11931_v33 = vmul.f32 0.35355338, %v4487_v59 }
0x2252   : > { %v4529_v23 = vsel %vm2661_vm8, %v11933_v5, -inf }
0x2253   : > { %v9110_v57 = vpop.f32.mrb[66].mxu0  ;;  %v4526_v53 = vsel %vm2661_vm8, %v11931_v33, -inf }
0x2254   : > { %4524 = vmax.xlane.f32.xlu0 %v4523_v54  ;;  %4527 = vmax.xlane.f32.xlu1 %v4526_v53  ;;  %v4497_v30 = vpop.f32.mrb[67].mxu0  ;;  %v11941_v26 = vmul.f32 0.35355338, %v9110_v57 }
0x2255   : > { %v11939_v13 = vmul.f32 0.35355338, %v4497_v30 }
0x2256   : > { %v4535_v17 = vsel %vm2661_vm8, %v11941_v26, -inf }
0x2257   : > { %v4532_v56 = vsel %vm2661_vm8, %v11939_v13, -inf }
0x2258   : > { %4530 = vmax.xlane.f32.xlu0 %v4529_v23  ;;  %4533 = vmax.xlane.f32.xlu1 %v4532_v56 }
0x225c   : > { %4536 = vmax.xlane.f32.xlu0 %v4535_v17 }
0x22ba   : > { %v9129_v16 = vpop.f32.mrb[68].mxu0 }
0x22bb   : > { %v11949_v21 = vmul.f32 0.35355338, %v9129_v16  ;;  %v4836_v40 = vpop.f32.mrb[69].mxu0 }
0x22bc   : > { %v11951_v49 = vmul.f32 0.35355338, %v4836_v40 }
0x22bd   : > { %v4886_v7 = vsel %vm2661_vm8, %v11949_v21, -inf }
0x22be   : > { %4887 = vmax.xlane.f32.xlu0 %v4886_v7  ;;  %v9132_v14 = vpop.f32.mrb[70].mxu0  ;;  %v4883_v42 = vsel %vm2661_vm8, %v11951_v49, -inf }
0x22bf   : > { %v11957_v48 = vmul.f32 0.35355338, %v9132_v14  ;;  %v4846_v50 = vpop.f32.mrb[71].mxu0  ;;  %4884 = vmax.xlane.f32.xlu1 %v4883_v42 }
0x22c0   : > { %v11959_v15 = vmul.f32 0.35355338, %v4846_v50 }
0x22c1   : > { %v4892_v35 = vsel %vm2661_vm8, %v11957_v48, -inf }
0x22c2   : > { %4893 = vmax.xlane.f32.xlu0 %v4892_v35  ;;  %v9135_v22 = vpop.f32.mrb[72].mxu0  ;;  %v4889_v36 = vsel %vm2661_vm8, %v11959_v15, -inf }
0x22c3   : > { %v11965_v61 = vmul.f32 0.35355338, %v9135_v22  ;;  %v4856_v41 = vpop.f32.mrb[73].mxu0  ;;  %4890 = vmax.xlane.f32.xlu1 %v4889_v36 }
0x22c4   : > { %v11967_v19 = vmul.f32 0.35355338, %v4856_v41 }
0x22c5   : > { %v4898_v18 = vsel %vm2661_vm8, %v11965_v61, -inf }
0x22c6   : > { %4899 = vmax.xlane.f32.xlu0 %v4898_v18  ;;  %v9138_v45 = vpop.f32.mrb[74].mxu0  ;;  %v4895_v52 = vsel %vm2661_vm8, %v11967_v19, -inf }
0x22c7   : > { %v11973_v39 = vmul.f32 0.35355338, %v9138_v45  ;;  %v4866_v63 = vpop.f32.mrb[75].mxu0  ;;  %4896 = vmax.xlane.f32.xlu1 %v4895_v52 }
0x22c8   : > { %v11975_v31 = vmul.f32 0.35355338, %v4866_v63 }
0x22c9   : > { %v4904_v6 = vsel %vm2661_vm8, %v11973_v39, -inf }
0x22ca   : > { %4905 = vmax.xlane.f32.xlu0 %v4904_v6  ;;  %v4901_v10 = vsel %vm2661_vm8, %v11975_v31, -inf }
0x22cb   : > { %4902 = vmax.xlane.f32.xlu1 %v4901_v10 }
0x22d8   : > { %v4519_v9 = vpop.xlane.xlu0 %4518 }
0x22d9   : > { %v4539_v58 = vsub.f32 %v11917_v46, %v4519_v9  ;;  %v4516_v51 = vpop.xlane.xlu1 %4515 }
0x22da   : > { %v4538_v29 = vsub.f32 %v11919_v28, %v4516_v51 }
0x22db   : > { %v4548_v43 = vmul.f32 1.442695, %v4539_v58 }
0x22dc   : > { %v4546_v34 = vmul.f32 1.442695, %v4538_v29 }
0x22dd   : > { %10282 = vpow2.f32 %v4548_v43  ;;  %v4522_v4 = vpop.xlane.xlu0 %4521 }
0x22de   : > { %10284 = vpow2.f32 %v4546_v34  ;;  %v4540_v2 = vsub.f32 %v11925_v55, %v4522_v4 }
0x22e0   : > { %v4550_v59 = vmul.f32 1.442695, %v4540_v2 }
0x22e1   : > { %v4525_v57 = vpop.xlane.xlu0 %4524  ;;  %v4528_v54 = vpop.xlane.xlu1 %4527 }
0x22e2   : > { %10286 = vpow2.f32 %v4550_v59  ;;  %v4541_v53 = vsub.f32 %v11927_v12, %v4525_v57  ;;  %v4542_v30 = vsub.f32 %v11931_v33, %v4528_v54 }
0x22e4   : > { %v4552_v23 = vmul.f32 1.442695, %v4541_v53  ;;  %v4554_v46 = vmul.f32 1.442695, %v4542_v30 }
0x22e5   : > { %v4531_v56 = vpop.xlane.xlu0 %4530  ;;  %v4534_v17 = vpop.xlane.xlu1 %4533 }
0x22e6   : > { %10288 = vpow2.f32 %v4552_v23  ;;  %v4543_v28 = vsub.f32 %v11933_v5, %v4531_v56  ;;  %v4544_v16 = vsub.f32 %v11939_v13, %v4534_v17 }
0x22e7   : > { %v11988_v40 = vpop.eup %10282  ;;  %10290 = vpow2.f32 %v4554_v46 }
0x22e8   : > { %v11990_v55 = vpop.eup %10284  ;;  %v4556_v7 = vmul.f32 1.442695, %v4543_v28  ;;  %v4558_v14 = vmul.f32 1.442695, %v4544_v16  ;;  %v4565_v12 = vsel %vm2661_vm8, %v11988_v40, 0.0 }
0x22e9   : > { %v4537_v33 = vpop.xlane.xlu0 %4536  ;;  %4566 = vadd.xlane.f32.xlu0 %v4565_v12  ;;  %v4562_v42 = vsel %vm2661_vm8, %v11990_v55, 0.0 }
0x22ea   : > { %10292 = vpow2.f32 %v4556_v7  ;;  %v4545_v5 = vsub.f32 %v11941_v26, %v4537_v33  ;;  %4563 = vadd.xlane.f32.xlu1 %v4562_v42 }
0x22eb   : > { %10294 = vpow2.f32 %v4558_v14 }
0x22ec   : > { %v11997_v13 = vpop.eup %10286  ;;  %v4560_v50 = vmul.f32 1.442695, %v4545_v5 }
0x22ed   : > { %v4568_v35 = vsel %vm2661_vm8, %v11997_v13, 0.0 }
0x22ee   : > { %10296 = vpow2.f32 %v4560_v50  ;;  %4569 = vadd.xlane.f32.xlu1 %v4568_v35 }
0x22f0   : > { %v12001_v22 = vpop.eup %10288 }
0x22f1   : > { %v12003_v36 = vpop.eup %10290  ;;  %v4571_v41 = vsel %vm2661_vm8, %v12001_v22, 0.0 }
0x22f2   : > { %4572 = vadd.xlane.f32.xlu0 %v4571_v41  ;;  %v4574_v26 = vsel %vm2661_vm8, %v12003_v36, 0.0 }
0x22f3   : > { %4575 = vadd.xlane.f32.xlu1 %v4574_v26 }
0x22f4   : > { %v12009_v18 = vpop.eup %10292 }
0x22f5   : > { %v12011_v45 = vpop.eup %10294  ;;  %v4577_v52 = vsel %vm2661_vm8, %v12009_v18, 0.0 }
0x22f6   : > { %4578 = vadd.xlane.f32.xlu0 %v4577_v52  ;;  %v4580_v63 = vsel %vm2661_vm8, %v12011_v45, 0.0 }
0x22f7   : > { %4581 = vadd.xlane.f32.xlu1 %v4580_v63 }
0x22f8   : > { %v12017_v6 = vpop.eup %10296 }
0x22f9   : > { %v4583_v10 = vsel %vm2661_vm8, %v12017_v6, 0.0 }
0x22fa   : > { %4584 = vadd.xlane.f32.xlu0 %v4583_v10 }
0x234b   : > { %v4888_v9 = vpop.xlane.xlu0 %4887 }
0x234c   : > { %v4908_v58 = vsub.f32 %v11949_v21, %v4888_v9  ;;  %v4885_v51 = vpop.xlane.xlu1 %4884 }
0x234d   : > { %v4907_v29 = vsub.f32 %v11951_v49, %v4885_v51 }
0x234e   : > { %v4917_v43 = vmul.f32 1.442695, %v4908_v58 }
0x234f   : > { %v4915_v34 = vmul.f32 1.442695, %v4907_v29  ;;  %v4894_v4 = vpop.xlane.xlu0 %4893 }
0x2350   : > { %10298 = vpow2.f32 %v4917_v43  ;;  %v4910_v2 = vsub.f32 %v11957_v48, %v4894_v4  ;;  %v4891_v59 = vpop.xlane.xlu1 %4890 }
0x2351   : > { %10300 = vpow2.f32 %v4915_v34  ;;  %v4909_v57 = vsub.f32 %v11959_v15, %v4891_v59 }
0x2352   : > { %v4921_v54 = vmul.f32 1.442695, %v4910_v2 }
0x2353   : > { %v4919_v53 = vmul.f32 1.442695, %v4909_v57  ;;  %v4900_v30 = vpop.xlane.xlu0 %4899 }
0x2354   : > { %10302 = vpow2.f32 %v4921_v54  ;;  %v4912_v23 = vsub.f32 %v11965_v61, %v4900_v30  ;;  %v4897_v21 = vpop.xlane.xlu1 %4896 }
0x2355   : > { %10304 = vpow2.f32 %v4919_v53  ;;  %v4911_v49 = vsub.f32 %v11967_v19, %v4897_v21 }
0x2356   : > { %v4925_v46 = vmul.f32 1.442695, %v4912_v23 }
0x2357   : > { %v4923_v56 = vmul.f32 1.442695, %v4911_v49  ;;  %v4906_v17 = vpop.xlane.xlu0 %4905 }
0x2358   : > { %10306 = vpow2.f32 %v4925_v46  ;;  %v4914_v48 = vsub.f32 %v11973_v39, %v4906_v17  ;;  %v4903_v28 = vpop.xlane.xlu1 %4902 }
0x2359   : > { %10308 = vpow2.f32 %v4923_v56  ;;  %v4913_v15 = vsub.f32 %v11975_v31, %v4903_v28 }
0x235a   : > { %v12029_v16 = vpop.eup %10298  ;;  %v4929_v7 = vmul.f32 1.442695, %v4914_v48 }
0x235b   : > { %v12031_v14 = vpop.eup %10300  ;;  %v4927_v61 = vmul.f32 1.442695, %v4913_v15  ;;  %v4934_v12 = vsel %vm2661_vm8, %v12029_v16, 0.0 }
0x235c   : > { %10310 = vpow2.f32 %v4929_v7  ;;  %4935 = vadd.xlane.f32.xlu0 %v4934_v12  ;;  %v4931_v19 = vsel %vm2661_vm8, %v12031_v14, 0.0 }
0x235d   : > { %10312 = vpow2.f32 %v4927_v61  ;;  %4932 = vadd.xlane.f32.xlu1 %v4931_v19 }
0x235e   : > { %v12037_v39 = vpop.eup %10302 }
0x235f   : > { %v12039_v33 = vpop.eup %10304  ;;  %v4940_v31 = vsel %vm2661_vm8, %v12037_v39, 0.0 }
0x2360   : > { %4941 = vadd.xlane.f32.xlu0 %v4940_v31  ;;  %v4937_v42 = vsel %vm2661_vm8, %v12039_v33, 0.0  ;;  %v5426_v31 = vld [vmem:[%s12909_s3 + $0x300] sm:$0xff] }
0x2361   : > { %4938 = vadd.xlane.f32.xlu1 %v4937_v42 }
0x2362   : > { %v12045_v5 = vpop.eup %10306 }
0x2363   : > { %v12047_v50 = vpop.eup %10308  ;;  %v4946_v35 = vsel %vm2661_vm8, %v12045_v5, 0.0 }
0x2364   : > { %4947 = vadd.xlane.f32.xlu0 %v4946_v35  ;;  %v4943_v41 = vsel %vm2661_vm8, %v12047_v50, 0.0 }
0x2365   : > { %4944 = vadd.xlane.f32.xlu1 %v4943_v41 }
0x2366   : > { %v12053_v26 = vpop.eup %10310 }
0x2367   : > { %v12055_v52 = vpop.eup %10312  ;;  %v4952_v63 = vsel %vm2661_vm8, %v12053_v26, 0.0 }
0x2368   : > { %4953 = vadd.xlane.f32.xlu0 %v4952_v63  ;;  %v4949_v10 = vsel %vm2661_vm8, %v12055_v52, 0.0 }
0x2369   : > { %4950 = vadd.xlane.f32.xlu1 %v4949_v10 }
0x2376   : > { %v4567_v9 = vpop.xlane.xlu0 %4566 }
0x2377   : > { %10314 = vrcp.f32 %v4567_v9  ;;  %v4564_v58 = vpop.xlane.xlu1 %4563  ;;  %v5428_v9 = vld [vmem:[%s12909_s3 + $0x310] sm:$0xff] }
0x2378   : > { %10316 = vrcp.f32 %v4564_v58 }
0x237a   : > { %4971 = vrot.lane.b32.xlu1 %v11878_v25, %s10446_s10 }
0x237b   : > { %v4570_v51 = vpop.xlane.xlu1 %4569 }
0x237c   : > { %10318 = vrcp.f32 %v4570_v51 }
0x237f   : > { %v4573_v29 = vpop.xlane.xlu0 %4572 }
0x2380   : > { %10320 = vrcp.f32 %v4573_v29  ;;  %v4576_v43 = vpop.xlane.xlu1 %4575 }
0x2381   : > { %v10315_v34 = vpop.eup %10314  ;;  %10322 = vrcp.f32 %v4576_v43 }
0x2382   : > { %v10317_v4 = vpop.eup %10316  ;;  %v4595_v57 = vmul.f32 %v10315_v34, %v11988_v40 }
0x2383   : > { %v4579_v2 = vpop.xlane.xlu0 %4578  ;;  %v4594_v59 = vmul.f32 %v10317_v4, %v11990_v55 }
0x2384   : > { %10324 = vrcp.f32 %v4579_v2  ;;  %v4582_v54 = vpop.xlane.xlu1 %4581 }
0x2385   : > { %10326 = vrcp.f32 %v4582_v54  ;;  %9113 = vmatprep.mubr.msk.f32.mxu1 %vm2661_vm8, %v4594_v59 }
0x2386   : > { %v10319_v53 = vpop.eup %10318  ;;  %9114 = vmatmul.mubr.msk.f32.vlgmr.msra.gmra.mrb[76].mxu1 %vm2661_vm8, %v4595_v57 }
0x2387   : > { %v4585_v25 = vpop.xlane.xlu0 %4584  ;;  %v4596_v30 = vmul.f32 %v10319_v53, %v11997_v13 }
0x2388   : > { %10328 = vrcp.f32 %v4585_v25 }
0x2389   : > { %9116 = vmatprep.mubr.msk.f32.mxu1 %vm2661_vm8, %v4596_v30 }
0x238a   : > { %v10321_v23 = vpop.eup %10320 }
0x238b   : > { %v10323_v21 = vpop.eup %10322  ;;  %v4597_v55 = vmul.f32 %v10321_v23, %v12001_v22 }
0x238c   : > { %v4598_v40 = vmul.f32 %v10323_v21, %v12003_v36 }
0x238d   : > { %9117 = vmatmul.mubr.msk.f32.gmra.mrb[78].mxu1 %vm2661_vm8, %v4597_v55 }
0x238e   : > { %v10325_v49 = vpop.eup %10324  ;;  %9119 = vmatprep.mubr.msk.f32.mxu1 %vm2661_vm8, %v4598_v40 }
0x238f   : > { %v10327_v46 = vpop.eup %10326  ;;  %v4599_v56 = vmul.f32 %v10325_v49, %v12009_v18 }
0x2390   : > { %v4600_v17 = vmul.f32 %v10327_v46, %v12011_v45 }
0x2391   : > { %9120 = vmatmul.mubr.msk.f32.gmra.mrb[80].mxu1 %vm2661_vm8, %v4599_v56 }
0x2392   : > { %v10329_v13 = vpop.eup %10328  ;;  %9122 = vmatprep.mubr.msk.f32.mxu1 %vm2661_vm8, %v4600_v17 }
0x2393   : > { %v4601_v48 = vmul.f32 %v10329_v13, %v12017_v6  ;;  %v5425_v6 = vld [vmem:[%s12909_s3 + $0x2f8] sm:$0xff] }
0x2394   : > { %v9765_v63 = vpack.c.bf16 %v5426_v31, %v5425_v6 }
0x2395   : > { %9123 = vmatmul.mubr.msk.f32.gmra.mrb[82].mxu1 %vm2661_vm8, %v4601_v48 }
0x23e9   : > { %v4936_v22 = vpop.xlane.xlu0 %4935 }
0x23ea   : > { %v4933_v36 = vpop.xlane.xlu1 %4932 }
0x23eb   : > { %10330 = vrcp.f32 %v4933_v36 }
0x23ec   : > { %10332 = vrcp.f32 %v4936_v22 }
0x23ed   : > { %v4942_v28 = vpop.xlane.xlu0 %4941 }
0x23ee   : > { %v4939_v15 = vpop.xlane.xlu1 %4938 }
0x23ef   : > { %10334 = vrcp.f32 %v4939_v15 }
0x23f0   : > { %10336 = vrcp.f32 %v4942_v28 }
0x23f1   : > { %v4948_v7 = vpop.xlane.xlu0 %4947 }
0x23f2   : > { %v4945_v18 = vpop.xlane.xlu1 %4944 }
0x23f3   : > { %10338 = vrcp.f32 %v4945_v18 }
0x23f4   : > { %10340 = vrcp.f32 %v4948_v7 }
0x23f5   : > { %v10331_v45 = vpop.eup %10330  ;;  %v4954_v19 = vpop.xlane.xlu0 %4953 }
0x23f6   : > { %v4951_v61 = vpop.xlane.xlu1 %4950  ;;  %v4963_v12 = vmul.f32 %v10331_v45, %v12031_v14  ;;  %v10333_v42 = vpop.eup %10332  ;;  %v5427_v14 = vld [vmem:[%s12909_s3 + $0x308] sm:$0xff] }
0x23f7   : > { %10342 = vrcp.f32 %v4951_v61  ;;  %v4964_v10 = vmul.f32 %v10333_v42, %v12029_v16  ;;  %v9768_v16 = vpack.c.bf16 %v5428_v9, %v5427_v14  ;;  %v8022_v9 = vld [vmem:[%s12909_s3 + $0x2f0] ss:$0 sm:$0xff] }
0x23f8   : > { %9141 = vmatprep.mubr.msk.f32.mxu1 %vm2661_vm8, %v4963_v12  ;;  %10344 = vrcp.f32 %v4954_v19 }
0x23f9   : > { %v10335_v35 = vpop.eup %10334 }
0x23fa   : > { %v4972_v41 = vpop.permute.xlu1 %4971  ;;  %v10337_v58 = vpop.eup %10336  ;;  %v4965_v51 = vmul.f32 %v10335_v35, %v12039_v33 }
0x23fb   : > { %9139 = vmatprep.subr.msk.mxu1 %vm2665_vm7, %v4972_v41  ;;  %v4966_v43 = vmul.f32 %v10337_v58, %v12037_v39 }
0x23fc   : > { %9140 = vmatpush3.msk.msra.mxu1 %vm2665_vm7, %v4972_v41 }
0x23fd   : > { %v10339_v29 = vpop.eup %10338  ;;  %9142 = vmatmul.mubr.msk.f32.vlgmr.msra.gmra.mrb[84].mxu1 %vm2661_vm8, %v4964_v10  ;;  %9764 = vmatprep.subr.bf16.mxu1 %v10443_v32 }
0x23fe   : > { %9144 = vmatprep.mubr.msk.f32.mxu1 %vm2661_vm8, %v4965_v51  ;;  %9766 = vmatpush3.bf16.msra.mxu1 %v9765_v63  ;;  %v10341_v34 = vpop.eup %10340  ;;  %v4967_v4 = vmul.f32 %v10339_v29, %v12047_v50 }
0x23ff   : > { %9767 = vmatprep.subr.bf16.mxu1 %v10443_v32  ;;  %v4968_v33 = vmul.f32 %v10341_v34, %v12045_v5 }
0x2401   : > { %v10343_v2 = vpop.eup %10342  ;;  %9145 = vmatmul.mubr.msk.f32.gmra.mrb[86].mxu1 %vm2661_vm8, %v4966_v43 }
0x2402   : > { %9147 = vmatprep.mubr.msk.f32.mxu1 %vm2661_vm8, %v4967_v4  ;;  %9769 = vmatpush3.bf16.msra.mxu1 %v9768_v16  ;;  %v10345_v59 = vpop.eup %10344  ;;  %v4969_v57 = vmul.f32 %v10343_v2, %v12055_v52  ;;  %v5144_v52 = vld [vmem:[%s12909_s3 + $0x2e0] sm:$0xff] }
0x2403   : > { %v4970_v39 = vmul.f32 %v10345_v59, %v12053_v26  ;;  %v5145_v26 = vld [vmem:[%s12909_s3 + $0x2e8] sm:$0xff] }
0x2404   : > { %v9760_v25 = vpack.c.bf16 %v5145_v26, %v5144_v52 }
0x2405   : > { %9148 = vmatmul.mubr.msk.f32.gmra.mrb[88].mxu1 %vm2661_vm8, %v4968_v33 }
0x2406   : > { %9150 = vmatprep.mubr.msk.f32.mxu1 %vm2661_vm8, %v4969_v57  ;;  %9761 = vmatprep.subr.bf16.mxu0 %v9760_v25 }
0x2407   : > { %9763 = vmatpush3.bf16.msra.mxu0 %v9760_v25 }
0x2409   : > { %9151 = vmatmul.mubr.msk.f32.gmra.mrb[90].mxu1 %vm2661_vm8, %v4970_v39 }
0x240a   : > { %9177 = vmatprep.mubr.msk.f32.mxu1 %vm10445_vm5, %v10444_v3 }
0x240d   : > { %9178 = vmatmul.mubr.msk.f32.vlgmr.msra.gmra.mrb[92].mxu1 %vm417_vm1, %v11866_v47 }
0x2459   : > { %v9115_v50 = vpop.f32.mrb[76].mxu1 }
0x245a   : > { %v4695_v54 = vpop.f32.mrb[77].mxu1 }
0x2460   : > { %v9118_v5 = vpop.f32.mrb[78].mxu1 }
0x2461   : > { %v4705_v53 = vpop.f32.mrb[79].mxu1 }
0x2464   : > { %v9121_v30 = vpop.f32.mrb[80].mxu1 }
0x2465   : > { %v4715_v23 = vpop.f32.mrb[81].mxu1 }
0x2468   : > { %v9124_v21 = vpop.f32.mrb[82].mxu1 }
0x2469   : > { %v4725_v55 = vpop.f32.mrb[83].mxu1 }
0x24d0   : > { %v9143_v47 = vpop.f32.mrb[84].mxu1 }
0x24d1   : > { %5114 = vrot.lane.b32.xlu1 %v9143_v47, %s10447_s21  ;;  %v5065_v40 = vpop.f32.mrb[85].mxu1 }
0x24d2   : > { %5112 = vrot.lane.b32.xlu0 %v5065_v40, %s10447_s21 }
0x24d4   : > { %v9146_v49 = vpop.f32.mrb[86].mxu1 }
0x24d5   : > { %v5075_v46 = vpop.f32.mrb[87].mxu1 }
0x24d6   : > { %5116 = vrot.lane.b32.xlu1 %v5075_v46, %s10447_s21 }
0x24d8   : > { %v9149_v56 = vpop.f32.mrb[88].mxu1 }
0x24d9   : > { %v5085_v17 = vpop.f32.mrb[89].mxu1 }
0x24da   : > { %5118 = vrot.lane.b32.xlu1 %v9146_v49, %s10447_s21  ;;  %5120 = vrot.lane.b32.xlu0 %v5085_v17, %s10447_s21 }
0x24dc   : > { %v9152_v13 = vpop.f32.mrb[90].mxu1 }
0x24dd   : > { %v5095_v48 = vpop.f32.mrb[91].mxu1 }
0x24de   : > { %5122 = vrot.lane.b32.xlu1 %v9149_v56, %s10447_s21  ;;  %5124 = vrot.lane.b32.xlu0 %v5095_v48, %s10447_s21 }
0x24e0   : > { %v12128_v22 = vpop.f32.mrb[92].mxu1 }
0x24e1   : > { %v9179_v36 = vpop.f32.mrb[93].mxu1 }
0x24e2   : > { %5126 = vrot.lane.b32.xlu1 %v9152_v13, %s10447_s21 }
0x2543   : > { %v5115_v28 = vpop.permute.xlu1 %5114 }
0x2544   : > { %v5113_v15 = vpop.permute.xlu0 %5112  ;;  %v5137_v18 = vsel %vm3384_vm10, %v9115_v50, %v5115_v28 }
0x2545   : > { %v5136_v7 = vsel %vm3384_vm10, %v4695_v54, %v5113_v15 }
0x2546   : > { %9157 = vmatprep.mubr.msk.f32.mxu0 %vm709_vm2, %v5136_v7 }
0x2547   : > { %9158 = vmatmul.mubr.msk.f32.vlgmr.msra.gmra.mrb[76].mxu0 %vm709_vm2, %v5137_v18 }
0x2548   : > { %v5117_v45 = vpop.permute.xlu1 %5116 }
0x2549   : > { %v5138_v61 = vsel %vm3384_vm10, %v4705_v53, %v5117_v45 }
0x254a   : > { %9160 = vmatprep.mubr.msk.f32.mxu0 %vm709_vm2, %v5138_v61 }
0x254c   : > { %v5119_v12 = vpop.permute.xlu1 %5118  ;;  %v5121_v19 = vpop.permute.xlu0 %5120 }
0x254d   : > { %v5139_v6 = vsel %vm3384_vm10, %v9118_v5, %v5119_v12  ;;  %v5140_v31 = vsel %vm3384_vm10, %v4715_v23, %v5121_v19 }
0x254e   : > { %9161 = vmatmul.mubr.msk.f32.gmra.mrb[78].mxu0 %vm709_vm2, %v5139_v6 }
0x254f   : > { %9163 = vmatprep.mubr.msk.f32.mxu0 %vm709_vm2, %v5140_v31 }
0x2550   : > { %v5123_v42 = vpop.permute.xlu1 %5122  ;;  %v5125_v35 = vpop.permute.xlu0 %5124 }
0x2551   : > { %v5141_v41 = vsel %vm3384_vm10, %v9121_v30, %v5123_v42  ;;  %v5142_v63 = vsel %vm3384_vm10, %v4725_v55, %v5125_v35 }
0x2552   : > { %9164 = vmatmul.mubr.msk.f32.gmra.mrb[80].mxu0 %vm709_vm2, %v5141_v41 }
0x2553   : > { %9166 = vmatprep.mubr.msk.f32.mxu0 %vm709_vm2, %v5142_v63 }
0x2554   : > { %v5127_v10 = vpop.permute.xlu1 %5126 }
0x2555   : > { %v5143_v14 = vsel %vm3384_vm10, %v9124_v21, %v5127_v10 }
0x2556   : > { %9167 = vmatmul.mubr.msk.f32.gmra.mrb[82].mxu0 %vm709_vm2, %v5143_v14 }
0x261a   : > { %v9159_v58 = vpop.f32.mrb[76].mxu0 }
0x261b   : > { %v5247_v51 = vadd.f32 %v9159_v58, %v8022_v9  ;;  %v5241_v29 = vpop.f32.mrb[77].mxu0 }
0x261c   : > { %v5242_v16 = vadd.f32 %v8022_v9, %v5241_v29 }
0x261d   : > { %v5281_v43 = vadd.f32 %v5247_v51, %v11407_v27 }
0x261e   : > { %v5280_v34 = vadd.f32 %v5242_v16, %v11387_v20 }
0x261f   : > { %v5292_v4 = vsel %vm417_vm1, %v5281_v43, 0.0 }
0x2620   : > { %5293 = vadd.xlane.f32.xlu1 %v5292_v4  ;;  %v5289_v2 = vsel %vm417_vm1, %v5280_v34, 0.0 }
0x2621   : > { %v9162_v33 = vpop.f32.mrb[78].mxu0  ;;  %5290 = vadd.xlane.f32.xlu0 %v5289_v2 }
0x2622   : > { %v5251_v59 = vpop.f32.mrb[79].mxu0  ;;  %v5257_v57 = vadd.f32 %v9162_v33, %v8022_v9 }
0x2623   : > { %v5252_v39 = vadd.f32 %v8022_v9, %v5251_v59 }
0x2624   : > { %v5283_v52 = vadd.f32 %v5257_v57, %v11423_v1 }
0x2625   : > { %v5282_v50 = vadd.f32 %v5252_v39, %v11414_v60  ;;  %v9165_v54 = vpop.f32.mrb[80].mxu0 }
0x2626   : > { %v5267_v5 = vadd.f32 %v9165_v54, %v8022_v9  ;;  %v5261_v53 = vpop.f32.mrb[81].mxu0  ;;  %v5298_v60 = vsel %vm417_vm1, %v5283_v52, 0.0 }
0x2627   : > { %v5262_v27 = vadd.f32 %v8022_v9, %v5261_v53  ;;  %v5295_v20 = vsel %vm417_vm1, %v5282_v50, 0.0  ;;  %v5642_v53 = vld [vmem:[%s12909_s3 + $0x338] sm:$0xff] }
0x2628   : > { %v5285_v26 = vadd.f32 %v5267_v5, %v11442_v24  ;;  %5296 = vadd.xlane.f32.xlu0 %v5295_v20  ;;  %v5504_v20 = vld [vmem:[%s12909_s3 + $0x318] sm:$0xff] }
0x2629   : > { %v9168_v25 = vpop.f32.mrb[82].mxu0  ;;  %v5284_v55 = vadd.f32 %v5262_v27, %v11426_v44 }
0x262a   : > { %v5277_v30 = vadd.f32 %v9168_v25, %v8022_v9  ;;  %v5271_v23 = vpop.f32.mrb[83].mxu0  ;;  %v5304_v21 = vsel %vm417_vm1, %v5285_v26, 0.0 }
0x262b   : > { %v5272_v47 = vadd.f32 %v8022_v9, %v5271_v23  ;;  %5305 = vadd.xlane.f32.xlu1 %v5304_v21  ;;  %v5301_v24 = vsel %vm417_vm1, %v5284_v55, 0.0  ;;  %v5645_v23 = vld [vmem:[%s12909_s3 + $0x350] sm:$0xff] }
0x262c   : > { %v5287_v40 = vadd.f32 %v5277_v30, %v11466_v62  ;;  %5299 = vadd.xlane.f32.xlu0 %v5298_v60  ;;  %v5644_v30 = vld [vmem:[%s12909_s3 + $0x348] sm:$0xff] }
0x262d   : > { %v5286_v49 = vadd.f32 %v5272_v47, %v11454_v38  ;;  %v9782_v21 = vpack.c.bf16 %v5645_v23, %v5644_v30  ;;  %v5507_v47 = vld [vmem:[%s12909_s3 + $0x330] sm:$0xff] }
0x262e   : > { %v5310_v1 = vsel %vm417_vm1, %v5287_v40, 0.0 }
0x262f   : > { %5311 = vadd.xlane.f32.xlu1 %v5310_v1  ;;  %v5307_v46 = vsel %vm417_vm1, %v5286_v49, 0.0 }
0x2630   : > { %5302 = vadd.xlane.f32.xlu0 %v5301_v24 }
0x2634   : > { %5308 = vadd.xlane.f32.xlu0 %v5307_v46 }
0x26ad   : > { %v5294_v56 = vpop.xlane.xlu1 %5293 }
0x26ae   : > { %v5314_v44 = vmul.f32 0.03125, %v5294_v56  ;;  %v5291_v17 = vpop.xlane.xlu0 %5290 }
0x26af   : > { %v5313_v13 = vmul.f32 0.03125, %v5291_v17 }
0x26b0   : > { %v12166_v48 = vsub.f32 %v5281_v43, %v5314_v44 }
0x26b1   : > { %v12168_v36 = vsub.f32 %v5280_v34, %v5313_v13  ;;  %v5288_v13 = vld [vmem:[%s12909_s3 + $0x408] sm:$0x3] }
0x26b2   : > { %v5330_v62 = vmul.f32 %v12166_v48, %v12166_v48 }
0x26b3   : > { %v5329_v38 = vmul.f32 %v12168_v36, %v12168_v36 }
0x26b4   : > { %v5340_v28 = vsel %vm417_vm1, %v5330_v62, 0.0 }
0x26b5   : > { %5341 = vadd.xlane.f32.xlu1 %v5340_v28  ;;  %v5297_v15 = vpop.xlane.xlu0 %5296  ;;  %v5337_v7 = vsel %vm417_vm1, %v5329_v38, 0.0 }
0x26b6   : > { %v5315_v18 = vmul.f32 0.03125, %v5297_v15  ;;  %5338 = vadd.xlane.f32.xlu0 %v5337_v7  ;;  %v12236_v15 = vrot.slane %v5288_v13, %v10637_v0 }
0x26b8   : > { %v12176_v45 = vsub.f32 %v5282_v50, %v5315_v18  ;;  %v5306_v61 = vpop.xlane.xlu1 %5305 }
0x26b9   : > { %v5318_v12 = vmul.f32 0.03125, %v5306_v61  ;;  %v5300_v19 = vpop.xlane.xlu0 %5299 }
0x26ba   : > { %v5316_v6 = vmul.f32 0.03125, %v5300_v19  ;;  %v5331_v31 = vmul.f32 %v12176_v45, %v12176_v45 }
0x26bb   : > { %v12180_v42 = vsub.f32 %v5285_v26, %v5318_v12  ;;  %v5505_v26 = vld [vmem:[%s12909_s3 + $0x320] sm:$0xff]  ;;  %v12239_v12 = vrot.slane %v5288_v13, %v10642_v8  ;;  %v10425_v13 = vld [vmem:[%s12907_s1 + $0x28] sm:$0xff] }
0x26bc   : > { %v12182_v35 = vsub.f32 %v5283_v52, %v5316_v6  ;;  %v5312_v41 = vpop.xlane.xlu1 %5311  ;;  %v5343_v63 = vsel %vm417_vm1, %v5331_v31, 0.0  ;;  %v5643_v52 = vld [vmem:[%s12909_s3 + $0x340] sm:$0xff]  ;;  %v9770_v25 = vpack.c.bf16 %v5505_v26, %v5504_v20 }
0x26bd   : > { %v5320_v10 = vmul.f32 0.03125, %v5312_v41  ;;  %5344 = vadd.xlane.f32.xlu0 %v5343_v63  ;;  %v5303_v14 = vpop.xlane.xlu0 %5302  ;;  %v5334_v43 = vmul.f32 %v12180_v42, %v12180_v42  ;;  %v9778_v27 = vpack.c.bf16 %v5643_v52, %v5642_v53 }
0x26be   : > { %v5317_v9 = vmul.f32 0.03125, %v5303_v14  ;;  %v5332_v58 = vmul.f32 %v12182_v35, %v12182_v35  ;;  %9771 = vmatprep.subr.bf16.mxu1 %v9770_v25 }
0x26bf   : > { %v12187_v51 = vsub.f32 %v5287_v40, %v5320_v10  ;;  %v5352_v59 = vsel %vm417_vm1, %v5334_v43, 0.0  ;;  %9779 = vmatprep.subr.bf16.mxu0 %v9778_v27  ;;  %9773 = vmatpush3.bf16.msra.mxu1 %v9770_v25 }
0x26c0   : > { %v12189_v29 = vsub.f32 %v5284_v55, %v5317_v9  ;;  %v5346_v16 = vsel %vm417_vm1, %v5332_v58, 0.0  ;;  %9781 = vmatpush3.bf16.msra.mxu0 %v9778_v27  ;;  %v5506_v55 = vld [vmem:[%s12909_s3 + $0x328] sm:$0xff] }
0x26c1   : > { %5347 = vadd.xlane.f32.xlu1 %v5346_v16  ;;  %v5309_v34 = vpop.xlane.xlu0 %5308  ;;  %v5336_v39 = vmul.f32 %v12187_v51, %v12187_v51  ;;  %9783 = vmatprep.subr.bf16.mxu0 %v9782_v21  ;;  %v9774_v60 = vpack.c.bf16 %v5507_v47, %v5506_v55 }
0x26c2   : > { %v5319_v4 = vmul.f32 0.03125, %v5309_v34  ;;  %v5333_v2 = vmul.f32 %v12189_v29, %v12189_v29 }
0x26c3   : > { %v5358_v54 = vsel %vm417_vm1, %v5336_v39, 0.0  ;;  %9775 = vmatprep.subr.bf16.mxu1 %v9774_v60 }
0x26c4   : > { %v12196_v33 = vsub.f32 %v5286_v49, %v5319_v4  ;;  %v5349_v57 = vsel %vm417_vm1, %v5333_v2, 0.0  ;;  %9785 = vmatpush3.bf16.msra.mxu0 %v9782_v21  ;;  %9777 = vmatpush3.bf16.msra.mxu1 %v9774_v60 }
0x26c5   : > { %5353 = vadd.xlane.f32.xlu1 %v5352_v59  ;;  %5350 = vadd.xlane.f32.xlu0 %v5349_v57 }
0x26c6   : > { %v5335_v50 = vmul.f32 %v12196_v33, %v12196_v33  ;;  %9802 = vmatprep.subr.bf16.mxu0 %v10443_v32  ;;  %9786 = vmatprep.subr.bf16.mxu1 %v10443_v32 }
0x26c8   : > { %v5355_v5 = vsel %vm417_vm1, %v5335_v50, 0.0  ;;  %v10421_v50 = vld [vmem:[%s12907_s1] sm:$0xff] }
0x26c9   : > { %5359 = vadd.xlane.f32.xlu1 %v5358_v54  ;;  %5356 = vadd.xlane.f32.xlu0 %v5355_v5  ;;  %v10422_v5 = vld [vmem:[%s12907_s1 + $0x8] sm:$0xff] }
0x2742   : > { %v5342_v40 = vpop.xlane.xlu1 %5341 }
0x2743   : > { %v5362_v1 = vmul.f32 0.03125, %v5342_v40  ;;  %v5339_v49 = vpop.xlane.xlu0 %5338  ;;  %v10424_v40 = vld [vmem:[%s12907_s1 + $0x18] sm:$0xff] }
0x2744   : > { %v5361_v24 = vmul.f32 0.03125, %v5339_v49 }
0x2745   : > { %v5370_v46 = vadd.f32 1e-05, %v5362_v1 }
0x2746   : > { %v5369_v56 = vadd.f32 1e-05, %v5361_v24 }
0x2747   : > { %10346 = vrsqrt.f32 %v5370_v46 }
0x2748   : > { %10348 = vrsqrt.f32 %v5369_v56 }
0x274a   : > { %v5345_v44 = vpop.xlane.xlu0 %5344 }
0x274b   : > { %v5363_v17 = vmul.f32 0.03125, %v5345_v44 }
0x274d   : > { %v5371_v62 = vadd.f32 1e-05, %v5363_v17 }
0x274e   : > { %v5348_v38 = vpop.xlane.xlu1 %5347 }
0x274f   : > { %10350 = vrsqrt.f32 %v5371_v62  ;;  %v5364_v28 = vmul.f32 0.03125, %v5348_v38 }
0x2751   : > { %v10347_v7 = vpop.eup %10346  ;;  %v5372_v18 = vadd.f32 1e-05, %v5364_v28 }
0x2752   : > { %v10349_v61 = vpop.eup %10348  ;;  %v5386_v19 = vmul.f32 %v10347_v7, %v12166_v48  ;;  %v5354_v6 = vpop.xlane.xlu1 %5353 }
0x2753   : > { %v5351_v31 = vpop.xlane.xlu0 %5350  ;;  %10352 = vrsqrt.f32 %v5372_v18  ;;  %v5366_v41 = vmul.f32 0.03125, %v5354_v6  ;;  %v5385_v10 = vmul.f32 %v10349_v61, %v12168_v36  ;;  %v10427_v61 = vld [vmem:[%s12907_s1 + $0x38] sm:$0xff] }
0x2754   : > { %v5365_v63 = vmul.f32 0.03125, %v5351_v31  ;;  %v5398_v14 = vmul.f32 %v12236_v15, %v5386_v19 }
0x2755   : > { %v5374_v9 = vadd.f32 1e-05, %v5366_v41  ;;  %v5397_v16 = vmul.f32 %v12236_v15, %v5385_v10  ;;  %v8033_v41 = vld [vmem:[%s12909_s3 + $0x360] ss:$0 sm:$0xff] }
0x2756   : > { %v5373_v58 = vadd.f32 1e-05, %v5365_v63  ;;  %v12246_v43 = vadd.f32 %v12239_v12, %v5398_v14  ;;  %v5360_v34 = vpop.xlane.xlu1 %5359 }
0x2757   : > { %v5357_v4 = vpop.xlane.xlu0 %5356  ;;  %10354 = vrsqrt.f32 %v5374_v9  ;;  %v5368_v48 = vmul.f32 0.03125, %v5360_v34  ;;  %v12249_v59 = vadd.f32 %v12239_v12, %v5397_v16 }
0x2758   : > { %v5367_v2 = vmul.f32 0.03125, %v5357_v4  ;;  %10356 = vrsqrt.f32 %v5373_v58  ;;  %v5418_v53 = vadd.f32 %v10422_v5, %v12246_v43 }
0x2759   : > { %v10351_v57 = vpop.eup %10350  ;;  %v5376_v36 = vadd.f32 1e-05, %v5368_v48  ;;  %9208 = vmatprep.mubr.msk.f32.mxu0 %vm417_vm1, %v12249_v59  ;;  %v5417_v54 = vadd.f32 %v10421_v50, %v12249_v59 }
0x275a   : > { %v5375_v39 = vadd.f32 1e-05, %v5367_v2  ;;  %9209 = vmatmul.mubr.msk.f32.vlgmr.msra.gmra.mrb[84].mxu0 %vm417_vm1, %v12246_v43  ;;  %v5387_v52 = vmul.f32 %v10351_v57, %v12176_v45  ;;  %v10423_v45 = vld [vmem:[%s12907_s1 + $0x10] sm:$0xff] }
0x275b   : > { %10358 = vrsqrt.f32 %v5376_v36  ;;  %9188 = vmatprep.mubr.msk.f32.mxu1 %vm417_vm1, %v5417_v54 }
0x275c   : > { %10360 = vrsqrt.f32 %v5375_v39  ;;  %9189 = vmatmul.mubr.msk.f32.vlgmr.msra.gmra.mrb[94].mxu1 %vm417_vm1, %v5418_v53  ;;  %v5399_v27 = vmul.f32 %v12236_v15, %v5387_v52 }
0x275d   : > { %v10353_v20 = vpop.eup %10352 }
0x275e   : > { %v12268_v26 = vadd.f32 %v12239_v12, %v5399_v27  ;;  %v5388_v25 = vmul.f32 %v10353_v20, %v12182_v35 }
0x2760   : > { %9211 = vmatprep.mubr.msk.f32.mxu0 %vm417_vm1, %v12268_v26  ;;  %v5419_v30 = vadd.f32 %v10423_v45, %v12268_v26  ;;  %v5400_v23 = vmul.f32 %v12236_v15, %v5388_v25 }
0x2761   : > { %v10355_v21 = vpop.eup %10354 }
0x2762   : > { %v10357_v55 = vpop.eup %10356  ;;  %9191 = vmatprep.mubr.msk.f32.mxu1 %vm417_vm1, %v5419_v30  ;;  %v12280_v47 = vadd.f32 %v12239_v12, %v5400_v23  ;;  %v5390_v35 = vmul.f32 %v10355_v21, %v12180_v42 }
0x2763   : > { %v5389_v60 = vmul.f32 %v10357_v55, %v12189_v29 }
0x2764   : > { %9212 = vmatmul.mubr.msk.f32.gmra.mrb[86].mxu0 %vm417_vm1, %v12280_v47  ;;  %v5420_v1 = vadd.f32 %v10424_v40, %v12280_v47  ;;  %v5402_v49 = vmul.f32 %v12236_v15, %v5390_v35 }
0x2765   : > { %v10359_v24 = vpop.eup %10358  ;;  %v5401_v46 = vmul.f32 %v12236_v15, %v5389_v60 }
0x2766   : > { %v10361_v56 = vpop.eup %10360  ;;  %9192 = vmatmul.mubr.msk.f32.gmra.mrb[96].mxu1 %vm417_vm1, %v5420_v1  ;;  %v12294_v42 = vadd.f32 %v12239_v12, %v5402_v49  ;;  %v5392_v29 = vmul.f32 %v10359_v24, %v12187_v51  ;;  %v10426_v51 = vld [vmem:[%s12907_s1 + $0x20] sm:$0xff] }
0x2767   : > { %v12298_v44 = vadd.f32 %v12239_v12, %v5401_v46  ;;  %v5391_v17 = vmul.f32 %v10361_v56, %v12196_v33 }
0x2768   : > { %v5422_v62 = vadd.f32 %v10425_v13, %v12294_v42  ;;  %v5404_v38 = vmul.f32 %v12236_v15, %v5392_v29 }
0x2769   : > { %9214 = vmatprep.mubr.msk.f32.mxu0 %vm417_vm1, %v12298_v44  ;;  %v5421_v28 = vadd.f32 %v10426_v51, %v12298_v44  ;;  %v5403_v7 = vmul.f32 %v12236_v15, %v5391_v17  ;;  %v10428_v15 = vld [vmem:[%s12907_s1 + $0x30] sm:$0xff] }
0x276a   : > { %9215 = vmatmul.mubr.msk.f32.gmra.mrb[88].mxu0 %vm417_vm1, %v12294_v42  ;;  %v12316_v33 = vadd.f32 %v12239_v12, %v5404_v38 }
0x276b   : > { %9194 = vmatprep.mubr.msk.f32.mxu1 %vm417_vm1, %v5421_v28  ;;  %v12320_v18 = vadd.f32 %v12239_v12, %v5403_v7  ;;  %v8042_v12 = vld [vmem:[%s12909_s3 + $0x368] ss:$0 sm:$0xff] }
0x276c   : > { %9195 = vmatmul.mubr.msk.f32.gmra.mrb[98].mxu1 %vm417_vm1, %v5422_v62  ;;  %v5424_v19 = vadd.f32 %v10427_v61, %v12316_v33 }
0x276d   : > { %9217 = vmatprep.mubr.msk.f32.mxu0 %vm417_vm1, %v12320_v18  ;;  %v5423_v6 = vadd.f32 %v10428_v15, %v12320_v18 }
0x276e   : > { %9218 = vmatmul.mubr.msk.f32.gmra.mrb[90].mxu0 %vm417_vm1, %v12316_v33 }
0x276f   : > { %9197 = vmatprep.mubr.msk.f32.mxu1 %vm417_vm1, %v5423_v6  ;;  %9255 = vmatprep.mubr.msk.f32.mxu0 %vm10445_vm5, %v10444_v3 }
0x2770   : > { %9198 = vmatmul.mubr.msk.f32.gmra.mrb[100].mxu1 %vm417_vm1, %v5424_v19 }
0x2771   : > { %9236 = vmatprep.mubr.msk.f32.mxu1 %vm10445_vm5, %v10444_v3 }
0x282d   : > { %v9210_v31 = vpop.f32.mrb[84].mxu0 }
0x282e   : > { %v12347_v63 = vadd.f32 %v9210_v31, %v8042_v12  ;;  %v5741_v10 = vpop.f32.mrb[85].mxu0 }
0x282f   : > { %v12349_v14 = vadd.f32 %v8042_v12, %v5741_v10  ;;  %v9190_v9 = vpop.f32.mrb[94].mxu1 }
0x2830   : > { %v12351_v58 = vadd.f32 %v9190_v9, %v8033_v41  ;;  %v5603_v16 = vpop.f32.mrb[95].mxu1 }
0x2831   : > { %v10112_v34 = vpack.i.bf16 %v12347_v63, %v12349_v14  ;;  %v9803_v4 = vpack.c.bf16 %v12347_v63, %v12349_v14  ;;  %v12357_v48 = vadd.f32 %v8033_v41, %v5603_v16 }
0x2833   : > { %v10092_v2 = vpack.i.bf16 %v12351_v58, %v12357_v48  ;;  %v9787_v57 = vpack.c.bf16 %v12351_v58, %v12357_v48  ;;  %9804 = vmatpush3.bf16.msra.mxu0 %v9803_v4 }
0x2834   : > { %9805 = vmatprep.subr.bf16.mxu0 %v10443_v32 }
0x2835   : > { %9789 = vmatpush3.bf16.xpose.msk.msra.mxu1 %vm11498_vm11, %v9787_v57 }
0x2836   : > { %9790 = vmatprep.subr.bf16.mxu1 %v10443_v32 }
0x2837   : > { %v9213_v36 = vpop.f32.mrb[86].mxu0 }
0x2838   : > { %v12367_v39 = vadd.f32 %v9213_v36, %v8042_v12  ;;  %v5751_v50 = vpop.f32.mrb[87].mxu0 }
0x2839   : > { %v12369_v54 = vadd.f32 %v8042_v12, %v5751_v50  ;;  %v9193_v5 = vpop.f32.mrb[96].mxu1 }
0x283a   : > { %v12371_v53 = vadd.f32 %v9193_v5, %v8033_v41  ;;  %v5613_v52 = vpop.f32.mrb[97].mxu1 }
0x283b   : > { %v10117_v27 = vpack.i.bf16 %v12367_v39, %v12369_v54  ;;  %v9806_v20 = vpack.c.bf16 %v12367_v39, %v12369_v54  ;;  %v12377_v25 = vadd.f32 %v8033_v41, %v5613_v52 }
0x283d   : > { %v10097_v45 = vpack.i.bf16 %v12371_v53, %v12377_v25  ;;  %v9791_v30 = vpack.c.bf16 %v12371_v53, %v12377_v25  ;;  %v9216_v23 = vpop.f32.mrb[88].mxu0  ;;  %9807 = vmatpush3.bf16.msra.mxu0 %v9806_v20 }
0x283e   : > { %v12383_v21 = vadd.f32 %v9216_v23, %v8042_v12  ;;  %v5761_v55 = vpop.f32.mrb[89].mxu0  ;;  %9808 = vmatprep.subr.bf16.mxu0 %v10443_v32 }
0x283f   : > { %v12386_v35 = vadd.f32 %v8042_v12, %v5761_v55  ;;  %v9196_v60 = vpop.f32.mrb[98].mxu1  ;;  %9793 = vmatpush3.bf16.xpose.msk.msra.mxu1 %vm11498_vm11, %v9791_v30 }
0x2840   : > { %v5629_v40 = vadd.f32 %v9196_v60, %v8033_v41  ;;  %v5623_v1 = vpop.f32.mrb[99].mxu1  ;;  %9794 = vmatprep.subr.bf16.mxu1 %v10443_v32 }
0x2841   : > { %v10122_v49 = vpack.i.bf16 %v12383_v21, %v12386_v35  ;;  %v9809_v24 = vpack.c.bf16 %v12383_v21, %v12386_v35  ;;  %v5624_v46 = vadd.f32 %v8033_v41, %v5623_v1  ;;  %v9219_v56 = vpop.f32.mrb[90].mxu0 }
0x2842   : > { %v12395_v29 = vadd.f32 %v9219_v56, %v8042_v12  ;;  %v5771_v17 = vpop.f32.mrb[91].mxu0 }
0x2843   : > { %v10102_v13 = vpack.i.bf16 %v5629_v40, %v5624_v46  ;;  %v9795_v62 = vpack.c.bf16 %v5629_v40, %v5624_v46  ;;  %v12397_v38 = vadd.f32 %v8042_v12, %v5771_v17  ;;  %v9199_v51 = vpop.f32.mrb[100].mxu1  ;;  %9810 = vmatpush3.bf16.msra.mxu0 %v9809_v24  ;;  %v8031_v12 = vld [vmem:[%s12909_s3 + $0x358] ss:$0 sm:$0xff] }
0x2844   : > { %v5639_v28 = vadd.f32 %v9199_v51, %v8033_v41  ;;  %v5633_v7 = vpop.f32.mrb[101].mxu1  ;;  %9811 = vmatprep.subr.bf16.mxu0 %v10443_v32 }
0x2845   : > { %v10127_v61 = vpack.i.bf16 %v12395_v29, %v12397_v38  ;;  %v9812_v19 = vpack.c.bf16 %v12395_v29, %v12397_v38  ;;  %v5634_v15 = vadd.f32 %v8033_v41, %v5633_v7  ;;  %v5501_v41 = vadd.f32 %v8031_v12, %v12128_v22  ;;  %v6190_v29 = vld [vmem:[%s12909_s3 + $0x370] sm:$0xff]  ;;  %v6191_v38 = vld [vmem:[%s12909_s3 + $0x378] sm:$0xff] }
0x2847   : > { %v10107_v6 = vpack.i.bf16 %v5639_v28, %v5634_v15  ;;  %v9799_v31 = vpack.c.bf16 %v5639_v28, %v5634_v15  ;;  %9813 = vmatpush3.bf16.msra.mxu0 %v9812_v19  ;;  %9797 = vmatpush3.bf16.xpose.msk.msra.mxu1 %vm11498_vm11, %v9795_v62 }
0x2848   : > { %9798 = vmatprep.subr.bf16.mxu1 %v10443_v32  ;;  %9814 = vmatprep.subr.bf16.mxu0 %v10443_v32 }
0x284f   : > { %9801 = vmatpush3.bf16.xpose.msk.msra.mxu1 %vm11498_vm11, %v9799_v31 }
0x2850   : > { %9830 = vmatprep.subr.bf16.mxu1 %v10443_v32 }
0x2856   : > { %9237 = vmatmul.mubr.msk.f32.vlgmr.msra.gmra.mrb[102].mxu1 %vm3384_vm10, %v5501_v41 }
0x2857   : > { %9293 = vmatprep.mubr.msk.f32.mxu1 %vm10445_vm5, %v10444_v3 }
0x2929   : > { %v5873_v10 = vpop.f32.mrb[102].mxu1 }
0x292a   : > { %v5877_v9 = vmul.f32 0.35355338, %v5873_v10  ;;  %v9238_v58 = vpop.f32.mrb[103].mxu1 }
0x292c   : > { %v5878_v16 = vsel %vm3483_vm12, %v5877_v9, -inf }
0x292d   : > { %5879 = vmax.xlane.f32.xlu0 %v5878_v16 }
0x2943   : > { %10093 = vrot.lane.b32.xlu0 %v10092_v2, %s10446_s10 }
0x2947   : > { %5962 = vrot.lane.b32.xlu0 %v5501_v41, %s10446_s10 }
0x294b   : > { %10113 = vrot.lane.b32.xlu0 %v10112_v34, %s10446_s10 }
0x29ba   : > { %v5880_v22 = vpop.xlane.xlu0 %5879 }
0x29bb   : > { %v5881_v4 = vsub.f32 %v5877_v9, %v5880_v22 }
0x29bd   : > { %v5882_v48 = vmul.f32 1.442695, %v5881_v4 }
0x29be   : > { %v10094_v57 = vpop.permute.xlu0 %10093 }
0x29bf   : > { %10362 = vpow2.f32 %v5882_v48  ;;  %v10096_v14 = vunpack.i.h.bf16 %v10094_v57  ;;  %v10095_v34 = vunpack.i.l.bf16 %v10094_v57 }
0x29c1   : > { %v9815_v60 = vpack.c.bf16 %v10096_v14, %v10095_v34 }
0x29c2   : > { %v5963_v36 = vpop.permute.xlu0 %5962 }
0x29c6   : > { %v10114_v50 = vpop.permute.xlu0 %10113 }
0x29c7   : > { %v10116_v5 = vunpack.i.h.bf16 %v10114_v50  ;;  %v10115_v52 = vunpack.i.l.bf16 %v10114_v50 }
0x29c9   : > { %v10363_v20 = vpop.eup %10362  ;;  %v9831_v30 = vpack.c.bf16 %v10116_v5, %v10115_v52 }
0x29ca   : > { %v5884_v2 = vsel %vm3483_vm12, %v10363_v20, 0.0 }
0x29cb   : > { %5885 = vadd.xlane.f32.xlu1 %v5884_v2  ;;  %9832 = vmatpush3.bf16.msra.mxu1 %v9831_v30 }
0x29cc   : > { %9833 = vmatprep.subr.bf16.mxu1 %v10443_v32 }
0x29dc   : > { %10098 = vrot.lane.b32.xlu1 %v10097_v45, %s10446_s10 }
0x29e0   : > { %10103 = vrot.lane.b32.xlu1 %v10102_v13, %s10446_s10 }
0x29e4   : > { %10108 = vrot.lane.b32.xlu1 %v10107_v6, %s10446_s10 }
0x2a58   : > { %v5886_v63 = vpop.xlane.xlu1 %5885 }
0x2a59   : > { %10364 = vrcp.f32 %v5886_v63  ;;  %v8071_v63 = vld [vmem:[%s12909_s3 + $0x380] ss:$0 sm:$0xff] }
0x2a5c   : > { %v10099_v40 = vpop.permute.xlu1 %10098 }
0x2a5d   : > { %v10101_v53 = vunpack.i.h.bf16 %v10099_v40  ;;  %v10100_v25 = vunpack.i.l.bf16 %v10099_v40 }
0x2a5f   : > { %v9819_v45 = vpack.c.bf16 %v10101_v53, %v10100_v25 }
0x2a60   : > { %v10104_v1 = vpop.permute.xlu1 %10103 }
0x2a61   : > { %v10106_v24 = vunpack.i.h.bf16 %v10104_v1  ;;  %v10105_v46 = vunpack.i.l.bf16 %v10104_v1 }
0x2a63   : > { %v10365_v23 = vpop.eup %10364  ;;  %v9823_v56 = vpack.c.bf16 %v10106_v24, %v10105_v46  ;;  %v6295_v24 = vld [vmem:[%s12909_s3 + $0x4a8] sm:$0xff]  ;;  %v6296_v46 = vld [vmem:[%s12909_s3 + $0x4b0] sm:$0xff] }
0x2a64   : > { %v5888_v55 = vmul.f32 %v10365_v23, %v10363_v20  ;;  %v10109_v17 = vpop.permute.xlu1 %10108 }
0x2a65   : > { %v10111_v13 = vunpack.i.h.bf16 %v10109_v17  ;;  %v10110_v62 = vunpack.i.l.bf16 %v10109_v17  ;;  %v6298_v17 = vld [vmem:[%s12909_s3 + $0x4c0] sm:$0xff] }
0x2a66   : > { %9256 = vmatmul.mubr.msk.f32.vlgmr.msra.gmra.mrb[92].mxu0 %vm855_vm4, %v5888_v55 }
0x2a67   : > { %9817 = vmatpush3.bf16.xpose.msk.msra.mxu0 %vm11498_vm11, %v9815_v60  ;;  %9274 = vmatprep.mubr.msk.f32.mxu0 %vm10445_vm5, %v10444_v3  ;;  %v9827_v51 = vpack.c.bf16 %v10111_v13, %v10110_v62  ;;  %v6375_v62 = vld [vmem:[%s12909_s3 + $0x4d0] sm:$0xff] }
0x2a68   : > { %9818 = vmatprep.subr.bf16.mxu0 %v10443_v32 }
0x2a6f   : > { %9821 = vmatpush3.bf16.xpose.msk.msra.mxu0 %vm11498_vm11, %v9819_v45 }
0x2a70   : > { %9822 = vmatprep.subr.bf16.mxu0 %v10443_v32 }
0x2a77   : > { %9825 = vmatpush3.bf16.xpose.msk.msra.mxu0 %vm11498_vm11, %v9823_v56  ;;  %v9846_v56 = vpack.c.bf16 %v6296_v46, %v6295_v24 }
0x2a78   : > { %9826 = vmatprep.subr.bf16.mxu0 %v10443_v32 }
0x2a7f   : > { %9829 = vmatpush3.bf16.xpose.msk.msra.mxu0 %vm11498_vm11, %v9827_v51  ;;  %v6376_v51 = vld [vmem:[%s12909_s3 + $0x4d8] sm:$0xff] }
0x2a80   : > { %9845 = vmatprep.subr.bf16.mxu0 %v10443_v32 }
0x2a86   : > { %9275 = vmatmul.mubr.msk.f32.vlgmr.msra.gmra.mrb[94].mxu0 %vm3384_vm10, %v5963_v36 }
0x2a87   : > { %9311 = vmatprep.mubr.msk.f32.mxu0 %vm10445_vm5, %v10444_v3  ;;  %9847 = vmatpush3.bf16.msra.mxu0 %v9846_v56 }
0x2a88   : > { %9848 = vmatprep.subr.bf16.mxu0 %v10443_v32 }
0x2b39   : > { %v5958_v28 = vpop.f32.mrb[92].mxu0 }
0x2b3a   : > { %v9257_v7 = vpop.f32.mrb[93].mxu0 }
0x2b59   : > { %v6064_v19 = vpop.f32.mrb[94].mxu0 }
0x2b5a   : > { %v6068_v15 = vmul.f32 0.35355338, %v6064_v19  ;;  %v9276_v6 = vpop.f32.mrb[95].mxu0 }
0x2b5b   : > { %v6271_v6 = vld [vmem:[%s12909_s3 + $0x410] sm:$0x3] }
0x2b5c   : > { %v6069_v31 = vsel %vm3483_vm12, %v6068_v15, -inf }
0x2b5d   : > { %6070 = vmax.xlane.f32.xlu1 %v6069_v31  ;;  %v6288_v31 = vrot.slane %v6271_v6, %v10637_v0 }
0x2b6e   : > { %10118 = vrot.lane.b32.xlu1 %v10117_v27, %s10446_s10 }
0x2b72   : > { %10123 = vrot.lane.b32.xlu1 %v10122_v49, %s10446_s10 }
0x2bea   : > { %v6071_v37 = vpop.xlane.xlu1 %6070 }
0x2beb   : > { %v6072_v12 = vsub.f32 %v6068_v15, %v6071_v37 }
0x2bed   : > { %v6073_v41 = vmul.f32 1.442695, %v6072_v12 }
0x2bee   : > { %v10119_v10 = vpop.permute.xlu1 %10118 }
0x2bef   : > { %10366 = vpow2.f32 %v6073_v41  ;;  %v10121_v9 = vunpack.i.h.bf16 %v10119_v10  ;;  %v10120_v58 = vunpack.i.l.bf16 %v10119_v10  ;;  %v6293_v41 = vrot.slane %v6271_v6, %v10642_v8 }
0x2bf1   : > { %v9834_v16 = vpack.c.bf16 %v10121_v9, %v10120_v58 }
0x2bf2   : > { %v10124_v22 = vpop.permute.xlu1 %10123 }
0x2bf3   : > { %v10126_v4 = vunpack.i.h.bf16 %v10124_v22  ;;  %v10125_v48 = vunpack.i.l.bf16 %v10124_v22  ;;  %9835 = vmatpush3.bf16.msra.mxu1 %v9834_v16  ;;  %v6377_v16 = vld [vmem:[%s12909_s3 + $0x4e0] sm:$0xff]  ;;  %v6378_v22 = vld [vmem:[%s12909_s3 + $0x4e8] sm:$0xff] }
0x2bf4   : > { %9836 = vmatprep.subr.bf16.mxu1 %v10443_v32 }
0x2bf5   : > { %v9837_v39 = vpack.c.bf16 %v10126_v4, %v10125_v48  ;;  %v9855_v4 = vpack.c.bf16 %v6378_v22, %v6377_v16  ;;  %v6532_v48 = vld [vmem:[%s12909_s3 + $0x418] sm:$0xff] }
0x2bf6   : > { %v7063_v16 = vld [vmem:[%s12909_s3 + $0x478] sm:$0xff] }
0x2bf7   : > { %9838 = vmatpush3.bf16.msra.mxu1 %v9837_v39  ;;  %v6533_v39 = vld [vmem:[%s12909_s3 + $0x420] sm:$0xff] }
0x2bf8   : > { %9839 = vmatprep.subr.bf16.mxu1 %v10443_v32 }
0x2bf9   : > { %v10367_v54 = vpop.eup %10366 }
0x2bfa   : > { %v6075_v27 = vsel %vm3483_vm12, %v10367_v54, 0.0 }
0x2bfb   : > { %6076 = vadd.xlane.f32.xlu0 %v6075_v27  ;;  %v6454_v27 = vld [vmem:[%s12909_s3 + $0x4f8] sm:$0xff] }
0x2c11   : > { %10128 = vrot.lane.b32.xlu0 %v10127_v61, %s10446_s10  ;;  %v9843_v61 = vpack.c.bf16 %v6191_v38, %v6190_v29 }
0x2c88   : > { %v6077_v21 = vpop.xlane.xlu0 %6076 }
0x2c89   : > { %10368 = vrcp.f32 %v6077_v21  ;;  %v6455_v21 = vld [vmem:[%s12909_s3 + $0x500] sm:$0xff] }
0x2c8c   : > { %v10129_v35 = vpop.permute.xlu0 %10128 }
0x2c8d   : > { %v10131_v49 = vunpack.i.h.bf16 %v10129_v35  ;;  %v10130_v57 = vunpack.i.l.bf16 %v10129_v35  ;;  %v9858_v35 = vpack.c.bf16 %v6455_v21, %v6454_v27  ;;  %v6458_v27 = vld [vmem:[%s12909_s3 + $0x518] sm:$0x1] }
0x2c8f   : > { %v9840_v36 = vpack.c.bf16 %v10131_v49, %v10130_v57  ;;  %v6299_v49 = vld [vmem:[%s12909_s3 + $0x4c8] sm:$0x1] }
0x2c91   : > { %9841 = vmatpush3.bf16.msra.mxu1 %v9840_v36  ;;  %v6534_v36 = vld [vmem:[%s12909_s3 + $0x428] sm:$0xff] }
0x2c92   : > { %9842 = vmatprep.subr.bf16.mxu1 %v10443_v32 }
0x2c93   : > { %v10369_v50 = vpop.eup %10368 }
0x2c94   : > { %v6079_v5 = vmul.f32 %v10369_v50, %v10367_v54  ;;  %v9863_v54 = vpack.c.bf16 %v6533_v39, %v6532_v48  ;;  %v6535_v50 = vld [vmem:[%s12909_s3 + $0x430] sm:$0xff]  ;;  %v7465_v39 = vld [vmem:[%s12909_s3 + $0x520] sm:$0xff] }
0x2c96   : > { %9294 = vmatmul.mubr.msk.f32.vlgmr.msra.gmra.mrb[104].mxu1 %vm855_vm4, %v6079_v5 }
0x2c97   : > { %9300 = vmatprep.mubr.msk.f32.mxu1 %vm10445_vm5, %v10444_v3  ;;  %9844 = vmatpush3.bf16.msra.mxu1 %v9843_v61  ;;  %v9867_v61 = vpack.c.bf16 %v6535_v50, %v6534_v36  ;;  %v7467_v36 = vld [vmem:[%s12909_s3 + $0x530] sm:$0xff]  ;;  %v7468_v50 = vld [vmem:[%s12909_s3 + $0x538] sm:$0xff] }
0x2c98   : > { %9851 = vmatprep.subr.bf16.mxu1 %v10443_v32 }
0x2d69   : > { %v6181_v52 = vpop.f32.mrb[104].mxu1 }
0x2d6a   : > { %6186 = vrot.lane.b32.xlu1 %v6181_v52, %s10447_s21  ;;  %v9295_v20 = vpop.f32.mrb[105].mxu1  ;;  %s247_s21 = scalar_lea.vmem %s12910_s4, %s8128_s8 }
0x2d6b   : > { %v6379_v20 = vld [vmem:[%s12909_s3 + $0x4f0] sm:$0x1] }
0x2ddc   : > { %v6187_v30 = vpop.permute.xlu1 %6186 }
0x2ddd   : > { %v6189_v2 = vsel %vm3384_vm10, %v5958_v28, %v6187_v30  ;;  %v9852_v28 = vpack.c.bf16 %v6376_v51, %v6375_v62 }
0x2dde   : > { %9301 = vmatmul.mubr.msk.f32.vlgmr.msra.gmra.mrb[106].mxu1 %vm709_vm2, %v6189_v2 }
0x2ddf   : > { %9322 = vmatprep.mubr.msk.f32.mxu1 %vm10445_vm5, %v10444_v3  ;;  %9853 = vmatpush3.bf16.msra.mxu1 %v9852_v28 }
0x2de0   : > { %9854 = vmatprep.subr.bf16.mxu1 %v10443_v32 }
0x2de3   : > { %9856 = vmatpush3.bf16.msra.mxu1 %v9855_v4  ;;  %v7064_v4 = vld [vmem:[%s12909_s3 + $0x480] sm:$0xff] }
0x2de4   : > { %9864 = vmatprep.subr.bf16.mxu1 %v9863_v54  ;;  %v9891_v48 = vpack.c.bf16 %v7064_v4, %v7063_v16 }
0x2eb1   : > { %v6266_v14 = vpop.f32.mrb[106].mxu1 }
0x2eb2   : > { %v6267_v34 = vadd.f32 %v8071_v63, %v6266_v14  ;;  %v9302_v23 = vpop.f32.mrb[107].mxu1 }
0x2eb4   : > { %v6270_v55 = vadd.f32 %v6267_v34, %v11860_v11  ;;  %v6297_v11 = vld [vmem:[%s12909_s3 + $0x4b8] sm:$0xff] }
0x2eb5   : > { %v9849_v13 = vpack.c.bf16 %v6298_v17, %v6297_v11  ;;  %v8076_v34 = vld [vmem:[%s12909_s3 + $0x438] ss:$0 sm:$0xff] }
0x2eb6   : > { %v6272_v60 = vsel %vm2993_vm9, %v6270_v55, 0.0 }
0x2eb7   : > { %6273 = vadd.xlane.f32.xlu0 %v6272_v60  ;;  %9850 = vmatpush3.bf16.msra.mxu0 %v9849_v13 }
0x2eb8   : > { %9857 = vmatprep.subr.bf16.mxu0 %v10443_v32 }
0x2f44   : > { %v6274_v40 = vpop.xlane.xlu0 %6273 }
0x2f45   : > { %v6275_v53 = vmul.f32 0.03125, %v6274_v40 }
0x2f47   : > { %v6276_v25 = vsub.f32 %v6270_v55, %v6275_v53 }
0x2f49   : > { %v6277_v45 = vmul.f32 %v6276_v25, %v6276_v25 }
0x2f4b   : > { %v6278_v1 = vsel %vm2993_vm9, %v6277_v45, 0.0 }
0x2f4c   : > { %6279 = vadd.xlane.f32.xlu1 %v6278_v1 }
0x2fd9   : > { %v6280_v7 = vpop.xlane.xlu1 %6279 }
0x2fda   : > { %v6281_v19 = vmul.f32 0.03125, %v6280_v7 }
0x2fdc   : > { %v6282_v15 = vadd.f32 1e-05, %v6281_v19 }
0x2fde   : > { %10370 = vrsqrt.f32 %v6282_v15 }
0x2fe8   : > { %v10371_v37 = vpop.eup %10370 }
0x2fe9   : > { %v6284_v12 = vmul.f32 %v10371_v37, %v6276_v25 }
0x2feb   : > { %v6289_v10 = vmul.f32 %v6288_v31, %v6284_v12 }
0x2fed   : > { %v12515_v9 = vadd.f32 %v6293_v41, %v6289_v10  ;;  %v7271_v41 = vld [vmem:[%s12909_s3 + $0x490] sm:$0xf]  ;;  %v7061_v10 = vld [vmem:[%s12909_s3 + $0x468] sm:$0xff] }
0x2fef   : > { %v6301_v58 = vrot.slane %v12515_v9, 1 }
0x2ff1   : > { %9312 = vmatmul.mubr.msk.f32.vlgmr.msra.gmra.mrb[96].mxu0 %vm417_vm1, %v6301_v58  ;;  %v7062_v58 = vld [vmem:[%s12909_s3 + $0x470] sm:$0xff] }
0x2ff2   : > { %9333 = vmatprep.mubr.msk.f32.mxu0 %vm10445_vm5, %v10444_v3  ;;  %9859 = vmatpush3.bf16.msra.mxu0 %v9858_v35  ;;  %v9887_v22 = vpack.c.bf16 %v7062_v58, %v7061_v10 }
0x2ff3   : > { %9860 = vmatprep.subr.bf16.mxu0 %v10443_v32 }
0x30c4   : > { %v6370_v57 = vpop.f32.mrb[96].mxu0 }
0x30c5   : > { %v6371_v5 = vadd.f32 %v6370_v57, %v6299_v49  ;;  %v9313_v29 = vpop.f32.mrb[97].mxu0 }
0x30c6   : > { %v7543_v29 = vld [vmem:[%s12909_s3 + $0x548] sm:$0xff] }
0x30c7   : > { %v6374_v38 = vmax.f32 %v6371_v5, 0.0  ;;  %v9923_v5 = vpack.c.bf16 %v7468_v50, %v7467_v36 }
0x30c9   : > { %9323 = vmatmul.mubr.msk.f32.vlgmr.msra.gmra.mrb[108].mxu1 %vm417_vm1, %v6374_v38  ;;  %v7544_v38 = vld [vmem:[%s12909_s3 + $0x550] sm:$0xff] }
0x30ca   : > { %9866 = vmatpush3.bf16.msra.mxu1 %v9863_v54  ;;  %9344 = vmatprep.mubr.msk.f32.mxu1 %vm417_vm1, %v12249_v59  ;;  %v6457_v59 = vld [vmem:[%s12909_s3 + $0x510] sm:$0xff]  ;;  %v7466_v54 = vld [vmem:[%s12909_s3 + $0x528] sm:$0xff] }
0x30cb   : > { %9868 = vmatprep.subr.bf16.mxu1 %v9867_v61  ;;  %v9920_v35 = vpack.c.bf16 %v7466_v54, %v7465_v39 }
0x30ce   : > { %9870 = vmatpush3.bf16.msra.mxu1 %v9867_v61 }
0x30d1   : > { %9345 = vmatmul.mubr.msk.f32.vlgmr.msra.gmra.mrb[110].mxu1 %vm417_vm1, %v12246_v43  ;;  %v6456_v43 = vld [vmem:[%s12909_s3 + $0x508] sm:$0xff] }
0x30d2   : > { %9347 = vmatprep.mubr.msk.f32.mxu1 %vm417_vm1, %v12268_v26  ;;  %v9861_v26 = vpack.c.bf16 %v6457_v59, %v6456_v43  ;;  %v9926_v43 = vpack.c.bf16 %v7544_v38, %v7543_v29 }
0x30d4   : > { %9862 = vmatpush3.bf16.msra.mxu0 %v9861_v26 }
0x30d5   : > { %9348 = vmatmul.mubr.msk.f32.gmra.mrb[112].mxu1 %vm417_vm1, %v12280_v47  ;;  %v6646_v47 = vld [vmem:[%s12909_s3 + $0x448] sm:$0xff] }
0x30d6   : > { %9350 = vmatprep.mubr.msk.f32.mxu1 %vm417_vm1, %v12298_v44 }
0x30d9   : > { %9351 = vmatmul.mubr.msk.f32.gmra.mrb[114].mxu1 %vm417_vm1, %v12294_v42  ;;  %v6647_v42 = vld [vmem:[%s12909_s3 + $0x450] sm:$0xff] }
0x30da   : > { %9353 = vmatprep.mubr.msk.f32.mxu1 %vm417_vm1, %v12320_v18  ;;  %v9871_v44 = vpack.c.bf16 %v6647_v42, %v6646_v47  ;;  %v6649_v18 = vld [vmem:[%s12909_s3 + $0x460] sm:$0xff] }
0x30dc   : > { %9872 = vmatprep.subr.bf16.mxu0 %v9871_v44  ;;  %9880 = vmatprep.subr.bf16.mxu1 %v9871_v44 }
0x30dd   : > { %9354 = vmatmul.mubr.msk.f32.gmra.mrb[116].mxu1 %vm417_vm1, %v12316_v33  ;;  %v6648_v33 = vld [vmem:[%s12909_s3 + $0x458] sm:$0xff] }
0x30de   : > { %9882 = vmatpush3.bf16.msra.mxu1 %v9871_v44  ;;  %v9875_v52 = vpack.c.bf16 %v6649_v18, %v6648_v33 }
0x30e0   : > { %9884 = vmatprep.subr.bf16.mxu1 %v9875_v52 }
0x30e2   : > { %9886 = vmatpush3.bf16.msra.mxu1 %v9875_v52 }
0x30e3   : > { %9416 = vmatprep.subr.mxu1 %v10444_v3 }
0x319c   : > { %v6449_v30 = vpop.f32.mrb[108].mxu1 }
0x319d   : > { %v6450_v2 = vadd.f32 %v6449_v30, %v6379_v20  ;;  %v9324_v63 = vpop.f32.mrb[109].mxu1 }
0x319f   : > { %v6453_v14 = vmax.f32 %v6450_v2, 0.0 }
0x31a1   : > { %9334 = vmatmul.mubr.msk.f32.vlgmr.msra.gmra.mrb[98].mxu0 %vm417_vm1, %v6453_v14 }
0x31a2   : > { %9874 = vmatpush3.bf16.msra.mxu0 %v9871_v44 }
0x31a3   : > { %9876 = vmatprep.subr.bf16.mxu0 %v9875_v52 }
0x31a4   : > { %v9346_v23 = vpop.f32.mrb[110].mxu1 }
0x31a5   : > { %v12592_v55 = vadd.f32 %v9346_v23, %v8076_v34  ;;  %v6607_v60 = vpop.f32.mrb[111].mxu1 }
0x31a6   : > { %v12594_v40 = vadd.f32 %v8076_v34, %v6607_v60  ;;  %9878 = vmatpush3.bf16.msra.mxu0 %v9875_v52 }
0x31a7   : > { %v6780_v45 = vmul.f32 %v12592_v55, %v12592_v55  ;;  %9888 = vmatprep.subr.bf16.mxu0 %v9887_v22 }
0x31a8   : > { %v6779_v53 = vmul.f32 %v12594_v40, %v12594_v40  ;;  %v9349_v25 = vpop.f32.mrb[112].mxu1  ;;  %9364 = vmatprep.mubr.msk.f32.mxu0 %vm417_vm1, %v12594_v40 }
0x31a9   : > { %v12602_v1 = vadd.f32 %v9349_v25, %v8076_v34  ;;  %v6617_v24 = vpop.f32.mrb[113].mxu1  ;;  %9365 = vmatmul.mubr.msk.f32.vlgmr.msra.gmra.mrb[100].mxu0 %vm417_vm1, %v12592_v55 }
0x31aa   : > { %v12606_v46 = vadd.f32 %v8076_v34, %v6617_v24  ;;  %9384 = vmatprep.mubr.msk.f32.mxu1 %vm417_vm1, %v6779_v53  ;;  %9890 = vmatpush3.bf16.msra.mxu0 %v9887_v22 }
0x31ab   : > { %9385 = vmatmul.mubr.msk.f32.vlgmr.msra.gmra.mrb[118].mxu1 %vm417_vm1, %v6780_v45  ;;  %v6782_v17 = vmul.f32 %v12602_v1, %v12602_v1  ;;  %9892 = vmatprep.subr.bf16.mxu0 %v9891_v48 }
0x31ac   : > { %v6781_v56 = vmul.f32 %v12606_v46, %v12606_v46  ;;  %v9352_v11 = vpop.f32.mrb[114].mxu1  ;;  %9367 = vmatprep.mubr.msk.f32.mxu0 %vm417_vm1, %v12606_v46  ;;  %9417 = vmatpush3.msk.msra.mxu1 %vm7276_vm13, %v7271_v41 }
0x31ad   : > { %v12616_v13 = vadd.f32 %v9352_v11, %v8076_v34  ;;  %v6627_v62 = vpop.f32.mrb[115].mxu1  ;;  %9368 = vmatmul.mubr.msk.f32.gmra.mrb[102].mxu0 %vm417_vm1, %v12602_v1  ;;  %9919 = vmatprep.subr.bf16.mxu1 %v10443_v32 }
0x31ae   : > { %v12620_v51 = vadd.f32 %v8076_v34, %v6627_v62  ;;  %9387 = vmatprep.mubr.msk.f32.mxu1 %vm417_vm1, %v6781_v56  ;;  %9894 = vmatpush3.bf16.msra.mxu0 %v9891_v48 }
0x31af   : > { %9388 = vmatmul.mubr.msk.f32.gmra.mrb[120].mxu1 %vm417_vm1, %v6782_v17  ;;  %v6784_v19 = vmul.f32 %v12616_v13, %v12616_v13 }
0x31b0   : > { %v6783_v28 = vmul.f32 %v12620_v51, %v12620_v51  ;;  %v9355_v7 = vpop.f32.mrb[116].mxu1  ;;  %9370 = vmatprep.mubr.msk.f32.mxu0 %vm417_vm1, %v12620_v51 }
0x31b1   : > { %v12630_v15 = vadd.f32 %v9355_v7, %v8076_v34  ;;  %v6637_v6 = vpop.f32.mrb[117].mxu1  ;;  %9371 = vmatmul.mubr.msk.f32.gmra.mrb[104].mxu0 %vm417_vm1, %v12616_v13 }
0x31b2   : > { %v12634_v31 = vadd.f32 %v8076_v34, %v6637_v6  ;;  %9390 = vmatprep.mubr.msk.f32.mxu1 %vm417_vm1, %v6783_v28  ;;  %v6932_v6 = vld [vmem:[%s12909_s3 + $0x440] sm:$0x3] }
0x31b3   : > { %9391 = vmatmul.mubr.msk.f32.gmra.mrb[122].mxu1 %vm417_vm1, %v6784_v19  ;;  %v6786_v12 = vmul.f32 %v12630_v15, %v12630_v15  ;;  %v6968_v39 = vrot.slane %v6932_v6, %v10637_v0  ;;  %v6980_v36 = vrot.slane %v6932_v6, %v10642_v8 }
0x31b4   : > { %v6785_v37 = vmul.f32 %v12634_v31, %v12634_v31  ;;  %9373 = vmatprep.mubr.msk.f32.mxu0 %vm417_vm1, %v12634_v31 }
0x31b5   : > { %9374 = vmatmul.mubr.msk.f32.gmra.mrb[106].mxu0 %vm417_vm1, %v12630_v15 }
0x31b6   : > { %9393 = vmatprep.mubr.msk.f32.mxu1 %vm417_vm1, %v6785_v37 }
0x31b7   : > { %9394 = vmatmul.mubr.msk.f32.gmra.mrb[124].mxu1 %vm417_vm1, %v6786_v12 }
0x31b8   : > { %9418 = vmatprep.mubr.msk.f32.mxu1 %vm10445_vm5, %v10444_v3 }
0x3274   : > { %v6528_v21 = vpop.f32.mrb[98].mxu0 }
0x3275   : > { %v6529_v49 = vadd.f32 %v6528_v21, %v6458_v27  ;;  %v9335_v57 = vpop.f32.mrb[99].mxu0 }
0x3277   : > { %9419 = vmatmul.mubr.msk.f32.vlgmr.msra.gmra.mrb[126].mxu1 %vm7272_vm14, %v6529_v49 }
0x3278   : > { %9921 = vmatpush3.bf16.msra.mxu1 %v9920_v35  ;;  %9448 = vmatprep.mubr.msk.f32.mxu1 %vm10445_vm5, %v10444_v3 }
0x3279   : > { %9922 = vmatprep.subr.bf16.mxu1 %v10443_v32 }
0x327c   : > { %v9366_v61 = vpop.f32.mrb[100].mxu0  ;;  %9924 = vmatpush3.bf16.msra.mxu1 %v9923_v5 }
0x327d   : > { %v6917_v59 = vmul.f32 %v9366_v61, %v9366_v61  ;;  %v6740_v26 = vpop.f32.mrb[101].mxu0  ;;  %9925 = vmatprep.subr.bf16.mxu1 %v10443_v32  ;;  %v6934_v48 = vsub.f32 %v12592_v55, %v9366_v61 }
0x327e   : > { %v6916_v47 = vmul.f32 %v6740_v26, %v6740_v26  ;;  %v9386_v42 = vpop.f32.mrb[118].mxu1  ;;  %v6933_v21 = vsub.f32 %v12594_v40, %v6740_v26 }
0x327f   : > { %v6925_v44 = vsub.f32 %v9386_v42, %v6917_v59  ;;  %v6877_v33 = vpop.f32.mrb[119].mxu1  ;;  %9449 = vmatmul.mubr.msk.f32.vlgmr.msra.gmra.mrb[128].mxu1 %vm417_vm1, %v12515_v9 }
0x3280   : > { %v6924_v18 = vsub.f32 %v6877_v33, %v6916_v47  ;;  %v9369_v52 = vpop.f32.mrb[102].mxu0  ;;  %9927 = vmatpush3.bf16.msra.mxu1 %v9926_v43  ;;  %9467 = vmatprep.mubr.msk.f32.mxu1 %vm10445_vm5, %v10444_v3 }
0x3281   : > { %v6942_v20 = vadd.f32 1e-06, %v6925_v44  ;;  %v6919_v30 = vmul.f32 %v9369_v52, %v9369_v52  ;;  %v6750_v2 = vpop.f32.mrb[103].mxu0  ;;  %9928 = vmatprep.subr.bf16.mxu1 %v10443_v32  ;;  %v6936_v38 = vsub.f32 %v12602_v1, %v9369_v52 }
0x3282   : > { %v6941_v63 = vadd.f32 1e-06, %v6924_v18  ;;  %v6918_v14 = vmul.f32 %v6750_v2, %v6750_v2  ;;  %v9389_v34 = vpop.f32.mrb[120].mxu1  ;;  %v6935_v43 = vsub.f32 %v12606_v46, %v6750_v2 }
0x3283   : > { %10372 = vrsqrt.f32 %v6942_v20  ;;  %v6927_v23 = vsub.f32 %v9389_v34, %v6919_v30  ;;  %v6887_v60 = vpop.f32.mrb[121].mxu1 }
0x3284   : > { %10374 = vrsqrt.f32 %v6941_v63  ;;  %v6926_v53 = vsub.f32 %v6887_v60, %v6918_v14  ;;  %v9372_v9 = vpop.f32.mrb[104].mxu0 }
0x3285   : > { %v6944_v25 = vadd.f32 1e-06, %v6927_v23  ;;  %v6921_v45 = vmul.f32 %v9372_v9, %v9372_v9  ;;  %v6760_v24 = vpop.f32.mrb[105].mxu0  ;;  %v6938_v33 = vsub.f32 %v12616_v13, %v9372_v9 }
0x3286   : > { %v6943_v56 = vadd.f32 1e-06, %v6926_v53  ;;  %v6920_v11 = vmul.f32 %v6760_v24, %v6760_v24  ;;  %v9392_v17 = vpop.f32.mrb[122].mxu1  ;;  %v6937_v1 = vsub.f32 %v12620_v51, %v6760_v24 }
0x3287   : > { %10376 = vrsqrt.f32 %v6944_v25  ;;  %v6929_v62 = vsub.f32 %v9392_v17, %v6921_v45  ;;  %v6897_v28 = vpop.f32.mrb[123].mxu1 }
0x3288   : > { %10378 = vrsqrt.f32 %v6943_v56  ;;  %v6928_v7 = vsub.f32 %v6897_v28, %v6920_v11  ;;  %v9375_v19 = vpop.f32.mrb[106].mxu0 }
0x3289   : > { %v6946_v37 = vadd.f32 1e-06, %v6929_v62  ;;  %v6923_v12 = vmul.f32 %v9375_v19, %v9375_v19  ;;  %v6770_v41 = vpop.f32.mrb[107].mxu0  ;;  %v6940_v13 = vsub.f32 %v12630_v15, %v9375_v19 }
0x328a   : > { %v6945_v10 = vadd.f32 1e-06, %v6928_v7  ;;  %v6922_v58 = vmul.f32 %v6770_v41, %v6770_v41  ;;  %v9395_v16 = vpop.f32.mrb[124].mxu1  ;;  %v6939_v45 = vsub.f32 %v12634_v31, %v6770_v41 }
0x328b   : > { %10380 = vrsqrt.f32 %v6946_v37  ;;  %v6931_v22 = vsub.f32 %v9395_v16, %v6923_v12  ;;  %v6907_v4 = vpop.f32.mrb[125].mxu1 }
0x328c   : > { %10382 = vrsqrt.f32 %v6945_v10  ;;  %v6930_v54 = vsub.f32 %v6907_v4, %v6922_v58 }
0x328d   : > { %v10373_v27 = vpop.eup %10372  ;;  %v6948_v35 = vadd.f32 1e-06, %v6931_v22 }
0x328e   : > { %v10375_v49 = vpop.eup %10374  ;;  %v6958_v57 = vmul.f32 %v10373_v27, %v6934_v48  ;;  %v6947_v50 = vadd.f32 1e-06, %v6930_v54 }
0x328f   : > { %v6957_v5 = vmul.f32 %v10375_v49, %v6933_v21  ;;  %10384 = vrsqrt.f32 %v6948_v35 }
0x3290   : > { %v6970_v29 = vmul.f32 %v6968_v39, %v6958_v57  ;;  %10386 = vrsqrt.f32 %v6947_v50 }
0x3291   : > { %v10377_v55 = vpop.eup %10376  ;;  %v6969_v61 = vmul.f32 %v6968_v39, %v6957_v5 }
0x3292   : > { %v10379_v59 = vpop.eup %10378  ;;  %v12705_v47 = vadd.f32 %v6980_v36, %v6970_v29  ;;  %v6960_v40 = vmul.f32 %v10377_v55, %v6936_v38 }
0x3293   : > { %v12707_v26 = vadd.f32 %v6980_v36, %v6969_v61  ;;  %v6959_v42 = vmul.f32 %v10379_v59, %v6935_v43 }
0x3294   : > { %v6998_v8 = vmul.f32 0.044715, %v12705_v47  ;;  %v6972_v44 = vmul.f32 %v6968_v39, %v6960_v40 }
0x3295   : > { %v10381_v18 = vpop.eup %10380  ;;  %v6971_v20 = vmul.f32 %v6968_v39, %v6959_v42  ;;  %v6997_v52 = vmul.f32 0.044715, %v12707_v26 }
0x3296   : > { %v10383_v30 = vpop.eup %10382  ;;  %v12713_v46 = vadd.f32 %v6980_v36, %v6972_v44  ;;  %v6962_v2 = vmul.f32 %v10381_v18, %v6938_v33  ;;  %v7006_v63 = vmul.f32 %v6998_v8, %v12705_v47 }
0x3297   : > { %v12716_v14 = vadd.f32 %v6980_v36, %v6971_v20  ;;  %v6961_v34 = vmul.f32 %v10383_v30, %v6937_v1  ;;  %v7005_v23 = vmul.f32 %v6997_v52, %v12707_v26 }
0x3298   : > { %v6974_v60 = vmul.f32 %v6968_v39, %v6962_v2  ;;  %v7014_v53 = vmul.f32 %v7006_v63, %v12705_v47  ;;  %v7000_v51 = vmul.f32 0.044715, %v12713_v46  ;;  %v6989_v2 = vmul.f32 0.5, %v12707_v26 }
0x3299   : > { %v10385_v9 = vpop.eup %10384  ;;  %v6973_v25 = vmul.f32 %v6968_v39, %v6961_v34  ;;  %v7013_v24 = vmul.f32 %v7005_v23, %v12707_v26  ;;  %v6999_v56 = vmul.f32 0.044715, %v12716_v14  ;;  %v6990_v34 = vmul.f32 0.5, %v12705_v47 }
0x329a   : > { %v10387_v11 = vpop.eup %10386  ;;  %v12725_v17 = vadd.f32 %v6980_v36, %v6974_v60  ;;  %v6964_v62 = vmul.f32 %v10385_v9, %v6940_v13  ;;  %v7022_v28 = vadd.f32 %v7014_v53, %v12705_v47  ;;  %v7008_v15 = vmul.f32 %v7000_v51, %v12713_v46 }
0x329b   : > { %v12729_v7 = vadd.f32 %v6980_v36, %v6973_v25  ;;  %v6963_v19 = vmul.f32 %v10387_v11, %v6939_v45  ;;  %v7021_v6 = vadd.f32 %v7013_v24, %v12707_v26  ;;  %v7007_v37 = vmul.f32 %v6999_v56, %v12716_v14 }
0x329c   : > { %v6976_v31 = vmul.f32 %v6968_v39, %v6964_v62  ;;  %v7030_v12 = vmul.f32 0.7978846, %v7022_v28  ;;  %v7016_v41 = vmul.f32 %v7008_v15, %v12713_v46  ;;  %v7002_v21 = vmul.f32 0.044715, %v12725_v17 }
0x329d   : > { %v6975_v10 = vmul.f32 %v6968_v39, %v6963_v19  ;;  %v7029_v58 = vmul.f32 0.7978846, %v7021_v6  ;;  %v7015_v16 = vmul.f32 %v7007_v37, %v12716_v14  ;;  %v7001_v48 = vmul.f32 0.044715, %v12729_v7 }
0x329e   : > { %v12735_v22 = vadd.f32 %v6980_v36, %v6976_v31  ;;  %10388 = vtanh.f32 %v7030_v12  ;;  %v7024_v4 = vadd.f32 %v7016_v41, %v12713_v46  ;;  %v7010_v50 = vmul.f32 %v7002_v21, %v12725_v17 }
0x329f   : > { %v6987_v54 = vadd.f32 %v6980_v36, %v6975_v10  ;;  %10390 = vtanh.f32 %v7029_v58  ;;  %v7023_v27 = vadd.f32 %v7015_v16, %v12716_v14  ;;  %v7009_v49 = vmul.f32 %v7001_v48, %v12729_v7  ;;  %v7546_v58 = vld [vmem:[%s12909_s3 + $0x560] sm:$0xff] }
0x32a0   : > { %v7032_v35 = vmul.f32 0.7978846, %v7024_v4  ;;  %v7004_v39 = vmul.f32 0.044715, %v12735_v22  ;;  %v7018_v36 = vmul.f32 %v7010_v50, %v12725_v17  ;;  %v6991_v9 = vmul.f32 0.5, %v12716_v14  ;;  %v7547_v4 = vld [vmem:[%s12909_s3 + $0x568] sm:$0xff] }
0x32a1   : > { %v7031_v57 = vmul.f32 0.7978846, %v7023_v27  ;;  %v7003_v5 = vmul.f32 0.044715, %v6987_v54  ;;  %v7017_v29 = vmul.f32 %v7009_v49, %v12729_v7  ;;  %v6992_v45 = vmul.f32 0.5, %v12713_v46  ;;  %v7550_v27 = vld [vmem:[%s12909_s3 + $0x580] sm:$0xff] }
0x32a2   : > { %10392 = vtanh.f32 %v7032_v35  ;;  %v7012_v38 = vmul.f32 %v7004_v39, %v12735_v22  ;;  %v7026_v59 = vadd.f32 %v7018_v36, %v12725_v17  ;;  %v6993_v11 = vmul.f32 0.5, %v12729_v7  ;;  %v7350_v49 = vld [vmem:[%s12909_s3 + $0x498] sm:$0xff] }
0x32a3   : > { %10394 = vtanh.f32 %v7031_v57  ;;  %v7011_v55 = vmul.f32 %v7003_v5, %v6987_v54  ;;  %v7025_v61 = vadd.f32 %v7017_v29, %v12729_v7  ;;  %v6994_v15 = vmul.f32 0.5, %v12725_v17  ;;  %v7545_v17 = vld [vmem:[%s12909_s3 + $0x558] sm:$0xff]  ;;  %v7469_v5 = vld [vmem:[%s12909_s3 + $0x540] sm:$0x1] }
0x32a4   : > { %v7020_v43 = vmul.f32 %v7012_v38, %v12735_v22  ;;  %v7034_v44 = vmul.f32 0.7978846, %v7026_v59  ;;  %v6995_v31 = vmul.f32 0.5, %v6987_v54  ;;  %v6996_v10 = vmul.f32 0.5, %v12735_v22 }
0x32a5   : > { %v7019_v40 = vmul.f32 %v7011_v55, %v6987_v54  ;;  %v7033_v42 = vmul.f32 0.7978846, %v7025_v61  ;;  %v9929_v16 = vpack.c.bf16 %v7546_v58, %v7545_v17 }
0x32a6   : > { %v7028_v8 = vadd.f32 %v7020_v43, %v12735_v22  ;;  %v7548_v22 = vld [vmem:[%s12909_s3 + $0x570] sm:$0xff] }
0x32a7   : > { %v7027_v33 = vadd.f32 %v7019_v40, %v6987_v54  ;;  %10396 = vtanh.f32 %v7033_v42  ;;  %9930 = vmatpush3.bf16.msra.mxu1 %v9929_v16  ;;  %v9932_v48 = vpack.c.bf16 %v7548_v22, %v7547_v4  ;;  %v7549_v54 = vld [vmem:[%s12909_s3 + $0x578] sm:$0xff] }
0x32a8   : > { %v10389_v18 = vpop.eup %10388  ;;  %v7036_v20 = vmul.f32 0.7978846, %v7028_v8  ;;  %10398 = vtanh.f32 %v7034_v44  ;;  %9931 = vmatprep.subr.bf16.mxu1 %v10443_v32  ;;  %v9935_v21 = vpack.c.bf16 %v7550_v27, %v7549_v54 }
0x32a9   : > { %v10391_v1 = vpop.eup %10390  ;;  %v7046_v52 = vadd.f32 1.0, %v10389_v18  ;;  %v7035_v30 = vmul.f32 0.7978846, %v7027_v33 }
0x32aa   : > { %v7045_v63 = vadd.f32 1.0, %v10391_v1  ;;  %10400 = vtanh.f32 %v7036_v20 }
0x32ab   : > { %10402 = vtanh.f32 %v7035_v30  ;;  %v7054_v53 = vmul.f32 %v7046_v52, %v6990_v34  ;;  %9933 = vmatpush3.bf16.msra.mxu1 %v9932_v48 }
0x32ac   : > { %v10393_v23 = vpop.eup %10392  ;;  %v7053_v60 = vmul.f32 %v7045_v63, %v6989_v2  ;;  %9934 = vmatprep.subr.bf16.mxu1 %v10443_v32 }
0x32ad   : > { %v10395_v13 = vpop.eup %10394  ;;  %v7048_v51 = vadd.f32 1.0, %v10393_v23 }
0x32ae   : > { %9404 = vmatprep.mubr.msk.f32.mxu0 %vm417_vm1, %v7053_v60  ;;  %v7047_v25 = vadd.f32 1.0, %v10395_v13 }
0x32af   : > { %9405 = vmatmul.mubr.msk.f32.vlgmr.msra.gmra.mrb[108].mxu0 %vm417_vm1, %v7054_v53  ;;  %v7056_v24 = vmul.f32 %v7048_v51, %v6992_v45  ;;  %9936 = vmatpush3.bf16.msra.mxu1 %v9935_v21 }
0x32b0   : > { %v7055_v26 = vmul.f32 %v7047_v25, %v6991_v9 }
0x32b1   : > { %v10397_v56 = vpop.eup %10396 }
0x32b2   : > { %9407 = vmatprep.mubr.msk.f32.mxu0 %vm417_vm1, %v7055_v26  ;;  %v10399_v47 = vpop.eup %10398  ;;  %v7049_v62 = vadd.f32 1.0, %v10397_v56 }
0x32b3   : > { %9408 = vmatmul.mubr.msk.f32.gmra.mrb[110].mxu0 %vm417_vm1, %v7056_v24  ;;  %v7050_v14 = vadd.f32 1.0, %v10399_v47 }
0x32b4   : > { %v10401_v28 = vpop.eup %10400  ;;  %v7057_v6 = vmul.f32 %v7049_v62, %v6993_v11 }
0x32b5   : > { %v10403_v19 = vpop.eup %10402  ;;  %v7058_v37 = vmul.f32 %v7050_v14, %v6994_v15  ;;  %v7052_v12 = vadd.f32 1.0, %v10401_v28 }
0x32b6   : > { %v7051_v46 = vadd.f32 1.0, %v10403_v19  ;;  %9410 = vmatprep.mubr.msk.f32.mxu0 %vm417_vm1, %v7057_v6 }
0x32b7   : > { %9411 = vmatmul.mubr.msk.f32.gmra.mrb[112].mxu0 %vm417_vm1, %v7058_v37  ;;  %v7060_v7 = vmul.f32 %v7052_v12, %v6996_v10 }
0x32b8   : > { %v7059_v41 = vmul.f32 %v7051_v46, %v6995_v31 }
0x32ba   : > { %9413 = vmatprep.mubr.msk.f32.mxu0 %vm417_vm1, %v7059_v41 }
0x32bb   : > { %9414 = vmatmul.mubr.msk.f32.gmra.mrb[114].mxu0 %vm417_vm1, %v7060_v7 }
0x334a   : > { %v7346_v35 = vpop.f32.mrb[126].mxu1 }
0x334b   : > { %v12790_v39 = vrot.slane %v7346_v35, %v10637_v0  ;;  %v9420_v57 = vpop.f32.mrb[127].mxu1  ;;  %v8101_v0 = vld [vmem:[%s12909_s3 + $0x488] ss:$0 sm:$0xff] }
0x334d   : > { %v7356_v50 = vmul.f32 %v12790_v39, %v7350_v49 }
0x334f   : > { %9437 = vmatprep.mubr.msk.f32.mxu0 %vm855_vm4, %v7356_v50 }
0x3352   : > { %v7538_v29 = vpop.f32.mrb[128].mxu1 }
0x3353   : > { %v7539_v38 = vadd.f32 %v7538_v29, %v7469_v5  ;;  %v9450_v36 = vpop.f32.mrb[129].mxu1 }
0x3355   : > { %v7542_v55 = vmax.f32 %v7539_v38, 0.0 }
0x3357   : > { %9468 = vmatmul.mubr.msk.f32.vlgmr.msra.gmra.mrb[130].mxu1 %vm855_vm4, %v7542_v55 }
0x3382   : > { %v9406_v61 = vpop.f32.mrb[108].mxu0 }
0x3383   : > { %v7166_v43 = vadd.f32 %v9406_v61, %v8101_v0  ;;  %v7160_v59 = vpop.f32.mrb[109].mxu0 }
0x3384   : > { %v7161_v40 = vadd.f32 %v8101_v0, %v7160_v59 }
0x3385   : > { %v7208_v42 = vmul.f32 0.044715, %v7166_v43  ;;  %v7200_v38 = vmul.f32 0.5, %v7166_v43 }
0x3386   : > { %v7207_v8 = vmul.f32 0.044715, %v7161_v40  ;;  %v9409_v44 = vpop.f32.mrb[110].mxu0 }
0x3387   : > { %v7216_v33 = vmul.f32 %v7208_v42, %v7166_v43  ;;  %v12801_v18 = vadd.f32 %v9409_v44, %v8101_v0  ;;  %v7170_v20 = vpop.f32.mrb[111].mxu0 }
0x3388   : > { %v7215_v1 = vmul.f32 %v7207_v8, %v7161_v40  ;;  %v12803_v52 = vadd.f32 %v8101_v0, %v7170_v20 }
0x3389   : > { %v7224_v30 = vmul.f32 %v7216_v33, %v7166_v43  ;;  %v7210_v2 = vmul.f32 0.044715, %v12801_v18  ;;  %v7202_v20 = vmul.f32 0.5, %v12801_v18 }
0x338a   : > { %v7223_v63 = vmul.f32 %v7215_v1, %v7161_v40  ;;  %v7209_v34 = vmul.f32 0.044715, %v12803_v52  ;;  %v9412_v13 = vpop.f32.mrb[112].mxu0 }
0x338b   : > { %v7232_v23 = vadd.f32 %v7224_v30, %v7166_v43  ;;  %v7218_v60 = vmul.f32 %v7210_v2, %v12801_v18  ;;  %v12809_v9 = vadd.f32 %v9412_v13, %v8101_v0  ;;  %v7180_v25 = vpop.f32.mrb[113].mxu0  ;;  %v7201_v30 = vmul.f32 0.5, %v12803_v52 }
0x338c   : > { %v7231_v53 = vadd.f32 %v7223_v63, %v7161_v40  ;;  %v7217_v51 = vmul.f32 %v7209_v34, %v12803_v52  ;;  %v12812_v24 = vadd.f32 %v8101_v0, %v7180_v25 }
0x338d   : > { %v7240_v45 = vmul.f32 0.7978846, %v7232_v23  ;;  %v7226_v26 = vmul.f32 %v7218_v60, %v12801_v18  ;;  %v7212_v11 = vmul.f32 0.044715, %v12809_v9  ;;  %v7204_v13 = vmul.f32 0.5, %v12809_v9 }
0x338e   : > { %v7239_v56 = vmul.f32 0.7978846, %v7231_v53  ;;  %v7225_v47 = vmul.f32 %v7217_v51, %v12803_v52  ;;  %v7211_v28 = vmul.f32 0.044715, %v12812_v24  ;;  %v9415_v15 = vpop.f32.mrb[114].mxu0 }
0x338f   : > { %10404 = vtanh.f32 %v7240_v45  ;;  %v7234_v62 = vadd.f32 %v7226_v26, %v12801_v18  ;;  %v7220_v19 = vmul.f32 %v7212_v11, %v12809_v9  ;;  %v7196_v6 = vadd.f32 %v9415_v15, %v8101_v0  ;;  %v7190_v37 = vpop.f32.mrb[115].mxu0 }
0x3390   : > { %10406 = vtanh.f32 %v7239_v56  ;;  %v7233_v14 = vadd.f32 %v7225_v47, %v12803_v52  ;;  %v7219_v46 = vmul.f32 %v7211_v28, %v12812_v24  ;;  %v7191_v12 = vadd.f32 %v8101_v0, %v7190_v37 }
0x3391   : > { %v7242_v31 = vmul.f32 0.7978846, %v7234_v62  ;;  %v7228_v10 = vmul.f32 %v7220_v19, %v12809_v9  ;;  %v7214_v7 = vmul.f32 0.044715, %v7196_v6  ;;  %v7199_v0 = vmul.f32 0.5, %v7161_v40  ;;  %v7627_v19 = vld [vmem:[%s12909_s3 + $0x598] sm:$0xff] }
0x3392   : > { %v7241_v41 = vmul.f32 0.7978846, %v7233_v14  ;;  %v7227_v17 = vmul.f32 %v7219_v46, %v12812_v24  ;;  %v7213_v58 = vmul.f32 0.044715, %v7191_v12  ;;  %v7203_v18 = vmul.f32 0.5, %v12812_v24  ;;  %v7626_v14 = vld [vmem:[%s12909_s3 + $0x590] sm:$0xff] }
0x3393   : > { %10408 = vtanh.f32 %v7242_v31  ;;  %v7236_v16 = vadd.f32 %v7228_v10, %v12809_v9  ;;  %v7222_v4 = vmul.f32 %v7214_v7, %v7196_v6  ;;  %v7206_v56 = vmul.f32 0.5, %v7196_v6  ;;  %v7628_v46 = vld [vmem:[%s12909_s3 + $0x5a0] sm:$0xff]  ;;  %v7631_v10 = vld [vmem:[%s12909_s3 + $0x5b8] sm:$0xff] }
0x3394   : > { %10410 = vtanh.f32 %v7241_v41  ;;  %v7235_v22 = vadd.f32 %v7227_v17, %v12812_v24  ;;  %v7221_v48 = vmul.f32 %v7213_v58, %v7191_v12  ;;  %v7205_v62 = vmul.f32 0.5, %v7191_v12  ;;  %v7632_v17 = vld [vmem:[%s12909_s3 + $0x5c0] sm:$0xff] }
0x3395   : > { %v7244_v54 = vmul.f32 0.7978846, %v7236_v16  ;;  %v7230_v27 = vmul.f32 %v7222_v4, %v7196_v6  ;;  %v9938_v37 = vpack.c.bf16 %v7627_v19, %v7626_v14  ;;  %v7551_v16 = vld [vmem:[%s12909_s3 + $0x588] sm:$0x1] }
0x3396   : > { %v7243_v21 = vmul.f32 0.7978846, %v7235_v22  ;;  %v7229_v35 = vmul.f32 %v7221_v48, %v7191_v12 }
0x3397   : > { %10412 = vtanh.f32 %v7244_v54  ;;  %v7238_v49 = vadd.f32 %v7230_v27, %v7196_v6  ;;  %v7351_v6 = vld [vmem:[%s12909_s3 + $0x4a0] sm:$0xff] }
0x3398   : > { %10414 = vtanh.f32 %v7243_v21  ;;  %v7237_v50 = vadd.f32 %v7229_v35, %v7191_v12  ;;  %v7357_v31 = vmul.f32 %v12790_v39, %v7351_v6  ;;  %v7629_v12 = vld [vmem:[%s12909_s3 + $0x5a8] sm:$0xff]  ;;  %v7630_v39 = vld [vmem:[%s12909_s3 + $0x5b0] sm:$0xff] }
0x3399   : > { %v10405_v57 = vpop.eup %10404  ;;  %v7246_v29 = vmul.f32 0.7978846, %v7238_v49  ;;  %v9941_v41 = vpack.c.bf16 %v7629_v12, %v7628_v46  ;;  %v9944_v7 = vpack.c.bf16 %v7631_v10, %v7630_v39  ;;  %v7634_v21 = vld [vmem:[%s12909_s3 + $0x5d0] sm:$0x1] }
0x339a   : > { %v10407_v5 = vpop.eup %10406  ;;  %v7256_v36 = vadd.f32 1.0, %v10405_v57  ;;  %v7245_v55 = vmul.f32 0.7978846, %v7237_v50 }
0x339b   : > { %v7255_v61 = vadd.f32 1.0, %v10407_v5  ;;  %10416 = vtanh.f32 %v7246_v29 }
0x339c   : > { %v7264_v59 = vmul.f32 %v7256_v36, %v7200_v38  ;;  %10418 = vtanh.f32 %v7245_v55 }
0x339d   : > { %v10409_v42 = vpop.eup %10408  ;;  %v7263_v8 = vmul.f32 %v7255_v61, %v7199_v0 }
0x339e   : > { %v10411_v44 = vpop.eup %10410  ;;  %v7258_v1 = vadd.f32 1.0, %v10409_v42 }
0x339f   : > { %v9895_v43 = vpack.c.bf16 %v7264_v59, %v7263_v8  ;;  %v7257_v40 = vadd.f32 1.0, %v10411_v44 }
0x33a0   : > { %v7266_v2 = vmul.f32 %v7258_v1, %v7202_v20 }
0x33a1   : > { %9897 = vmatprep.subr.msk.bf16.mxu0 %vm12827_vm15, %v9895_v43  ;;  %v7265_v63 = vmul.f32 %v7257_v40, %v7201_v30  ;;  %v10413_v34 = vpop.eup %10412 }
0x33a2   : > { %9900 = vmatpush3.bf16.xpose.msk.msra.mxu0 %vm12827_vm15, %v9895_v43  ;;  %v10415_v23 = vpop.eup %10414  ;;  %v7260_v53 = vadd.f32 1.0, %v10413_v34 }
0x33a3   : > { %v9901_v60 = vpack.c.bf16 %v7266_v2, %v7265_v63  ;;  %v7259_v51 = vadd.f32 1.0, %v10415_v23 }
0x33a4   : > { %v7268_v52 = vmul.f32 %v7260_v53, %v7204_v13 }
0x33a5   : > { %9903 = vmatprep.subr.msk.bf16.mxu0 %vm12827_vm15, %v9901_v60  ;;  %v10417_v25 = vpop.eup %10416  ;;  %v7267_v45 = vmul.f32 %v7259_v51, %v7203_v18 }
0x33a6   : > { %v10419_v26 = vpop.eup %10418  ;;  %v7262_v47 = vadd.f32 1.0, %v10417_v25 }
0x33a7   : > { %v9907_v11 = vpack.c.bf16 %v7268_v52, %v7267_v45  ;;  %v7261_v28 = vadd.f32 1.0, %v10419_v26 }
0x33a8   : > { %v7270_v15 = vmul.f32 %v7262_v47, %v7206_v56 }
0x33a9   : > { %v7269_v9 = vmul.f32 %v7261_v28, %v7205_v62 }
0x33aa   : > { %9906 = vmatpush3.bf16.xpose.msk.msra.mxu0 %vm12827_vm15, %v9901_v60 }
0x33ab   : > { %9909 = vmatprep.subr.msk.bf16.mxu0 %vm12827_vm15, %v9907_v11  ;;  %v9913_v24 = vpack.c.bf16 %v7270_v15, %v7269_v9 }
0x33b2   : > { %9912 = vmatpush3.bf16.xpose.msk.msra.mxu0 %vm12827_vm15, %v9907_v11 }
0x33b3   : > { %9915 = vmatprep.subr.msk.bf16.mxu0 %vm12827_vm15, %v9913_v24 }
0x33ba   : > { %9918 = vmatpush3.bf16.xpose.msk.msra.mxu0 %vm12827_vm15, %v9913_v24 }
0x33bb   : > { %9937 = vmatprep.subr.bf16.mxu0 %v10443_v32 }
0x33c1   : > { %9438 = vmatmul.mubr.msk.f32.vlgmr.msra.gmra.mrb[116].mxu0 %vm855_vm4, %v7357_v31 }
0x33c2   : > { %9939 = vmatpush3.bf16.msra.mxu0 %v9938_v37  ;;  %9486 = vmatprep.mubr.msk.f32.mxu0 %vm10445_vm5, %v10444_v3  ;;  %v7633_v3 = vld [vmem:[%s12909_s3 + $0x5c8] sm:$0xff] }
0x33c3   : > { %9940 = vmatprep.subr.bf16.mxu0 %v10443_v32  ;;  %v9947_v58 = vpack.c.bf16 %v7633_v3, %v7632_v17 }
0x33c6   : > { %9942 = vmatpush3.bf16.msra.mxu0 %v9941_v41 }
0x33c7   : > { %9943 = vmatprep.subr.bf16.mxu0 %v10443_v32 }
0x33ca   : > { %9945 = vmatpush3.bf16.msra.mxu0 %v9944_v7 }
0x33cb   : > { %9946 = vmatprep.subr.bf16.mxu0 %v10443_v32 }
0x33ce   : > { %9948 = vmatpush3.bf16.msra.mxu0 %v9947_v58 }
0x342a   : > { %v7621_v4 = vpop.f32.mrb[130].mxu1 }
0x342b   : > { %v7622_v22 = vadd.f32 %v7621_v4, %v7551_v16  ;;  %v9469_v48 = vpop.f32.mrb[131].mxu1 }
0x342d   : > { %v7625_v54 = vmax.f32 %v7622_v22, 0.0 }
0x342f   : > { %9487 = vmatmul.mubr.msk.f32.vlgmr.msra.gmra.mrb[118].mxu0 %vm855_vm4, %v7625_v54 }
0x3494   : > { %v9439_v27 = vpop.f32.mrb[116].mxu0 }
0x3495   : > { %7464 = vst.msk [vmem:[%s247_s21 + $0x8] sm:$0xff] %vm855_vm4, %v9439_v27  ;;  %v7454_v32 = vpop.f32.mrb[117].mxu0 }
0x3496   : > { %7463 = vst.msk [vmem:[%s247_s21] sm:$0xff] %vm855_vm4, %v7454_v32 }
0x3502   : > { %v7704_v35 = vpop.f32.mrb[118].mxu0 }
0x3503   : > { %v7705_v49 = vadd.f32 %v7704_v35, %v7634_v21  ;;  %v9488_v57 = vpop.f32.mrb[119].mxu0 }
0x3505   : > { %7709 = vst.msk [vmem:[%s250_s11] sm:$0x1] %vm7708_vm0, %v7705_v49 }
0x3506 PF: > { %s16_s18 = sadd.s32 1, %s10435_s18  }
0x3507   : > { %p13_p4 = scmp.ge.s32.totalorder %s16_s18, 4  }
0x3509   :  { %15 = sbr.rel (!%p13_p4) target bundleno = 1 (0x1), region = 81 }

</bundles_post_ra>
